<compile_context>
chip_gen: v7x
topology: tpu7x:2x2x1
jax: 0.10.0
libtpu: 0.0.40
codegen_flags: <defaults>
</compile_context>

<pallas_src>
import functools
import math

import jax
import jax.numpy as jnp
from jax.experimental import pallas as pl
from jax.experimental.pallas import tpu as pltpu

# Hyperparameters implied by HParams.Transformer (small synthetic sizes).
D_MODEL = 32
NHEAD = 4
DIM_FEEDFORWARD = 64
NUM_ENCODER_LAYERS = 2
NUM_DECODER_LAYERS = 2
LN_EPS = 1e-5                      # torch LayerNorm default
_INV_SQRT2 = 0.7071067811865476
_NEG_BIG = -1.0e30                 # Python float only (never captured as an array)


def _vmem_spec():
    return pl.BlockSpec(memory_space=pltpu.MemorySpace.VMEM)


# ---------------------------------------------------------------------------
# Build-time Mosaic-lowering probe (resolved once, before the main kernel is
# built — never on the first forward pass).
# ---------------------------------------------------------------------------
_PROBE_CACHE = {}


def _probe_compiles(name, body, arg_shapes, out_shape):
    if name not in _PROBE_CACHE:
        try:
            args = [jnp.zeros(s, jnp.float32) for s in arg_shapes]
            jax.jit(pl.pallas_call(
                body,
                out_shape=jax.ShapeDtypeStruct(out_shape, jnp.float32),
                in_specs=[_vmem_spec() for _ in arg_shapes],
                out_specs=_vmem_spec(),
            )).lower(*args).compile()
            _PROBE_CACHE[name] = True
        except Exception:
            _PROBE_CACHE[name] = False
    return _PROBE_CACHE[name]


def _erf_probe_kernel(x_ref, o_ref):
    o_ref[...] = jax.lax.erf(x_ref[...])


# ---------------------------------------------------------------------------
# Exact GELU (erf-based, like PyTorch F.gelu default)
# ---------------------------------------------------------------------------
def _gelu_erf(x):
    return 0.5 * x * (1.0 + jax.lax.erf(x * _INV_SQRT2))


def _gelu_erf_poly(x):
    # Fallback: erf via Abramowitz–Stegun 7.1.26 (|err| < 1.5e-7), VPU + 1 exp.
    z = x * _INV_SQRT2
    az = jnp.abs(z)
    t = 1.0 / (1.0 + 0.3275911 * az)
    poly = t * (0.254829592 + t * (-0.284496736 + t * (1.421413741
             + t * (-1.453152027 + t * 1.061405429))))
    erf_abs = 1.0 - poly * jnp.exp(-az * az)
    erf_z = jnp.where(z < 0.0, -erf_abs, erf_abs)
    return 0.5 * x * (1.0 + erf_z)


# ---------------------------------------------------------------------------
# In-kernel building blocks (inputs are values / trees of VMEM refs)
# ---------------------------------------------------------------------------
def _layer_norm(x, p):
    mean = jnp.mean(x, axis=-1, keepdims=True)
    c = x - mean
    var = jnp.mean(c * c, axis=-1, keepdims=True)
    return c * jax.lax.rsqrt(var + LN_EPS) * p["g"][...] + p["b"][...]


def _attention(xq, xkv, mask, p, *, nhead):
    """Multi-head attention on batch-folded (B*S, D) activations.

    `mask` is an additive (B*S, B*S) score bias (0 inside the allowed block,
    -1e30 elsewhere) that enforces per-batch block-diagonal attention and,
    for decoder self-attention, causality.
    """
    d = xq.shape[-1]
    hd = d // nhead
    scale = 1.0 / math.sqrt(hd)

    # Full K projection once; single transpose per attention (not per head).
    k = jnp.dot(xkv, p["wk"][...], preferred_element_type=jnp.float32) + p["bk"][...]
    kT = k.T                                           # (D, N)
    wo = p["wo"][...]                                  # (D, D)

    out = None
    for h in range(nhead):                             # static unroll
        # Per-head projection weights -> no lane slicing of packed results.
        qh = jnp.dot(xq, p["wq"][h], preferred_element_type=jnp.float32) + p["bq"][h]
        vh = jnp.dot(xkv, p["wv"][h], preferred_element_type=jnp.float32) + p["bv"][h]
        kTh = kT[h * hd:(h + 1) * hd, :]               # 8-aligned sublane slice
        s = jnp.dot(qh, kTh, preferred_element_type=jnp.float32) * scale + mask
        s = s - jnp.max(s, axis=-1, keepdims=True)
        e = jnp.exp(s)
        denom = jnp.sum(e, axis=-1, keepdims=True)
        # Normalize after the PV matmul; reciprocal runs on the EUP slot.
        oh = (jnp.dot(e, vh, preferred_element_type=jnp.float32)
              * pl.reciprocal(denom, approx=True))
        # concat(heads) @ Wo decomposed into per-head partial matmuls.
        part = jnp.dot(oh, wo[h * hd:(h + 1) * hd, :],
                       preferred_element_type=jnp.float32)
        out = part if out is None else out + part
    return out + p["bo"][...]


def _ffn(x, p, gelu):
    h = gelu(jnp.dot(x, p["w1"][...], preferred_element_type=jnp.float32) + p["b1"][...])
    return jnp.dot(h, p["w2"][...], preferred_element_type=jnp.float32) + p["b2"][...]


def _encoder_layer(x, p, mask_nc, *, nhead, gelu):
    sa = _attention(x, x, mask_nc, p["self_attn"], nhead=nhead)
    x = _layer_norm(x + sa, p["ln1"])                  # fused add + LN (post-norm)
    x = _layer_norm(x + _ffn(x, p["ffn"], gelu), p["ln2"])
    return x


def _decoder_layer(y, memory, p, mask_c, mask_nc, *, nhead, gelu):
    sa = _attention(y, y, mask_c, p["self_attn"], nhead=nhead)
    y = _layer_norm(y + sa, p["ln1"])
    ca = _attention(y, memory, mask_nc, p["cross_attn"], nhead=nhead)
    y = _layer_norm(y + ca, p["ln2"])
    y = _layer_norm(y + _ffn(y, p["ffn"], gelu), p["ln3"])
    return y


# ---------------------------------------------------------------------------
# One fused, grid-less kernel for the whole model
# ---------------------------------------------------------------------------
def _transformer_kernel(*refs, treedef, n_leaves, nhead, gelu, include_encoder):
    seq_a_ref, tgt_ref, mask_nc_ref, mask_c_ref = refs[:4]
    param_refs = refs[4:4 + n_leaves]
    out_refs = refs[4 + n_leaves:]

    # Rebuild the params pytree (of VMEM refs) from the flat ref list.
    p = jax.tree_util.tree_unflatten(treedef, param_refs)

    mask_nc = mask_nc_ref[...]
    mask_c = mask_c_ref[...]

    a = seq_a_ref[...]                     # (B*S, D): src tokens or external memory
    if include_encoder:
        x = a
        for lp in p["encoder_layers"]:
            x = _encoder_layer(x, lp, mask_nc, nhead=nhead, gelu=gelu)
        memory = _layer_norm(x, p["encoder_norm"])
        out_refs[1][...] = memory
    else:
        memory = a                         # external memory: no HBM write-back

    y = tgt_ref[...]
    for lp in p["decoder_layers"]:
        y = _decoder_layer(y, memory, lp, mask_c, mask_nc, nhead=nhead, gelu=gelu)
    out_refs[0][...] = _layer_norm(y, p["decoder_norm"])


def build_transformer_forward(params, batch, seq_len, d_model, nhead, *,
                              include_encoder=True):
    flat, treedef = jax.tree_util.tree_flatten(params)
    n_leaves = len(flat)
    m = batch * seq_len

    # Resolve whether lax.erf lowers on this Mosaic build; otherwise fall back
    # to a polynomial erf (|err| < 1.5e-7).
    gelu = (_gelu_erf
            if _probe_compiles("erf", _erf_probe_kernel, [(8, 128)], (8, 128))
            else _gelu_erf_poly)

    # Host-precomputed additive score masks for the batch-folded attention:
    # block-diagonal over batch items; decoder self-attention also causal.
    idx = jnp.arange(m, dtype=jnp.int32)
    bid = idx // seq_len
    pos = idx % seq_len
    same_batch = bid[:, None] == bid[None, :]
    causal_keep = same_batch & (pos[None, :] <= pos[:, None])
    mask_nc = jnp.where(same_batch, 0.0, _NEG_BIG).astype(jnp.float32)
    mask_c = jnp.where(causal_keep, 0.0, _NEG_BIG).astype(jnp.float32)

    kernel = functools.partial(
        _transformer_kernel, treedef=treedef, n_leaves=n_leaves, nhead=nhead,
        gelu=gelu, include_encoder=include_encoder)

    n_out = 2 if include_encoder else 1
    out_shape = tuple(jax.ShapeDtypeStruct((m, d_model), jnp.float32)
                      for _ in range(n_out))
    out_specs = tuple(_vmem_spec() for _ in range(n_out))

    call = pl.pallas_call(
        kernel,
        out_shape=out_shape,
        in_specs=[_vmem_spec() for _ in range(4 + n_leaves)],
        out_specs=out_specs,
    )

    @jax.jit
    def forward(p, seq_a, tgt_seq):
        # Fold batch into the sublane axis outside the kernel (free reshape).
        a2 = seq_a.reshape(m, d_model)
        t2 = tgt_seq.reshape(m, d_model)
        outs = call(a2, t2, mask_nc, mask_c, *jax.tree_util.tree_leaves(p))
        dec = outs[0].reshape(batch, seq_len, d_model)
        if include_encoder:
            mem = outs[1].reshape(batch, seq_len, d_model)
            return dec, mem
        return dec

    return forward


class PallasTransformer:
    """Pallas counterpart of the PyTorch Transformer module (eval mode)."""

    def __init__(self, params, batch, seq_len, d_model=D_MODEL, nhead=NHEAD):
        self.params = params
        self._dims = (batch, seq_len, d_model, nhead)
        self._enc_dec = build_transformer_forward(
            params, batch, seq_len, d_model, nhead, include_encoder=True)
        self._dec_only = None

    def __call__(self, src_seq, tgt_seq, memory=None):
        if memory is None:
            return self._enc_dec(self.params, src_seq, tgt_seq)
        b, s, d, nh = self._dims
        sub = {"decoder_layers": self.params["decoder_layers"],
               "decoder_norm": self.params["decoder_norm"]}
        if self._dec_only is None:
            self._dec_only = build_transformer_forward(
                sub, b, s, d, nh, include_encoder=False)
        dec = self._dec_only(sub, memory, tgt_seq)
        return dec, memory                 # pass-through memory, no kernel write


# ---------------------------------------------------------------------------
# Deterministic synthetic parameter init (shapes follow nn.Transformer layers;
# Q/V projections stored per head, K/O as full (D, D) matrices).
# ---------------------------------------------------------------------------
def _dense(key, shape):
    return 0.02 * jax.random.normal(key, shape, jnp.float32)


def _attn_params(key, d, nhead):
    hd = d // nhead
    k = jax.random.split(key, 8)
    return dict(wq=_dense(k[0], (nhead, d, hd)), bq=_dense(k[1], (nhead, 1, hd)),
                wk=_dense(k[2], (d, d)),         bk=_dense(k[3], (1, d)),
                wv=_dense(k[4], (nhead, d, hd)), bv=_dense(k[5], (nhead, 1, hd)),
                wo=_dense(k[6], (d, d)),         bo=_dense(k[7], (1, d)))


def _ln_params(d):
    return dict(g=jnp.ones((1, d), jnp.float32), b=jnp.zeros((1, d), jnp.float32))


def _ffn_params(key, d, dff):
    k = jax.random.split(key, 4)
    return dict(w1=_dense(k[0], (d, dff)), b1=_dense(k[1], (1, dff)),
                w2=_dense(k[2], (dff, d)), b2=_dense(k[3], (1, d)))


def init_params(key, d_model, nhead, dim_feedforward,
                num_encoder_layers, num_decoder_layers):
    keys = jax.random.split(key, num_encoder_layers + num_decoder_layers)
    enc = []
    for i in range(num_encoder_layers):
        k = jax.random.split(keys[i], 2)
        enc.append(dict(self_attn=_attn_params(k[0], d_model, nhead),
                        ffn=_ffn_params(k[1], d_model, dim_feedforward),
                        ln1=_ln_params(d_model), ln2=_ln_params(d_model)))
    dec = []
    for i in range(num_decoder_layers):
        k = jax.random.split(keys[num_encoder_layers + i], 3)
        dec.append(dict(self_attn=_attn_params(k[0], d_model, nhead),
                        cross_attn=_attn_params(k[1], d_model, nhead),
                        ffn=_ffn_params(k[2], d_model, dim_feedforward),
                        ln1=_ln_params(d_model), ln2=_ln_params(d_model),
                        ln3=_ln_params(d_model)))
    return dict(encoder_layers=enc, decoder_layers=dec,
                encoder_norm=_ln_params(d_model), decoder_norm=_ln_params(d_model))


if __name__ == "__main__":
    key = jax.random.PRNGKey(0)
    k_params, k_src, k_tgt = jax.random.split(key, 3)

    B, S = 2, 8  # batch, num_pieces
    params = init_params(k_params, D_MODEL, NHEAD, DIM_FEEDFORWARD,
                         NUM_ENCODER_LAYERS, NUM_DECODER_LAYERS)
    src_seq = jax.random.normal(k_src, (B, S, D_MODEL), jnp.float32)
    tgt_seq = jax.random.normal(k_tgt, (B, S, D_MODEL), jnp.float32)

    model = PallasTransformer(params, batch=B, seq_len=S,
                              d_model=D_MODEL, nhead=NHEAD)
    decoder_output, encoder_memory = model(src_seq, tgt_seq)
    jax.block_until_ready((decoder_output, encoder_memory))

    assert decoder_output.shape == (B, S, D_MODEL)
    assert encoder_memory.shape == (B, S, D_MODEL)
    assert decoder_output.dtype == jnp.float32 and encoder_memory.dtype == jnp.float32
    assert bool(jnp.all(jnp.isfinite(decoder_output)))
    assert bool(jnp.all(jnp.isfinite(encoder_memory)))
    print("KERNEL_OK")
</pallas_src>

<mosaic_0001>
module attributes {stable_mosaic.version = 11 : i64} {
  func.func @_transformer_kernel(%arg0: memref<16x32xf32, #tpu.memory_space<vmem>>, %arg1: memref<16x32xf32, #tpu.memory_space<vmem>>, %arg2: memref<16x16xf32, #tpu.memory_space<vmem>>, %arg3: memref<16x16xf32, #tpu.memory_space<vmem>>, %arg4: memref<1x32xf32, #tpu.memory_space<vmem>>, %arg5: memref<1x32xf32, #tpu.memory_space<vmem>>, %arg6: memref<4x1x8xf32, #tpu.memory_space<vmem>>, %arg7: memref<4x1x8xf32, #tpu.memory_space<vmem>>, %arg8: memref<32x32xf32, #tpu.memory_space<vmem>>, %arg9: memref<32x32xf32, #tpu.memory_space<vmem>>, %arg10: memref<4x32x8xf32, #tpu.memory_space<vmem>>, %arg11: memref<4x32x8xf32, #tpu.memory_space<vmem>>, %arg12: memref<1x64xf32, #tpu.memory_space<vmem>>, %arg13: memref<1x32xf32, #tpu.memory_space<vmem>>, %arg14: memref<32x64xf32, #tpu.memory_space<vmem>>, %arg15: memref<64x32xf32, #tpu.memory_space<vmem>>, %arg16: memref<1x32xf32, #tpu.memory_space<vmem>>, %arg17: memref<1x32xf32, #tpu.memory_space<vmem>>, %arg18: memref<1x32xf32, #tpu.memory_space<vmem>>, %arg19: memref<1x32xf32, #tpu.memory_space<vmem>>, %arg20: memref<1x32xf32, #tpu.memory_space<vmem>>, %arg21: memref<1x32xf32, #tpu.memory_space<vmem>>, %arg22: memref<1x32xf32, #tpu.memory_space<vmem>>, %arg23: memref<1x32xf32, #tpu.memory_space<vmem>>, %arg24: memref<4x1x8xf32, #tpu.memory_space<vmem>>, %arg25: memref<4x1x8xf32, #tpu.memory_space<vmem>>, %arg26: memref<32x32xf32, #tpu.memory_space<vmem>>, %arg27: memref<32x32xf32, #tpu.memory_space<vmem>>, %arg28: memref<4x32x8xf32, #tpu.memory_space<vmem>>, %arg29: memref<4x32x8xf32, #tpu.memory_space<vmem>>, %arg30: memref<1x32xf32, #tpu.memory_space<vmem>>, %arg31: memref<1x32xf32, #tpu.memory_space<vmem>>, %arg32: memref<4x1x8xf32, #tpu.memory_space<vmem>>, %arg33: memref<4x1x8xf32, #tpu.memory_space<vmem>>, %arg34: memref<32x32xf32, #tpu.memory_space<vmem>>, %arg35: memref<32x32xf32, #tpu.memory_space<vmem>>, %arg36: memref<4x32x8xf32, #tpu.memory_space<vmem>>, %arg37: memref<4x32x8xf32, #tpu.memory_space<vmem>>, %arg38: memref<1x64xf32, #tpu.memory_space<vmem>>, %arg39: memref<1x32xf32, #tpu.memory_space<vmem>>, %arg40: memref<32x64xf32, #tpu.memory_space<vmem>>, %arg41: memref<64x32xf32, #tpu.memory_space<vmem>>, %arg42: memref<1x32xf32, #tpu.memory_space<vmem>>, %arg43: memref<1x32xf32, #tpu.memory_space<vmem>>, %arg44: memref<1x32xf32, #tpu.memory_space<vmem>>, %arg45: memref<1x32xf32, #tpu.memory_space<vmem>>, %arg46: memref<1x32xf32, #tpu.memory_space<vmem>>, %arg47: memref<1x32xf32, #tpu.memory_space<vmem>>, %arg48: memref<1x32xf32, #tpu.memory_space<vmem>>, %arg49: memref<1x32xf32, #tpu.memory_space<vmem>>, %arg50: memref<4x1x8xf32, #tpu.memory_space<vmem>>, %arg51: memref<4x1x8xf32, #tpu.memory_space<vmem>>, %arg52: memref<32x32xf32, #tpu.memory_space<vmem>>, %arg53: memref<32x32xf32, #tpu.memory_space<vmem>>, %arg54: memref<4x32x8xf32, #tpu.memory_space<vmem>>, %arg55: memref<4x32x8xf32, #tpu.memory_space<vmem>>, %arg56: memref<1x32xf32, #tpu.memory_space<vmem>>, %arg57: memref<1x32xf32, #tpu.memory_space<vmem>>, %arg58: memref<1x64xf32, #tpu.memory_space<vmem>>, %arg59: memref<1x32xf32, #tpu.memory_space<vmem>>, %arg60: memref<32x64xf32, #tpu.memory_space<vmem>>, %arg61: memref<64x32xf32, #tpu.memory_space<vmem>>, %arg62: memref<1x32xf32, #tpu.memory_space<vmem>>, %arg63: memref<1x32xf32, #tpu.memory_space<vmem>>, %arg64: memref<1x32xf32, #tpu.memory_space<vmem>>, %arg65: memref<1x32xf32, #tpu.memory_space<vmem>>, %arg66: memref<1x32xf32, #tpu.memory_space<vmem>>, %arg67: memref<1x32xf32, #tpu.memory_space<vmem>>, %arg68: memref<4x1x8xf32, #tpu.memory_space<vmem>>, %arg69: memref<4x1x8xf32, #tpu.memory_space<vmem>>, %arg70: memref<32x32xf32, #tpu.memory_space<vmem>>, %arg71: memref<32x32xf32, #tpu.memory_space<vmem>>, %arg72: memref<4x32x8xf32, #tpu.memory_space<vmem>>, %arg73: memref<4x32x8xf32, #tpu.memory_space<vmem>>, %arg74: memref<1x64xf32, #tpu.memory_space<vmem>>, %arg75: memref<1x32xf32, #tpu.memory_space<vmem>>, %arg76: memref<32x64xf32, #tpu.memory_space<vmem>>, %arg77: memref<64x32xf32, #tpu.memory_space<vmem>>, %arg78: memref<1x32xf32, #tpu.memory_space<vmem>>, %arg79: memref<1x32xf32, #tpu.memory_space<vmem>>, %arg80: memref<1x32xf32, #tpu.memory_space<vmem>>, %arg81: memref<1x32xf32, #tpu.memory_space<vmem>>, %arg82: memref<1x32xf32, #tpu.memory_space<vmem>>, %arg83: memref<1x32xf32, #tpu.memory_space<vmem>>, %arg84: memref<4x1x8xf32, #tpu.memory_space<vmem>>, %arg85: memref<4x1x8xf32, #tpu.memory_space<vmem>>, %arg86: memref<32x32xf32, #tpu.memory_space<vmem>>, %arg87: memref<32x32xf32, #tpu.memory_space<vmem>>, %arg88: memref<4x32x8xf32, #tpu.memory_space<vmem>>, %arg89: memref<4x32x8xf32, #tpu.memory_space<vmem>>, %arg90: memref<1x32xf32, #tpu.memory_space<vmem>>, %arg91: memref<1x32xf32, #tpu.memory_space<vmem>>, %arg92: memref<16x32xf32, #tpu.memory_space<vmem>>, %arg93: memref<16x32xf32, #tpu.memory_space<vmem>>) attributes {dimension_semantics = [], scalar_prefetch = 0 : i64, scratch_operands = 0 : i64, tpu.core_type = #tpu.core_type<tc>} {
    %c0 = arith.constant 0 : index
    %c0_0 = arith.constant 0 : index
    %0 = vector.load %arg2[%c0, %c0_0] : memref<16x16xf32, #tpu.memory_space<vmem>>, vector<16x16xf32>
    %c0_1 = arith.constant 0 : index
    %c0_2 = arith.constant 0 : index
    %1 = vector.load %arg3[%c0_1, %c0_2] : memref<16x16xf32, #tpu.memory_space<vmem>>, vector<16x16xf32>
    %c0_3 = arith.constant 0 : index
    %c0_4 = arith.constant 0 : index
    %2 = vector.load %arg0[%c0_3, %c0_4] : memref<16x32xf32, #tpu.memory_space<vmem>>, vector<16x32xf32>
    %c0_5 = arith.constant 0 : index
    %c0_6 = arith.constant 0 : index
    %3 = vector.load %arg70[%c0_5, %c0_6] : memref<32x32xf32, #tpu.memory_space<vmem>>, vector<32x32xf32>
    %cst = arith.constant dense<0.000000e+00> : vector<16x32xf32>
    %4 = tpu.matmul %2, %3, %cst {dimension_numbers = #tpu.dot_dimension_numbers<[1], [0], [0], [1], [0, 0, 1, 1], [], []>} : vector<16x32xf32>, vector<32x32xf32>, vector<16x32xf32> -> vector<16x32xf32>
    %c0_7 = arith.constant 0 : index
    %c0_8 = arith.constant 0 : index
    %5 = vector.load %arg66[%c0_7, %c0_8] : memref<1x32xf32, #tpu.memory_space<vmem>>, vector<1x32xf32>
    %6 = vector.broadcast %5 : vector<1x32xf32> to vector<16x32xf32>
    %7 = arith.addf %4, %6 : vector<16x32xf32>
    %8 = tpu.transpose %7, [1, 0] : vector<16x32xf32> -> vector<32x16xf32>
    %c0_9 = arith.constant 0 : index
    %c0_10 = arith.constant 0 : index
    %9 = vector.load %arg71[%c0_9, %c0_10] : memref<32x32xf32, #tpu.memory_space<vmem>>, vector<32x32xf32>
    %c0_11 = arith.constant 0 : index
    %c0_12 = arith.constant 0 : index
    %c0_13 = arith.constant 0 : index
    %10 = vector.load %arg72[%c0_11, %c0_12, %c0_13] : memref<4x32x8xf32, #tpu.memory_space<vmem>>, vector<1x32x8xf32>
    %11 = vector.shape_cast %10 : vector<1x32x8xf32> to vector<32x8xf32>
    %cst_14 = arith.constant dense<0.000000e+00> : vector<16x8xf32>
    %12 = tpu.matmul %2, %11, %cst_14 {dimension_numbers = #tpu.dot_dimension_numbers<[1], [0], [0], [1], [0, 0, 1, 1], [], []>} : vector<16x32xf32>, vector<32x8xf32>, vector<16x8xf32> -> vector<16x8xf32>
    %c0_15 = arith.constant 0 : index
    %c0_16 = arith.constant 0 : index
    %c0_17 = arith.constant 0 : index
    %13 = vector.load %arg68[%c0_15, %c0_16, %c0_17] : memref<4x1x8xf32, #tpu.memory_space<vmem>>, vector<1x1x8xf32>
    %14 = vector.shape_cast %13 : vector<1x1x8xf32> to vector<1x8xf32>
    %15 = vector.broadcast %14 : vector<1x8xf32> to vector<16x8xf32>
    %16 = arith.addf %12, %15 : vector<16x8xf32>
    %c0_18 = arith.constant 0 : index
    %c0_19 = arith.constant 0 : index
    %c0_20 = arith.constant 0 : index
    %17 = vector.load %arg73[%c0_18, %c0_19, %c0_20] : memref<4x32x8xf32, #tpu.memory_space<vmem>>, vector<1x32x8xf32>
    %18 = vector.shape_cast %17 : vector<1x32x8xf32> to vector<32x8xf32>
    %cst_21 = arith.constant dense<0.000000e+00> : vector<16x8xf32>
    %19 = tpu.matmul %2, %18, %cst_21 {dimension_numbers = #tpu.dot_dimension_numbers<[1], [0], [0], [1], [0, 0, 1, 1], [], []>} : vector<16x32xf32>, vector<32x8xf32>, vector<16x8xf32> -> vector<16x8xf32>
    %c0_22 = arith.constant 0 : index
    %c0_23 = arith.constant 0 : index
    %c0_24 = arith.constant 0 : index
    %20 = vector.load %arg69[%c0_22, %c0_23, %c0_24] : memref<4x1x8xf32, #tpu.memory_space<vmem>>, vector<1x1x8xf32>
    %21 = vector.shape_cast %20 : vector<1x1x8xf32> to vector<1x8xf32>
    %22 = vector.broadcast %21 : vector<1x8xf32> to vector<16x8xf32>
    %23 = arith.addf %19, %22 : vector<16x8xf32>
    %24 = vector.extract_strided_slice %8 {offsets = [0, 0], sizes = [8, 16], strides = [1, 1]} : vector<32x16xf32> to vector<8x16xf32>
    %cst_25 = arith.constant dense<0.000000e+00> : vector<16x16xf32>
    %25 = tpu.matmul %16, %24, %cst_25 {dimension_numbers = #tpu.dot_dimension_numbers<[1], [0], [0], [1], [0, 0, 1, 1], [], []>} : vector<16x8xf32>, vector<8x16xf32>, vector<16x16xf32> -> vector<16x16xf32>
    %cst_26 = arith.constant 0.353553385 : f32
    %26 = vector.broadcast %cst_26 : f32 to vector<16x16xf32>
    %27 = arith.mulf %25, %26 : vector<16x16xf32>
    %28 = arith.addf %27, %0 : vector<16x16xf32>
    %cst_27 = arith.constant dense<0xFF800000> : vector<16xf32>
    %29 = vector.multi_reduction <maximumf>, %28, %cst_27 [1] : vector<16x16xf32> to vector<16xf32>
    %30 = vector.shape_cast %29 : vector<16xf32> to vector<16x1xf32>
    %31 = vector.broadcast %30 : vector<16x1xf32> to vector<16x16xf32>
    %32 = arith.subf %28, %31 : vector<16x16xf32>
    %33 = math.exp %32 : vector<16x16xf32>
    %cst_28 = arith.constant dense<0.000000e+00> : vector<16xf32>
    %34 = vector.multi_reduction <add>, %33, %cst_28 [1] : vector<16x16xf32> to vector<16xf32>
    %35 = vector.shape_cast %34 : vector<16xf32> to vector<16x1xf32>
    %cst_29 = arith.constant dense<0.000000e+00> : vector<16x8xf32>
    %36 = tpu.matmul %33, %23, %cst_29 {dimension_numbers = #tpu.dot_dimension_numbers<[1], [0], [0], [1], [0, 0, 1, 1], [], []>} : vector<16x16xf32>, vector<16x8xf32>, vector<16x8xf32> -> vector<16x8xf32>
    %37 = tpu.reciprocal %35 {approx = true} : vector<16x1xf32> -> vector<16x1xf32>
    %38 = vector.broadcast %37 : vector<16x1xf32> to vector<16x8xf32>
    %39 = arith.mulf %36, %38 : vector<16x8xf32>
    %40 = vector.extract_strided_slice %9 {offsets = [0, 0], sizes = [8, 32], strides = [1, 1]} : vector<32x32xf32> to vector<8x32xf32>
    %cst_30 = arith.constant dense<0.000000e+00> : vector<16x32xf32>
    %41 = tpu.matmul %39, %40, %cst_30 {dimension_numbers = #tpu.dot_dimension_numbers<[1], [0], [0], [1], [0, 0, 1, 1], [], []>} : vector<16x8xf32>, vector<8x32xf32>, vector<16x32xf32> -> vector<16x32xf32>
    %c1 = arith.constant 1 : index
    %c0_31 = arith.constant 0 : index
    %c0_32 = arith.constant 0 : index
    %42 = vector.load %arg72[%c1, %c0_31, %c0_32] : memref<4x32x8xf32, #tpu.memory_space<vmem>>, vector<1x32x8xf32>
    %43 = vector.shape_cast %42 : vector<1x32x8xf32> to vector<32x8xf32>
    %cst_33 = arith.constant dense<0.000000e+00> : vector<16x8xf32>
    %44 = tpu.matmul %2, %43, %cst_33 {dimension_numbers = #tpu.dot_dimension_numbers<[1], [0], [0], [1], [0, 0, 1, 1], [], []>} : vector<16x32xf32>, vector<32x8xf32>, vector<16x8xf32> -> vector<16x8xf32>
    %c1_34 = arith.constant 1 : index
    %c0_35 = arith.constant 0 : index
    %c0_36 = arith.constant 0 : index
    %45 = vector.load %arg68[%c1_34, %c0_35, %c0_36] : memref<4x1x8xf32, #tpu.memory_space<vmem>>, vector<1x1x8xf32>
    %46 = vector.shape_cast %45 : vector<1x1x8xf32> to vector<1x8xf32>
    %47 = vector.broadcast %46 : vector<1x8xf32> to vector<16x8xf32>
    %48 = arith.addf %44, %47 : vector<16x8xf32>
    %c1_37 = arith.constant 1 : index
    %c0_38 = arith.constant 0 : index
    %c0_39 = arith.constant 0 : index
    %49 = vector.load %arg73[%c1_37, %c0_38, %c0_39] : memref<4x32x8xf32, #tpu.memory_space<vmem>>, vector<1x32x8xf32>
    %50 = vector.shape_cast %49 : vector<1x32x8xf32> to vector<32x8xf32>
    %cst_40 = arith.constant dense<0.000000e+00> : vector<16x8xf32>
    %51 = tpu.matmul %2, %50, %cst_40 {dimension_numbers = #tpu.dot_dimension_numbers<[1], [0], [0], [1], [0, 0, 1, 1], [], []>} : vector<16x32xf32>, vector<32x8xf32>, vector<16x8xf32> -> vector<16x8xf32>
    %c1_41 = arith.constant 1 : index
    %c0_42 = arith.constant 0 : index
    %c0_43 = arith.constant 0 : index
    %52 = vector.load %arg69[%c1_41, %c0_42, %c0_43] : memref<4x1x8xf32, #tpu.memory_space<vmem>>, vector<1x1x8xf32>
    %53 = vector.shape_cast %52 : vector<1x1x8xf32> to vector<1x8xf32>
    %54 = vector.broadcast %53 : vector<1x8xf32> to vector<16x8xf32>
    %55 = arith.addf %51, %54 : vector<16x8xf32>
    %56 = vector.extract_strided_slice %8 {offsets = [8, 0], sizes = [8, 16], strides = [1, 1]} : vector<32x16xf32> to vector<8x16xf32>
    %cst_44 = arith.constant dense<0.000000e+00> : vector<16x16xf32>
    %57 = tpu.matmul %48, %56, %cst_44 {dimension_numbers = #tpu.dot_dimension_numbers<[1], [0], [0], [1], [0, 0, 1, 1], [], []>} : vector<16x8xf32>, vector<8x16xf32>, vector<16x16xf32> -> vector<16x16xf32>
    %cst_45 = arith.constant 0.353553385 : f32
    %58 = vector.broadcast %cst_45 : f32 to vector<16x16xf32>
    %59 = arith.mulf %57, %58 : vector<16x16xf32>
    %60 = arith.addf %59, %0 : vector<16x16xf32>
    %cst_46 = arith.constant dense<0xFF800000> : vector<16xf32>
    %61 = vector.multi_reduction <maximumf>, %60, %cst_46 [1] : vector<16x16xf32> to vector<16xf32>
    %62 = vector.shape_cast %61 : vector<16xf32> to vector<16x1xf32>
    %63 = vector.broadcast %62 : vector<16x1xf32> to vector<16x16xf32>
    %64 = arith.subf %60, %63 : vector<16x16xf32>
    %65 = math.exp %64 : vector<16x16xf32>
    %cst_47 = arith.constant dense<0.000000e+00> : vector<16xf32>
    %66 = vector.multi_reduction <add>, %65, %cst_47 [1] : vector<16x16xf32> to vector<16xf32>
    %67 = vector.shape_cast %66 : vector<16xf32> to vector<16x1xf32>
    %cst_48 = arith.constant dense<0.000000e+00> : vector<16x8xf32>
    %68 = tpu.matmul %65, %55, %cst_48 {dimension_numbers = #tpu.dot_dimension_numbers<[1], [0], [0], [1], [0, 0, 1, 1], [], []>} : vector<16x16xf32>, vector<16x8xf32>, vector<16x8xf32> -> vector<16x8xf32>
    %69 = tpu.reciprocal %67 {approx = true} : vector<16x1xf32> -> vector<16x1xf32>
    %70 = vector.broadcast %69 : vector<16x1xf32> to vector<16x8xf32>
    %71 = arith.mulf %68, %70 : vector<16x8xf32>
    %72 = vector.extract_strided_slice %9 {offsets = [8, 0], sizes = [8, 32], strides = [1, 1]} : vector<32x32xf32> to vector<8x32xf32>
    %cst_49 = arith.constant dense<0.000000e+00> : vector<16x32xf32>
    %73 = tpu.matmul %71, %72, %cst_49 {dimension_numbers = #tpu.dot_dimension_numbers<[1], [0], [0], [1], [0, 0, 1, 1], [], []>} : vector<16x8xf32>, vector<8x32xf32>, vector<16x32xf32> -> vector<16x32xf32>
    %74 = arith.addf %41, %73 : vector<16x32xf32>
    %c2 = arith.constant 2 : index
    %c0_50 = arith.constant 0 : index
    %c0_51 = arith.constant 0 : index
    %75 = vector.load %arg72[%c2, %c0_50, %c0_51] : memref<4x32x8xf32, #tpu.memory_space<vmem>>, vector<1x32x8xf32>
    %76 = vector.shape_cast %75 : vector<1x32x8xf32> to vector<32x8xf32>
    %cst_52 = arith.constant dense<0.000000e+00> : vector<16x8xf32>
    %77 = tpu.matmul %2, %76, %cst_52 {dimension_numbers = #tpu.dot_dimension_numbers<[1], [0], [0], [1], [0, 0, 1, 1], [], []>} : vector<16x32xf32>, vector<32x8xf32>, vector<16x8xf32> -> vector<16x8xf32>
    %c2_53 = arith.constant 2 : index
    %c0_54 = arith.constant 0 : index
    %c0_55 = arith.constant 0 : index
    %78 = vector.load %arg68[%c2_53, %c0_54, %c0_55] : memref<4x1x8xf32, #tpu.memory_space<vmem>>, vector<1x1x8xf32>
    %79 = vector.shape_cast %78 : vector<1x1x8xf32> to vector<1x8xf32>
    %80 = vector.broadcast %79 : vector<1x8xf32> to vector<16x8xf32>
    %81 = arith.addf %77, %80 : vector<16x8xf32>
    %c2_56 = arith.constant 2 : index
    %c0_57 = arith.constant 0 : index
    %c0_58 = arith.constant 0 : index
    %82 = vector.load %arg73[%c2_56, %c0_57, %c0_58] : memref<4x32x8xf32, #tpu.memory_space<vmem>>, vector<1x32x8xf32>
    %83 = vector.shape_cast %82 : vector<1x32x8xf32> to vector<32x8xf32>
    %cst_59 = arith.constant dense<0.000000e+00> : vector<16x8xf32>
    %84 = tpu.matmul %2, %83, %cst_59 {dimension_numbers = #tpu.dot_dimension_numbers<[1], [0], [0], [1], [0, 0, 1, 1], [], []>} : vector<16x32xf32>, vector<32x8xf32>, vector<16x8xf32> -> vector<16x8xf32>
    %c2_60 = arith.constant 2 : index
    %c0_61 = arith.constant 0 : index
    %c0_62 = arith.constant 0 : index
    %85 = vector.load %arg69[%c2_60, %c0_61, %c0_62] : memref<4x1x8xf32, #tpu.memory_space<vmem>>, vector<1x1x8xf32>
    %86 = vector.shape_cast %85 : vector<1x1x8xf32> to vector<1x8xf32>
    %87 = vector.broadcast %86 : vector<1x8xf32> to vector<16x8xf32>
    %88 = arith.addf %84, %87 : vector<16x8xf32>
    %89 = vector.extract_strided_slice %8 {offsets = [16, 0], sizes = [8, 16], strides = [1, 1]} : vector<32x16xf32> to vector<8x16xf32>
    %cst_63 = arith.constant dense<0.000000e+00> : vector<16x16xf32>
    %90 = tpu.matmul %81, %89, %cst_63 {dimension_numbers = #tpu.dot_dimension_numbers<[1], [0], [0], [1], [0, 0, 1, 1], [], []>} : vector<16x8xf32>, vector<8x16xf32>, vector<16x16xf32> -> vector<16x16xf32>
    %cst_64 = arith.constant 0.353553385 : f32
    %91 = vector.broadcast %cst_64 : f32 to vector<16x16xf32>
    %92 = arith.mulf %90, %91 : vector<16x16xf32>
    %93 = arith.addf %92, %0 : vector<16x16xf32>
    %cst_65 = arith.constant dense<0xFF800000> : vector<16xf32>
    %94 = vector.multi_reduction <maximumf>, %93, %cst_65 [1] : vector<16x16xf32> to vector<16xf32>
    %95 = vector.shape_cast %94 : vector<16xf32> to vector<16x1xf32>
    %96 = vector.broadcast %95 : vector<16x1xf32> to vector<16x16xf32>
    %97 = arith.subf %93, %96 : vector<16x16xf32>
    %98 = math.exp %97 : vector<16x16xf32>
    %cst_66 = arith.constant dense<0.000000e+00> : vector<16xf32>
    %99 = vector.multi_reduction <add>, %98, %cst_66 [1] : vector<16x16xf32> to vector<16xf32>
    %100 = vector.shape_cast %99 : vector<16xf32> to vector<16x1xf32>
    %cst_67 = arith.constant dense<0.000000e+00> : vector<16x8xf32>
    %101 = tpu.matmul %98, %88, %cst_67 {dimension_numbers = #tpu.dot_dimension_numbers<[1], [0], [0], [1], [0, 0, 1, 1], [], []>} : vector<16x16xf32>, vector<16x8xf32>, vector<16x8xf32> -> vector<16x8xf32>
    %102 = tpu.reciprocal %100 {approx = true} : vector<16x1xf32> -> vector<16x1xf32>
    %103 = vector.broadcast %102 : vector<16x1xf32> to vector<16x8xf32>
    %104 = arith.mulf %101, %103 : vector<16x8xf32>
    %105 = vector.extract_strided_slice %9 {offsets = [16, 0], sizes = [8, 32], strides = [1, 1]} : vector<32x32xf32> to vector<8x32xf32>
    %cst_68 = arith.constant dense<0.000000e+00> : vector<16x32xf32>
    %106 = tpu.matmul %104, %105, %cst_68 {dimension_numbers = #tpu.dot_dimension_numbers<[1], [0], [0], [1], [0, 0, 1, 1], [], []>} : vector<16x8xf32>, vector<8x32xf32>, vector<16x32xf32> -> vector<16x32xf32>
    %107 = arith.addf %74, %106 : vector<16x32xf32>
    %c3 = arith.constant 3 : index
    %c0_69 = arith.constant 0 : index
    %c0_70 = arith.constant 0 : index
    %108 = vector.load %arg72[%c3, %c0_69, %c0_70] : memref<4x32x8xf32, #tpu.memory_space<vmem>>, vector<1x32x8xf32>
    %109 = vector.shape_cast %108 : vector<1x32x8xf32> to vector<32x8xf32>
    %cst_71 = arith.constant dense<0.000000e+00> : vector<16x8xf32>
    %110 = tpu.matmul %2, %109, %cst_71 {dimension_numbers = #tpu.dot_dimension_numbers<[1], [0], [0], [1], [0, 0, 1, 1], [], []>} : vector<16x32xf32>, vector<32x8xf32>, vector<16x8xf32> -> vector<16x8xf32>
    %c3_72 = arith.constant 3 : index
    %c0_73 = arith.constant 0 : index
    %c0_74 = arith.constant 0 : index
    %111 = vector.load %arg68[%c3_72, %c0_73, %c0_74] : memref<4x1x8xf32, #tpu.memory_space<vmem>>, vector<1x1x8xf32>
    %112 = vector.shape_cast %111 : vector<1x1x8xf32> to vector<1x8xf32>
    %113 = vector.broadcast %112 : vector<1x8xf32> to vector<16x8xf32>
    %114 = arith.addf %110, %113 : vector<16x8xf32>
    %c3_75 = arith.constant 3 : index
    %c0_76 = arith.constant 0 : index
    %c0_77 = arith.constant 0 : index
    %115 = vector.load %arg73[%c3_75, %c0_76, %c0_77] : memref<4x32x8xf32, #tpu.memory_space<vmem>>, vector<1x32x8xf32>
    %116 = vector.shape_cast %115 : vector<1x32x8xf32> to vector<32x8xf32>
    %cst_78 = arith.constant dense<0.000000e+00> : vector<16x8xf32>
    %117 = tpu.matmul %2, %116, %cst_78 {dimension_numbers = #tpu.dot_dimension_numbers<[1], [0], [0], [1], [0, 0, 1, 1], [], []>} : vector<16x32xf32>, vector<32x8xf32>, vector<16x8xf32> -> vector<16x8xf32>
    %c3_79 = arith.constant 3 : index
    %c0_80 = arith.constant 0 : index
    %c0_81 = arith.constant 0 : index
    %118 = vector.load %arg69[%c3_79, %c0_80, %c0_81] : memref<4x1x8xf32, #tpu.memory_space<vmem>>, vector<1x1x8xf32>
    %119 = vector.shape_cast %118 : vector<1x1x8xf32> to vector<1x8xf32>
    %120 = vector.broadcast %119 : vector<1x8xf32> to vector<16x8xf32>
    %121 = arith.addf %117, %120 : vector<16x8xf32>
    %122 = vector.extract_strided_slice %8 {offsets = [24, 0], sizes = [8, 16], strides = [1, 1]} : vector<32x16xf32> to vector<8x16xf32>
    %cst_82 = arith.constant dense<0.000000e+00> : vector<16x16xf32>
    %123 = tpu.matmul %114, %122, %cst_82 {dimension_numbers = #tpu.dot_dimension_numbers<[1], [0], [0], [1], [0, 0, 1, 1], [], []>} : vector<16x8xf32>, vector<8x16xf32>, vector<16x16xf32> -> vector<16x16xf32>
    %cst_83 = arith.constant 0.353553385 : f32
    %124 = vector.broadcast %cst_83 : f32 to vector<16x16xf32>
    %125 = arith.mulf %123, %124 : vector<16x16xf32>
    %126 = arith.addf %125, %0 : vector<16x16xf32>
    %cst_84 = arith.constant dense<0xFF800000> : vector<16xf32>
    %127 = vector.multi_reduction <maximumf>, %126, %cst_84 [1] : vector<16x16xf32> to vector<16xf32>
    %128 = vector.shape_cast %127 : vector<16xf32> to vector<16x1xf32>
    %129 = vector.broadcast %128 : vector<16x1xf32> to vector<16x16xf32>
    %130 = arith.subf %126, %129 : vector<16x16xf32>
    %131 = math.exp %130 : vector<16x16xf32>
    %cst_85 = arith.constant dense<0.000000e+00> : vector<16xf32>
    %132 = vector.multi_reduction <add>, %131, %cst_85 [1] : vector<16x16xf32> to vector<16xf32>
    %133 = vector.shape_cast %132 : vector<16xf32> to vector<16x1xf32>
    %cst_86 = arith.constant dense<0.000000e+00> : vector<16x8xf32>
    %134 = tpu.matmul %131, %121, %cst_86 {dimension_numbers = #tpu.dot_dimension_numbers<[1], [0], [0], [1], [0, 0, 1, 1], [], []>} : vector<16x16xf32>, vector<16x8xf32>, vector<16x8xf32> -> vector<16x8xf32>
    %135 = tpu.reciprocal %133 {approx = true} : vector<16x1xf32> -> vector<16x1xf32>
    %136 = vector.broadcast %135 : vector<16x1xf32> to vector<16x8xf32>
    %137 = arith.mulf %134, %136 : vector<16x8xf32>
    %138 = vector.extract_strided_slice %9 {offsets = [24, 0], sizes = [8, 32], strides = [1, 1]} : vector<32x32xf32> to vector<8x32xf32>
    %cst_87 = arith.constant dense<0.000000e+00> : vector<16x32xf32>
    %139 = tpu.matmul %137, %138, %cst_87 {dimension_numbers = #tpu.dot_dimension_numbers<[1], [0], [0], [1], [0, 0, 1, 1], [], []>} : vector<16x8xf32>, vector<8x32xf32>, vector<16x32xf32> -> vector<16x32xf32>
    %140 = arith.addf %107, %139 : vector<16x32xf32>
    %c0_88 = arith.constant 0 : index
    %c0_89 = arith.constant 0 : index
    %141 = vector.load %arg67[%c0_88, %c0_89] : memref<1x32xf32, #tpu.memory_space<vmem>>, vector<1x32xf32>
    %142 = vector.broadcast %141 : vector<1x32xf32> to vector<16x32xf32>
    %143 = arith.addf %140, %142 : vector<16x32xf32>
    %144 = arith.addf %2, %143 : vector<16x32xf32>
    %cst_90 = arith.constant dense<0.000000e+00> : vector<16xf32>
    %145 = vector.multi_reduction <add>, %144, %cst_90 [1] : vector<16x32xf32> to vector<16xf32>
    %146 = vector.shape_cast %145 : vector<16xf32> to vector<16x1xf32>
    %cst_91 = arith.constant 3.200000e+01 : f32
    %147 = vector.broadcast %cst_91 : f32 to vector<16x1xf32>
    %148 = arith.divf %146, %147 : vector<16x1xf32>
    %149 = vector.broadcast %148 : vector<16x1xf32> to vector<16x32xf32>
    %150 = arith.subf %144, %149 : vector<16x32xf32>
    %151 = arith.mulf %150, %150 : vector<16x32xf32>
    %cst_92 = arith.constant dense<0.000000e+00> : vector<16xf32>
    %152 = vector.multi_reduction <add>, %151, %cst_92 [1] : vector<16x32xf32> to vector<16xf32>
    %153 = vector.shape_cast %152 : vector<16xf32> to vector<16x1xf32>
    %cst_93 = arith.constant 3.200000e+01 : f32
    %154 = vector.broadcast %cst_93 : f32 to vector<16x1xf32>
    %155 = arith.divf %153, %154 : vector<16x1xf32>
    %cst_94 = arith.constant 9.99999974E-6 : f32
    %156 = vector.broadcast %cst_94 : f32 to vector<16x1xf32>
    %157 = arith.addf %155, %156 : vector<16x1xf32>
    %158 = math.rsqrt %157 : vector<16x1xf32>
    %159 = vector.broadcast %158 : vector<16x1xf32> to vector<16x32xf32>
    %160 = arith.mulf %150, %159 : vector<16x32xf32>
    %c0_95 = arith.constant 0 : index
    %c0_96 = arith.constant 0 : index
    %161 = vector.load %arg63[%c0_95, %c0_96] : memref<1x32xf32, #tpu.memory_space<vmem>>, vector<1x32xf32>
    %162 = vector.broadcast %161 : vector<1x32xf32> to vector<16x32xf32>
    %163 = arith.mulf %160, %162 : vector<16x32xf32>
    %c0_97 = arith.constant 0 : index
    %c0_98 = arith.constant 0 : index
    %164 = vector.load %arg62[%c0_97, %c0_98] : memref<1x32xf32, #tpu.memory_space<vmem>>, vector<1x32xf32>
    %165 = vector.broadcast %164 : vector<1x32xf32> to vector<16x32xf32>
    %166 = arith.addf %163, %165 : vector<16x32xf32>
    %c0_99 = arith.constant 0 : index
    %c0_100 = arith.constant 0 : index
    %167 = vector.load %arg60[%c0_99, %c0_100] : memref<32x64xf32, #tpu.memory_space<vmem>>, vector<32x64xf32>
    %cst_101 = arith.constant dense<0.000000e+00> : vector<16x64xf32>
    %168 = tpu.matmul %166, %167, %cst_101 {dimension_numbers = #tpu.dot_dimension_numbers<[1], [0], [0], [1], [0, 0, 1, 1], [], []>} : vector<16x32xf32>, vector<32x64xf32>, vector<16x64xf32> -> vector<16x64xf32>
    %c0_102 = arith.constant 0 : index
    %c0_103 = arith.constant 0 : index
    %169 = vector.load %arg58[%c0_102, %c0_103] : memref<1x64xf32, #tpu.memory_space<vmem>>, vector<1x64xf32>
    %170 = vector.broadcast %169 : vector<1x64xf32> to vector<16x64xf32>
    %171 = arith.addf %168, %170 : vector<16x64xf32>
    %cst_104 = arith.constant 0.707106769 : f32
    %172 = vector.broadcast %cst_104 : f32 to vector<16x64xf32>
    %173 = arith.mulf %171, %172 : vector<16x64xf32>
    %174 = math.absf %173 : vector<16x64xf32>
    %cst_105 = arith.constant 0.327591091 : f32
    %175 = vector.broadcast %cst_105 : f32 to vector<16x64xf32>
    %176 = arith.mulf %175, %174 : vector<16x64xf32>
    %cst_106 = arith.constant 1.000000e+00 : f32
    %177 = vector.broadcast %cst_106 : f32 to vector<16x64xf32>
    %178 = arith.addf %177, %176 : vector<16x64xf32>
    %cst_107 = arith.constant 1.000000e+00 : f32
    %179 = vector.broadcast %cst_107 : f32 to vector<16x64xf32>
    %180 = arith.divf %179, %178 : vector<16x64xf32>
    %cst_108 = arith.constant 1.06140542 : f32
    %181 = vector.broadcast %cst_108 : f32 to vector<16x64xf32>
    %182 = arith.mulf %180, %181 : vector<16x64xf32>
    %cst_109 = arith.constant -1.45315206 : f32
    %183 = vector.broadcast %cst_109 : f32 to vector<16x64xf32>
    %184 = arith.addf %183, %182 : vector<16x64xf32>
    %185 = arith.mulf %180, %184 : vector<16x64xf32>
    %cst_110 = arith.constant 1.42141378 : f32
    %186 = vector.broadcast %cst_110 : f32 to vector<16x64xf32>
    %187 = arith.addf %186, %185 : vector<16x64xf32>
    %188 = arith.mulf %180, %187 : vector<16x64xf32>
    %cst_111 = arith.constant -0.284496725 : f32
    %189 = vector.broadcast %cst_111 : f32 to vector<16x64xf32>
    %190 = arith.addf %189, %188 : vector<16x64xf32>
    %191 = arith.mulf %180, %190 : vector<16x64xf32>
    %cst_112 = arith.constant 0.254829586 : f32
    %192 = vector.broadcast %cst_112 : f32 to vector<16x64xf32>
    %193 = arith.addf %192, %191 : vector<16x64xf32>
    %194 = arith.mulf %180, %193 : vector<16x64xf32>
    %cst_113 = arith.constant 0.000000e+00 : f32
    %195 = vector.broadcast %cst_113 : f32 to vector<16x64xf32>
    %196 = arith.subf %195, %174 : vector<16x64xf32>
    %197 = arith.mulf %196, %174 : vector<16x64xf32>
    %198 = math.exp %197 : vector<16x64xf32>
    %199 = arith.mulf %194, %198 : vector<16x64xf32>
    %cst_114 = arith.constant 1.000000e+00 : f32
    %200 = vector.broadcast %cst_114 : f32 to vector<16x64xf32>
    %201 = arith.subf %200, %199 : vector<16x64xf32>
    %cst_115 = arith.constant 0.000000e+00 : f32
    %202 = vector.broadcast %cst_115 : f32 to vector<16x64xf32>
    %203 = arith.cmpf olt, %173, %202 : vector<16x64xf32>
    %cst_116 = arith.constant 0.000000e+00 : f32
    %204 = vector.broadcast %cst_116 : f32 to vector<16x64xf32>
    %205 = arith.subf %204, %201 : vector<16x64xf32>
    %206 = arith.select %203, %205, %201 : vector<16x64xi1>, vector<16x64xf32>
    %cst_117 = arith.constant 5.000000e-01 : f32
    %207 = vector.broadcast %cst_117 : f32 to vector<16x64xf32>
    %208 = arith.mulf %207, %171 : vector<16x64xf32>
    %cst_118 = arith.constant 1.000000e+00 : f32
    %209 = vector.broadcast %cst_118 : f32 to vector<16x64xf32>
    %210 = arith.addf %209, %206 : vector<16x64xf32>
    %211 = arith.mulf %208, %210 : vector<16x64xf32>
    %c0_119 = arith.constant 0 : index
    %c0_120 = arith.constant 0 : index
    %212 = vector.load %arg61[%c0_119, %c0_120] : memref<64x32xf32, #tpu.memory_space<vmem>>, vector<64x32xf32>
    %cst_121 = arith.constant dense<0.000000e+00> : vector<16x32xf32>
    %213 = tpu.matmul %211, %212, %cst_121 {dimension_numbers = #tpu.dot_dimension_numbers<[1], [0], [0], [1], [0, 0, 1, 1], [], []>} : vector<16x64xf32>, vector<64x32xf32>, vector<16x32xf32> -> vector<16x32xf32>
    %c0_122 = arith.constant 0 : index
    %c0_123 = arith.constant 0 : index
    %214 = vector.load %arg59[%c0_122, %c0_123] : memref<1x32xf32, #tpu.memory_space<vmem>>, vector<1x32xf32>
    %215 = vector.broadcast %214 : vector<1x32xf32> to vector<16x32xf32>
    %216 = arith.addf %213, %215 : vector<16x32xf32>
    %217 = arith.addf %166, %216 : vector<16x32xf32>
    %cst_124 = arith.constant dense<0.000000e+00> : vector<16xf32>
    %218 = vector.multi_reduction <add>, %217, %cst_124 [1] : vector<16x32xf32> to vector<16xf32>
    %219 = vector.shape_cast %218 : vector<16xf32> to vector<16x1xf32>
    %cst_125 = arith.constant 3.200000e+01 : f32
    %220 = vector.broadcast %cst_125 : f32 to vector<16x1xf32>
    %221 = arith.divf %219, %220 : vector<16x1xf32>
    %222 = vector.broadcast %221 : vector<16x1xf32> to vector<16x32xf32>
    %223 = arith.subf %217, %222 : vector<16x32xf32>
    %224 = arith.mulf %223, %223 : vector<16x32xf32>
    %cst_126 = arith.constant dense<0.000000e+00> : vector<16xf32>
    %225 = vector.multi_reduction <add>, %224, %cst_126 [1] : vector<16x32xf32> to vector<16xf32>
    %226 = vector.shape_cast %225 : vector<16xf32> to vector<16x1xf32>
    %cst_127 = arith.constant 3.200000e+01 : f32
    %227 = vector.broadcast %cst_127 : f32 to vector<16x1xf32>
    %228 = arith.divf %226, %227 : vector<16x1xf32>
    %cst_128 = arith.constant 9.99999974E-6 : f32
    %229 = vector.broadcast %cst_128 : f32 to vector<16x1xf32>
    %230 = arith.addf %228, %229 : vector<16x1xf32>
    %231 = math.rsqrt %230 : vector<16x1xf32>
    %232 = vector.broadcast %231 : vector<16x1xf32> to vector<16x32xf32>
    %233 = arith.mulf %223, %232 : vector<16x32xf32>
    %c0_129 = arith.constant 0 : index
    %c0_130 = arith.constant 0 : index
    %234 = vector.load %arg65[%c0_129, %c0_130] : memref<1x32xf32, #tpu.memory_space<vmem>>, vector<1x32xf32>
    %235 = vector.broadcast %234 : vector<1x32xf32> to vector<16x32xf32>
    %236 = arith.mulf %233, %235 : vector<16x32xf32>
    %c0_131 = arith.constant 0 : index
    %c0_132 = arith.constant 0 : index
    %237 = vector.load %arg64[%c0_131, %c0_132] : memref<1x32xf32, #tpu.memory_space<vmem>>, vector<1x32xf32>
    %238 = vector.broadcast %237 : vector<1x32xf32> to vector<16x32xf32>
    %239 = arith.addf %236, %238 : vector<16x32xf32>
    %c0_133 = arith.constant 0 : index
    %c0_134 = arith.constant 0 : index
    %240 = vector.load %arg86[%c0_133, %c0_134] : memref<32x32xf32, #tpu.memory_space<vmem>>, vector<32x32xf32>
    %cst_135 = arith.constant dense<0.000000e+00> : vector<16x32xf32>
    %241 = tpu.matmul %239, %240, %cst_135 {dimension_numbers = #tpu.dot_dimension_numbers<[1], [0], [0], [1], [0, 0, 1, 1], [], []>} : vector<16x32xf32>, vector<32x32xf32>, vector<16x32xf32> -> vector<16x32xf32>
    %c0_136 = arith.constant 0 : index
    %c0_137 = arith.constant 0 : index
    %242 = vector.load %arg82[%c0_136, %c0_137] : memref<1x32xf32, #tpu.memory_space<vmem>>, vector<1x32xf32>
    %243 = vector.broadcast %242 : vector<1x32xf32> to vector<16x32xf32>
    %244 = arith.addf %241, %243 : vector<16x32xf32>
    %245 = tpu.transpose %244, [1, 0] : vector<16x32xf32> -> vector<32x16xf32>
    %c0_138 = arith.constant 0 : index
    %c0_139 = arith.constant 0 : index
    %246 = vector.load %arg87[%c0_138, %c0_139] : memref<32x32xf32, #tpu.memory_space<vmem>>, vector<32x32xf32>
    %c0_140 = arith.constant 0 : index
    %c0_141 = arith.constant 0 : index
    %c0_142 = arith.constant 0 : index
    %247 = vector.load %arg88[%c0_140, %c0_141, %c0_142] : memref<4x32x8xf32, #tpu.memory_space<vmem>>, vector<1x32x8xf32>
    %248 = vector.shape_cast %247 : vector<1x32x8xf32> to vector<32x8xf32>
    %cst_143 = arith.constant dense<0.000000e+00> : vector<16x8xf32>
    %249 = tpu.matmul %239, %248, %cst_143 {dimension_numbers = #tpu.dot_dimension_numbers<[1], [0], [0], [1], [0, 0, 1, 1], [], []>} : vector<16x32xf32>, vector<32x8xf32>, vector<16x8xf32> -> vector<16x8xf32>
    %c0_144 = arith.constant 0 : index
    %c0_145 = arith.constant 0 : index
    %c0_146 = arith.constant 0 : index
    %250 = vector.load %arg84[%c0_144, %c0_145, %c0_146] : memref<4x1x8xf32, #tpu.memory_space<vmem>>, vector<1x1x8xf32>
    %251 = vector.shape_cast %250 : vector<1x1x8xf32> to vector<1x8xf32>
    %252 = vector.broadcast %251 : vector<1x8xf32> to vector<16x8xf32>
    %253 = arith.addf %249, %252 : vector<16x8xf32>
    %c0_147 = arith.constant 0 : index
    %c0_148 = arith.constant 0 : index
    %c0_149 = arith.constant 0 : index
    %254 = vector.load %arg89[%c0_147, %c0_148, %c0_149] : memref<4x32x8xf32, #tpu.memory_space<vmem>>, vector<1x32x8xf32>
    %255 = vector.shape_cast %254 : vector<1x32x8xf32> to vector<32x8xf32>
    %cst_150 = arith.constant dense<0.000000e+00> : vector<16x8xf32>
    %256 = tpu.matmul %239, %255, %cst_150 {dimension_numbers = #tpu.dot_dimension_numbers<[1], [0], [0], [1], [0, 0, 1, 1], [], []>} : vector<16x32xf32>, vector<32x8xf32>, vector<16x8xf32> -> vector<16x8xf32>
    %c0_151 = arith.constant 0 : index
    %c0_152 = arith.constant 0 : index
    %c0_153 = arith.constant 0 : index
    %257 = vector.load %arg85[%c0_151, %c0_152, %c0_153] : memref<4x1x8xf32, #tpu.memory_space<vmem>>, vector<1x1x8xf32>
    %258 = vector.shape_cast %257 : vector<1x1x8xf32> to vector<1x8xf32>
    %259 = vector.broadcast %258 : vector<1x8xf32> to vector<16x8xf32>
    %260 = arith.addf %256, %259 : vector<16x8xf32>
    %261 = vector.extract_strided_slice %245 {offsets = [0, 0], sizes = [8, 16], strides = [1, 1]} : vector<32x16xf32> to vector<8x16xf32>
    %cst_154 = arith.constant dense<0.000000e+00> : vector<16x16xf32>
    %262 = tpu.matmul %253, %261, %cst_154 {dimension_numbers = #tpu.dot_dimension_numbers<[1], [0], [0], [1], [0, 0, 1, 1], [], []>} : vector<16x8xf32>, vector<8x16xf32>, vector<16x16xf32> -> vector<16x16xf32>
    %cst_155 = arith.constant 0.353553385 : f32
    %263 = vector.broadcast %cst_155 : f32 to vector<16x16xf32>
    %264 = arith.mulf %262, %263 : vector<16x16xf32>
    %265 = arith.addf %264, %0 : vector<16x16xf32>
    %cst_156 = arith.constant dense<0xFF800000> : vector<16xf32>
    %266 = vector.multi_reduction <maximumf>, %265, %cst_156 [1] : vector<16x16xf32> to vector<16xf32>
    %267 = vector.shape_cast %266 : vector<16xf32> to vector<16x1xf32>
    %268 = vector.broadcast %267 : vector<16x1xf32> to vector<16x16xf32>
    %269 = arith.subf %265, %268 : vector<16x16xf32>
    %270 = math.exp %269 : vector<16x16xf32>
    %cst_157 = arith.constant dense<0.000000e+00> : vector<16xf32>
    %271 = vector.multi_reduction <add>, %270, %cst_157 [1] : vector<16x16xf32> to vector<16xf32>
    %272 = vector.shape_cast %271 : vector<16xf32> to vector<16x1xf32>
    %cst_158 = arith.constant dense<0.000000e+00> : vector<16x8xf32>
    %273 = tpu.matmul %270, %260, %cst_158 {dimension_numbers = #tpu.dot_dimension_numbers<[1], [0], [0], [1], [0, 0, 1, 1], [], []>} : vector<16x16xf32>, vector<16x8xf32>, vector<16x8xf32> -> vector<16x8xf32>
    %274 = tpu.reciprocal %272 {approx = true} : vector<16x1xf32> -> vector<16x1xf32>
    %275 = vector.broadcast %274 : vector<16x1xf32> to vector<16x8xf32>
    %276 = arith.mulf %273, %275 : vector<16x8xf32>
    %277 = vector.extract_strided_slice %246 {offsets = [0, 0], sizes = [8, 32], strides = [1, 1]} : vector<32x32xf32> to vector<8x32xf32>
    %cst_159 = arith.constant dense<0.000000e+00> : vector<16x32xf32>
    %278 = tpu.matmul %276, %277, %cst_159 {dimension_numbers = #tpu.dot_dimension_numbers<[1], [0], [0], [1], [0, 0, 1, 1], [], []>} : vector<16x8xf32>, vector<8x32xf32>, vector<16x32xf32> -> vector<16x32xf32>
    %c1_160 = arith.constant 1 : index
    %c0_161 = arith.constant 0 : index
    %c0_162 = arith.constant 0 : index
    %279 = vector.load %arg88[%c1_160, %c0_161, %c0_162] : memref<4x32x8xf32, #tpu.memory_space<vmem>>, vector<1x32x8xf32>
    %280 = vector.shape_cast %279 : vector<1x32x8xf32> to vector<32x8xf32>
    %cst_163 = arith.constant dense<0.000000e+00> : vector<16x8xf32>
    %281 = tpu.matmul %239, %280, %cst_163 {dimension_numbers = #tpu.dot_dimension_numbers<[1], [0], [0], [1], [0, 0, 1, 1], [], []>} : vector<16x32xf32>, vector<32x8xf32>, vector<16x8xf32> -> vector<16x8xf32>
    %c1_164 = arith.constant 1 : index
    %c0_165 = arith.constant 0 : index
    %c0_166 = arith.constant 0 : index
    %282 = vector.load %arg84[%c1_164, %c0_165, %c0_166] : memref<4x1x8xf32, #tpu.memory_space<vmem>>, vector<1x1x8xf32>
    %283 = vector.shape_cast %282 : vector<1x1x8xf32> to vector<1x8xf32>
    %284 = vector.broadcast %283 : vector<1x8xf32> to vector<16x8xf32>
    %285 = arith.addf %281, %284 : vector<16x8xf32>
    %c1_167 = arith.constant 1 : index
    %c0_168 = arith.constant 0 : index
    %c0_169 = arith.constant 0 : index
    %286 = vector.load %arg89[%c1_167, %c0_168, %c0_169] : memref<4x32x8xf32, #tpu.memory_space<vmem>>, vector<1x32x8xf32>
    %287 = vector.shape_cast %286 : vector<1x32x8xf32> to vector<32x8xf32>
    %cst_170 = arith.constant dense<0.000000e+00> : vector<16x8xf32>
    %288 = tpu.matmul %239, %287, %cst_170 {dimension_numbers = #tpu.dot_dimension_numbers<[1], [0], [0], [1], [0, 0, 1, 1], [], []>} : vector<16x32xf32>, vector<32x8xf32>, vector<16x8xf32> -> vector<16x8xf32>
    %c1_171 = arith.constant 1 : index
    %c0_172 = arith.constant 0 : index
    %c0_173 = arith.constant 0 : index
    %289 = vector.load %arg85[%c1_171, %c0_172, %c0_173] : memref<4x1x8xf32, #tpu.memory_space<vmem>>, vector<1x1x8xf32>
    %290 = vector.shape_cast %289 : vector<1x1x8xf32> to vector<1x8xf32>
    %291 = vector.broadcast %290 : vector<1x8xf32> to vector<16x8xf32>
    %292 = arith.addf %288, %291 : vector<16x8xf32>
    %293 = vector.extract_strided_slice %245 {offsets = [8, 0], sizes = [8, 16], strides = [1, 1]} : vector<32x16xf32> to vector<8x16xf32>
    %cst_174 = arith.constant dense<0.000000e+00> : vector<16x16xf32>
    %294 = tpu.matmul %285, %293, %cst_174 {dimension_numbers = #tpu.dot_dimension_numbers<[1], [0], [0], [1], [0, 0, 1, 1], [], []>} : vector<16x8xf32>, vector<8x16xf32>, vector<16x16xf32> -> vector<16x16xf32>
    %cst_175 = arith.constant 0.353553385 : f32
    %295 = vector.broadcast %cst_175 : f32 to vector<16x16xf32>
    %296 = arith.mulf %294, %295 : vector<16x16xf32>
    %297 = arith.addf %296, %0 : vector<16x16xf32>
    %cst_176 = arith.constant dense<0xFF800000> : vector<16xf32>
    %298 = vector.multi_reduction <maximumf>, %297, %cst_176 [1] : vector<16x16xf32> to vector<16xf32>
    %299 = vector.shape_cast %298 : vector<16xf32> to vector<16x1xf32>
    %300 = vector.broadcast %299 : vector<16x1xf32> to vector<16x16xf32>
    %301 = arith.subf %297, %300 : vector<16x16xf32>
    %302 = math.exp %301 : vector<16x16xf32>
    %cst_177 = arith.constant dense<0.000000e+00> : vector<16xf32>
    %303 = vector.multi_reduction <add>, %302, %cst_177 [1] : vector<16x16xf32> to vector<16xf32>
    %304 = vector.shape_cast %303 : vector<16xf32> to vector<16x1xf32>
    %cst_178 = arith.constant dense<0.000000e+00> : vector<16x8xf32>
    %305 = tpu.matmul %302, %292, %cst_178 {dimension_numbers = #tpu.dot_dimension_numbers<[1], [0], [0], [1], [0, 0, 1, 1], [], []>} : vector<16x16xf32>, vector<16x8xf32>, vector<16x8xf32> -> vector<16x8xf32>
    %306 = tpu.reciprocal %304 {approx = true} : vector<16x1xf32> -> vector<16x1xf32>
    %307 = vector.broadcast %306 : vector<16x1xf32> to vector<16x8xf32>
    %308 = arith.mulf %305, %307 : vector<16x8xf32>
    %309 = vector.extract_strided_slice %246 {offsets = [8, 0], sizes = [8, 32], strides = [1, 1]} : vector<32x32xf32> to vector<8x32xf32>
    %cst_179 = arith.constant dense<0.000000e+00> : vector<16x32xf32>
    %310 = tpu.matmul %308, %309, %cst_179 {dimension_numbers = #tpu.dot_dimension_numbers<[1], [0], [0], [1], [0, 0, 1, 1], [], []>} : vector<16x8xf32>, vector<8x32xf32>, vector<16x32xf32> -> vector<16x32xf32>
    %311 = arith.addf %278, %310 : vector<16x32xf32>
    %c2_180 = arith.constant 2 : index
    %c0_181 = arith.constant 0 : index
    %c0_182 = arith.constant 0 : index
    %312 = vector.load %arg88[%c2_180, %c0_181, %c0_182] : memref<4x32x8xf32, #tpu.memory_space<vmem>>, vector<1x32x8xf32>
    %313 = vector.shape_cast %312 : vector<1x32x8xf32> to vector<32x8xf32>
    %cst_183 = arith.constant dense<0.000000e+00> : vector<16x8xf32>
    %314 = tpu.matmul %239, %313, %cst_183 {dimension_numbers = #tpu.dot_dimension_numbers<[1], [0], [0], [1], [0, 0, 1, 1], [], []>} : vector<16x32xf32>, vector<32x8xf32>, vector<16x8xf32> -> vector<16x8xf32>
    %c2_184 = arith.constant 2 : index
    %c0_185 = arith.constant 0 : index
    %c0_186 = arith.constant 0 : index
    %315 = vector.load %arg84[%c2_184, %c0_185, %c0_186] : memref<4x1x8xf32, #tpu.memory_space<vmem>>, vector<1x1x8xf32>
    %316 = vector.shape_cast %315 : vector<1x1x8xf32> to vector<1x8xf32>
    %317 = vector.broadcast %316 : vector<1x8xf32> to vector<16x8xf32>
    %318 = arith.addf %314, %317 : vector<16x8xf32>
    %c2_187 = arith.constant 2 : index
    %c0_188 = arith.constant 0 : index
    %c0_189 = arith.constant 0 : index
    %319 = vector.load %arg89[%c2_187, %c0_188, %c0_189] : memref<4x32x8xf32, #tpu.memory_space<vmem>>, vector<1x32x8xf32>
    %320 = vector.shape_cast %319 : vector<1x32x8xf32> to vector<32x8xf32>
    %cst_190 = arith.constant dense<0.000000e+00> : vector<16x8xf32>
    %321 = tpu.matmul %239, %320, %cst_190 {dimension_numbers = #tpu.dot_dimension_numbers<[1], [0], [0], [1], [0, 0, 1, 1], [], []>} : vector<16x32xf32>, vector<32x8xf32>, vector<16x8xf32> -> vector<16x8xf32>
    %c2_191 = arith.constant 2 : index
    %c0_192 = arith.constant 0 : index
    %c0_193 = arith.constant 0 : index
    %322 = vector.load %arg85[%c2_191, %c0_192, %c0_193] : memref<4x1x8xf32, #tpu.memory_space<vmem>>, vector<1x1x8xf32>
    %323 = vector.shape_cast %322 : vector<1x1x8xf32> to vector<1x8xf32>
    %324 = vector.broadcast %323 : vector<1x8xf32> to vector<16x8xf32>
    %325 = arith.addf %321, %324 : vector<16x8xf32>
    %326 = vector.extract_strided_slice %245 {offsets = [16, 0], sizes = [8, 16], strides = [1, 1]} : vector<32x16xf32> to vector<8x16xf32>
    %cst_194 = arith.constant dense<0.000000e+00> : vector<16x16xf32>
    %327 = tpu.matmul %318, %326, %cst_194 {dimension_numbers = #tpu.dot_dimension_numbers<[1], [0], [0], [1], [0, 0, 1, 1], [], []>} : vector<16x8xf32>, vector<8x16xf32>, vector<16x16xf32> -> vector<16x16xf32>
    %cst_195 = arith.constant 0.353553385 : f32
    %328 = vector.broadcast %cst_195 : f32 to vector<16x16xf32>
    %329 = arith.mulf %327, %328 : vector<16x16xf32>
    %330 = arith.addf %329, %0 : vector<16x16xf32>
    %cst_196 = arith.constant dense<0xFF800000> : vector<16xf32>
    %331 = vector.multi_reduction <maximumf>, %330, %cst_196 [1] : vector<16x16xf32> to vector<16xf32>
    %332 = vector.shape_cast %331 : vector<16xf32> to vector<16x1xf32>
    %333 = vector.broadcast %332 : vector<16x1xf32> to vector<16x16xf32>
    %334 = arith.subf %330, %333 : vector<16x16xf32>
    %335 = math.exp %334 : vector<16x16xf32>
    %cst_197 = arith.constant dense<0.000000e+00> : vector<16xf32>
    %336 = vector.multi_reduction <add>, %335, %cst_197 [1] : vector<16x16xf32> to vector<16xf32>
    %337 = vector.shape_cast %336 : vector<16xf32> to vector<16x1xf32>
    %cst_198 = arith.constant dense<0.000000e+00> : vector<16x8xf32>
    %338 = tpu.matmul %335, %325, %cst_198 {dimension_numbers = #tpu.dot_dimension_numbers<[1], [0], [0], [1], [0, 0, 1, 1], [], []>} : vector<16x16xf32>, vector<16x8xf32>, vector<16x8xf32> -> vector<16x8xf32>
    %339 = tpu.reciprocal %337 {approx = true} : vector<16x1xf32> -> vector<16x1xf32>
    %340 = vector.broadcast %339 : vector<16x1xf32> to vector<16x8xf32>
    %341 = arith.mulf %338, %340 : vector<16x8xf32>
    %342 = vector.extract_strided_slice %246 {offsets = [16, 0], sizes = [8, 32], strides = [1, 1]} : vector<32x32xf32> to vector<8x32xf32>
    %cst_199 = arith.constant dense<0.000000e+00> : vector<16x32xf32>
    %343 = tpu.matmul %341, %342, %cst_199 {dimension_numbers = #tpu.dot_dimension_numbers<[1], [0], [0], [1], [0, 0, 1, 1], [], []>} : vector<16x8xf32>, vector<8x32xf32>, vector<16x32xf32> -> vector<16x32xf32>
    %344 = arith.addf %311, %343 : vector<16x32xf32>
    %c3_200 = arith.constant 3 : index
    %c0_201 = arith.constant 0 : index
    %c0_202 = arith.constant 0 : index
    %345 = vector.load %arg88[%c3_200, %c0_201, %c0_202] : memref<4x32x8xf32, #tpu.memory_space<vmem>>, vector<1x32x8xf32>
    %346 = vector.shape_cast %345 : vector<1x32x8xf32> to vector<32x8xf32>
    %cst_203 = arith.constant dense<0.000000e+00> : vector<16x8xf32>
    %347 = tpu.matmul %239, %346, %cst_203 {dimension_numbers = #tpu.dot_dimension_numbers<[1], [0], [0], [1], [0, 0, 1, 1], [], []>} : vector<16x32xf32>, vector<32x8xf32>, vector<16x8xf32> -> vector<16x8xf32>
    %c3_204 = arith.constant 3 : index
    %c0_205 = arith.constant 0 : index
    %c0_206 = arith.constant 0 : index
    %348 = vector.load %arg84[%c3_204, %c0_205, %c0_206] : memref<4x1x8xf32, #tpu.memory_space<vmem>>, vector<1x1x8xf32>
    %349 = vector.shape_cast %348 : vector<1x1x8xf32> to vector<1x8xf32>
    %350 = vector.broadcast %349 : vector<1x8xf32> to vector<16x8xf32>
    %351 = arith.addf %347, %350 : vector<16x8xf32>
    %c3_207 = arith.constant 3 : index
    %c0_208 = arith.constant 0 : index
    %c0_209 = arith.constant 0 : index
    %352 = vector.load %arg89[%c3_207, %c0_208, %c0_209] : memref<4x32x8xf32, #tpu.memory_space<vmem>>, vector<1x32x8xf32>
    %353 = vector.shape_cast %352 : vector<1x32x8xf32> to vector<32x8xf32>
    %cst_210 = arith.constant dense<0.000000e+00> : vector<16x8xf32>
    %354 = tpu.matmul %239, %353, %cst_210 {dimension_numbers = #tpu.dot_dimension_numbers<[1], [0], [0], [1], [0, 0, 1, 1], [], []>} : vector<16x32xf32>, vector<32x8xf32>, vector<16x8xf32> -> vector<16x8xf32>
    %c3_211 = arith.constant 3 : index
    %c0_212 = arith.constant 0 : index
    %c0_213 = arith.constant 0 : index
    %355 = vector.load %arg85[%c3_211, %c0_212, %c0_213] : memref<4x1x8xf32, #tpu.memory_space<vmem>>, vector<1x1x8xf32>
    %356 = vector.shape_cast %355 : vector<1x1x8xf32> to vector<1x8xf32>
    %357 = vector.broadcast %356 : vector<1x8xf32> to vector<16x8xf32>
    %358 = arith.addf %354, %357 : vector<16x8xf32>
    %359 = vector.extract_strided_slice %245 {offsets = [24, 0], sizes = [8, 16], strides = [1, 1]} : vector<32x16xf32> to vector<8x16xf32>
    %cst_214 = arith.constant dense<0.000000e+00> : vector<16x16xf32>
    %360 = tpu.matmul %351, %359, %cst_214 {dimension_numbers = #tpu.dot_dimension_numbers<[1], [0], [0], [1], [0, 0, 1, 1], [], []>} : vector<16x8xf32>, vector<8x16xf32>, vector<16x16xf32> -> vector<16x16xf32>
    %cst_215 = arith.constant 0.353553385 : f32
    %361 = vector.broadcast %cst_215 : f32 to vector<16x16xf32>
    %362 = arith.mulf %360, %361 : vector<16x16xf32>
    %363 = arith.addf %362, %0 : vector<16x16xf32>
    %cst_216 = arith.constant dense<0xFF800000> : vector<16xf32>
    %364 = vector.multi_reduction <maximumf>, %363, %cst_216 [1] : vector<16x16xf32> to vector<16xf32>
    %365 = vector.shape_cast %364 : vector<16xf32> to vector<16x1xf32>
    %366 = vector.broadcast %365 : vector<16x1xf32> to vector<16x16xf32>
    %367 = arith.subf %363, %366 : vector<16x16xf32>
    %368 = math.exp %367 : vector<16x16xf32>
    %cst_217 = arith.constant dense<0.000000e+00> : vector<16xf32>
    %369 = vector.multi_reduction <add>, %368, %cst_217 [1] : vector<16x16xf32> to vector<16xf32>
    %370 = vector.shape_cast %369 : vector<16xf32> to vector<16x1xf32>
    %cst_218 = arith.constant dense<0.000000e+00> : vector<16x8xf32>
    %371 = tpu.matmul %368, %358, %cst_218 {dimension_numbers = #tpu.dot_dimension_numbers<[1], [0], [0], [1], [0, 0, 1, 1], [], []>} : vector<16x16xf32>, vector<16x8xf32>, vector<16x8xf32> -> vector<16x8xf32>
    %372 = tpu.reciprocal %370 {approx = true} : vector<16x1xf32> -> vector<16x1xf32>
    %373 = vector.broadcast %372 : vector<16x1xf32> to vector<16x8xf32>
    %374 = arith.mulf %371, %373 : vector<16x8xf32>
    %375 = vector.extract_strided_slice %246 {offsets = [24, 0], sizes = [8, 32], strides = [1, 1]} : vector<32x32xf32> to vector<8x32xf32>
    %cst_219 = arith.constant dense<0.000000e+00> : vector<16x32xf32>
    %376 = tpu.matmul %374, %375, %cst_219 {dimension_numbers = #tpu.dot_dimension_numbers<[1], [0], [0], [1], [0, 0, 1, 1], [], []>} : vector<16x8xf32>, vector<8x32xf32>, vector<16x32xf32> -> vector<16x32xf32>
    %377 = arith.addf %344, %376 : vector<16x32xf32>
    %c0_220 = arith.constant 0 : index
    %c0_221 = arith.constant 0 : index
    %378 = vector.load %arg83[%c0_220, %c0_221] : memref<1x32xf32, #tpu.memory_space<vmem>>, vector<1x32xf32>
    %379 = vector.broadcast %378 : vector<1x32xf32> to vector<16x32xf32>
    %380 = arith.addf %377, %379 : vector<16x32xf32>
    %381 = arith.addf %239, %380 : vector<16x32xf32>
    %cst_222 = arith.constant dense<0.000000e+00> : vector<16xf32>
    %382 = vector.multi_reduction <add>, %381, %cst_222 [1] : vector<16x32xf32> to vector<16xf32>
    %383 = vector.shape_cast %382 : vector<16xf32> to vector<16x1xf32>
    %cst_223 = arith.constant 3.200000e+01 : f32
    %384 = vector.broadcast %cst_223 : f32 to vector<16x1xf32>
    %385 = arith.divf %383, %384 : vector<16x1xf32>
    %386 = vector.broadcast %385 : vector<16x1xf32> to vector<16x32xf32>
    %387 = arith.subf %381, %386 : vector<16x32xf32>
    %388 = arith.mulf %387, %387 : vector<16x32xf32>
    %cst_224 = arith.constant dense<0.000000e+00> : vector<16xf32>
    %389 = vector.multi_reduction <add>, %388, %cst_224 [1] : vector<16x32xf32> to vector<16xf32>
    %390 = vector.shape_cast %389 : vector<16xf32> to vector<16x1xf32>
    %cst_225 = arith.constant 3.200000e+01 : f32
    %391 = vector.broadcast %cst_225 : f32 to vector<16x1xf32>
    %392 = arith.divf %390, %391 : vector<16x1xf32>
    %cst_226 = arith.constant 9.99999974E-6 : f32
    %393 = vector.broadcast %cst_226 : f32 to vector<16x1xf32>
    %394 = arith.addf %392, %393 : vector<16x1xf32>
    %395 = math.rsqrt %394 : vector<16x1xf32>
    %396 = vector.broadcast %395 : vector<16x1xf32> to vector<16x32xf32>
    %397 = arith.mulf %387, %396 : vector<16x32xf32>
    %c0_227 = arith.constant 0 : index
    %c0_228 = arith.constant 0 : index
    %398 = vector.load %arg79[%c0_227, %c0_228] : memref<1x32xf32, #tpu.memory_space<vmem>>, vector<1x32xf32>
    %399 = vector.broadcast %398 : vector<1x32xf32> to vector<16x32xf32>
    %400 = arith.mulf %397, %399 : vector<16x32xf32>
    %c0_229 = arith.constant 0 : index
    %c0_230 = arith.constant 0 : index
    %401 = vector.load %arg78[%c0_229, %c0_230] : memref<1x32xf32, #tpu.memory_space<vmem>>, vector<1x32xf32>
    %402 = vector.broadcast %401 : vector<1x32xf32> to vector<16x32xf32>
    %403 = arith.addf %400, %402 : vector<16x32xf32>
    %c0_231 = arith.constant 0 : index
    %c0_232 = arith.constant 0 : index
    %404 = vector.load %arg76[%c0_231, %c0_232] : memref<32x64xf32, #tpu.memory_space<vmem>>, vector<32x64xf32>
    %cst_233 = arith.constant dense<0.000000e+00> : vector<16x64xf32>
    %405 = tpu.matmul %403, %404, %cst_233 {dimension_numbers = #tpu.dot_dimension_numbers<[1], [0], [0], [1], [0, 0, 1, 1], [], []>} : vector<16x32xf32>, vector<32x64xf32>, vector<16x64xf32> -> vector<16x64xf32>
    %c0_234 = arith.constant 0 : index
    %c0_235 = arith.constant 0 : index
    %406 = vector.load %arg74[%c0_234, %c0_235] : memref<1x64xf32, #tpu.memory_space<vmem>>, vector<1x64xf32>
    %407 = vector.broadcast %406 : vector<1x64xf32> to vector<16x64xf32>
    %408 = arith.addf %405, %407 : vector<16x64xf32>
    %cst_236 = arith.constant 0.707106769 : f32
    %409 = vector.broadcast %cst_236 : f32 to vector<16x64xf32>
    %410 = arith.mulf %408, %409 : vector<16x64xf32>
    %411 = math.absf %410 : vector<16x64xf32>
    %cst_237 = arith.constant 0.327591091 : f32
    %412 = vector.broadcast %cst_237 : f32 to vector<16x64xf32>
    %413 = arith.mulf %412, %411 : vector<16x64xf32>
    %cst_238 = arith.constant 1.000000e+00 : f32
    %414 = vector.broadcast %cst_238 : f32 to vector<16x64xf32>
    %415 = arith.addf %414, %413 : vector<16x64xf32>
    %cst_239 = arith.constant 1.000000e+00 : f32
    %416 = vector.broadcast %cst_239 : f32 to vector<16x64xf32>
    %417 = arith.divf %416, %415 : vector<16x64xf32>
    %cst_240 = arith.constant 1.06140542 : f32
    %418 = vector.broadcast %cst_240 : f32 to vector<16x64xf32>
    %419 = arith.mulf %417, %418 : vector<16x64xf32>
    %cst_241 = arith.constant -1.45315206 : f32
    %420 = vector.broadcast %cst_241 : f32 to vector<16x64xf32>
    %421 = arith.addf %420, %419 : vector<16x64xf32>
    %422 = arith.mulf %417, %421 : vector<16x64xf32>
    %cst_242 = arith.constant 1.42141378 : f32
    %423 = vector.broadcast %cst_242 : f32 to vector<16x64xf32>
    %424 = arith.addf %423, %422 : vector<16x64xf32>
    %425 = arith.mulf %417, %424 : vector<16x64xf32>
    %cst_243 = arith.constant -0.284496725 : f32
    %426 = vector.broadcast %cst_243 : f32 to vector<16x64xf32>
    %427 = arith.addf %426, %425 : vector<16x64xf32>
    %428 = arith.mulf %417, %427 : vector<16x64xf32>
    %cst_244 = arith.constant 0.254829586 : f32
    %429 = vector.broadcast %cst_244 : f32 to vector<16x64xf32>
    %430 = arith.addf %429, %428 : vector<16x64xf32>
    %431 = arith.mulf %417, %430 : vector<16x64xf32>
    %cst_245 = arith.constant 0.000000e+00 : f32
    %432 = vector.broadcast %cst_245 : f32 to vector<16x64xf32>
    %433 = arith.subf %432, %411 : vector<16x64xf32>
    %434 = arith.mulf %433, %411 : vector<16x64xf32>
    %435 = math.exp %434 : vector<16x64xf32>
    %436 = arith.mulf %431, %435 : vector<16x64xf32>
    %cst_246 = arith.constant 1.000000e+00 : f32
    %437 = vector.broadcast %cst_246 : f32 to vector<16x64xf32>
    %438 = arith.subf %437, %436 : vector<16x64xf32>
    %cst_247 = arith.constant 0.000000e+00 : f32
    %439 = vector.broadcast %cst_247 : f32 to vector<16x64xf32>
    %440 = arith.cmpf olt, %410, %439 : vector<16x64xf32>
    %cst_248 = arith.constant 0.000000e+00 : f32
    %441 = vector.broadcast %cst_248 : f32 to vector<16x64xf32>
    %442 = arith.subf %441, %438 : vector<16x64xf32>
    %443 = arith.select %440, %442, %438 : vector<16x64xi1>, vector<16x64xf32>
    %cst_249 = arith.constant 5.000000e-01 : f32
    %444 = vector.broadcast %cst_249 : f32 to vector<16x64xf32>
    %445 = arith.mulf %444, %408 : vector<16x64xf32>
    %cst_250 = arith.constant 1.000000e+00 : f32
    %446 = vector.broadcast %cst_250 : f32 to vector<16x64xf32>
    %447 = arith.addf %446, %443 : vector<16x64xf32>
    %448 = arith.mulf %445, %447 : vector<16x64xf32>
    %c0_251 = arith.constant 0 : index
    %c0_252 = arith.constant 0 : index
    %449 = vector.load %arg77[%c0_251, %c0_252] : memref<64x32xf32, #tpu.memory_space<vmem>>, vector<64x32xf32>
    %cst_253 = arith.constant dense<0.000000e+00> : vector<16x32xf32>
    %450 = tpu.matmul %448, %449, %cst_253 {dimension_numbers = #tpu.dot_dimension_numbers<[1], [0], [0], [1], [0, 0, 1, 1], [], []>} : vector<16x64xf32>, vector<64x32xf32>, vector<16x32xf32> -> vector<16x32xf32>
    %c0_254 = arith.constant 0 : index
    %c0_255 = arith.constant 0 : index
    %451 = vector.load %arg75[%c0_254, %c0_255] : memref<1x32xf32, #tpu.memory_space<vmem>>, vector<1x32xf32>
    %452 = vector.broadcast %451 : vector<1x32xf32> to vector<16x32xf32>
    %453 = arith.addf %450, %452 : vector<16x32xf32>
    %454 = arith.addf %403, %453 : vector<16x32xf32>
    %cst_256 = arith.constant dense<0.000000e+00> : vector<16xf32>
    %455 = vector.multi_reduction <add>, %454, %cst_256 [1] : vector<16x32xf32> to vector<16xf32>
    %456 = vector.shape_cast %455 : vector<16xf32> to vector<16x1xf32>
    %cst_257 = arith.constant 3.200000e+01 : f32
    %457 = vector.broadcast %cst_257 : f32 to vector<16x1xf32>
    %458 = arith.divf %456, %457 : vector<16x1xf32>
    %459 = vector.broadcast %458 : vector<16x1xf32> to vector<16x32xf32>
    %460 = arith.subf %454, %459 : vector<16x32xf32>
    %461 = arith.mulf %460, %460 : vector<16x32xf32>
    %cst_258 = arith.constant dense<0.000000e+00> : vector<16xf32>
    %462 = vector.multi_reduction <add>, %461, %cst_258 [1] : vector<16x32xf32> to vector<16xf32>
    %463 = vector.shape_cast %462 : vector<16xf32> to vector<16x1xf32>
    %cst_259 = arith.constant 3.200000e+01 : f32
    %464 = vector.broadcast %cst_259 : f32 to vector<16x1xf32>
    %465 = arith.divf %463, %464 : vector<16x1xf32>
    %cst_260 = arith.constant 9.99999974E-6 : f32
    %466 = vector.broadcast %cst_260 : f32 to vector<16x1xf32>
    %467 = arith.addf %465, %466 : vector<16x1xf32>
    %468 = math.rsqrt %467 : vector<16x1xf32>
    %469 = vector.broadcast %468 : vector<16x1xf32> to vector<16x32xf32>
    %470 = arith.mulf %460, %469 : vector<16x32xf32>
    %c0_261 = arith.constant 0 : index
    %c0_262 = arith.constant 0 : index
    %471 = vector.load %arg81[%c0_261, %c0_262] : memref<1x32xf32, #tpu.memory_space<vmem>>, vector<1x32xf32>
    %472 = vector.broadcast %471 : vector<1x32xf32> to vector<16x32xf32>
    %473 = arith.mulf %470, %472 : vector<16x32xf32>
    %c0_263 = arith.constant 0 : index
    %c0_264 = arith.constant 0 : index
    %474 = vector.load %arg80[%c0_263, %c0_264] : memref<1x32xf32, #tpu.memory_space<vmem>>, vector<1x32xf32>
    %475 = vector.broadcast %474 : vector<1x32xf32> to vector<16x32xf32>
    %476 = arith.addf %473, %475 : vector<16x32xf32>
    %cst_265 = arith.constant dense<0.000000e+00> : vector<16xf32>
    %477 = vector.multi_reduction <add>, %476, %cst_265 [1] : vector<16x32xf32> to vector<16xf32>
    %478 = vector.shape_cast %477 : vector<16xf32> to vector<16x1xf32>
    %cst_266 = arith.constant 3.200000e+01 : f32
    %479 = vector.broadcast %cst_266 : f32 to vector<16x1xf32>
    %480 = arith.divf %478, %479 : vector<16x1xf32>
    %481 = vector.broadcast %480 : vector<16x1xf32> to vector<16x32xf32>
    %482 = arith.subf %476, %481 : vector<16x32xf32>
    %483 = arith.mulf %482, %482 : vector<16x32xf32>
    %cst_267 = arith.constant dense<0.000000e+00> : vector<16xf32>
    %484 = vector.multi_reduction <add>, %483, %cst_267 [1] : vector<16x32xf32> to vector<16xf32>
    %485 = vector.shape_cast %484 : vector<16xf32> to vector<16x1xf32>
    %cst_268 = arith.constant 3.200000e+01 : f32
    %486 = vector.broadcast %cst_268 : f32 to vector<16x1xf32>
    %487 = arith.divf %485, %486 : vector<16x1xf32>
    %cst_269 = arith.constant 9.99999974E-6 : f32
    %488 = vector.broadcast %cst_269 : f32 to vector<16x1xf32>
    %489 = arith.addf %487, %488 : vector<16x1xf32>
    %490 = math.rsqrt %489 : vector<16x1xf32>
    %491 = vector.broadcast %490 : vector<16x1xf32> to vector<16x32xf32>
    %492 = arith.mulf %482, %491 : vector<16x32xf32>
    %c0_270 = arith.constant 0 : index
    %c0_271 = arith.constant 0 : index
    %493 = vector.load %arg91[%c0_270, %c0_271] : memref<1x32xf32, #tpu.memory_space<vmem>>, vector<1x32xf32>
    %494 = vector.broadcast %493 : vector<1x32xf32> to vector<16x32xf32>
    %495 = arith.mulf %492, %494 : vector<16x32xf32>
    %c0_272 = arith.constant 0 : index
    %c0_273 = arith.constant 0 : index
    %496 = vector.load %arg90[%c0_272, %c0_273] : memref<1x32xf32, #tpu.memory_space<vmem>>, vector<1x32xf32>
    %497 = vector.broadcast %496 : vector<1x32xf32> to vector<16x32xf32>
    %498 = arith.addf %495, %497 : vector<16x32xf32>
    %c0_274 = arith.constant 0 : index
    %c0_275 = arith.constant 0 : index
    %499 = vector.load %arg93[%c0_274, %c0_275] : memref<16x32xf32, #tpu.memory_space<vmem>>, vector<16x32xf32>
    tpu.vector_store %arg93[%c0_274, %c0_275], %498 {strides = array<i32>} : memref<16x32xf32, #tpu.memory_space<vmem>>, vector<16x32xf32>,
    %c0_276 = arith.constant 0 : index
    %c0_277 = arith.constant 0 : index
    %500 = vector.load %arg1[%c0_276, %c0_277] : memref<16x32xf32, #tpu.memory_space<vmem>>, vector<16x32xf32>
    %c0_278 = arith.constant 0 : index
    %c0_279 = arith.constant 0 : index
    %501 = vector.load %arg26[%c0_278, %c0_279] : memref<32x32xf32, #tpu.memory_space<vmem>>, vector<32x32xf32>
    %cst_280 = arith.constant dense<0.000000e+00> : vector<16x32xf32>
    %502 = tpu.matmul %500, %501, %cst_280 {dimension_numbers = #tpu.dot_dimension_numbers<[1], [0], [0], [1], [0, 0, 1, 1], [], []>} : vector<16x32xf32>, vector<32x32xf32>, vector<16x32xf32> -> vector<16x32xf32>
    %c0_281 = arith.constant 0 : index
    %c0_282 = arith.constant 0 : index
    %503 = vector.load %arg22[%c0_281, %c0_282] : memref<1x32xf32, #tpu.memory_space<vmem>>, vector<1x32xf32>
    %504 = vector.broadcast %503 : vector<1x32xf32> to vector<16x32xf32>
    %505 = arith.addf %502, %504 : vector<16x32xf32>
    %506 = tpu.transpose %505, [1, 0] : vector<16x32xf32> -> vector<32x16xf32>
    %c0_283 = arith.constant 0 : index
    %c0_284 = arith.constant 0 : index
    %507 = vector.load %arg27[%c0_283, %c0_284] : memref<32x32xf32, #tpu.memory_space<vmem>>, vector<32x32xf32>
    %c0_285 = arith.constant 0 : index
    %c0_286 = arith.constant 0 : index
    %c0_287 = arith.constant 0 : index
    %508 = vector.load %arg28[%c0_285, %c0_286, %c0_287] : memref<4x32x8xf32, #tpu.memory_space<vmem>>, vector<1x32x8xf32>
    %509 = vector.shape_cast %508 : vector<1x32x8xf32> to vector<32x8xf32>
    %cst_288 = arith.constant dense<0.000000e+00> : vector<16x8xf32>
    %510 = tpu.matmul %500, %509, %cst_288 {dimension_numbers = #tpu.dot_dimension_numbers<[1], [0], [0], [1], [0, 0, 1, 1], [], []>} : vector<16x32xf32>, vector<32x8xf32>, vector<16x8xf32> -> vector<16x8xf32>
    %c0_289 = arith.constant 0 : index
    %c0_290 = arith.constant 0 : index
    %c0_291 = arith.constant 0 : index
    %511 = vector.load %arg24[%c0_289, %c0_290, %c0_291] : memref<4x1x8xf32, #tpu.memory_space<vmem>>, vector<1x1x8xf32>
    %512 = vector.shape_cast %511 : vector<1x1x8xf32> to vector<1x8xf32>
    %513 = vector.broadcast %512 : vector<1x8xf32> to vector<16x8xf32>
    %514 = arith.addf %510, %513 : vector<16x8xf32>
    %c0_292 = arith.constant 0 : index
    %c0_293 = arith.constant 0 : index
    %c0_294 = arith.constant 0 : index
    %515 = vector.load %arg29[%c0_292, %c0_293, %c0_294] : memref<4x32x8xf32, #tpu.memory_space<vmem>>, vector<1x32x8xf32>
    %516 = vector.shape_cast %515 : vector<1x32x8xf32> to vector<32x8xf32>
    %cst_295 = arith.constant dense<0.000000e+00> : vector<16x8xf32>
    %517 = tpu.matmul %500, %516, %cst_295 {dimension_numbers = #tpu.dot_dimension_numbers<[1], [0], [0], [1], [0, 0, 1, 1], [], []>} : vector<16x32xf32>, vector<32x8xf32>, vector<16x8xf32> -> vector<16x8xf32>
    %c0_296 = arith.constant 0 : index
    %c0_297 = arith.constant 0 : index
    %c0_298 = arith.constant 0 : index
    %518 = vector.load %arg25[%c0_296, %c0_297, %c0_298] : memref<4x1x8xf32, #tpu.memory_space<vmem>>, vector<1x1x8xf32>
    %519 = vector.shape_cast %518 : vector<1x1x8xf32> to vector<1x8xf32>
    %520 = vector.broadcast %519 : vector<1x8xf32> to vector<16x8xf32>
    %521 = arith.addf %517, %520 : vector<16x8xf32>
    %522 = vector.extract_strided_slice %506 {offsets = [0, 0], sizes = [8, 16], strides = [1, 1]} : vector<32x16xf32> to vector<8x16xf32>
    %cst_299 = arith.constant dense<0.000000e+00> : vector<16x16xf32>
    %523 = tpu.matmul %514, %522, %cst_299 {dimension_numbers = #tpu.dot_dimension_numbers<[1], [0], [0], [1], [0, 0, 1, 1], [], []>} : vector<16x8xf32>, vector<8x16xf32>, vector<16x16xf32> -> vector<16x16xf32>
    %cst_300 = arith.constant 0.353553385 : f32
    %524 = vector.broadcast %cst_300 : f32 to vector<16x16xf32>
    %525 = arith.mulf %523, %524 : vector<16x16xf32>
    %526 = arith.addf %525, %1 : vector<16x16xf32>
    %cst_301 = arith.constant dense<0xFF800000> : vector<16xf32>
    %527 = vector.multi_reduction <maximumf>, %526, %cst_301 [1] : vector<16x16xf32> to vector<16xf32>
    %528 = vector.shape_cast %527 : vector<16xf32> to vector<16x1xf32>
    %529 = vector.broadcast %528 : vector<16x1xf32> to vector<16x16xf32>
    %530 = arith.subf %526, %529 : vector<16x16xf32>
    %531 = math.exp %530 : vector<16x16xf32>
    %cst_302 = arith.constant dense<0.000000e+00> : vector<16xf32>
    %532 = vector.multi_reduction <add>, %531, %cst_302 [1] : vector<16x16xf32> to vector<16xf32>
    %533 = vector.shape_cast %532 : vector<16xf32> to vector<16x1xf32>
    %cst_303 = arith.constant dense<0.000000e+00> : vector<16x8xf32>
    %534 = tpu.matmul %531, %521, %cst_303 {dimension_numbers = #tpu.dot_dimension_numbers<[1], [0], [0], [1], [0, 0, 1, 1], [], []>} : vector<16x16xf32>, vector<16x8xf32>, vector<16x8xf32> -> vector<16x8xf32>
    %535 = tpu.reciprocal %533 {approx = true} : vector<16x1xf32> -> vector<16x1xf32>
    %536 = vector.broadcast %535 : vector<16x1xf32> to vector<16x8xf32>
    %537 = arith.mulf %534, %536 : vector<16x8xf32>
    %538 = vector.extract_strided_slice %507 {offsets = [0, 0], sizes = [8, 32], strides = [1, 1]} : vector<32x32xf32> to vector<8x32xf32>
    %cst_304 = arith.constant dense<0.000000e+00> : vector<16x32xf32>
    %539 = tpu.matmul %537, %538, %cst_304 {dimension_numbers = #tpu.dot_dimension_numbers<[1], [0], [0], [1], [0, 0, 1, 1], [], []>} : vector<16x8xf32>, vector<8x32xf32>, vector<16x32xf32> -> vector<16x32xf32>
    %c1_305 = arith.constant 1 : index
    %c0_306 = arith.constant 0 : index
    %c0_307 = arith.constant 0 : index
    %540 = vector.load %arg28[%c1_305, %c0_306, %c0_307] : memref<4x32x8xf32, #tpu.memory_space<vmem>>, vector<1x32x8xf32>
    %541 = vector.shape_cast %540 : vector<1x32x8xf32> to vector<32x8xf32>
    %cst_308 = arith.constant dense<0.000000e+00> : vector<16x8xf32>
    %542 = tpu.matmul %500, %541, %cst_308 {dimension_numbers = #tpu.dot_dimension_numbers<[1], [0], [0], [1], [0, 0, 1, 1], [], []>} : vector<16x32xf32>, vector<32x8xf32>, vector<16x8xf32> -> vector<16x8xf32>
    %c1_309 = arith.constant 1 : index
    %c0_310 = arith.constant 0 : index
    %c0_311 = arith.constant 0 : index
    %543 = vector.load %arg24[%c1_309, %c0_310, %c0_311] : memref<4x1x8xf32, #tpu.memory_space<vmem>>, vector<1x1x8xf32>
    %544 = vector.shape_cast %543 : vector<1x1x8xf32> to vector<1x8xf32>
    %545 = vector.broadcast %544 : vector<1x8xf32> to vector<16x8xf32>
    %546 = arith.addf %542, %545 : vector<16x8xf32>
    %c1_312 = arith.constant 1 : index
    %c0_313 = arith.constant 0 : index
    %c0_314 = arith.constant 0 : index
    %547 = vector.load %arg29[%c1_312, %c0_313, %c0_314] : memref<4x32x8xf32, #tpu.memory_space<vmem>>, vector<1x32x8xf32>
    %548 = vector.shape_cast %547 : vector<1x32x8xf32> to vector<32x8xf32>
    %cst_315 = arith.constant dense<0.000000e+00> : vector<16x8xf32>
    %549 = tpu.matmul %500, %548, %cst_315 {dimension_numbers = #tpu.dot_dimension_numbers<[1], [0], [0], [1], [0, 0, 1, 1], [], []>} : vector<16x32xf32>, vector<32x8xf32>, vector<16x8xf32> -> vector<16x8xf32>
    %c1_316 = arith.constant 1 : index
    %c0_317 = arith.constant 0 : index
    %c0_318 = arith.constant 0 : index
    %550 = vector.load %arg25[%c1_316, %c0_317, %c0_318] : memref<4x1x8xf32, #tpu.memory_space<vmem>>, vector<1x1x8xf32>
    %551 = vector.shape_cast %550 : vector<1x1x8xf32> to vector<1x8xf32>
    %552 = vector.broadcast %551 : vector<1x8xf32> to vector<16x8xf32>
    %553 = arith.addf %549, %552 : vector<16x8xf32>
    %554 = vector.extract_strided_slice %506 {offsets = [8, 0], sizes = [8, 16], strides = [1, 1]} : vector<32x16xf32> to vector<8x16xf32>
    %cst_319 = arith.constant dense<0.000000e+00> : vector<16x16xf32>
    %555 = tpu.matmul %546, %554, %cst_319 {dimension_numbers = #tpu.dot_dimension_numbers<[1], [0], [0], [1], [0, 0, 1, 1], [], []>} : vector<16x8xf32>, vector<8x16xf32>, vector<16x16xf32> -> vector<16x16xf32>
    %cst_320 = arith.constant 0.353553385 : f32
    %556 = vector.broadcast %cst_320 : f32 to vector<16x16xf32>
    %557 = arith.mulf %555, %556 : vector<16x16xf32>
    %558 = arith.addf %557, %1 : vector<16x16xf32>
    %cst_321 = arith.constant dense<0xFF800000> : vector<16xf32>
    %559 = vector.multi_reduction <maximumf>, %558, %cst_321 [1] : vector<16x16xf32> to vector<16xf32>
    %560 = vector.shape_cast %559 : vector<16xf32> to vector<16x1xf32>
    %561 = vector.broadcast %560 : vector<16x1xf32> to vector<16x16xf32>
    %562 = arith.subf %558, %561 : vector<16x16xf32>
    %563 = math.exp %562 : vector<16x16xf32>
    %cst_322 = arith.constant dense<0.000000e+00> : vector<16xf32>
    %564 = vector.multi_reduction <add>, %563, %cst_322 [1] : vector<16x16xf32> to vector<16xf32>
    %565 = vector.shape_cast %564 : vector<16xf32> to vector<16x1xf32>
    %cst_323 = arith.constant dense<0.000000e+00> : vector<16x8xf32>
    %566 = tpu.matmul %563, %553, %cst_323 {dimension_numbers = #tpu.dot_dimension_numbers<[1], [0], [0], [1], [0, 0, 1, 1], [], []>} : vector<16x16xf32>, vector<16x8xf32>, vector<16x8xf32> -> vector<16x8xf32>
    %567 = tpu.reciprocal %565 {approx = true} : vector<16x1xf32> -> vector<16x1xf32>
    %568 = vector.broadcast %567 : vector<16x1xf32> to vector<16x8xf32>
    %569 = arith.mulf %566, %568 : vector<16x8xf32>
    %570 = vector.extract_strided_slice %507 {offsets = [8, 0], sizes = [8, 32], strides = [1, 1]} : vector<32x32xf32> to vector<8x32xf32>
    %cst_324 = arith.constant dense<0.000000e+00> : vector<16x32xf32>
    %571 = tpu.matmul %569, %570, %cst_324 {dimension_numbers = #tpu.dot_dimension_numbers<[1], [0], [0], [1], [0, 0, 1, 1], [], []>} : vector<16x8xf32>, vector<8x32xf32>, vector<16x32xf32> -> vector<16x32xf32>
    %572 = arith.addf %539, %571 : vector<16x32xf32>
    %c2_325 = arith.constant 2 : index
    %c0_326 = arith.constant 0 : index
    %c0_327 = arith.constant 0 : index
    %573 = vector.load %arg28[%c2_325, %c0_326, %c0_327] : memref<4x32x8xf32, #tpu.memory_space<vmem>>, vector<1x32x8xf32>
    %574 = vector.shape_cast %573 : vector<1x32x8xf32> to vector<32x8xf32>
    %cst_328 = arith.constant dense<0.000000e+00> : vector<16x8xf32>
    %575 = tpu.matmul %500, %574, %cst_328 {dimension_numbers = #tpu.dot_dimension_numbers<[1], [0], [0], [1], [0, 0, 1, 1], [], []>} : vector<16x32xf32>, vector<32x8xf32>, vector<16x8xf32> -> vector<16x8xf32>
    %c2_329 = arith.constant 2 : index
    %c0_330 = arith.constant 0 : index
    %c0_331 = arith.constant 0 : index
    %576 = vector.load %arg24[%c2_329, %c0_330, %c0_331] : memref<4x1x8xf32, #tpu.memory_space<vmem>>, vector<1x1x8xf32>
    %577 = vector.shape_cast %576 : vector<1x1x8xf32> to vector<1x8xf32>
    %578 = vector.broadcast %577 : vector<1x8xf32> to vector<16x8xf32>
    %579 = arith.addf %575, %578 : vector<16x8xf32>
    %c2_332 = arith.constant 2 : index
    %c0_333 = arith.constant 0 : index
    %c0_334 = arith.constant 0 : index
    %580 = vector.load %arg29[%c2_332, %c0_333, %c0_334] : memref<4x32x8xf32, #tpu.memory_space<vmem>>, vector<1x32x8xf32>
    %581 = vector.shape_cast %580 : vector<1x32x8xf32> to vector<32x8xf32>
    %cst_335 = arith.constant dense<0.000000e+00> : vector<16x8xf32>
    %582 = tpu.matmul %500, %581, %cst_335 {dimension_numbers = #tpu.dot_dimension_numbers<[1], [0], [0], [1], [0, 0, 1, 1], [], []>} : vector<16x32xf32>, vector<32x8xf32>, vector<16x8xf32> -> vector<16x8xf32>
    %c2_336 = arith.constant 2 : index
    %c0_337 = arith.constant 0 : index
    %c0_338 = arith.constant 0 : index
    %583 = vector.load %arg25[%c2_336, %c0_337, %c0_338] : memref<4x1x8xf32, #tpu.memory_space<vmem>>, vector<1x1x8xf32>
    %584 = vector.shape_cast %583 : vector<1x1x8xf32> to vector<1x8xf32>
    %585 = vector.broadcast %584 : vector<1x8xf32> to vector<16x8xf32>
    %586 = arith.addf %582, %585 : vector<16x8xf32>
    %587 = vector.extract_strided_slice %506 {offsets = [16, 0], sizes = [8, 16], strides = [1, 1]} : vector<32x16xf32> to vector<8x16xf32>
    %cst_339 = arith.constant dense<0.000000e+00> : vector<16x16xf32>
    %588 = tpu.matmul %579, %587, %cst_339 {dimension_numbers = #tpu.dot_dimension_numbers<[1], [0], [0], [1], [0, 0, 1, 1], [], []>} : vector<16x8xf32>, vector<8x16xf32>, vector<16x16xf32> -> vector<16x16xf32>
    %cst_340 = arith.constant 0.353553385 : f32
    %589 = vector.broadcast %cst_340 : f32 to vector<16x16xf32>
    %590 = arith.mulf %588, %589 : vector<16x16xf32>
    %591 = arith.addf %590, %1 : vector<16x16xf32>
    %cst_341 = arith.constant dense<0xFF800000> : vector<16xf32>
    %592 = vector.multi_reduction <maximumf>, %591, %cst_341 [1] : vector<16x16xf32> to vector<16xf32>
    %593 = vector.shape_cast %592 : vector<16xf32> to vector<16x1xf32>
    %594 = vector.broadcast %593 : vector<16x1xf32> to vector<16x16xf32>
    %595 = arith.subf %591, %594 : vector<16x16xf32>
    %596 = math.exp %595 : vector<16x16xf32>
    %cst_342 = arith.constant dense<0.000000e+00> : vector<16xf32>
    %597 = vector.multi_reduction <add>, %596, %cst_342 [1] : vector<16x16xf32> to vector<16xf32>
    %598 = vector.shape_cast %597 : vector<16xf32> to vector<16x1xf32>
    %cst_343 = arith.constant dense<0.000000e+00> : vector<16x8xf32>
    %599 = tpu.matmul %596, %586, %cst_343 {dimension_numbers = #tpu.dot_dimension_numbers<[1], [0], [0], [1], [0, 0, 1, 1], [], []>} : vector<16x16xf32>, vector<16x8xf32>, vector<16x8xf32> -> vector<16x8xf32>
    %600 = tpu.reciprocal %598 {approx = true} : vector<16x1xf32> -> vector<16x1xf32>
    %601 = vector.broadcast %600 : vector<16x1xf32> to vector<16x8xf32>
    %602 = arith.mulf %599, %601 : vector<16x8xf32>
    %603 = vector.extract_strided_slice %507 {offsets = [16, 0], sizes = [8, 32], strides = [1, 1]} : vector<32x32xf32> to vector<8x32xf32>
    %cst_344 = arith.constant dense<0.000000e+00> : vector<16x32xf32>
    %604 = tpu.matmul %602, %603, %cst_344 {dimension_numbers = #tpu.dot_dimension_numbers<[1], [0], [0], [1], [0, 0, 1, 1], [], []>} : vector<16x8xf32>, vector<8x32xf32>, vector<16x32xf32> -> vector<16x32xf32>
    %605 = arith.addf %572, %604 : vector<16x32xf32>
    %c3_345 = arith.constant 3 : index
    %c0_346 = arith.constant 0 : index
    %c0_347 = arith.constant 0 : index
    %606 = vector.load %arg28[%c3_345, %c0_346, %c0_347] : memref<4x32x8xf32, #tpu.memory_space<vmem>>, vector<1x32x8xf32>
    %607 = vector.shape_cast %606 : vector<1x32x8xf32> to vector<32x8xf32>
    %cst_348 = arith.constant dense<0.000000e+00> : vector<16x8xf32>
    %608 = tpu.matmul %500, %607, %cst_348 {dimension_numbers = #tpu.dot_dimension_numbers<[1], [0], [0], [1], [0, 0, 1, 1], [], []>} : vector<16x32xf32>, vector<32x8xf32>, vector<16x8xf32> -> vector<16x8xf32>
    %c3_349 = arith.constant 3 : index
    %c0_350 = arith.constant 0 : index
    %c0_351 = arith.constant 0 : index
    %609 = vector.load %arg24[%c3_349, %c0_350, %c0_351] : memref<4x1x8xf32, #tpu.memory_space<vmem>>, vector<1x1x8xf32>
    %610 = vector.shape_cast %609 : vector<1x1x8xf32> to vector<1x8xf32>
    %611 = vector.broadcast %610 : vector<1x8xf32> to vector<16x8xf32>
    %612 = arith.addf %608, %611 : vector<16x8xf32>
    %c3_352 = arith.constant 3 : index
    %c0_353 = arith.constant 0 : index
    %c0_354 = arith.constant 0 : index
    %613 = vector.load %arg29[%c3_352, %c0_353, %c0_354] : memref<4x32x8xf32, #tpu.memory_space<vmem>>, vector<1x32x8xf32>
    %614 = vector.shape_cast %613 : vector<1x32x8xf32> to vector<32x8xf32>
    %cst_355 = arith.constant dense<0.000000e+00> : vector<16x8xf32>
    %615 = tpu.matmul %500, %614, %cst_355 {dimension_numbers = #tpu.dot_dimension_numbers<[1], [0], [0], [1], [0, 0, 1, 1], [], []>} : vector<16x32xf32>, vector<32x8xf32>, vector<16x8xf32> -> vector<16x8xf32>
    %c3_356 = arith.constant 3 : index
    %c0_357 = arith.constant 0 : index
    %c0_358 = arith.constant 0 : index
    %616 = vector.load %arg25[%c3_356, %c0_357, %c0_358] : memref<4x1x8xf32, #tpu.memory_space<vmem>>, vector<1x1x8xf32>
    %617 = vector.shape_cast %616 : vector<1x1x8xf32> to vector<1x8xf32>
    %618 = vector.broadcast %617 : vector<1x8xf32> to vector<16x8xf32>
    %619 = arith.addf %615, %618 : vector<16x8xf32>
    %620 = vector.extract_strided_slice %506 {offsets = [24, 0], sizes = [8, 16], strides = [1, 1]} : vector<32x16xf32> to vector<8x16xf32>
    %cst_359 = arith.constant dense<0.000000e+00> : vector<16x16xf32>
    %621 = tpu.matmul %612, %620, %cst_359 {dimension_numbers = #tpu.dot_dimension_numbers<[1], [0], [0], [1], [0, 0, 1, 1], [], []>} : vector<16x8xf32>, vector<8x16xf32>, vector<16x16xf32> -> vector<16x16xf32>
    %cst_360 = arith.constant 0.353553385 : f32
    %622 = vector.broadcast %cst_360 : f32 to vector<16x16xf32>
    %623 = arith.mulf %621, %622 : vector<16x16xf32>
    %624 = arith.addf %623, %1 : vector<16x16xf32>
    %cst_361 = arith.constant dense<0xFF800000> : vector<16xf32>
    %625 = vector.multi_reduction <maximumf>, %624, %cst_361 [1] : vector<16x16xf32> to vector<16xf32>
    %626 = vector.shape_cast %625 : vector<16xf32> to vector<16x1xf32>
    %627 = vector.broadcast %626 : vector<16x1xf32> to vector<16x16xf32>
    %628 = arith.subf %624, %627 : vector<16x16xf32>
    %629 = math.exp %628 : vector<16x16xf32>
    %cst_362 = arith.constant dense<0.000000e+00> : vector<16xf32>
    %630 = vector.multi_reduction <add>, %629, %cst_362 [1] : vector<16x16xf32> to vector<16xf32>
    %631 = vector.shape_cast %630 : vector<16xf32> to vector<16x1xf32>
    %cst_363 = arith.constant dense<0.000000e+00> : vector<16x8xf32>
    %632 = tpu.matmul %629, %619, %cst_363 {dimension_numbers = #tpu.dot_dimension_numbers<[1], [0], [0], [1], [0, 0, 1, 1], [], []>} : vector<16x16xf32>, vector<16x8xf32>, vector<16x8xf32> -> vector<16x8xf32>
    %633 = tpu.reciprocal %631 {approx = true} : vector<16x1xf32> -> vector<16x1xf32>
    %634 = vector.broadcast %633 : vector<16x1xf32> to vector<16x8xf32>
    %635 = arith.mulf %632, %634 : vector<16x8xf32>
    %636 = vector.extract_strided_slice %507 {offsets = [24, 0], sizes = [8, 32], strides = [1, 1]} : vector<32x32xf32> to vector<8x32xf32>
    %cst_364 = arith.constant dense<0.000000e+00> : vector<16x32xf32>
    %637 = tpu.matmul %635, %636, %cst_364 {dimension_numbers = #tpu.dot_dimension_numbers<[1], [0], [0], [1], [0, 0, 1, 1], [], []>} : vector<16x8xf32>, vector<8x32xf32>, vector<16x32xf32> -> vector<16x32xf32>
    %638 = arith.addf %605, %637 : vector<16x32xf32>
    %c0_365 = arith.constant 0 : index
    %c0_366 = arith.constant 0 : index
    %639 = vector.load %arg23[%c0_365, %c0_366] : memref<1x32xf32, #tpu.memory_space<vmem>>, vector<1x32xf32>
    %640 = vector.broadcast %639 : vector<1x32xf32> to vector<16x32xf32>
    %641 = arith.addf %638, %640 : vector<16x32xf32>
    %642 = arith.addf %500, %641 : vector<16x32xf32>
    %cst_367 = arith.constant dense<0.000000e+00> : vector<16xf32>
    %643 = vector.multi_reduction <add>, %642, %cst_367 [1] : vector<16x32xf32> to vector<16xf32>
    %644 = vector.shape_cast %643 : vector<16xf32> to vector<16x1xf32>
    %cst_368 = arith.constant 3.200000e+01 : f32
    %645 = vector.broadcast %cst_368 : f32 to vector<16x1xf32>
    %646 = arith.divf %644, %645 : vector<16x1xf32>
    %647 = vector.broadcast %646 : vector<16x1xf32> to vector<16x32xf32>
    %648 = arith.subf %642, %647 : vector<16x32xf32>
    %649 = arith.mulf %648, %648 : vector<16x32xf32>
    %cst_369 = arith.constant dense<0.000000e+00> : vector<16xf32>
    %650 = vector.multi_reduction <add>, %649, %cst_369 [1] : vector<16x32xf32> to vector<16xf32>
    %651 = vector.shape_cast %650 : vector<16xf32> to vector<16x1xf32>
    %cst_370 = arith.constant 3.200000e+01 : f32
    %652 = vector.broadcast %cst_370 : f32 to vector<16x1xf32>
    %653 = arith.divf %651, %652 : vector<16x1xf32>
    %cst_371 = arith.constant 9.99999974E-6 : f32
    %654 = vector.broadcast %cst_371 : f32 to vector<16x1xf32>
    %655 = arith.addf %653, %654 : vector<16x1xf32>
    %656 = math.rsqrt %655 : vector<16x1xf32>
    %657 = vector.broadcast %656 : vector<16x1xf32> to vector<16x32xf32>
    %658 = arith.mulf %648, %657 : vector<16x32xf32>
    %c0_372 = arith.constant 0 : index
    %c0_373 = arith.constant 0 : index
    %659 = vector.load %arg17[%c0_372, %c0_373] : memref<1x32xf32, #tpu.memory_space<vmem>>, vector<1x32xf32>
    %660 = vector.broadcast %659 : vector<1x32xf32> to vector<16x32xf32>
    %661 = arith.mulf %658, %660 : vector<16x32xf32>
    %c0_374 = arith.constant 0 : index
    %c0_375 = arith.constant 0 : index
    %662 = vector.load %arg16[%c0_374, %c0_375] : memref<1x32xf32, #tpu.memory_space<vmem>>, vector<1x32xf32>
    %663 = vector.broadcast %662 : vector<1x32xf32> to vector<16x32xf32>
    %664 = arith.addf %661, %663 : vector<16x32xf32>
    %c0_376 = arith.constant 0 : index
    %c0_377 = arith.constant 0 : index
    %665 = vector.load %arg8[%c0_376, %c0_377] : memref<32x32xf32, #tpu.memory_space<vmem>>, vector<32x32xf32>
    %cst_378 = arith.constant dense<0.000000e+00> : vector<16x32xf32>
    %666 = tpu.matmul %498, %665, %cst_378 {dimension_numbers = #tpu.dot_dimension_numbers<[1], [0], [0], [1], [0, 0, 1, 1], [], []>} : vector<16x32xf32>, vector<32x32xf32>, vector<16x32xf32> -> vector<16x32xf32>
    %c0_379 = arith.constant 0 : index
    %c0_380 = arith.constant 0 : index
    %667 = vector.load %arg4[%c0_379, %c0_380] : memref<1x32xf32, #tpu.memory_space<vmem>>, vector<1x32xf32>
    %668 = vector.broadcast %667 : vector<1x32xf32> to vector<16x32xf32>
    %669 = arith.addf %666, %668 : vector<16x32xf32>
    %670 = tpu.transpose %669, [1, 0] : vector<16x32xf32> -> vector<32x16xf32>
    %c0_381 = arith.constant 0 : index
    %c0_382 = arith.constant 0 : index
    %671 = vector.load %arg9[%c0_381, %c0_382] : memref<32x32xf32, #tpu.memory_space<vmem>>, vector<32x32xf32>
    %c0_383 = arith.constant 0 : index
    %c0_384 = arith.constant 0 : index
    %c0_385 = arith.constant 0 : index
    %672 = vector.load %arg10[%c0_383, %c0_384, %c0_385] : memref<4x32x8xf32, #tpu.memory_space<vmem>>, vector<1x32x8xf32>
    %673 = vector.shape_cast %672 : vector<1x32x8xf32> to vector<32x8xf32>
    %cst_386 = arith.constant dense<0.000000e+00> : vector<16x8xf32>
    %674 = tpu.matmul %664, %673, %cst_386 {dimension_numbers = #tpu.dot_dimension_numbers<[1], [0], [0], [1], [0, 0, 1, 1], [], []>} : vector<16x32xf32>, vector<32x8xf32>, vector<16x8xf32> -> vector<16x8xf32>
    %c0_387 = arith.constant 0 : index
    %c0_388 = arith.constant 0 : index
    %c0_389 = arith.constant 0 : index
    %675 = vector.load %arg6[%c0_387, %c0_388, %c0_389] : memref<4x1x8xf32, #tpu.memory_space<vmem>>, vector<1x1x8xf32>
    %676 = vector.shape_cast %675 : vector<1x1x8xf32> to vector<1x8xf32>
    %677 = vector.broadcast %676 : vector<1x8xf32> to vector<16x8xf32>
    %678 = arith.addf %674, %677 : vector<16x8xf32>
    %c0_390 = arith.constant 0 : index
    %c0_391 = arith.constant 0 : index
    %c0_392 = arith.constant 0 : index
    %679 = vector.load %arg11[%c0_390, %c0_391, %c0_392] : memref<4x32x8xf32, #tpu.memory_space<vmem>>, vector<1x32x8xf32>
    %680 = vector.shape_cast %679 : vector<1x32x8xf32> to vector<32x8xf32>
    %cst_393 = arith.constant dense<0.000000e+00> : vector<16x8xf32>
    %681 = tpu.matmul %498, %680, %cst_393 {dimension_numbers = #tpu.dot_dimension_numbers<[1], [0], [0], [1], [0, 0, 1, 1], [], []>} : vector<16x32xf32>, vector<32x8xf32>, vector<16x8xf32> -> vector<16x8xf32>
    %c0_394 = arith.constant 0 : index
    %c0_395 = arith.constant 0 : index
    %c0_396 = arith.constant 0 : index
    %682 = vector.load %arg7[%c0_394, %c0_395, %c0_396] : memref<4x1x8xf32, #tpu.memory_space<vmem>>, vector<1x1x8xf32>
    %683 = vector.shape_cast %682 : vector<1x1x8xf32> to vector<1x8xf32>
    %684 = vector.broadcast %683 : vector<1x8xf32> to vector<16x8xf32>
    %685 = arith.addf %681, %684 : vector<16x8xf32>
    %686 = vector.extract_strided_slice %670 {offsets = [0, 0], sizes = [8, 16], strides = [1, 1]} : vector<32x16xf32> to vector<8x16xf32>
    %cst_397 = arith.constant dense<0.000000e+00> : vector<16x16xf32>
    %687 = tpu.matmul %678, %686, %cst_397 {dimension_numbers = #tpu.dot_dimension_numbers<[1], [0], [0], [1], [0, 0, 1, 1], [], []>} : vector<16x8xf32>, vector<8x16xf32>, vector<16x16xf32> -> vector<16x16xf32>
    %cst_398 = arith.constant 0.353553385 : f32
    %688 = vector.broadcast %cst_398 : f32 to vector<16x16xf32>
    %689 = arith.mulf %687, %688 : vector<16x16xf32>
    %690 = arith.addf %689, %0 : vector<16x16xf32>
    %cst_399 = arith.constant dense<0xFF800000> : vector<16xf32>
    %691 = vector.multi_reduction <maximumf>, %690, %cst_399 [1] : vector<16x16xf32> to vector<16xf32>
    %692 = vector.shape_cast %691 : vector<16xf32> to vector<16x1xf32>
    %693 = vector.broadcast %692 : vector<16x1xf32> to vector<16x16xf32>
    %694 = arith.subf %690, %693 : vector<16x16xf32>
    %695 = math.exp %694 : vector<16x16xf32>
    %cst_400 = arith.constant dense<0.000000e+00> : vector<16xf32>
    %696 = vector.multi_reduction <add>, %695, %cst_400 [1] : vector<16x16xf32> to vector<16xf32>
    %697 = vector.shape_cast %696 : vector<16xf32> to vector<16x1xf32>
    %cst_401 = arith.constant dense<0.000000e+00> : vector<16x8xf32>
    %698 = tpu.matmul %695, %685, %cst_401 {dimension_numbers = #tpu.dot_dimension_numbers<[1], [0], [0], [1], [0, 0, 1, 1], [], []>} : vector<16x16xf32>, vector<16x8xf32>, vector<16x8xf32> -> vector<16x8xf32>
    %699 = tpu.reciprocal %697 {approx = true} : vector<16x1xf32> -> vector<16x1xf32>
    %700 = vector.broadcast %699 : vector<16x1xf32> to vector<16x8xf32>
    %701 = arith.mulf %698, %700 : vector<16x8xf32>
    %702 = vector.extract_strided_slice %671 {offsets = [0, 0], sizes = [8, 32], strides = [1, 1]} : vector<32x32xf32> to vector<8x32xf32>
    %cst_402 = arith.constant dense<0.000000e+00> : vector<16x32xf32>
    %703 = tpu.matmul %701, %702, %cst_402 {dimension_numbers = #tpu.dot_dimension_numbers<[1], [0], [0], [1], [0, 0, 1, 1], [], []>} : vector<16x8xf32>, vector<8x32xf32>, vector<16x32xf32> -> vector<16x32xf32>
    %c1_403 = arith.constant 1 : index
    %c0_404 = arith.constant 0 : index
    %c0_405 = arith.constant 0 : index
    %704 = vector.load %arg10[%c1_403, %c0_404, %c0_405] : memref<4x32x8xf32, #tpu.memory_space<vmem>>, vector<1x32x8xf32>
    %705 = vector.shape_cast %704 : vector<1x32x8xf32> to vector<32x8xf32>
    %cst_406 = arith.constant dense<0.000000e+00> : vector<16x8xf32>
    %706 = tpu.matmul %664, %705, %cst_406 {dimension_numbers = #tpu.dot_dimension_numbers<[1], [0], [0], [1], [0, 0, 1, 1], [], []>} : vector<16x32xf32>, vector<32x8xf32>, vector<16x8xf32> -> vector<16x8xf32>
    %c1_407 = arith.constant 1 : index
    %c0_408 = arith.constant 0 : index
    %c0_409 = arith.constant 0 : index
    %707 = vector.load %arg6[%c1_407, %c0_408, %c0_409] : memref<4x1x8xf32, #tpu.memory_space<vmem>>, vector<1x1x8xf32>
    %708 = vector.shape_cast %707 : vector<1x1x8xf32> to vector<1x8xf32>
    %709 = vector.broadcast %708 : vector<1x8xf32> to vector<16x8xf32>
    %710 = arith.addf %706, %709 : vector<16x8xf32>
    %c1_410 = arith.constant 1 : index
    %c0_411 = arith.constant 0 : index
    %c0_412 = arith.constant 0 : index
    %711 = vector.load %arg11[%c1_410, %c0_411, %c0_412] : memref<4x32x8xf32, #tpu.memory_space<vmem>>, vector<1x32x8xf32>
    %712 = vector.shape_cast %711 : vector<1x32x8xf32> to vector<32x8xf32>
    %cst_413 = arith.constant dense<0.000000e+00> : vector<16x8xf32>
    %713 = tpu.matmul %498, %712, %cst_413 {dimension_numbers = #tpu.dot_dimension_numbers<[1], [0], [0], [1], [0, 0, 1, 1], [], []>} : vector<16x32xf32>, vector<32x8xf32>, vector<16x8xf32> -> vector<16x8xf32>
    %c1_414 = arith.constant 1 : index
    %c0_415 = arith.constant 0 : index
    %c0_416 = arith.constant 0 : index
    %714 = vector.load %arg7[%c1_414, %c0_415, %c0_416] : memref<4x1x8xf32, #tpu.memory_space<vmem>>, vector<1x1x8xf32>
    %715 = vector.shape_cast %714 : vector<1x1x8xf32> to vector<1x8xf32>
    %716 = vector.broadcast %715 : vector<1x8xf32> to vector<16x8xf32>
    %717 = arith.addf %713, %716 : vector<16x8xf32>
    %718 = vector.extract_strided_slice %670 {offsets = [8, 0], sizes = [8, 16], strides = [1, 1]} : vector<32x16xf32> to vector<8x16xf32>
    %cst_417 = arith.constant dense<0.000000e+00> : vector<16x16xf32>
    %719 = tpu.matmul %710, %718, %cst_417 {dimension_numbers = #tpu.dot_dimension_numbers<[1], [0], [0], [1], [0, 0, 1, 1], [], []>} : vector<16x8xf32>, vector<8x16xf32>, vector<16x16xf32> -> vector<16x16xf32>
    %cst_418 = arith.constant 0.353553385 : f32
    %720 = vector.broadcast %cst_418 : f32 to vector<16x16xf32>
    %721 = arith.mulf %719, %720 : vector<16x16xf32>
    %722 = arith.addf %721, %0 : vector<16x16xf32>
    %cst_419 = arith.constant dense<0xFF800000> : vector<16xf32>
    %723 = vector.multi_reduction <maximumf>, %722, %cst_419 [1] : vector<16x16xf32> to vector<16xf32>
    %724 = vector.shape_cast %723 : vector<16xf32> to vector<16x1xf32>
    %725 = vector.broadcast %724 : vector<16x1xf32> to vector<16x16xf32>
    %726 = arith.subf %722, %725 : vector<16x16xf32>
    %727 = math.exp %726 : vector<16x16xf32>
    %cst_420 = arith.constant dense<0.000000e+00> : vector<16xf32>
    %728 = vector.multi_reduction <add>, %727, %cst_420 [1] : vector<16x16xf32> to vector<16xf32>
    %729 = vector.shape_cast %728 : vector<16xf32> to vector<16x1xf32>
    %cst_421 = arith.constant dense<0.000000e+00> : vector<16x8xf32>
    %730 = tpu.matmul %727, %717, %cst_421 {dimension_numbers = #tpu.dot_dimension_numbers<[1], [0], [0], [1], [0, 0, 1, 1], [], []>} : vector<16x16xf32>, vector<16x8xf32>, vector<16x8xf32> -> vector<16x8xf32>
    %731 = tpu.reciprocal %729 {approx = true} : vector<16x1xf32> -> vector<16x1xf32>
    %732 = vector.broadcast %731 : vector<16x1xf32> to vector<16x8xf32>
    %733 = arith.mulf %730, %732 : vector<16x8xf32>
    %734 = vector.extract_strided_slice %671 {offsets = [8, 0], sizes = [8, 32], strides = [1, 1]} : vector<32x32xf32> to vector<8x32xf32>
    %cst_422 = arith.constant dense<0.000000e+00> : vector<16x32xf32>
    %735 = tpu.matmul %733, %734, %cst_422 {dimension_numbers = #tpu.dot_dimension_numbers<[1], [0], [0], [1], [0, 0, 1, 1], [], []>} : vector<16x8xf32>, vector<8x32xf32>, vector<16x32xf32> -> vector<16x32xf32>
    %736 = arith.addf %703, %735 : vector<16x32xf32>
    %c2_423 = arith.constant 2 : index
    %c0_424 = arith.constant 0 : index
    %c0_425 = arith.constant 0 : index
    %737 = vector.load %arg10[%c2_423, %c0_424, %c0_425] : memref<4x32x8xf32, #tpu.memory_space<vmem>>, vector<1x32x8xf32>
    %738 = vector.shape_cast %737 : vector<1x32x8xf32> to vector<32x8xf32>
    %cst_426 = arith.constant dense<0.000000e+00> : vector<16x8xf32>
    %739 = tpu.matmul %664, %738, %cst_426 {dimension_numbers = #tpu.dot_dimension_numbers<[1], [0], [0], [1], [0, 0, 1, 1], [], []>} : vector<16x32xf32>, vector<32x8xf32>, vector<16x8xf32> -> vector<16x8xf32>
    %c2_427 = arith.constant 2 : index
    %c0_428 = arith.constant 0 : index
    %c0_429 = arith.constant 0 : index
    %740 = vector.load %arg6[%c2_427, %c0_428, %c0_429] : memref<4x1x8xf32, #tpu.memory_space<vmem>>, vector<1x1x8xf32>
    %741 = vector.shape_cast %740 : vector<1x1x8xf32> to vector<1x8xf32>
    %742 = vector.broadcast %741 : vector<1x8xf32> to vector<16x8xf32>
    %743 = arith.addf %739, %742 : vector<16x8xf32>
    %c2_430 = arith.constant 2 : index
    %c0_431 = arith.constant 0 : index
    %c0_432 = arith.constant 0 : index
    %744 = vector.load %arg11[%c2_430, %c0_431, %c0_432] : memref<4x32x8xf32, #tpu.memory_space<vmem>>, vector<1x32x8xf32>
    %745 = vector.shape_cast %744 : vector<1x32x8xf32> to vector<32x8xf32>
    %cst_433 = arith.constant dense<0.000000e+00> : vector<16x8xf32>
    %746 = tpu.matmul %498, %745, %cst_433 {dimension_numbers = #tpu.dot_dimension_numbers<[1], [0], [0], [1], [0, 0, 1, 1], [], []>} : vector<16x32xf32>, vector<32x8xf32>, vector<16x8xf32> -> vector<16x8xf32>
    %c2_434 = arith.constant 2 : index
    %c0_435 = arith.constant 0 : index
    %c0_436 = arith.constant 0 : index
    %747 = vector.load %arg7[%c2_434, %c0_435, %c0_436] : memref<4x1x8xf32, #tpu.memory_space<vmem>>, vector<1x1x8xf32>
    %748 = vector.shape_cast %747 : vector<1x1x8xf32> to vector<1x8xf32>
    %749 = vector.broadcast %748 : vector<1x8xf32> to vector<16x8xf32>
    %750 = arith.addf %746, %749 : vector<16x8xf32>
    %751 = vector.extract_strided_slice %670 {offsets = [16, 0], sizes = [8, 16], strides = [1, 1]} : vector<32x16xf32> to vector<8x16xf32>
    %cst_437 = arith.constant dense<0.000000e+00> : vector<16x16xf32>
    %752 = tpu.matmul %743, %751, %cst_437 {dimension_numbers = #tpu.dot_dimension_numbers<[1], [0], [0], [1], [0, 0, 1, 1], [], []>} : vector<16x8xf32>, vector<8x16xf32>, vector<16x16xf32> -> vector<16x16xf32>
    %cst_438 = arith.constant 0.353553385 : f32
    %753 = vector.broadcast %cst_438 : f32 to vector<16x16xf32>
    %754 = arith.mulf %752, %753 : vector<16x16xf32>
    %755 = arith.addf %754, %0 : vector<16x16xf32>
    %cst_439 = arith.constant dense<0xFF800000> : vector<16xf32>
    %756 = vector.multi_reduction <maximumf>, %755, %cst_439 [1] : vector<16x16xf32> to vector<16xf32>
    %757 = vector.shape_cast %756 : vector<16xf32> to vector<16x1xf32>
    %758 = vector.broadcast %757 : vector<16x1xf32> to vector<16x16xf32>
    %759 = arith.subf %755, %758 : vector<16x16xf32>
    %760 = math.exp %759 : vector<16x16xf32>
    %cst_440 = arith.constant dense<0.000000e+00> : vector<16xf32>
    %761 = vector.multi_reduction <add>, %760, %cst_440 [1] : vector<16x16xf32> to vector<16xf32>
    %762 = vector.shape_cast %761 : vector<16xf32> to vector<16x1xf32>
    %cst_441 = arith.constant dense<0.000000e+00> : vector<16x8xf32>
    %763 = tpu.matmul %760, %750, %cst_441 {dimension_numbers = #tpu.dot_dimension_numbers<[1], [0], [0], [1], [0, 0, 1, 1], [], []>} : vector<16x16xf32>, vector<16x8xf32>, vector<16x8xf32> -> vector<16x8xf32>
    %764 = tpu.reciprocal %762 {approx = true} : vector<16x1xf32> -> vector<16x1xf32>
    %765 = vector.broadcast %764 : vector<16x1xf32> to vector<16x8xf32>
    %766 = arith.mulf %763, %765 : vector<16x8xf32>
    %767 = vector.extract_strided_slice %671 {offsets = [16, 0], sizes = [8, 32], strides = [1, 1]} : vector<32x32xf32> to vector<8x32xf32>
    %cst_442 = arith.constant dense<0.000000e+00> : vector<16x32xf32>
    %768 = tpu.matmul %766, %767, %cst_442 {dimension_numbers = #tpu.dot_dimension_numbers<[1], [0], [0], [1], [0, 0, 1, 1], [], []>} : vector<16x8xf32>, vector<8x32xf32>, vector<16x32xf32> -> vector<16x32xf32>
    %769 = arith.addf %736, %768 : vector<16x32xf32>
    %c3_443 = arith.constant 3 : index
    %c0_444 = arith.constant 0 : index
    %c0_445 = arith.constant 0 : index
    %770 = vector.load %arg10[%c3_443, %c0_444, %c0_445] : memref<4x32x8xf32, #tpu.memory_space<vmem>>, vector<1x32x8xf32>
    %771 = vector.shape_cast %770 : vector<1x32x8xf32> to vector<32x8xf32>
    %cst_446 = arith.constant dense<0.000000e+00> : vector<16x8xf32>
    %772 = tpu.matmul %664, %771, %cst_446 {dimension_numbers = #tpu.dot_dimension_numbers<[1], [0], [0], [1], [0, 0, 1, 1], [], []>} : vector<16x32xf32>, vector<32x8xf32>, vector<16x8xf32> -> vector<16x8xf32>
    %c3_447 = arith.constant 3 : index
    %c0_448 = arith.constant 0 : index
    %c0_449 = arith.constant 0 : index
    %773 = vector.load %arg6[%c3_447, %c0_448, %c0_449] : memref<4x1x8xf32, #tpu.memory_space<vmem>>, vector<1x1x8xf32>
    %774 = vector.shape_cast %773 : vector<1x1x8xf32> to vector<1x8xf32>
    %775 = vector.broadcast %774 : vector<1x8xf32> to vector<16x8xf32>
    %776 = arith.addf %772, %775 : vector<16x8xf32>
    %c3_450 = arith.constant 3 : index
    %c0_451 = arith.constant 0 : index
    %c0_452 = arith.constant 0 : index
    %777 = vector.load %arg11[%c3_450, %c0_451, %c0_452] : memref<4x32x8xf32, #tpu.memory_space<vmem>>, vector<1x32x8xf32>
    %778 = vector.shape_cast %777 : vector<1x32x8xf32> to vector<32x8xf32>
    %cst_453 = arith.constant dense<0.000000e+00> : vector<16x8xf32>
    %779 = tpu.matmul %498, %778, %cst_453 {dimension_numbers = #tpu.dot_dimension_numbers<[1], [0], [0], [1], [0, 0, 1, 1], [], []>} : vector<16x32xf32>, vector<32x8xf32>, vector<16x8xf32> -> vector<16x8xf32>
    %c3_454 = arith.constant 3 : index
    %c0_455 = arith.constant 0 : index
    %c0_456 = arith.constant 0 : index
    %780 = vector.load %arg7[%c3_454, %c0_455, %c0_456] : memref<4x1x8xf32, #tpu.memory_space<vmem>>, vector<1x1x8xf32>
    %781 = vector.shape_cast %780 : vector<1x1x8xf32> to vector<1x8xf32>
    %782 = vector.broadcast %781 : vector<1x8xf32> to vector<16x8xf32>
    %783 = arith.addf %779, %782 : vector<16x8xf32>
    %784 = vector.extract_strided_slice %670 {offsets = [24, 0], sizes = [8, 16], strides = [1, 1]} : vector<32x16xf32> to vector<8x16xf32>
    %cst_457 = arith.constant dense<0.000000e+00> : vector<16x16xf32>
    %785 = tpu.matmul %776, %784, %cst_457 {dimension_numbers = #tpu.dot_dimension_numbers<[1], [0], [0], [1], [0, 0, 1, 1], [], []>} : vector<16x8xf32>, vector<8x16xf32>, vector<16x16xf32> -> vector<16x16xf32>
    %cst_458 = arith.constant 0.353553385 : f32
    %786 = vector.broadcast %cst_458 : f32 to vector<16x16xf32>
    %787 = arith.mulf %785, %786 : vector<16x16xf32>
    %788 = arith.addf %787, %0 : vector<16x16xf32>
    %cst_459 = arith.constant dense<0xFF800000> : vector<16xf32>
    %789 = vector.multi_reduction <maximumf>, %788, %cst_459 [1] : vector<16x16xf32> to vector<16xf32>
    %790 = vector.shape_cast %789 : vector<16xf32> to vector<16x1xf32>
    %791 = vector.broadcast %790 : vector<16x1xf32> to vector<16x16xf32>
    %792 = arith.subf %788, %791 : vector<16x16xf32>
    %793 = math.exp %792 : vector<16x16xf32>
    %cst_460 = arith.constant dense<0.000000e+00> : vector<16xf32>
    %794 = vector.multi_reduction <add>, %793, %cst_460 [1] : vector<16x16xf32> to vector<16xf32>
    %795 = vector.shape_cast %794 : vector<16xf32> to vector<16x1xf32>
    %cst_461 = arith.constant dense<0.000000e+00> : vector<16x8xf32>
    %796 = tpu.matmul %793, %783, %cst_461 {dimension_numbers = #tpu.dot_dimension_numbers<[1], [0], [0], [1], [0, 0, 1, 1], [], []>} : vector<16x16xf32>, vector<16x8xf32>, vector<16x8xf32> -> vector<16x8xf32>
    %797 = tpu.reciprocal %795 {approx = true} : vector<16x1xf32> -> vector<16x1xf32>
    %798 = vector.broadcast %797 : vector<16x1xf32> to vector<16x8xf32>
    %799 = arith.mulf %796, %798 : vector<16x8xf32>
    %800 = vector.extract_strided_slice %671 {offsets = [24, 0], sizes = [8, 32], strides = [1, 1]} : vector<32x32xf32> to vector<8x32xf32>
    %cst_462 = arith.constant dense<0.000000e+00> : vector<16x32xf32>
    %801 = tpu.matmul %799, %800, %cst_462 {dimension_numbers = #tpu.dot_dimension_numbers<[1], [0], [0], [1], [0, 0, 1, 1], [], []>} : vector<16x8xf32>, vector<8x32xf32>, vector<16x32xf32> -> vector<16x32xf32>
    %802 = arith.addf %769, %801 : vector<16x32xf32>
    %c0_463 = arith.constant 0 : index
    %c0_464 = arith.constant 0 : index
    %803 = vector.load %arg5[%c0_463, %c0_464] : memref<1x32xf32, #tpu.memory_space<vmem>>, vector<1x32xf32>
    %804 = vector.broadcast %803 : vector<1x32xf32> to vector<16x32xf32>
    %805 = arith.addf %802, %804 : vector<16x32xf32>
    %806 = arith.addf %664, %805 : vector<16x32xf32>
    %cst_465 = arith.constant dense<0.000000e+00> : vector<16xf32>
    %807 = vector.multi_reduction <add>, %806, %cst_465 [1] : vector<16x32xf32> to vector<16xf32>
    %808 = vector.shape_cast %807 : vector<16xf32> to vector<16x1xf32>
    %cst_466 = arith.constant 3.200000e+01 : f32
    %809 = vector.broadcast %cst_466 : f32 to vector<16x1xf32>
    %810 = arith.divf %808, %809 : vector<16x1xf32>
    %811 = vector.broadcast %810 : vector<16x1xf32> to vector<16x32xf32>
    %812 = arith.subf %806, %811 : vector<16x32xf32>
    %813 = arith.mulf %812, %812 : vector<16x32xf32>
    %cst_467 = arith.constant dense<0.000000e+00> : vector<16xf32>
    %814 = vector.multi_reduction <add>, %813, %cst_467 [1] : vector<16x32xf32> to vector<16xf32>
    %815 = vector.shape_cast %814 : vector<16xf32> to vector<16x1xf32>
    %cst_468 = arith.constant 3.200000e+01 : f32
    %816 = vector.broadcast %cst_468 : f32 to vector<16x1xf32>
    %817 = arith.divf %815, %816 : vector<16x1xf32>
    %cst_469 = arith.constant 9.99999974E-6 : f32
    %818 = vector.broadcast %cst_469 : f32 to vector<16x1xf32>
    %819 = arith.addf %817, %818 : vector<16x1xf32>
    %820 = math.rsqrt %819 : vector<16x1xf32>
    %821 = vector.broadcast %820 : vector<16x1xf32> to vector<16x32xf32>
    %822 = arith.mulf %812, %821 : vector<16x32xf32>
    %c0_470 = arith.constant 0 : index
    %c0_471 = arith.constant 0 : index
    %823 = vector.load %arg19[%c0_470, %c0_471] : memref<1x32xf32, #tpu.memory_space<vmem>>, vector<1x32xf32>
    %824 = vector.broadcast %823 : vector<1x32xf32> to vector<16x32xf32>
    %825 = arith.mulf %822, %824 : vector<16x32xf32>
    %c0_472 = arith.constant 0 : index
    %c0_473 = arith.constant 0 : index
    %826 = vector.load %arg18[%c0_472, %c0_473] : memref<1x32xf32, #tpu.memory_space<vmem>>, vector<1x32xf32>
    %827 = vector.broadcast %826 : vector<1x32xf32> to vector<16x32xf32>
    %828 = arith.addf %825, %827 : vector<16x32xf32>
    %c0_474 = arith.constant 0 : index
    %c0_475 = arith.constant 0 : index
    %829 = vector.load %arg14[%c0_474, %c0_475] : memref<32x64xf32, #tpu.memory_space<vmem>>, vector<32x64xf32>
    %cst_476 = arith.constant dense<0.000000e+00> : vector<16x64xf32>
    %830 = tpu.matmul %828, %829, %cst_476 {dimension_numbers = #tpu.dot_dimension_numbers<[1], [0], [0], [1], [0, 0, 1, 1], [], []>} : vector<16x32xf32>, vector<32x64xf32>, vector<16x64xf32> -> vector<16x64xf32>
    %c0_477 = arith.constant 0 : index
    %c0_478 = arith.constant 0 : index
    %831 = vector.load %arg12[%c0_477, %c0_478] : memref<1x64xf32, #tpu.memory_space<vmem>>, vector<1x64xf32>
    %832 = vector.broadcast %831 : vector<1x64xf32> to vector<16x64xf32>
    %833 = arith.addf %830, %832 : vector<16x64xf32>
    %cst_479 = arith.constant 0.707106769 : f32
    %834 = vector.broadcast %cst_479 : f32 to vector<16x64xf32>
    %835 = arith.mulf %833, %834 : vector<16x64xf32>
    %836 = math.absf %835 : vector<16x64xf32>
    %cst_480 = arith.constant 0.327591091 : f32
    %837 = vector.broadcast %cst_480 : f32 to vector<16x64xf32>
    %838 = arith.mulf %837, %836 : vector<16x64xf32>
    %cst_481 = arith.constant 1.000000e+00 : f32
    %839 = vector.broadcast %cst_481 : f32 to vector<16x64xf32>
    %840 = arith.addf %839, %838 : vector<16x64xf32>
    %cst_482 = arith.constant 1.000000e+00 : f32
    %841 = vector.broadcast %cst_482 : f32 to vector<16x64xf32>
    %842 = arith.divf %841, %840 : vector<16x64xf32>
    %cst_483 = arith.constant 1.06140542 : f32
    %843 = vector.broadcast %cst_483 : f32 to vector<16x64xf32>
    %844 = arith.mulf %842, %843 : vector<16x64xf32>
    %cst_484 = arith.constant -1.45315206 : f32
    %845 = vector.broadcast %cst_484 : f32 to vector<16x64xf32>
    %846 = arith.addf %845, %844 : vector<16x64xf32>
    %847 = arith.mulf %842, %846 : vector<16x64xf32>
    %cst_485 = arith.constant 1.42141378 : f32
    %848 = vector.broadcast %cst_485 : f32 to vector<16x64xf32>
    %849 = arith.addf %848, %847 : vector<16x64xf32>
    %850 = arith.mulf %842, %849 : vector<16x64xf32>
    %cst_486 = arith.constant -0.284496725 : f32
    %851 = vector.broadcast %cst_486 : f32 to vector<16x64xf32>
    %852 = arith.addf %851, %850 : vector<16x64xf32>
    %853 = arith.mulf %842, %852 : vector<16x64xf32>
    %cst_487 = arith.constant 0.254829586 : f32
    %854 = vector.broadcast %cst_487 : f32 to vector<16x64xf32>
    %855 = arith.addf %854, %853 : vector<16x64xf32>
    %856 = arith.mulf %842, %855 : vector<16x64xf32>
    %cst_488 = arith.constant 0.000000e+00 : f32
    %857 = vector.broadcast %cst_488 : f32 to vector<16x64xf32>
    %858 = arith.subf %857, %836 : vector<16x64xf32>
    %859 = arith.mulf %858, %836 : vector<16x64xf32>
    %860 = math.exp %859 : vector<16x64xf32>
    %861 = arith.mulf %856, %860 : vector<16x64xf32>
    %cst_489 = arith.constant 1.000000e+00 : f32
    %862 = vector.broadcast %cst_489 : f32 to vector<16x64xf32>
    %863 = arith.subf %862, %861 : vector<16x64xf32>
    %cst_490 = arith.constant 0.000000e+00 : f32
    %864 = vector.broadcast %cst_490 : f32 to vector<16x64xf32>
    %865 = arith.cmpf olt, %835, %864 : vector<16x64xf32>
    %cst_491 = arith.constant 0.000000e+00 : f32
    %866 = vector.broadcast %cst_491 : f32 to vector<16x64xf32>
    %867 = arith.subf %866, %863 : vector<16x64xf32>
    %868 = arith.select %865, %867, %863 : vector<16x64xi1>, vector<16x64xf32>
    %cst_492 = arith.constant 5.000000e-01 : f32
    %869 = vector.broadcast %cst_492 : f32 to vector<16x64xf32>
    %870 = arith.mulf %869, %833 : vector<16x64xf32>
    %cst_493 = arith.constant 1.000000e+00 : f32
    %871 = vector.broadcast %cst_493 : f32 to vector<16x64xf32>
    %872 = arith.addf %871, %868 : vector<16x64xf32>
    %873 = arith.mulf %870, %872 : vector<16x64xf32>
    %c0_494 = arith.constant 0 : index
    %c0_495 = arith.constant 0 : index
    %874 = vector.load %arg15[%c0_494, %c0_495] : memref<64x32xf32, #tpu.memory_space<vmem>>, vector<64x32xf32>
    %cst_496 = arith.constant dense<0.000000e+00> : vector<16x32xf32>
    %875 = tpu.matmul %873, %874, %cst_496 {dimension_numbers = #tpu.dot_dimension_numbers<[1], [0], [0], [1], [0, 0, 1, 1], [], []>} : vector<16x64xf32>, vector<64x32xf32>, vector<16x32xf32> -> vector<16x32xf32>
    %c0_497 = arith.constant 0 : index
    %c0_498 = arith.constant 0 : index
    %876 = vector.load %arg13[%c0_497, %c0_498] : memref<1x32xf32, #tpu.memory_space<vmem>>, vector<1x32xf32>
    %877 = vector.broadcast %876 : vector<1x32xf32> to vector<16x32xf32>
    %878 = arith.addf %875, %877 : vector<16x32xf32>
    %879 = arith.addf %828, %878 : vector<16x32xf32>
    %cst_499 = arith.constant dense<0.000000e+00> : vector<16xf32>
    %880 = vector.multi_reduction <add>, %879, %cst_499 [1] : vector<16x32xf32> to vector<16xf32>
    %881 = vector.shape_cast %880 : vector<16xf32> to vector<16x1xf32>
    %cst_500 = arith.constant 3.200000e+01 : f32
    %882 = vector.broadcast %cst_500 : f32 to vector<16x1xf32>
    %883 = arith.divf %881, %882 : vector<16x1xf32>
    %884 = vector.broadcast %883 : vector<16x1xf32> to vector<16x32xf32>
    %885 = arith.subf %879, %884 : vector<16x32xf32>
    %886 = arith.mulf %885, %885 : vector<16x32xf32>
    %cst_501 = arith.constant dense<0.000000e+00> : vector<16xf32>
    %887 = vector.multi_reduction <add>, %886, %cst_501 [1] : vector<16x32xf32> to vector<16xf32>
    %888 = vector.shape_cast %887 : vector<16xf32> to vector<16x1xf32>
    %cst_502 = arith.constant 3.200000e+01 : f32
    %889 = vector.broadcast %cst_502 : f32 to vector<16x1xf32>
    %890 = arith.divf %888, %889 : vector<16x1xf32>
    %cst_503 = arith.constant 9.99999974E-6 : f32
    %891 = vector.broadcast %cst_503 : f32 to vector<16x1xf32>
    %892 = arith.addf %890, %891 : vector<16x1xf32>
    %893 = math.rsqrt %892 : vector<16x1xf32>
    %894 = vector.broadcast %893 : vector<16x1xf32> to vector<16x32xf32>
    %895 = arith.mulf %885, %894 : vector<16x32xf32>
    %c0_504 = arith.constant 0 : index
    %c0_505 = arith.constant 0 : index
    %896 = vector.load %arg21[%c0_504, %c0_505] : memref<1x32xf32, #tpu.memory_space<vmem>>, vector<1x32xf32>
    %897 = vector.broadcast %896 : vector<1x32xf32> to vector<16x32xf32>
    %898 = arith.mulf %895, %897 : vector<16x32xf32>
    %c0_506 = arith.constant 0 : index
    %c0_507 = arith.constant 0 : index
    %899 = vector.load %arg20[%c0_506, %c0_507] : memref<1x32xf32, #tpu.memory_space<vmem>>, vector<1x32xf32>
    %900 = vector.broadcast %899 : vector<1x32xf32> to vector<16x32xf32>
    %901 = arith.addf %898, %900 : vector<16x32xf32>
    %c0_508 = arith.constant 0 : index
    %c0_509 = arith.constant 0 : index
    %902 = vector.load %arg52[%c0_508, %c0_509] : memref<32x32xf32, #tpu.memory_space<vmem>>, vector<32x32xf32>
    %cst_510 = arith.constant dense<0.000000e+00> : vector<16x32xf32>
    %903 = tpu.matmul %901, %902, %cst_510 {dimension_numbers = #tpu.dot_dimension_numbers<[1], [0], [0], [1], [0, 0, 1, 1], [], []>} : vector<16x32xf32>, vector<32x32xf32>, vector<16x32xf32> -> vector<16x32xf32>
    %c0_511 = arith.constant 0 : index
    %c0_512 = arith.constant 0 : index
    %904 = vector.load %arg48[%c0_511, %c0_512] : memref<1x32xf32, #tpu.memory_space<vmem>>, vector<1x32xf32>
    %905 = vector.broadcast %904 : vector<1x32xf32> to vector<16x32xf32>
    %906 = arith.addf %903, %905 : vector<16x32xf32>
    %907 = tpu.transpose %906, [1, 0] : vector<16x32xf32> -> vector<32x16xf32>
    %c0_513 = arith.constant 0 : index
    %c0_514 = arith.constant 0 : index
    %908 = vector.load %arg53[%c0_513, %c0_514] : memref<32x32xf32, #tpu.memory_space<vmem>>, vector<32x32xf32>
    %c0_515 = arith.constant 0 : index
    %c0_516 = arith.constant 0 : index
    %c0_517 = arith.constant 0 : index
    %909 = vector.load %arg54[%c0_515, %c0_516, %c0_517] : memref<4x32x8xf32, #tpu.memory_space<vmem>>, vector<1x32x8xf32>
    %910 = vector.shape_cast %909 : vector<1x32x8xf32> to vector<32x8xf32>
    %cst_518 = arith.constant dense<0.000000e+00> : vector<16x8xf32>
    %911 = tpu.matmul %901, %910, %cst_518 {dimension_numbers = #tpu.dot_dimension_numbers<[1], [0], [0], [1], [0, 0, 1, 1], [], []>} : vector<16x32xf32>, vector<32x8xf32>, vector<16x8xf32> -> vector<16x8xf32>
    %c0_519 = arith.constant 0 : index
    %c0_520 = arith.constant 0 : index
    %c0_521 = arith.constant 0 : index
    %912 = vector.load %arg50[%c0_519, %c0_520, %c0_521] : memref<4x1x8xf32, #tpu.memory_space<vmem>>, vector<1x1x8xf32>
    %913 = vector.shape_cast %912 : vector<1x1x8xf32> to vector<1x8xf32>
    %914 = vector.broadcast %913 : vector<1x8xf32> to vector<16x8xf32>
    %915 = arith.addf %911, %914 : vector<16x8xf32>
    %c0_522 = arith.constant 0 : index
    %c0_523 = arith.constant 0 : index
    %c0_524 = arith.constant 0 : index
    %916 = vector.load %arg55[%c0_522, %c0_523, %c0_524] : memref<4x32x8xf32, #tpu.memory_space<vmem>>, vector<1x32x8xf32>
    %917 = vector.shape_cast %916 : vector<1x32x8xf32> to vector<32x8xf32>
    %cst_525 = arith.constant dense<0.000000e+00> : vector<16x8xf32>
    %918 = tpu.matmul %901, %917, %cst_525 {dimension_numbers = #tpu.dot_dimension_numbers<[1], [0], [0], [1], [0, 0, 1, 1], [], []>} : vector<16x32xf32>, vector<32x8xf32>, vector<16x8xf32> -> vector<16x8xf32>
    %c0_526 = arith.constant 0 : index
    %c0_527 = arith.constant 0 : index
    %c0_528 = arith.constant 0 : index
    %919 = vector.load %arg51[%c0_526, %c0_527, %c0_528] : memref<4x1x8xf32, #tpu.memory_space<vmem>>, vector<1x1x8xf32>
    %920 = vector.shape_cast %919 : vector<1x1x8xf32> to vector<1x8xf32>
    %921 = vector.broadcast %920 : vector<1x8xf32> to vector<16x8xf32>
    %922 = arith.addf %918, %921 : vector<16x8xf32>
    %923 = vector.extract_strided_slice %907 {offsets = [0, 0], sizes = [8, 16], strides = [1, 1]} : vector<32x16xf32> to vector<8x16xf32>
    %cst_529 = arith.constant dense<0.000000e+00> : vector<16x16xf32>
    %924 = tpu.matmul %915, %923, %cst_529 {dimension_numbers = #tpu.dot_dimension_numbers<[1], [0], [0], [1], [0, 0, 1, 1], [], []>} : vector<16x8xf32>, vector<8x16xf32>, vector<16x16xf32> -> vector<16x16xf32>
    %cst_530 = arith.constant 0.353553385 : f32
    %925 = vector.broadcast %cst_530 : f32 to vector<16x16xf32>
    %926 = arith.mulf %924, %925 : vector<16x16xf32>
    %927 = arith.addf %926, %1 : vector<16x16xf32>
    %cst_531 = arith.constant dense<0xFF800000> : vector<16xf32>
    %928 = vector.multi_reduction <maximumf>, %927, %cst_531 [1] : vector<16x16xf32> to vector<16xf32>
    %929 = vector.shape_cast %928 : vector<16xf32> to vector<16x1xf32>
    %930 = vector.broadcast %929 : vector<16x1xf32> to vector<16x16xf32>
    %931 = arith.subf %927, %930 : vector<16x16xf32>
    %932 = math.exp %931 : vector<16x16xf32>
    %cst_532 = arith.constant dense<0.000000e+00> : vector<16xf32>
    %933 = vector.multi_reduction <add>, %932, %cst_532 [1] : vector<16x16xf32> to vector<16xf32>
    %934 = vector.shape_cast %933 : vector<16xf32> to vector<16x1xf32>
    %cst_533 = arith.constant dense<0.000000e+00> : vector<16x8xf32>
    %935 = tpu.matmul %932, %922, %cst_533 {dimension_numbers = #tpu.dot_dimension_numbers<[1], [0], [0], [1], [0, 0, 1, 1], [], []>} : vector<16x16xf32>, vector<16x8xf32>, vector<16x8xf32> -> vector<16x8xf32>
    %936 = tpu.reciprocal %934 {approx = true} : vector<16x1xf32> -> vector<16x1xf32>
    %937 = vector.broadcast %936 : vector<16x1xf32> to vector<16x8xf32>
    %938 = arith.mulf %935, %937 : vector<16x8xf32>
    %939 = vector.extract_strided_slice %908 {offsets = [0, 0], sizes = [8, 32], strides = [1, 1]} : vector<32x32xf32> to vector<8x32xf32>
    %cst_534 = arith.constant dense<0.000000e+00> : vector<16x32xf32>
    %940 = tpu.matmul %938, %939, %cst_534 {dimension_numbers = #tpu.dot_dimension_numbers<[1], [0], [0], [1], [0, 0, 1, 1], [], []>} : vector<16x8xf32>, vector<8x32xf32>, vector<16x32xf32> -> vector<16x32xf32>
    %c1_535 = arith.constant 1 : index
    %c0_536 = arith.constant 0 : index
    %c0_537 = arith.constant 0 : index
    %941 = vector.load %arg54[%c1_535, %c0_536, %c0_537] : memref<4x32x8xf32, #tpu.memory_space<vmem>>, vector<1x32x8xf32>
    %942 = vector.shape_cast %941 : vector<1x32x8xf32> to vector<32x8xf32>
    %cst_538 = arith.constant dense<0.000000e+00> : vector<16x8xf32>
    %943 = tpu.matmul %901, %942, %cst_538 {dimension_numbers = #tpu.dot_dimension_numbers<[1], [0], [0], [1], [0, 0, 1, 1], [], []>} : vector<16x32xf32>, vector<32x8xf32>, vector<16x8xf32> -> vector<16x8xf32>
    %c1_539 = arith.constant 1 : index
    %c0_540 = arith.constant 0 : index
    %c0_541 = arith.constant 0 : index
    %944 = vector.load %arg50[%c1_539, %c0_540, %c0_541] : memref<4x1x8xf32, #tpu.memory_space<vmem>>, vector<1x1x8xf32>
    %945 = vector.shape_cast %944 : vector<1x1x8xf32> to vector<1x8xf32>
    %946 = vector.broadcast %945 : vector<1x8xf32> to vector<16x8xf32>
    %947 = arith.addf %943, %946 : vector<16x8xf32>
    %c1_542 = arith.constant 1 : index
    %c0_543 = arith.constant 0 : index
    %c0_544 = arith.constant 0 : index
    %948 = vector.load %arg55[%c1_542, %c0_543, %c0_544] : memref<4x32x8xf32, #tpu.memory_space<vmem>>, vector<1x32x8xf32>
    %949 = vector.shape_cast %948 : vector<1x32x8xf32> to vector<32x8xf32>
    %cst_545 = arith.constant dense<0.000000e+00> : vector<16x8xf32>
    %950 = tpu.matmul %901, %949, %cst_545 {dimension_numbers = #tpu.dot_dimension_numbers<[1], [0], [0], [1], [0, 0, 1, 1], [], []>} : vector<16x32xf32>, vector<32x8xf32>, vector<16x8xf32> -> vector<16x8xf32>
    %c1_546 = arith.constant 1 : index
    %c0_547 = arith.constant 0 : index
    %c0_548 = arith.constant 0 : index
    %951 = vector.load %arg51[%c1_546, %c0_547, %c0_548] : memref<4x1x8xf32, #tpu.memory_space<vmem>>, vector<1x1x8xf32>
    %952 = vector.shape_cast %951 : vector<1x1x8xf32> to vector<1x8xf32>
    %953 = vector.broadcast %952 : vector<1x8xf32> to vector<16x8xf32>
    %954 = arith.addf %950, %953 : vector<16x8xf32>
    %955 = vector.extract_strided_slice %907 {offsets = [8, 0], sizes = [8, 16], strides = [1, 1]} : vector<32x16xf32> to vector<8x16xf32>
    %cst_549 = arith.constant dense<0.000000e+00> : vector<16x16xf32>
    %956 = tpu.matmul %947, %955, %cst_549 {dimension_numbers = #tpu.dot_dimension_numbers<[1], [0], [0], [1], [0, 0, 1, 1], [], []>} : vector<16x8xf32>, vector<8x16xf32>, vector<16x16xf32> -> vector<16x16xf32>
    %cst_550 = arith.constant 0.353553385 : f32
    %957 = vector.broadcast %cst_550 : f32 to vector<16x16xf32>
    %958 = arith.mulf %956, %957 : vector<16x16xf32>
    %959 = arith.addf %958, %1 : vector<16x16xf32>
    %cst_551 = arith.constant dense<0xFF800000> : vector<16xf32>
    %960 = vector.multi_reduction <maximumf>, %959, %cst_551 [1] : vector<16x16xf32> to vector<16xf32>
    %961 = vector.shape_cast %960 : vector<16xf32> to vector<16x1xf32>
    %962 = vector.broadcast %961 : vector<16x1xf32> to vector<16x16xf32>
    %963 = arith.subf %959, %962 : vector<16x16xf32>
    %964 = math.exp %963 : vector<16x16xf32>
    %cst_552 = arith.constant dense<0.000000e+00> : vector<16xf32>
    %965 = vector.multi_reduction <add>, %964, %cst_552 [1] : vector<16x16xf32> to vector<16xf32>
    %966 = vector.shape_cast %965 : vector<16xf32> to vector<16x1xf32>
    %cst_553 = arith.constant dense<0.000000e+00> : vector<16x8xf32>
    %967 = tpu.matmul %964, %954, %cst_553 {dimension_numbers = #tpu.dot_dimension_numbers<[1], [0], [0], [1], [0, 0, 1, 1], [], []>} : vector<16x16xf32>, vector<16x8xf32>, vector<16x8xf32> -> vector<16x8xf32>
    %968 = tpu.reciprocal %966 {approx = true} : vector<16x1xf32> -> vector<16x1xf32>
    %969 = vector.broadcast %968 : vector<16x1xf32> to vector<16x8xf32>
    %970 = arith.mulf %967, %969 : vector<16x8xf32>
    %971 = vector.extract_strided_slice %908 {offsets = [8, 0], sizes = [8, 32], strides = [1, 1]} : vector<32x32xf32> to vector<8x32xf32>
    %cst_554 = arith.constant dense<0.000000e+00> : vector<16x32xf32>
    %972 = tpu.matmul %970, %971, %cst_554 {dimension_numbers = #tpu.dot_dimension_numbers<[1], [0], [0], [1], [0, 0, 1, 1], [], []>} : vector<16x8xf32>, vector<8x32xf32>, vector<16x32xf32> -> vector<16x32xf32>
    %973 = arith.addf %940, %972 : vector<16x32xf32>
    %c2_555 = arith.constant 2 : index
    %c0_556 = arith.constant 0 : index
    %c0_557 = arith.constant 0 : index
    %974 = vector.load %arg54[%c2_555, %c0_556, %c0_557] : memref<4x32x8xf32, #tpu.memory_space<vmem>>, vector<1x32x8xf32>
    %975 = vector.shape_cast %974 : vector<1x32x8xf32> to vector<32x8xf32>
    %cst_558 = arith.constant dense<0.000000e+00> : vector<16x8xf32>
    %976 = tpu.matmul %901, %975, %cst_558 {dimension_numbers = #tpu.dot_dimension_numbers<[1], [0], [0], [1], [0, 0, 1, 1], [], []>} : vector<16x32xf32>, vector<32x8xf32>, vector<16x8xf32> -> vector<16x8xf32>
    %c2_559 = arith.constant 2 : index
    %c0_560 = arith.constant 0 : index
    %c0_561 = arith.constant 0 : index
    %977 = vector.load %arg50[%c2_559, %c0_560, %c0_561] : memref<4x1x8xf32, #tpu.memory_space<vmem>>, vector<1x1x8xf32>
    %978 = vector.shape_cast %977 : vector<1x1x8xf32> to vector<1x8xf32>
    %979 = vector.broadcast %978 : vector<1x8xf32> to vector<16x8xf32>
    %980 = arith.addf %976, %979 : vector<16x8xf32>
    %c2_562 = arith.constant 2 : index
    %c0_563 = arith.constant 0 : index
    %c0_564 = arith.constant 0 : index
    %981 = vector.load %arg55[%c2_562, %c0_563, %c0_564] : memref<4x32x8xf32, #tpu.memory_space<vmem>>, vector<1x32x8xf32>
    %982 = vector.shape_cast %981 : vector<1x32x8xf32> to vector<32x8xf32>
    %cst_565 = arith.constant dense<0.000000e+00> : vector<16x8xf32>
    %983 = tpu.matmul %901, %982, %cst_565 {dimension_numbers = #tpu.dot_dimension_numbers<[1], [0], [0], [1], [0, 0, 1, 1], [], []>} : vector<16x32xf32>, vector<32x8xf32>, vector<16x8xf32> -> vector<16x8xf32>
    %c2_566 = arith.constant 2 : index
    %c0_567 = arith.constant 0 : index
    %c0_568 = arith.constant 0 : index
    %984 = vector.load %arg51[%c2_566, %c0_567, %c0_568] : memref<4x1x8xf32, #tpu.memory_space<vmem>>, vector<1x1x8xf32>
    %985 = vector.shape_cast %984 : vector<1x1x8xf32> to vector<1x8xf32>
    %986 = vector.broadcast %985 : vector<1x8xf32> to vector<16x8xf32>
    %987 = arith.addf %983, %986 : vector<16x8xf32>
    %988 = vector.extract_strided_slice %907 {offsets = [16, 0], sizes = [8, 16], strides = [1, 1]} : vector<32x16xf32> to vector<8x16xf32>
    %cst_569 = arith.constant dense<0.000000e+00> : vector<16x16xf32>
    %989 = tpu.matmul %980, %988, %cst_569 {dimension_numbers = #tpu.dot_dimension_numbers<[1], [0], [0], [1], [0, 0, 1, 1], [], []>} : vector<16x8xf32>, vector<8x16xf32>, vector<16x16xf32> -> vector<16x16xf32>
    %cst_570 = arith.constant 0.353553385 : f32
    %990 = vector.broadcast %cst_570 : f32 to vector<16x16xf32>
    %991 = arith.mulf %989, %990 : vector<16x16xf32>
    %992 = arith.addf %991, %1 : vector<16x16xf32>
    %cst_571 = arith.constant dense<0xFF800000> : vector<16xf32>
    %993 = vector.multi_reduction <maximumf>, %992, %cst_571 [1] : vector<16x16xf32> to vector<16xf32>
    %994 = vector.shape_cast %993 : vector<16xf32> to vector<16x1xf32>
    %995 = vector.broadcast %994 : vector<16x1xf32> to vector<16x16xf32>
    %996 = arith.subf %992, %995 : vector<16x16xf32>
    %997 = math.exp %996 : vector<16x16xf32>
    %cst_572 = arith.constant dense<0.000000e+00> : vector<16xf32>
    %998 = vector.multi_reduction <add>, %997, %cst_572 [1] : vector<16x16xf32> to vector<16xf32>
    %999 = vector.shape_cast %998 : vector<16xf32> to vector<16x1xf32>
    %cst_573 = arith.constant dense<0.000000e+00> : vector<16x8xf32>
    %1000 = tpu.matmul %997, %987, %cst_573 {dimension_numbers = #tpu.dot_dimension_numbers<[1], [0], [0], [1], [0, 0, 1, 1], [], []>} : vector<16x16xf32>, vector<16x8xf32>, vector<16x8xf32> -> vector<16x8xf32>
    %1001 = tpu.reciprocal %999 {approx = true} : vector<16x1xf32> -> vector<16x1xf32>
    %1002 = vector.broadcast %1001 : vector<16x1xf32> to vector<16x8xf32>
    %1003 = arith.mulf %1000, %1002 : vector<16x8xf32>
    %1004 = vector.extract_strided_slice %908 {offsets = [16, 0], sizes = [8, 32], strides = [1, 1]} : vector<32x32xf32> to vector<8x32xf32>
    %cst_574 = arith.constant dense<0.000000e+00> : vector<16x32xf32>
    %1005 = tpu.matmul %1003, %1004, %cst_574 {dimension_numbers = #tpu.dot_dimension_numbers<[1], [0], [0], [1], [0, 0, 1, 1], [], []>} : vector<16x8xf32>, vector<8x32xf32>, vector<16x32xf32> -> vector<16x32xf32>
    %1006 = arith.addf %973, %1005 : vector<16x32xf32>
    %c3_575 = arith.constant 3 : index
    %c0_576 = arith.constant 0 : index
    %c0_577 = arith.constant 0 : index
    %1007 = vector.load %arg54[%c3_575, %c0_576, %c0_577] : memref<4x32x8xf32, #tpu.memory_space<vmem>>, vector<1x32x8xf32>
    %1008 = vector.shape_cast %1007 : vector<1x32x8xf32> to vector<32x8xf32>
    %cst_578 = arith.constant dense<0.000000e+00> : vector<16x8xf32>
    %1009 = tpu.matmul %901, %1008, %cst_578 {dimension_numbers = #tpu.dot_dimension_numbers<[1], [0], [0], [1], [0, 0, 1, 1], [], []>} : vector<16x32xf32>, vector<32x8xf32>, vector<16x8xf32> -> vector<16x8xf32>
    %c3_579 = arith.constant 3 : index
    %c0_580 = arith.constant 0 : index
    %c0_581 = arith.constant 0 : index
    %1010 = vector.load %arg50[%c3_579, %c0_580, %c0_581] : memref<4x1x8xf32, #tpu.memory_space<vmem>>, vector<1x1x8xf32>
    %1011 = vector.shape_cast %1010 : vector<1x1x8xf32> to vector<1x8xf32>
    %1012 = vector.broadcast %1011 : vector<1x8xf32> to vector<16x8xf32>
    %1013 = arith.addf %1009, %1012 : vector<16x8xf32>
    %c3_582 = arith.constant 3 : index
    %c0_583 = arith.constant 0 : index
    %c0_584 = arith.constant 0 : index
    %1014 = vector.load %arg55[%c3_582, %c0_583, %c0_584] : memref<4x32x8xf32, #tpu.memory_space<vmem>>, vector<1x32x8xf32>
    %1015 = vector.shape_cast %1014 : vector<1x32x8xf32> to vector<32x8xf32>
    %cst_585 = arith.constant dense<0.000000e+00> : vector<16x8xf32>
    %1016 = tpu.matmul %901, %1015, %cst_585 {dimension_numbers = #tpu.dot_dimension_numbers<[1], [0], [0], [1], [0, 0, 1, 1], [], []>} : vector<16x32xf32>, vector<32x8xf32>, vector<16x8xf32> -> vector<16x8xf32>
    %c3_586 = arith.constant 3 : index
    %c0_587 = arith.constant 0 : index
    %c0_588 = arith.constant 0 : index
    %1017 = vector.load %arg51[%c3_586, %c0_587, %c0_588] : memref<4x1x8xf32, #tpu.memory_space<vmem>>, vector<1x1x8xf32>
    %1018 = vector.shape_cast %1017 : vector<1x1x8xf32> to vector<1x8xf32>
    %1019 = vector.broadcast %1018 : vector<1x8xf32> to vector<16x8xf32>
    %1020 = arith.addf %1016, %1019 : vector<16x8xf32>
    %1021 = vector.extract_strided_slice %907 {offsets = [24, 0], sizes = [8, 16], strides = [1, 1]} : vector<32x16xf32> to vector<8x16xf32>
    %cst_589 = arith.constant dense<0.000000e+00> : vector<16x16xf32>
    %1022 = tpu.matmul %1013, %1021, %cst_589 {dimension_numbers = #tpu.dot_dimension_numbers<[1], [0], [0], [1], [0, 0, 1, 1], [], []>} : vector<16x8xf32>, vector<8x16xf32>, vector<16x16xf32> -> vector<16x16xf32>
    %cst_590 = arith.constant 0.353553385 : f32
    %1023 = vector.broadcast %cst_590 : f32 to vector<16x16xf32>
    %1024 = arith.mulf %1022, %1023 : vector<16x16xf32>
    %1025 = arith.addf %1024, %1 : vector<16x16xf32>
    %cst_591 = arith.constant dense<0xFF800000> : vector<16xf32>
    %1026 = vector.multi_reduction <maximumf>, %1025, %cst_591 [1] : vector<16x16xf32> to vector<16xf32>
    %1027 = vector.shape_cast %1026 : vector<16xf32> to vector<16x1xf32>
    %1028 = vector.broadcast %1027 : vector<16x1xf32> to vector<16x16xf32>
    %1029 = arith.subf %1025, %1028 : vector<16x16xf32>
    %1030 = math.exp %1029 : vector<16x16xf32>
    %cst_592 = arith.constant dense<0.000000e+00> : vector<16xf32>
    %1031 = vector.multi_reduction <add>, %1030, %cst_592 [1] : vector<16x16xf32> to vector<16xf32>
    %1032 = vector.shape_cast %1031 : vector<16xf32> to vector<16x1xf32>
    %cst_593 = arith.constant dense<0.000000e+00> : vector<16x8xf32>
    %1033 = tpu.matmul %1030, %1020, %cst_593 {dimension_numbers = #tpu.dot_dimension_numbers<[1], [0], [0], [1], [0, 0, 1, 1], [], []>} : vector<16x16xf32>, vector<16x8xf32>, vector<16x8xf32> -> vector<16x8xf32>
    %1034 = tpu.reciprocal %1032 {approx = true} : vector<16x1xf32> -> vector<16x1xf32>
    %1035 = vector.broadcast %1034 : vector<16x1xf32> to vector<16x8xf32>
    %1036 = arith.mulf %1033, %1035 : vector<16x8xf32>
    %1037 = vector.extract_strided_slice %908 {offsets = [24, 0], sizes = [8, 32], strides = [1, 1]} : vector<32x32xf32> to vector<8x32xf32>
    %cst_594 = arith.constant dense<0.000000e+00> : vector<16x32xf32>
    %1038 = tpu.matmul %1036, %1037, %cst_594 {dimension_numbers = #tpu.dot_dimension_numbers<[1], [0], [0], [1], [0, 0, 1, 1], [], []>} : vector<16x8xf32>, vector<8x32xf32>, vector<16x32xf32> -> vector<16x32xf32>
    %1039 = arith.addf %1006, %1038 : vector<16x32xf32>
    %c0_595 = arith.constant 0 : index
    %c0_596 = arith.constant 0 : index
    %1040 = vector.load %arg49[%c0_595, %c0_596] : memref<1x32xf32, #tpu.memory_space<vmem>>, vector<1x32xf32>
    %1041 = vector.broadcast %1040 : vector<1x32xf32> to vector<16x32xf32>
    %1042 = arith.addf %1039, %1041 : vector<16x32xf32>
    %1043 = arith.addf %901, %1042 : vector<16x32xf32>
    %cst_597 = arith.constant dense<0.000000e+00> : vector<16xf32>
    %1044 = vector.multi_reduction <add>, %1043, %cst_597 [1] : vector<16x32xf32> to vector<16xf32>
    %1045 = vector.shape_cast %1044 : vector<16xf32> to vector<16x1xf32>
    %cst_598 = arith.constant 3.200000e+01 : f32
    %1046 = vector.broadcast %cst_598 : f32 to vector<16x1xf32>
    %1047 = arith.divf %1045, %1046 : vector<16x1xf32>
    %1048 = vector.broadcast %1047 : vector<16x1xf32> to vector<16x32xf32>
    %1049 = arith.subf %1043, %1048 : vector<16x32xf32>
    %1050 = arith.mulf %1049, %1049 : vector<16x32xf32>
    %cst_599 = arith.constant dense<0.000000e+00> : vector<16xf32>
    %1051 = vector.multi_reduction <add>, %1050, %cst_599 [1] : vector<16x32xf32> to vector<16xf32>
    %1052 = vector.shape_cast %1051 : vector<16xf32> to vector<16x1xf32>
    %cst_600 = arith.constant 3.200000e+01 : f32
    %1053 = vector.broadcast %cst_600 : f32 to vector<16x1xf32>
    %1054 = arith.divf %1052, %1053 : vector<16x1xf32>
    %cst_601 = arith.constant 9.99999974E-6 : f32
    %1055 = vector.broadcast %cst_601 : f32 to vector<16x1xf32>
    %1056 = arith.addf %1054, %1055 : vector<16x1xf32>
    %1057 = math.rsqrt %1056 : vector<16x1xf32>
    %1058 = vector.broadcast %1057 : vector<16x1xf32> to vector<16x32xf32>
    %1059 = arith.mulf %1049, %1058 : vector<16x32xf32>
    %c0_602 = arith.constant 0 : index
    %c0_603 = arith.constant 0 : index
    %1060 = vector.load %arg43[%c0_602, %c0_603] : memref<1x32xf32, #tpu.memory_space<vmem>>, vector<1x32xf32>
    %1061 = vector.broadcast %1060 : vector<1x32xf32> to vector<16x32xf32>
    %1062 = arith.mulf %1059, %1061 : vector<16x32xf32>
    %c0_604 = arith.constant 0 : index
    %c0_605 = arith.constant 0 : index
    %1063 = vector.load %arg42[%c0_604, %c0_605] : memref<1x32xf32, #tpu.memory_space<vmem>>, vector<1x32xf32>
    %1064 = vector.broadcast %1063 : vector<1x32xf32> to vector<16x32xf32>
    %1065 = arith.addf %1062, %1064 : vector<16x32xf32>
    %c0_606 = arith.constant 0 : index
    %c0_607 = arith.constant 0 : index
    %1066 = vector.load %arg34[%c0_606, %c0_607] : memref<32x32xf32, #tpu.memory_space<vmem>>, vector<32x32xf32>
    %cst_608 = arith.constant dense<0.000000e+00> : vector<16x32xf32>
    %1067 = tpu.matmul %498, %1066, %cst_608 {dimension_numbers = #tpu.dot_dimension_numbers<[1], [0], [0], [1], [0, 0, 1, 1], [], []>} : vector<16x32xf32>, vector<32x32xf32>, vector<16x32xf32> -> vector<16x32xf32>
    %c0_609 = arith.constant 0 : index
    %c0_610 = arith.constant 0 : index
    %1068 = vector.load %arg30[%c0_609, %c0_610] : memref<1x32xf32, #tpu.memory_space<vmem>>, vector<1x32xf32>
    %1069 = vector.broadcast %1068 : vector<1x32xf32> to vector<16x32xf32>
    %1070 = arith.addf %1067, %1069 : vector<16x32xf32>
    %1071 = tpu.transpose %1070, [1, 0] : vector<16x32xf32> -> vector<32x16xf32>
    %c0_611 = arith.constant 0 : index
    %c0_612 = arith.constant 0 : index
    %1072 = vector.load %arg35[%c0_611, %c0_612] : memref<32x32xf32, #tpu.memory_space<vmem>>, vector<32x32xf32>
    %c0_613 = arith.constant 0 : index
    %c0_614 = arith.constant 0 : index
    %c0_615 = arith.constant 0 : index
    %1073 = vector.load %arg36[%c0_613, %c0_614, %c0_615] : memref<4x32x8xf32, #tpu.memory_space<vmem>>, vector<1x32x8xf32>
    %1074 = vector.shape_cast %1073 : vector<1x32x8xf32> to vector<32x8xf32>
    %cst_616 = arith.constant dense<0.000000e+00> : vector<16x8xf32>
    %1075 = tpu.matmul %1065, %1074, %cst_616 {dimension_numbers = #tpu.dot_dimension_numbers<[1], [0], [0], [1], [0, 0, 1, 1], [], []>} : vector<16x32xf32>, vector<32x8xf32>, vector<16x8xf32> -> vector<16x8xf32>
    %c0_617 = arith.constant 0 : index
    %c0_618 = arith.constant 0 : index
    %c0_619 = arith.constant 0 : index
    %1076 = vector.load %arg32[%c0_617, %c0_618, %c0_619] : memref<4x1x8xf32, #tpu.memory_space<vmem>>, vector<1x1x8xf32>
    %1077 = vector.shape_cast %1076 : vector<1x1x8xf32> to vector<1x8xf32>
    %1078 = vector.broadcast %1077 : vector<1x8xf32> to vector<16x8xf32>
    %1079 = arith.addf %1075, %1078 : vector<16x8xf32>
    %c0_620 = arith.constant 0 : index
    %c0_621 = arith.constant 0 : index
    %c0_622 = arith.constant 0 : index
    %1080 = vector.load %arg37[%c0_620, %c0_621, %c0_622] : memref<4x32x8xf32, #tpu.memory_space<vmem>>, vector<1x32x8xf32>
    %1081 = vector.shape_cast %1080 : vector<1x32x8xf32> to vector<32x8xf32>
    %cst_623 = arith.constant dense<0.000000e+00> : vector<16x8xf32>
    %1082 = tpu.matmul %498, %1081, %cst_623 {dimension_numbers = #tpu.dot_dimension_numbers<[1], [0], [0], [1], [0, 0, 1, 1], [], []>} : vector<16x32xf32>, vector<32x8xf32>, vector<16x8xf32> -> vector<16x8xf32>
    %c0_624 = arith.constant 0 : index
    %c0_625 = arith.constant 0 : index
    %c0_626 = arith.constant 0 : index
    %1083 = vector.load %arg33[%c0_624, %c0_625, %c0_626] : memref<4x1x8xf32, #tpu.memory_space<vmem>>, vector<1x1x8xf32>
    %1084 = vector.shape_cast %1083 : vector<1x1x8xf32> to vector<1x8xf32>
    %1085 = vector.broadcast %1084 : vector<1x8xf32> to vector<16x8xf32>
    %1086 = arith.addf %1082, %1085 : vector<16x8xf32>
    %1087 = vector.extract_strided_slice %1071 {offsets = [0, 0], sizes = [8, 16], strides = [1, 1]} : vector<32x16xf32> to vector<8x16xf32>
    %cst_627 = arith.constant dense<0.000000e+00> : vector<16x16xf32>
    %1088 = tpu.matmul %1079, %1087, %cst_627 {dimension_numbers = #tpu.dot_dimension_numbers<[1], [0], [0], [1], [0, 0, 1, 1], [], []>} : vector<16x8xf32>, vector<8x16xf32>, vector<16x16xf32> -> vector<16x16xf32>
    %cst_628 = arith.constant 0.353553385 : f32
    %1089 = vector.broadcast %cst_628 : f32 to vector<16x16xf32>
    %1090 = arith.mulf %1088, %1089 : vector<16x16xf32>
    %1091 = arith.addf %1090, %0 : vector<16x16xf32>
    %cst_629 = arith.constant dense<0xFF800000> : vector<16xf32>
    %1092 = vector.multi_reduction <maximumf>, %1091, %cst_629 [1] : vector<16x16xf32> to vector<16xf32>
    %1093 = vector.shape_cast %1092 : vector<16xf32> to vector<16x1xf32>
    %1094 = vector.broadcast %1093 : vector<16x1xf32> to vector<16x16xf32>
    %1095 = arith.subf %1091, %1094 : vector<16x16xf32>
    %1096 = math.exp %1095 : vector<16x16xf32>
    %cst_630 = arith.constant dense<0.000000e+00> : vector<16xf32>
    %1097 = vector.multi_reduction <add>, %1096, %cst_630 [1] : vector<16x16xf32> to vector<16xf32>
    %1098 = vector.shape_cast %1097 : vector<16xf32> to vector<16x1xf32>
    %cst_631 = arith.constant dense<0.000000e+00> : vector<16x8xf32>
    %1099 = tpu.matmul %1096, %1086, %cst_631 {dimension_numbers = #tpu.dot_dimension_numbers<[1], [0], [0], [1], [0, 0, 1, 1], [], []>} : vector<16x16xf32>, vector<16x8xf32>, vector<16x8xf32> -> vector<16x8xf32>
    %1100 = tpu.reciprocal %1098 {approx = true} : vector<16x1xf32> -> vector<16x1xf32>
    %1101 = vector.broadcast %1100 : vector<16x1xf32> to vector<16x8xf32>
    %1102 = arith.mulf %1099, %1101 : vector<16x8xf32>
    %1103 = vector.extract_strided_slice %1072 {offsets = [0, 0], sizes = [8, 32], strides = [1, 1]} : vector<32x32xf32> to vector<8x32xf32>
    %cst_632 = arith.constant dense<0.000000e+00> : vector<16x32xf32>
    %1104 = tpu.matmul %1102, %1103, %cst_632 {dimension_numbers = #tpu.dot_dimension_numbers<[1], [0], [0], [1], [0, 0, 1, 1], [], []>} : vector<16x8xf32>, vector<8x32xf32>, vector<16x32xf32> -> vector<16x32xf32>
    %c1_633 = arith.constant 1 : index
    %c0_634 = arith.constant 0 : index
    %c0_635 = arith.constant 0 : index
    %1105 = vector.load %arg36[%c1_633, %c0_634, %c0_635] : memref<4x32x8xf32, #tpu.memory_space<vmem>>, vector<1x32x8xf32>
    %1106 = vector.shape_cast %1105 : vector<1x32x8xf32> to vector<32x8xf32>
    %cst_636 = arith.constant dense<0.000000e+00> : vector<16x8xf32>
    %1107 = tpu.matmul %1065, %1106, %cst_636 {dimension_numbers = #tpu.dot_dimension_numbers<[1], [0], [0], [1], [0, 0, 1, 1], [], []>} : vector<16x32xf32>, vector<32x8xf32>, vector<16x8xf32> -> vector<16x8xf32>
    %c1_637 = arith.constant 1 : index
    %c0_638 = arith.constant 0 : index
    %c0_639 = arith.constant 0 : index
    %1108 = vector.load %arg32[%c1_637, %c0_638, %c0_639] : memref<4x1x8xf32, #tpu.memory_space<vmem>>, vector<1x1x8xf32>
    %1109 = vector.shape_cast %1108 : vector<1x1x8xf32> to vector<1x8xf32>
    %1110 = vector.broadcast %1109 : vector<1x8xf32> to vector<16x8xf32>
    %1111 = arith.addf %1107, %1110 : vector<16x8xf32>
    %c1_640 = arith.constant 1 : index
    %c0_641 = arith.constant 0 : index
    %c0_642 = arith.constant 0 : index
    %1112 = vector.load %arg37[%c1_640, %c0_641, %c0_642] : memref<4x32x8xf32, #tpu.memory_space<vmem>>, vector<1x32x8xf32>
    %1113 = vector.shape_cast %1112 : vector<1x32x8xf32> to vector<32x8xf32>
    %cst_643 = arith.constant dense<0.000000e+00> : vector<16x8xf32>
    %1114 = tpu.matmul %498, %1113, %cst_643 {dimension_numbers = #tpu.dot_dimension_numbers<[1], [0], [0], [1], [0, 0, 1, 1], [], []>} : vector<16x32xf32>, vector<32x8xf32>, vector<16x8xf32> -> vector<16x8xf32>
    %c1_644 = arith.constant 1 : index
    %c0_645 = arith.constant 0 : index
    %c0_646 = arith.constant 0 : index
    %1115 = vector.load %arg33[%c1_644, %c0_645, %c0_646] : memref<4x1x8xf32, #tpu.memory_space<vmem>>, vector<1x1x8xf32>
    %1116 = vector.shape_cast %1115 : vector<1x1x8xf32> to vector<1x8xf32>
    %1117 = vector.broadcast %1116 : vector<1x8xf32> to vector<16x8xf32>
    %1118 = arith.addf %1114, %1117 : vector<16x8xf32>
    %1119 = vector.extract_strided_slice %1071 {offsets = [8, 0], sizes = [8, 16], strides = [1, 1]} : vector<32x16xf32> to vector<8x16xf32>
    %cst_647 = arith.constant dense<0.000000e+00> : vector<16x16xf32>
    %1120 = tpu.matmul %1111, %1119, %cst_647 {dimension_numbers = #tpu.dot_dimension_numbers<[1], [0], [0], [1], [0, 0, 1, 1], [], []>} : vector<16x8xf32>, vector<8x16xf32>, vector<16x16xf32> -> vector<16x16xf32>
    %cst_648 = arith.constant 0.353553385 : f32
    %1121 = vector.broadcast %cst_648 : f32 to vector<16x16xf32>
    %1122 = arith.mulf %1120, %1121 : vector<16x16xf32>
    %1123 = arith.addf %1122, %0 : vector<16x16xf32>
    %cst_649 = arith.constant dense<0xFF800000> : vector<16xf32>
    %1124 = vector.multi_reduction <maximumf>, %1123, %cst_649 [1] : vector<16x16xf32> to vector<16xf32>
    %1125 = vector.shape_cast %1124 : vector<16xf32> to vector<16x1xf32>
    %1126 = vector.broadcast %1125 : vector<16x1xf32> to vector<16x16xf32>
    %1127 = arith.subf %1123, %1126 : vector<16x16xf32>
    %1128 = math.exp %1127 : vector<16x16xf32>
    %cst_650 = arith.constant dense<0.000000e+00> : vector<16xf32>
    %1129 = vector.multi_reduction <add>, %1128, %cst_650 [1] : vector<16x16xf32> to vector<16xf32>
    %1130 = vector.shape_cast %1129 : vector<16xf32> to vector<16x1xf32>
    %cst_651 = arith.constant dense<0.000000e+00> : vector<16x8xf32>
    %1131 = tpu.matmul %1128, %1118, %cst_651 {dimension_numbers = #tpu.dot_dimension_numbers<[1], [0], [0], [1], [0, 0, 1, 1], [], []>} : vector<16x16xf32>, vector<16x8xf32>, vector<16x8xf32> -> vector<16x8xf32>
    %1132 = tpu.reciprocal %1130 {approx = true} : vector<16x1xf32> -> vector<16x1xf32>
    %1133 = vector.broadcast %1132 : vector<16x1xf32> to vector<16x8xf32>
    %1134 = arith.mulf %1131, %1133 : vector<16x8xf32>
    %1135 = vector.extract_strided_slice %1072 {offsets = [8, 0], sizes = [8, 32], strides = [1, 1]} : vector<32x32xf32> to vector<8x32xf32>
    %cst_652 = arith.constant dense<0.000000e+00> : vector<16x32xf32>
    %1136 = tpu.matmul %1134, %1135, %cst_652 {dimension_numbers = #tpu.dot_dimension_numbers<[1], [0], [0], [1], [0, 0, 1, 1], [], []>} : vector<16x8xf32>, vector<8x32xf32>, vector<16x32xf32> -> vector<16x32xf32>
    %1137 = arith.addf %1104, %1136 : vector<16x32xf32>
    %c2_653 = arith.constant 2 : index
    %c0_654 = arith.constant 0 : index
    %c0_655 = arith.constant 0 : index
    %1138 = vector.load %arg36[%c2_653, %c0_654, %c0_655] : memref<4x32x8xf32, #tpu.memory_space<vmem>>, vector<1x32x8xf32>
    %1139 = vector.shape_cast %1138 : vector<1x32x8xf32> to vector<32x8xf32>
    %cst_656 = arith.constant dense<0.000000e+00> : vector<16x8xf32>
    %1140 = tpu.matmul %1065, %1139, %cst_656 {dimension_numbers = #tpu.dot_dimension_numbers<[1], [0], [0], [1], [0, 0, 1, 1], [], []>} : vector<16x32xf32>, vector<32x8xf32>, vector<16x8xf32> -> vector<16x8xf32>
    %c2_657 = arith.constant 2 : index
    %c0_658 = arith.constant 0 : index
    %c0_659 = arith.constant 0 : index
    %1141 = vector.load %arg32[%c2_657, %c0_658, %c0_659] : memref<4x1x8xf32, #tpu.memory_space<vmem>>, vector<1x1x8xf32>
    %1142 = vector.shape_cast %1141 : vector<1x1x8xf32> to vector<1x8xf32>
    %1143 = vector.broadcast %1142 : vector<1x8xf32> to vector<16x8xf32>
    %1144 = arith.addf %1140, %1143 : vector<16x8xf32>
    %c2_660 = arith.constant 2 : index
    %c0_661 = arith.constant 0 : index
    %c0_662 = arith.constant 0 : index
    %1145 = vector.load %arg37[%c2_660, %c0_661, %c0_662] : memref<4x32x8xf32, #tpu.memory_space<vmem>>, vector<1x32x8xf32>
    %1146 = vector.shape_cast %1145 : vector<1x32x8xf32> to vector<32x8xf32>
    %cst_663 = arith.constant dense<0.000000e+00> : vector<16x8xf32>
    %1147 = tpu.matmul %498, %1146, %cst_663 {dimension_numbers = #tpu.dot_dimension_numbers<[1], [0], [0], [1], [0, 0, 1, 1], [], []>} : vector<16x32xf32>, vector<32x8xf32>, vector<16x8xf32> -> vector<16x8xf32>
    %c2_664 = arith.constant 2 : index
    %c0_665 = arith.constant 0 : index
    %c0_666 = arith.constant 0 : index
    %1148 = vector.load %arg33[%c2_664, %c0_665, %c0_666] : memref<4x1x8xf32, #tpu.memory_space<vmem>>, vector<1x1x8xf32>
    %1149 = vector.shape_cast %1148 : vector<1x1x8xf32> to vector<1x8xf32>
    %1150 = vector.broadcast %1149 : vector<1x8xf32> to vector<16x8xf32>
    %1151 = arith.addf %1147, %1150 : vector<16x8xf32>
    %1152 = vector.extract_strided_slice %1071 {offsets = [16, 0], sizes = [8, 16], strides = [1, 1]} : vector<32x16xf32> to vector<8x16xf32>
    %cst_667 = arith.constant dense<0.000000e+00> : vector<16x16xf32>
    %1153 = tpu.matmul %1144, %1152, %cst_667 {dimension_numbers = #tpu.dot_dimension_numbers<[1], [0], [0], [1], [0, 0, 1, 1], [], []>} : vector<16x8xf32>, vector<8x16xf32>, vector<16x16xf32> -> vector<16x16xf32>
    %cst_668 = arith.constant 0.353553385 : f32
    %1154 = vector.broadcast %cst_668 : f32 to vector<16x16xf32>
    %1155 = arith.mulf %1153, %1154 : vector<16x16xf32>
    %1156 = arith.addf %1155, %0 : vector<16x16xf32>
    %cst_669 = arith.constant dense<0xFF800000> : vector<16xf32>
    %1157 = vector.multi_reduction <maximumf>, %1156, %cst_669 [1] : vector<16x16xf32> to vector<16xf32>
    %1158 = vector.shape_cast %1157 : vector<16xf32> to vector<16x1xf32>
    %1159 = vector.broadcast %1158 : vector<16x1xf32> to vector<16x16xf32>
    %1160 = arith.subf %1156, %1159 : vector<16x16xf32>
    %1161 = math.exp %1160 : vector<16x16xf32>
    %cst_670 = arith.constant dense<0.000000e+00> : vector<16xf32>
    %1162 = vector.multi_reduction <add>, %1161, %cst_670 [1] : vector<16x16xf32> to vector<16xf32>
    %1163 = vector.shape_cast %1162 : vector<16xf32> to vector<16x1xf32>
    %cst_671 = arith.constant dense<0.000000e+00> : vector<16x8xf32>
    %1164 = tpu.matmul %1161, %1151, %cst_671 {dimension_numbers = #tpu.dot_dimension_numbers<[1], [0], [0], [1], [0, 0, 1, 1], [], []>} : vector<16x16xf32>, vector<16x8xf32>, vector<16x8xf32> -> vector<16x8xf32>
    %1165 = tpu.reciprocal %1163 {approx = true} : vector<16x1xf32> -> vector<16x1xf32>
    %1166 = vector.broadcast %1165 : vector<16x1xf32> to vector<16x8xf32>
    %1167 = arith.mulf %1164, %1166 : vector<16x8xf32>
    %1168 = vector.extract_strided_slice %1072 {offsets = [16, 0], sizes = [8, 32], strides = [1, 1]} : vector<32x32xf32> to vector<8x32xf32>
    %cst_672 = arith.constant dense<0.000000e+00> : vector<16x32xf32>
    %1169 = tpu.matmul %1167, %1168, %cst_672 {dimension_numbers = #tpu.dot_dimension_numbers<[1], [0], [0], [1], [0, 0, 1, 1], [], []>} : vector<16x8xf32>, vector<8x32xf32>, vector<16x32xf32> -> vector<16x32xf32>
    %1170 = arith.addf %1137, %1169 : vector<16x32xf32>
    %c3_673 = arith.constant 3 : index
    %c0_674 = arith.constant 0 : index
    %c0_675 = arith.constant 0 : index
    %1171 = vector.load %arg36[%c3_673, %c0_674, %c0_675] : memref<4x32x8xf32, #tpu.memory_space<vmem>>, vector<1x32x8xf32>
    %1172 = vector.shape_cast %1171 : vector<1x32x8xf32> to vector<32x8xf32>
    %cst_676 = arith.constant dense<0.000000e+00> : vector<16x8xf32>
    %1173 = tpu.matmul %1065, %1172, %cst_676 {dimension_numbers = #tpu.dot_dimension_numbers<[1], [0], [0], [1], [0, 0, 1, 1], [], []>} : vector<16x32xf32>, vector<32x8xf32>, vector<16x8xf32> -> vector<16x8xf32>
    %c3_677 = arith.constant 3 : index
    %c0_678 = arith.constant 0 : index
    %c0_679 = arith.constant 0 : index
    %1174 = vector.load %arg32[%c3_677, %c0_678, %c0_679] : memref<4x1x8xf32, #tpu.memory_space<vmem>>, vector<1x1x8xf32>
    %1175 = vector.shape_cast %1174 : vector<1x1x8xf32> to vector<1x8xf32>
    %1176 = vector.broadcast %1175 : vector<1x8xf32> to vector<16x8xf32>
    %1177 = arith.addf %1173, %1176 : vector<16x8xf32>
    %c3_680 = arith.constant 3 : index
    %c0_681 = arith.constant 0 : index
    %c0_682 = arith.constant 0 : index
    %1178 = vector.load %arg37[%c3_680, %c0_681, %c0_682] : memref<4x32x8xf32, #tpu.memory_space<vmem>>, vector<1x32x8xf32>
    %1179 = vector.shape_cast %1178 : vector<1x32x8xf32> to vector<32x8xf32>
    %cst_683 = arith.constant dense<0.000000e+00> : vector<16x8xf32>
    %1180 = tpu.matmul %498, %1179, %cst_683 {dimension_numbers = #tpu.dot_dimension_numbers<[1], [0], [0], [1], [0, 0, 1, 1], [], []>} : vector<16x32xf32>, vector<32x8xf32>, vector<16x8xf32> -> vector<16x8xf32>
    %c3_684 = arith.constant 3 : index
    %c0_685 = arith.constant 0 : index
    %c0_686 = arith.constant 0 : index
    %1181 = vector.load %arg33[%c3_684, %c0_685, %c0_686] : memref<4x1x8xf32, #tpu.memory_space<vmem>>, vector<1x1x8xf32>
    %1182 = vector.shape_cast %1181 : vector<1x1x8xf32> to vector<1x8xf32>
    %1183 = vector.broadcast %1182 : vector<1x8xf32> to vector<16x8xf32>
    %1184 = arith.addf %1180, %1183 : vector<16x8xf32>
    %1185 = vector.extract_strided_slice %1071 {offsets = [24, 0], sizes = [8, 16], strides = [1, 1]} : vector<32x16xf32> to vector<8x16xf32>
    %cst_687 = arith.constant dense<0.000000e+00> : vector<16x16xf32>
    %1186 = tpu.matmul %1177, %1185, %cst_687 {dimension_numbers = #tpu.dot_dimension_numbers<[1], [0], [0], [1], [0, 0, 1, 1], [], []>} : vector<16x8xf32>, vector<8x16xf32>, vector<16x16xf32> -> vector<16x16xf32>
    %cst_688 = arith.constant 0.353553385 : f32
    %1187 = vector.broadcast %cst_688 : f32 to vector<16x16xf32>
    %1188 = arith.mulf %1186, %1187 : vector<16x16xf32>
    %1189 = arith.addf %1188, %0 : vector<16x16xf32>
    %cst_689 = arith.constant dense<0xFF800000> : vector<16xf32>
    %1190 = vector.multi_reduction <maximumf>, %1189, %cst_689 [1] : vector<16x16xf32> to vector<16xf32>
    %1191 = vector.shape_cast %1190 : vector<16xf32> to vector<16x1xf32>
    %1192 = vector.broadcast %1191 : vector<16x1xf32> to vector<16x16xf32>
    %1193 = arith.subf %1189, %1192 : vector<16x16xf32>
    %1194 = math.exp %1193 : vector<16x16xf32>
    %cst_690 = arith.constant dense<0.000000e+00> : vector<16xf32>
    %1195 = vector.multi_reduction <add>, %1194, %cst_690 [1] : vector<16x16xf32> to vector<16xf32>
    %1196 = vector.shape_cast %1195 : vector<16xf32> to vector<16x1xf32>
    %cst_691 = arith.constant dense<0.000000e+00> : vector<16x8xf32>
    %1197 = tpu.matmul %1194, %1184, %cst_691 {dimension_numbers = #tpu.dot_dimension_numbers<[1], [0], [0], [1], [0, 0, 1, 1], [], []>} : vector<16x16xf32>, vector<16x8xf32>, vector<16x8xf32> -> vector<16x8xf32>
    %1198 = tpu.reciprocal %1196 {approx = true} : vector<16x1xf32> -> vector<16x1xf32>
    %1199 = vector.broadcast %1198 : vector<16x1xf32> to vector<16x8xf32>
    %1200 = arith.mulf %1197, %1199 : vector<16x8xf32>
    %1201 = vector.extract_strided_slice %1072 {offsets = [24, 0], sizes = [8, 32], strides = [1, 1]} : vector<32x32xf32> to vector<8x32xf32>
    %cst_692 = arith.constant dense<0.000000e+00> : vector<16x32xf32>
    %1202 = tpu.matmul %1200, %1201, %cst_692 {dimension_numbers = #tpu.dot_dimension_numbers<[1], [0], [0], [1], [0, 0, 1, 1], [], []>} : vector<16x8xf32>, vector<8x32xf32>, vector<16x32xf32> -> vector<16x32xf32>
    %1203 = arith.addf %1170, %1202 : vector<16x32xf32>
    %c0_693 = arith.constant 0 : index
    %c0_694 = arith.constant 0 : index
    %1204 = vector.load %arg31[%c0_693, %c0_694] : memref<1x32xf32, #tpu.memory_space<vmem>>, vector<1x32xf32>
    %1205 = vector.broadcast %1204 : vector<1x32xf32> to vector<16x32xf32>
    %1206 = arith.addf %1203, %1205 : vector<16x32xf32>
    %1207 = arith.addf %1065, %1206 : vector<16x32xf32>
    %cst_695 = arith.constant dense<0.000000e+00> : vector<16xf32>
    %1208 = vector.multi_reduction <add>, %1207, %cst_695 [1] : vector<16x32xf32> to vector<16xf32>
    %1209 = vector.shape_cast %1208 : vector<16xf32> to vector<16x1xf32>
    %cst_696 = arith.constant 3.200000e+01 : f32
    %1210 = vector.broadcast %cst_696 : f32 to vector<16x1xf32>
    %1211 = arith.divf %1209, %1210 : vector<16x1xf32>
    %1212 = vector.broadcast %1211 : vector<16x1xf32> to vector<16x32xf32>
    %1213 = arith.subf %1207, %1212 : vector<16x32xf32>
    %1214 = arith.mulf %1213, %1213 : vector<16x32xf32>
    %cst_697 = arith.constant dense<0.000000e+00> : vector<16xf32>
    %1215 = vector.multi_reduction <add>, %1214, %cst_697 [1] : vector<16x32xf32> to vector<16xf32>
    %1216 = vector.shape_cast %1215 : vector<16xf32> to vector<16x1xf32>
    %cst_698 = arith.constant 3.200000e+01 : f32
    %1217 = vector.broadcast %cst_698 : f32 to vector<16x1xf32>
    %1218 = arith.divf %1216, %1217 : vector<16x1xf32>
    %cst_699 = arith.constant 9.99999974E-6 : f32
    %1219 = vector.broadcast %cst_699 : f32 to vector<16x1xf32>
    %1220 = arith.addf %1218, %1219 : vector<16x1xf32>
    %1221 = math.rsqrt %1220 : vector<16x1xf32>
    %1222 = vector.broadcast %1221 : vector<16x1xf32> to vector<16x32xf32>
    %1223 = arith.mulf %1213, %1222 : vector<16x32xf32>
    %c0_700 = arith.constant 0 : index
    %c0_701 = arith.constant 0 : index
    %1224 = vector.load %arg45[%c0_700, %c0_701] : memref<1x32xf32, #tpu.memory_space<vmem>>, vector<1x32xf32>
    %1225 = vector.broadcast %1224 : vector<1x32xf32> to vector<16x32xf32>
    %1226 = arith.mulf %1223, %1225 : vector<16x32xf32>
    %c0_702 = arith.constant 0 : index
    %c0_703 = arith.constant 0 : index
    %1227 = vector.load %arg44[%c0_702, %c0_703] : memref<1x32xf32, #tpu.memory_space<vmem>>, vector<1x32xf32>
    %1228 = vector.broadcast %1227 : vector<1x32xf32> to vector<16x32xf32>
    %1229 = arith.addf %1226, %1228 : vector<16x32xf32>
    %c0_704 = arith.constant 0 : index
    %c0_705 = arith.constant 0 : index
    %1230 = vector.load %arg40[%c0_704, %c0_705] : memref<32x64xf32, #tpu.memory_space<vmem>>, vector<32x64xf32>
    %cst_706 = arith.constant dense<0.000000e+00> : vector<16x64xf32>
    %1231 = tpu.matmul %1229, %1230, %cst_706 {dimension_numbers = #tpu.dot_dimension_numbers<[1], [0], [0], [1], [0, 0, 1, 1], [], []>} : vector<16x32xf32>, vector<32x64xf32>, vector<16x64xf32> -> vector<16x64xf32>
    %c0_707 = arith.constant 0 : index
    %c0_708 = arith.constant 0 : index
    %1232 = vector.load %arg38[%c0_707, %c0_708] : memref<1x64xf32, #tpu.memory_space<vmem>>, vector<1x64xf32>
    %1233 = vector.broadcast %1232 : vector<1x64xf32> to vector<16x64xf32>
    %1234 = arith.addf %1231, %1233 : vector<16x64xf32>
    %cst_709 = arith.constant 0.707106769 : f32
    %1235 = vector.broadcast %cst_709 : f32 to vector<16x64xf32>
    %1236 = arith.mulf %1234, %1235 : vector<16x64xf32>
    %1237 = math.absf %1236 : vector<16x64xf32>
    %cst_710 = arith.constant 0.327591091 : f32
    %1238 = vector.broadcast %cst_710 : f32 to vector<16x64xf32>
    %1239 = arith.mulf %1238, %1237 : vector<16x64xf32>
    %cst_711 = arith.constant 1.000000e+00 : f32
    %1240 = vector.broadcast %cst_711 : f32 to vector<16x64xf32>
    %1241 = arith.addf %1240, %1239 : vector<16x64xf32>
    %cst_712 = arith.constant 1.000000e+00 : f32
    %1242 = vector.broadcast %cst_712 : f32 to vector<16x64xf32>
    %1243 = arith.divf %1242, %1241 : vector<16x64xf32>
    %cst_713 = arith.constant 1.06140542 : f32
    %1244 = vector.broadcast %cst_713 : f32 to vector<16x64xf32>
    %1245 = arith.mulf %1243, %1244 : vector<16x64xf32>
    %cst_714 = arith.constant -1.45315206 : f32
    %1246 = vector.broadcast %cst_714 : f32 to vector<16x64xf32>
    %1247 = arith.addf %1246, %1245 : vector<16x64xf32>
    %1248 = arith.mulf %1243, %1247 : vector<16x64xf32>
    %cst_715 = arith.constant 1.42141378 : f32
    %1249 = vector.broadcast %cst_715 : f32 to vector<16x64xf32>
    %1250 = arith.addf %1249, %1248 : vector<16x64xf32>
    %1251 = arith.mulf %1243, %1250 : vector<16x64xf32>
    %cst_716 = arith.constant -0.284496725 : f32
    %1252 = vector.broadcast %cst_716 : f32 to vector<16x64xf32>
    %1253 = arith.addf %1252, %1251 : vector<16x64xf32>
    %1254 = arith.mulf %1243, %1253 : vector<16x64xf32>
    %cst_717 = arith.constant 0.254829586 : f32
    %1255 = vector.broadcast %cst_717 : f32 to vector<16x64xf32>
    %1256 = arith.addf %1255, %1254 : vector<16x64xf32>
    %1257 = arith.mulf %1243, %1256 : vector<16x64xf32>
    %cst_718 = arith.constant 0.000000e+00 : f32
    %1258 = vector.broadcast %cst_718 : f32 to vector<16x64xf32>
    %1259 = arith.subf %1258, %1237 : vector<16x64xf32>
    %1260 = arith.mulf %1259, %1237 : vector<16x64xf32>
    %1261 = math.exp %1260 : vector<16x64xf32>
    %1262 = arith.mulf %1257, %1261 : vector<16x64xf32>
    %cst_719 = arith.constant 1.000000e+00 : f32
    %1263 = vector.broadcast %cst_719 : f32 to vector<16x64xf32>
    %1264 = arith.subf %1263, %1262 : vector<16x64xf32>
    %cst_720 = arith.constant 0.000000e+00 : f32
    %1265 = vector.broadcast %cst_720 : f32 to vector<16x64xf32>
    %1266 = arith.cmpf olt, %1236, %1265 : vector<16x64xf32>
    %cst_721 = arith.constant 0.000000e+00 : f32
    %1267 = vector.broadcast %cst_721 : f32 to vector<16x64xf32>
    %1268 = arith.subf %1267, %1264 : vector<16x64xf32>
    %1269 = arith.select %1266, %1268, %1264 : vector<16x64xi1>, vector<16x64xf32>
    %cst_722 = arith.constant 5.000000e-01 : f32
    %1270 = vector.broadcast %cst_722 : f32 to vector<16x64xf32>
    %1271 = arith.mulf %1270, %1234 : vector<16x64xf32>
    %cst_723 = arith.constant 1.000000e+00 : f32
    %1272 = vector.broadcast %cst_723 : f32 to vector<16x64xf32>
    %1273 = arith.addf %1272, %1269 : vector<16x64xf32>
    %1274 = arith.mulf %1271, %1273 : vector<16x64xf32>
    %c0_724 = arith.constant 0 : index
    %c0_725 = arith.constant 0 : index
    %1275 = vector.load %arg41[%c0_724, %c0_725] : memref<64x32xf32, #tpu.memory_space<vmem>>, vector<64x32xf32>
    %cst_726 = arith.constant dense<0.000000e+00> : vector<16x32xf32>
    %1276 = tpu.matmul %1274, %1275, %cst_726 {dimension_numbers = #tpu.dot_dimension_numbers<[1], [0], [0], [1], [0, 0, 1, 1], [], []>} : vector<16x64xf32>, vector<64x32xf32>, vector<16x32xf32> -> vector<16x32xf32>
    %c0_727 = arith.constant 0 : index
    %c0_728 = arith.constant 0 : index
    %1277 = vector.load %arg39[%c0_727, %c0_728] : memref<1x32xf32, #tpu.memory_space<vmem>>, vector<1x32xf32>
    %1278 = vector.broadcast %1277 : vector<1x32xf32> to vector<16x32xf32>
    %1279 = arith.addf %1276, %1278 : vector<16x32xf32>
    %1280 = arith.addf %1229, %1279 : vector<16x32xf32>
    %cst_729 = arith.constant dense<0.000000e+00> : vector<16xf32>
    %1281 = vector.multi_reduction <add>, %1280, %cst_729 [1] : vector<16x32xf32> to vector<16xf32>
    %1282 = vector.shape_cast %1281 : vector<16xf32> to vector<16x1xf32>
    %cst_730 = arith.constant 3.200000e+01 : f32
    %1283 = vector.broadcast %cst_730 : f32 to vector<16x1xf32>
    %1284 = arith.divf %1282, %1283 : vector<16x1xf32>
    %1285 = vector.broadcast %1284 : vector<16x1xf32> to vector<16x32xf32>
    %1286 = arith.subf %1280, %1285 : vector<16x32xf32>
    %1287 = arith.mulf %1286, %1286 : vector<16x32xf32>
    %cst_731 = arith.constant dense<0.000000e+00> : vector<16xf32>
    %1288 = vector.multi_reduction <add>, %1287, %cst_731 [1] : vector<16x32xf32> to vector<16xf32>
    %1289 = vector.shape_cast %1288 : vector<16xf32> to vector<16x1xf32>
    %cst_732 = arith.constant 3.200000e+01 : f32
    %1290 = vector.broadcast %cst_732 : f32 to vector<16x1xf32>
    %1291 = arith.divf %1289, %1290 : vector<16x1xf32>
    %cst_733 = arith.constant 9.99999974E-6 : f32
    %1292 = vector.broadcast %cst_733 : f32 to vector<16x1xf32>
    %1293 = arith.addf %1291, %1292 : vector<16x1xf32>
    %1294 = math.rsqrt %1293 : vector<16x1xf32>
    %1295 = vector.broadcast %1294 : vector<16x1xf32> to vector<16x32xf32>
    %1296 = arith.mulf %1286, %1295 : vector<16x32xf32>
    %c0_734 = arith.constant 0 : index
    %c0_735 = arith.constant 0 : index
    %1297 = vector.load %arg47[%c0_734, %c0_735] : memref<1x32xf32, #tpu.memory_space<vmem>>, vector<1x32xf32>
    %1298 = vector.broadcast %1297 : vector<1x32xf32> to vector<16x32xf32>
    %1299 = arith.mulf %1296, %1298 : vector<16x32xf32>
    %c0_736 = arith.constant 0 : index
    %c0_737 = arith.constant 0 : index
    %1300 = vector.load %arg46[%c0_736, %c0_737] : memref<1x32xf32, #tpu.memory_space<vmem>>, vector<1x32xf32>
    %1301 = vector.broadcast %1300 : vector<1x32xf32> to vector<16x32xf32>
    %1302 = arith.addf %1299, %1301 : vector<16x32xf32>
    %cst_738 = arith.constant dense<0.000000e+00> : vector<16xf32>
    %1303 = vector.multi_reduction <add>, %1302, %cst_738 [1] : vector<16x32xf32> to vector<16xf32>
    %1304 = vector.shape_cast %1303 : vector<16xf32> to vector<16x1xf32>
    %cst_739 = arith.constant 3.200000e+01 : f32
    %1305 = vector.broadcast %cst_739 : f32 to vector<16x1xf32>
    %1306 = arith.divf %1304, %1305 : vector<16x1xf32>
    %1307 = vector.broadcast %1306 : vector<16x1xf32> to vector<16x32xf32>
    %1308 = arith.subf %1302, %1307 : vector<16x32xf32>
    %1309 = arith.mulf %1308, %1308 : vector<16x32xf32>
    %cst_740 = arith.constant dense<0.000000e+00> : vector<16xf32>
    %1310 = vector.multi_reduction <add>, %1309, %cst_740 [1] : vector<16x32xf32> to vector<16xf32>
    %1311 = vector.shape_cast %1310 : vector<16xf32> to vector<16x1xf32>
    %cst_741 = arith.constant 3.200000e+01 : f32
    %1312 = vector.broadcast %cst_741 : f32 to vector<16x1xf32>
    %1313 = arith.divf %1311, %1312 : vector<16x1xf32>
    %cst_742 = arith.constant 9.99999974E-6 : f32
    %1314 = vector.broadcast %cst_742 : f32 to vector<16x1xf32>
    %1315 = arith.addf %1313, %1314 : vector<16x1xf32>
    %1316 = math.rsqrt %1315 : vector<16x1xf32>
    %1317 = vector.broadcast %1316 : vector<16x1xf32> to vector<16x32xf32>
    %1318 = arith.mulf %1308, %1317 : vector<16x32xf32>
    %c0_743 = arith.constant 0 : index
    %c0_744 = arith.constant 0 : index
    %1319 = vector.load %arg57[%c0_743, %c0_744] : memref<1x32xf32, #tpu.memory_space<vmem>>, vector<1x32xf32>
    %1320 = vector.broadcast %1319 : vector<1x32xf32> to vector<16x32xf32>
    %1321 = arith.mulf %1318, %1320 : vector<16x32xf32>
    %c0_745 = arith.constant 0 : index
    %c0_746 = arith.constant 0 : index
    %1322 = vector.load %arg56[%c0_745, %c0_746] : memref<1x32xf32, #tpu.memory_space<vmem>>, vector<1x32xf32>
    %1323 = vector.broadcast %1322 : vector<1x32xf32> to vector<16x32xf32>
    %1324 = arith.addf %1321, %1323 : vector<16x32xf32>
    %c0_747 = arith.constant 0 : index
    %c0_748 = arith.constant 0 : index
    %1325 = vector.load %arg92[%c0_747, %c0_748] : memref<16x32xf32, #tpu.memory_space<vmem>>, vector<16x32xf32>
    tpu.vector_store %arg92[%c0_747, %c0_748], %1324 {strides = array<i32>} : memref<16x32xf32, #tpu.memory_space<vmem>>, vector<16x32xf32>,
    return
  }
}

</mosaic_0001>

<bundles_post_ra>
// kernel: forward.1
= control target key start
LH: loop header
LB: loop body
LE: loop exit
PB: predicated region body
PF: predicated region fallthrough
CT: control target
= control target key end

     0   :  { %s18781_s6 = smov 1   ;;  %s18782_s10 = smov 2   ;;  %s20844_s0 = inlined_call_operand.smem [shape: u32[94], index: -1, kind: input, shape index: {}] }
   0x1   :  { %s18931_s5 = sld [smem:[%s20844_s0]]   ;;  %s18783_s14 = smov 3  }
   0x2   :  { %s18936_s9 = sld [smem:[%s20844_s0 + %s18781_s6]]   ;;  %s18784_s18 = smov 4  }
   0x3   :  { %s18941_s13 = sld [smem:[%s20844_s0 + %s18782_s10]]   ;;  %s18785_s22 = smov 5  }
   0x4   :  { %s18946_s17 = sld [smem:[%s20844_s0 + %s18783_s14]]   ;;  %s18786_s26 = smov 6  }
   0x5   :  { %s18951_s21 = sld [smem:[%s20844_s0 + %s18784_s18]]   ;;  %s18787_s30 = smov 7  }
   0x6   :  { %s18956_s25 = sld [smem:[%s20844_s0 + %s18785_s22]]   ;;  %s18788_s4 = smov 8  }
   0x7   :  { %20919 = sst [smem:[#allocation94_spill]] %s18931_s5  ;;  %s18789_s10 = smov 9  }
   0x8   :  { %20920 = sst [smem:[#allocation95_spill]] %s18936_s9  ;;  %s18790_s15 = smov 10  }
   0x9   :  { %20921 = sst [smem:[#allocation96_spill]] %s18941_s13  ;;  %s18791_s20 = smov 11  }
   0xa   :  { %20922 = sst [smem:[#allocation97_spill]] %s18946_s17  ;;  %s18793_s1 = smov 13  }
   0xb   :  { %20923 = sst [smem:[#allocation98_spill]] %s18951_s21  ;;  %s18794_s7 = smov 14  }
   0xc   :  { %20924 = sst [smem:[#allocation99_spill]] %s18956_s25  ;;  %s18796_s22 = smov 16  }
   0xd   :  { %s18961_s29 = sld [smem:[%s20844_s0 + %s18786_s26]]   ;;  %s18792_s26 = smov 12  }
   0xe   :  { %s18966_s3 = sld [smem:[%s20844_s0 + %s18787_s30]]   ;;  %s18797_s28 = smov 17  }
   0xf   :  { %s18971_s8 = sld [smem:[%s20844_s0 + %s18788_s4]]  }
  0x10   :  { %s18976_s14 = sld [smem:[%s20844_s0 + %s18789_s10]]  }
  0x11   :  { %s18981_s19 = sld [smem:[%s20844_s0 + %s18790_s15]]   ;;  %s18795_s15 = smov 15  }
  0x12   :  { %s18986_s24 = sld [smem:[%s20844_s0 + %s18791_s20]]  }
  0x13   :  { %20925 = sst [smem:[#allocation100_spill]] %s18961_s29 }
  0x14   :  { %20926 = sst [smem:[#allocation101_spill]] %s18966_s3 }
  0x15   :  { %20927 = sst [smem:[#allocation102_spill]] %s18971_s8 }
  0x16   :  { %20928 = sst [smem:[#allocation103_spill]] %s18976_s14 }
  0x17   :  { %20929 = sst [smem:[#allocation104_spill]] %s18981_s19 }
  0x18   :  { %20930 = sst [smem:[#allocation105_spill]] %s18986_s24 }
  0x19   :  { %s18991_s30 = sld [smem:[%s20844_s0 + %s18792_s26]]  }
  0x1a   :  { %s18996_s6 = sld [smem:[%s20844_s0 + %s18793_s1]]  }
  0x1b   :  { %s19001_s12 = sld [smem:[%s20844_s0 + %s18794_s7]]   ;;  %s18798_s7 = smov 18  }
  0x1c   :  { %s19006_s20 = sld [smem:[%s20844_s0 + %s18795_s15]]   ;;  %s18799_s15 = smov 19  }
  0x1d   :  { %s19011_s27 = sld [smem:[%s20844_s0 + %s18796_s22]]   ;;  %s18800_s22 = smov 20  }
  0x1e   :  { %s19016_s4 = sld [smem:[%s20844_s0 + %s18797_s28]]   ;;  %s18801_s28 = smov 21  }
  0x1f   :  { %20931 = sst [smem:[#allocation106_spill]] %s18991_s30 }
  0x20   :  { %s19031_s25 = sld [smem:[%s20844_s0 + %s18800_s22]]   ;;  %s18804_s22 = smov 24  }
  0x21   :  { %20932 = sst [smem:[#allocation107_spill]] %s19001_s12 }
  0x22   :  { %20933 = sst [smem:[#allocation108_spill]] %s19006_s20 }
  0x23   :  { %20934 = sst [smem:[#allocation109_spill]] %s19011_s27 }
  0x24   :  { %s19021_s12 = sld [smem:[%s20844_s0 + %s18798_s7]]   ;;  %s18802_s7 = smov 22  }
  0x25   :  { %s19026_s20 = sld [smem:[%s20844_s0 + %s18799_s15]]   ;;  %s18803_s15 = smov 23  }
  0x26   :  { %20936 = sst [smem:[#allocation111_spill]] %s19031_s25 }
  0x27   :  { %s19036_s14 = sld [smem:[%s20844_s0 + %s18801_s28]]   ;;  %s18805_s28 = smov 25  }
  0x28   :  { %s19041_s29 = sld [smem:[%s20844_s0 + %s18802_s7]]   ;;  %s18806_s7 = smov 26  }
  0x29   :  { %s19046_s3 = sld [smem:[%s20844_s0 + %s18803_s15]]   ;;  %s18807_s15 = smov 27  }
  0x2a   :  { %20935 = sst [smem:[#allocation110_spill]] %s19021_s12 }
  0x2b   :  { %s19051_s21 = sld [smem:[%s20844_s0 + %s18804_s22]]   ;;  %s18808_s22 = smov 28  }
  0x2c   :  { %s19056_s19 = sld [smem:[%s20844_s0 + %s18805_s28]]   ;;  %s18809_s28 = smov 29  }
  0x2d   :  { %s19061_s24 = sld [smem:[%s20844_s0 + %s18806_s7]]   ;;  %s18810_s7 = smov 30  }
  0x2e   :  { %20937 = sst [smem:[#allocation112_spill]] %s19041_s29 }
  0x2f   :  { %s19066_s8 = sld [smem:[%s20844_s0 + %s18807_s15]]   ;;  %s18811_s15 = smov 31  }
  0x30   :  { %s19071_s17 = sld [smem:[%s20844_s0 + %s18808_s22]]   ;;  %s18812_s22 = smov 32  }
  0x31   :  { %20938 = sst [smem:[#allocation113_spill]] %s19051_s21 }
  0x32   :  { %20939 = sst [smem:[#allocation114_spill]] %s19056_s19 }
  0x33   :  { %20940 = sst [smem:[#allocation115_spill]] %s19061_s24 }
  0x34   :  { %s19076_s19 = sld [smem:[%s20844_s0 + %s18809_s28]]   ;;  %s18813_s28 = smov 33  }
  0x35   :  { %20941 = sst [smem:[#allocation116_spill]] %s19066_s8 }
  0x36   :  { %20942 = sst [smem:[#allocation117_spill]] %s19071_s17 }
  0x37   :  { %s19081_s21 = sld [smem:[%s20844_s0 + %s18810_s7]]   ;;  %s18814_s7 = smov 34  }
  0x38   :  { %s19086_s8 = sld [smem:[%s20844_s0 + %s18811_s15]]   ;;  %s18815_s15 = smov 35  }
  0x39   :  { %s19091_s17 = sld [smem:[%s20844_s0 + %s18812_s22]]   ;;  %s18816_s22 = smov 36  }
  0x3a   :  { %20943 = sst [smem:[#allocation118_spill]] %s19076_s19 }
  0x3b   :  { %s19096_s19 = sld [smem:[%s20844_s0 + %s18813_s28]]   ;;  %s18817_s28 = smov 37  }
  0x3c   :  { %s19101_s9 = sld [smem:[%s20844_s0 + %s18814_s7]]   ;;  %s18818_s7 = smov 38  }
  0x3d   :  { %20944 = sst [smem:[#allocation119_spill]] %s19081_s21 }
  0x3e   :  { %s19106_s24 = sld [smem:[%s20844_s0 + %s18815_s15]]   ;;  %s18819_s15 = smov 39  }
  0x3f   :  { %20945 = sst [smem:[#allocation120_spill]] %s19091_s17 }
  0x40   :  { %s19111_s17 = sld [smem:[%s20844_s0 + %s18816_s22]]   ;;  %s18820_s22 = smov 40  }
  0x41   :  { %20946 = sst [smem:[#allocation121_spill]] %s19096_s19 }
  0x42   :  { %20947 = sst [smem:[#allocation122_spill]] %s19101_s9 }
  0x43   :  { %s19116_s19 = sld [smem:[%s20844_s0 + %s18817_s28]]   ;;  %s18821_s28 = smov 41  }
  0x44   :  { %20948 = sst [smem:[#allocation123_spill]] %s19106_s24 }
  0x45   :  { %s19121_s9 = sld [smem:[%s20844_s0 + %s18818_s7]]   ;;  %s18822_s7 = smov 42  }
  0x46   :  { %20949 = sst [smem:[#allocation124_spill]] %s19111_s17 }
  0x47   :  { %s19126_s24 = sld [smem:[%s20844_s0 + %s18819_s15]]   ;;  %s18823_s15 = smov 43  }
  0x48   :  { %s19131_s17 = sld [smem:[%s20844_s0 + %s18820_s22]]   ;;  %s18824_s22 = smov 44  }
  0x49   :  { %20950 = sst [smem:[#allocation125_spill]] %s19116_s19 }
  0x4a   :  { %s19136_s19 = sld [smem:[%s20844_s0 + %s18821_s28]]   ;;  %s18825_s28 = smov 45  }
  0x4b   :  { %20951 = sst [smem:[#allocation126_spill]] %s19121_s9 }
  0x4c   :  { %s19141_s13 = sld [smem:[%s20844_s0 + %s18822_s7]]   ;;  %s18826_s7 = smov 46  }
  0x4d   :  { %s19146_s5 = sld [smem:[%s20844_s0 + %s18823_s15]]   ;;  %s18827_s15 = smov 47  }
  0x4e   :  { %20952 = sst [smem:[#allocation127_spill]] %s19131_s17 }
  0x4f   :  { %s19151_s17 = sld [smem:[%s20844_s0 + %s18824_s22]]   ;;  %s18828_s22 = smov 48  }
  0x50   :  { %20953 = sst [smem:[#allocation128_spill]] %s19136_s19 }
  0x51   :  { %s19156_s19 = sld [smem:[%s20844_s0 + %s18825_s28]]   ;;  %s18829_s28 = smov 49  }
  0x52   :  { %20954 = sst [smem:[#allocation129_spill]] %s19141_s13 }
  0x53   :  { %s19161_s13 = sld [smem:[%s20844_s0 + %s18826_s7]]   ;;  %s18830_s7 = smov 50  }
  0x54   :  { %s19166_s9 = sld [smem:[%s20844_s0 + %s18827_s15]]   ;;  %s18831_s15 = smov 51  }
  0x55   :  { %20955 = sst [smem:[#allocation130_spill]] %s19151_s17 }
  0x56   :  { %s19171_s17 = sld [smem:[%s20844_s0 + %s18828_s22]]   ;;  %s18832_s22 = smov 52  }
  0x57   :  { %s19176_s21 = sld [smem:[%s20844_s0 + %s18829_s28]]   ;;  %s18833_s28 = smov 53  }
  0x58   :  { %s19186_s29 = sld [smem:[%s20844_s0 + %s18831_s15]]   ;;  %s18835_s15 = smov 55  }
  0x59   :  { %20956 = sst [smem:[#allocation131_spill]] %s19161_s13 }
  0x5a   :  { %s19181_s13 = sld [smem:[%s20844_s0 + %s18830_s7]]   ;;  %s18834_s7 = smov 54  }
  0x5b   :  { %s19196_s25 = sld [smem:[%s20844_s0 + %s18833_s28]]   ;;  %s18837_s28 = smov 57  }
  0x5c   :  { %20957 = sst [smem:[#allocation132_spill]] %s19171_s17 }
  0x5d   :  { %s19191_s17 = sld [smem:[%s20844_s0 + %s18832_s22]]   ;;  %s18836_s22 = smov 56  }
  0x5e   :  { %20959 = sst [smem:[#allocation134_spill]] %s19186_s29 }
  0x5f   :  { %s19206_s29 = sld [smem:[%s20844_s0 + %s18835_s15]]   ;;  %s18839_s15 = smov 59  }
  0x60   :  { %20958 = sst [smem:[#allocation133_spill]] %s19181_s13 }
  0x61   :  { %20961 = sst [smem:[#allocation136_spill]] %s19196_s25 }
  0x62   :  { %s19201_s13 = sld [smem:[%s20844_s0 + %s18834_s7]]   ;;  %s18838_s7 = smov 58  }
  0x63   :  { %20960 = sst [smem:[#allocation135_spill]] %s19191_s17 }
  0x64   :  { %s19211_s17 = sld [smem:[%s20844_s0 + %s18836_s22]]   ;;  %s18840_s22 = smov 60  }
  0x65   :  { %20963 = sst [smem:[#allocation138_spill]] %s19206_s29 }
  0x66   :  { %s19216_s25 = sld [smem:[%s20844_s0 + %s18837_s28]]   ;;  %s18841_s28 = smov 61  }
  0x67   :  { %s19226_s29 = sld [smem:[%s20844_s0 + %s18839_s15]]   ;;  %s18843_s15 = smov 63  }
  0x68   :  { %20962 = sst [smem:[#allocation137_spill]] %s19201_s13 }
  0x69   :  { %s19221_s13 = sld [smem:[%s20844_s0 + %s18838_s7]]   ;;  %s18842_s7 = smov 62  }
  0x6a   :  { %20964 = sst [smem:[#allocation139_spill]] %s19211_s17 }
  0x6b   :  { %s19231_s17 = sld [smem:[%s20844_s0 + %s18840_s22]]   ;;  %s18844_s22 = smov 64  }
  0x6c   :  { %s19236_s12 = sld [smem:[%s20844_s0 + %s18841_s28]]   ;;  %s18845_s28 = smov 65  }
  0x6d   :  { %s19246_s27 = sld [smem:[%s20844_s0 + %s18843_s15]]   ;;  %s18847_s15 = smov 67  }
  0x6e   :  { %s19266_s30 = sld [smem:[%s20844_s0 + %s18847_s15]]   ;;  %s18851_s15 = smov 71  }
  0x6f   :  { %20965 = sst [smem:[#allocation140_spill]] %s19221_s13 }
  0x70   :  { %s19241_s13 = sld [smem:[%s20844_s0 + %s18842_s7]]   ;;  %s18846_s7 = smov 66  }
  0x71   :  { %20966 = sst [smem:[#allocation141_spill]] %s19231_s17 }
  0x72   :  { %20967 = sst [smem:[#allocation142_spill]] %s19236_s12 }
  0x73   :  { %s19251_s17 = sld [smem:[%s20844_s0 + %s18844_s22]]   ;;  %s18848_s22 = smov 68  }
  0x74   :  { %s19256_s12 = sld [smem:[%s20844_s0 + %s18845_s28]]   ;;  %s18849_s28 = smov 69  }
  0x75   :  { %20972 = sst [smem:[#allocation147_spill]] %s19266_s30 }
  0x76   :  { %20968 = sst [smem:[#allocation143_spill]] %s19241_s13 }
  0x77   :  { %s19261_s13 = sld [smem:[%s20844_s0 + %s18846_s7]]   ;;  %s18850_s7 = smov 70  }
  0x78   :  { %s19286_s30 = sld [smem:[%s20844_s0 + %s18851_s15]]   ;;  %s18855_s15 = smov 75  }
  0x79   :  { %20969 = sst [smem:[#allocation144_spill]] %s19251_s17 }
  0x7a   :  { %20970 = sst [smem:[#allocation145_spill]] %s19256_s12 }
  0x7b   :  { %s19271_s17 = sld [smem:[%s20844_s0 + %s18848_s22]]   ;;  %s18852_s22 = smov 72  }
  0x7c   :  { %s19276_s12 = sld [smem:[%s20844_s0 + %s18849_s28]]   ;;  %s18853_s28 = smov 73  }
  0x7d   :  { %20971 = sst [smem:[#allocation146_spill]] %s19261_s13 }
  0x7e   :  { %s19281_s13 = sld [smem:[%s20844_s0 + %s18850_s7]]   ;;  %s18854_s7 = smov 74  }
  0x7f   :  { %20976 = sst [smem:[#allocation151_spill]] %s19286_s30 }
  0x80   :  { %s19306_s30 = sld [smem:[%s20844_s0 + %s18855_s15]]   ;;  %s18859_s15 = smov 79  }
  0x81   :  { %20973 = sst [smem:[#allocation148_spill]] %s19271_s17 }
  0x82   :  { %20974 = sst [smem:[#allocation149_spill]] %s19276_s12 }
  0x83   :  { %s19291_s17 = sld [smem:[%s20844_s0 + %s18852_s22]]   ;;  %s18856_s22 = smov 76  }
  0x84   :  { %20975 = sst [smem:[#allocation150_spill]] %s19281_s13 }
  0x85   :  { %s19296_s12 = sld [smem:[%s20844_s0 + %s18853_s28]]   ;;  %s18857_s28 = smov 77  }
  0x86   :  { %s19301_s13 = sld [smem:[%s20844_s0 + %s18854_s7]]   ;;  %s18858_s7 = smov 78  }
  0x87   :  { %20980 = sst [smem:[#allocation155_spill]] %s19306_s30 }
  0x88   :  { %s19326_s30 = sld [smem:[%s20844_s0 + %s18859_s15]]   ;;  %s18863_s15 = smov 83  }
  0x89   :  { %20977 = sst [smem:[#allocation152_spill]] %s19291_s17 }
  0x8a   :  { %s19311_s17 = sld [smem:[%s20844_s0 + %s18856_s22]]   ;;  %s18860_s22 = smov 80  }
  0x8b   :  { %20978 = sst [smem:[#allocation153_spill]] %s19296_s12 }
  0x8c   :  { %20979 = sst [smem:[#allocation154_spill]] %s19301_s13 }
  0x8d   :  { %s19316_s12 = sld [smem:[%s20844_s0 + %s18857_s28]]   ;;  %s18861_s28 = smov 81  }
  0x8e   :  { %s19321_s13 = sld [smem:[%s20844_s0 + %s18858_s7]]   ;;  %s18862_s7 = smov 82  }
  0x8f   :  { %20984 = sst [smem:[#allocation159_spill]] %s19326_s30 }
  0x90   :  { %20981 = sst [smem:[#allocation156_spill]] %s19311_s17 }
  0x91   :  { %s19331_s17 = sld [smem:[%s20844_s0 + %s18860_s22]]   ;;  %s18864_s22 = smov 84  }
  0x92   :  { %s19346_s30 = sld [smem:[%s20844_s0 + %s18863_s15]]   ;;  %s18867_s15 = smov 87  }
  0x93   :  { %20982 = sst [smem:[#allocation157_spill]] %s19316_s12 }
  0x94   :  { %20983 = sst [smem:[#allocation158_spill]] %s19321_s13 }
  0x95   :  { %s19336_s12 = sld [smem:[%s20844_s0 + %s18861_s28]]   ;;  %s18865_s28 = smov 85  }
  0x96   :  { %s19341_s13 = sld [smem:[%s20844_s0 + %s18862_s7]]   ;;  %s18866_s7 = smov 86  }
  0x97   :  { %20985 = sst [smem:[#allocation160_spill]] %s19331_s17 }
  0x98   :  { %20988 = sst [smem:[#allocation163_spill]] %s19346_s30 }
  0x99   :  { %s19351_s17 = sld [smem:[%s20844_s0 + %s18864_s22]]   ;;  %s18868_s22 = smov 88  }
  0x9a   :  { %s19366_s30 = sld [smem:[%s20844_s0 + %s18867_s15]]   ;;  %s18871_s15 = smov 91  }
  0x9b   :  { %20986 = sst [smem:[#allocation161_spill]] %s19336_s12 }
  0x9c   :  { %20987 = sst [smem:[#allocation162_spill]] %s19341_s13 }
  0x9d   :  { %s19356_s12 = sld [smem:[%s20844_s0 + %s18865_s28]]   ;;  %s18869_s28 = smov 89  }
  0x9e   :  { %s19361_s13 = sld [smem:[%s20844_s0 + %s18866_s7]]   ;;  %s18870_s7 = smov 90  }
  0x9f   :  { %20989 = sst [smem:[#allocation164_spill]] %s19351_s17 }
  0xa0   :  { %20992 = sst [smem:[#allocation167_spill]] %s19366_s30 }
  0xa1   :  { %s19371_s17 = sld [smem:[%s20844_s0 + %s18868_s22]]   ;;  %s18872_s22 = smov 92  }
  0xa2   :  { %s19386_s30 = sld [smem:[%s20844_s0 + %s18871_s15]]  }
  0xa3   :  { %20990 = sst [smem:[#allocation165_spill]] %s19356_s12 }
  0xa4   :  { %20991 = sst [smem:[#allocation166_spill]] %s19361_s13 }
  0xa5   :  { %s19376_s12 = sld [smem:[%s20844_s0 + %s18869_s28]]   ;;  %s18873_s28 = smov 93  }
  0xa6   :  { %s19381_s13 = sld [smem:[%s20844_s0 + %s18870_s7]]  }
  0xa7   :  { %20993 = sst [smem:[#allocation168_spill]] %s19371_s17 }
  0xa8   :  { %s19391_s17 = sld [smem:[%s20844_s0 + %s18872_s22]]  }
  0xab   :  { %20994 = sst [smem:[#allocation169_spill]] %s19376_s12 }
  0xac   :  { %s19396_s12 = sld [smem:[%s20844_s0 + %s18873_s28]]  }
  0xad   :  { %193 = vsyncpa [#allocation3], 0 }
  0xae   :  { %194 = vsyncpa [#allocation6], 0 }
  0xaf   :  { %195 = vsyncpa [#allocation9], 0 }
  0xb0   :  { %196 = vsyncpa [#allocation12], 0 }
  0xb1   :  { %197 = vsyncpa [#allocation15], 0 }
  0xb2   :  { %198 = vsyncpa [#allocation18], 0 }
  0xb3   :  { %199 = vsyncpa [#allocation21], 0 }
  0xb4   :  { %200 = vsyncpa [#allocation24], 0 }
  0xb5   :  { %201 = vsyncpa [#allocation27], 0 }
  0xb6   :  { %202 = vsyncpa [#allocation30], 0 }
  0xb7   :  { %203 = vsyncpa [#allocation33], 0 }
  0xb8   :  { %204 = vsyncpa [#allocation36], 0 }
  0xb9   :  { %205 = vsyncpa [#allocation39], 0 }
  0xba   :  { %206 = vsyncpa [#allocation42], 0 }
  0xbb   :  { %207 = vsyncpa [#allocation45], 0 }
  0xbc   :  { %208 = vsyncpa [#allocation48], 0 }
  0xbd   :  { %209 = vsyncpa [#allocation51], 0 }
  0xbe   :  { %210 = vsyncpa [#allocation54], 0 }
  0xbf   :  { %211 = vsyncpa [#allocation57], 0 }
  0xc0   :  { %212 = vsyncpa [#allocation60], 0 }
  0xc1   :  { %213 = vsyncpa [#allocation63], 0 }
  0xc2   :  { %214 = vsyncpa [#allocation66], 0 }
  0xc3   :  { %215 = vsyncpa [#allocation4], 0 }
  0xc4   :  { %216 = vsyncpa [#allocation69], 0  ;;  %s18874_s0 = smov [#allocation5]   ;;  %s18875_s10 = smov [#allocation8]  }
  0xc5   :  { %s257_s7 = sshll.u32 %s18874_s0, 4  ;;  %s281_s11 = sshll.u32 %s18875_s10, 4  ;;  %s258_s7 = int_to_ptr.vmem [resolvable:$true] %s257_s7  ;;  %s282_s11 = int_to_ptr.vmem [resolvable:$true] %s281_s11 }
  0xc6   :  { %s17765_s15 = scalar_lea.hbm %s18996_s6, 16 }
  0xc7   :  { %p17766_p0 = scmp.ne.s32.totalorder %s18996_s6, %s17765_s15  ;;  %p17769_p1 = scmp.lt.u32.totalorder %s17765_s15, %s18996_s6 }
  0xc9   :  { %p17771_p2 = pnand %p17769_p1, %p17766_p0 }
  0xcb   :  { %17774 = shalt.err (!%p17771_p2)
}
  0xcc   :  { %s17775_s16 = scalar_lea.vmem %s258_s7, 16  ;;  %s17779_s18 = scalar_lea.vmem %s258_s7, 32 }
  0xcd   :  { %p17776_p3 = scmp.ne.s32.totalorder %s258_s7, %s17775_s16  ;;  %p17780_p4 = scmp.lt.s32.totalorder %s258_s7, %s258_s7 }
  0xce   :  { %p17781_p5 = scmp.lt.s32.totalorder %s17779_s18, %s17775_s16 }
  0xd0   :  { %p17782_p6 = por %p17781_p5, %p17780_p4 }
  0xd2   :  { %p17783_p7 = pnand %p17782_p6, %p17776_p3 }
  0xd4   :  { %17786 = shalt.err (!%p17783_p7)
}
  0xd5   :  { %260 = dma.hbm_to_vmem [thread:$0]  %s18996_s6, 16, %s258_s7, [#allocation6]  }
  0xd6   :  { %s17787_s22 = scalar_lea.hbm %s19016_s4, 16 }
  0xd7   :  { %p17788_p8 = scmp.ne.s32.totalorder %s19016_s4, %s17787_s22  ;;  %p17791_p9 = scmp.lt.u32.totalorder %s17787_s22, %s19016_s4 }
  0xd9   :  { %p17793_p10 = pnand %p17791_p9, %p17788_p8 }
  0xdb   :  { %17796 = shalt.err (!%p17793_p10)
}
  0xdc   :  { %s17797_s23 = scalar_lea.vmem %s282_s11, 16  ;;  %s17801_s26 = scalar_lea.vmem %s282_s11, 32 }
  0xdd   :  { %p17798_p11 = scmp.ne.s32.totalorder %s282_s11, %s17797_s23  ;;  %p17802_p12 = scmp.lt.s32.totalorder %s282_s11, %s282_s11 }
  0xde   :  { %p17803_p13 = scmp.lt.s32.totalorder %s17801_s26, %s17797_s23 }
  0xe0   :  { %p17804_p0 = por %p17803_p13, %p17802_p12 }
  0xe2   :  { %p17805_p1 = pnand %p17804_p0, %p17798_p11 }
  0xe4   :  { %17808 = shalt.err (!%p17805_p1)
}
  0xe5   :  { %284 = dma.hbm_to_vmem [thread:$0]  %s19016_s4, 16, %s282_s11, [#allocation9]  }
  0xe6   :  { %s18876_s28 = smov [#allocation11]   ;;  %s18877_s1 = smov [#allocation14]  }
  0xe7   :  { %s301_s6 = sshll.u32 %s18876_s28, 4  ;;  %s321_s2 = sshll.u32 %s18877_s1, 4  ;;  %s302_s6 = int_to_ptr.vmem [resolvable:$true] %s301_s6  ;;  %s322_s2 = int_to_ptr.vmem [resolvable:$true] %s321_s2 }
  0xe8   :  { %s17809_s0 = scalar_lea.hbm %s19026_s20, 16 }
  0xe9   :  { %p17810_p2 = scmp.ne.s32.totalorder %s19026_s20, %s17809_s0  ;;  %p17813_p3 = scmp.lt.u32.totalorder %s17809_s0, %s19026_s20 }
  0xeb   :  { %p17815_p4 = pnand %p17813_p3, %p17810_p2 }
  0xed   :  { %17818 = shalt.err (!%p17815_p4)
}
  0xee   :  { %s17819_s7 = scalar_lea.vmem %s302_s6, 16  ;;  %s17823_s10 = scalar_lea.vmem %s302_s6, 32 }
  0xef   :  { %p17820_p5 = scmp.ne.s32.totalorder %s302_s6, %s17819_s7  ;;  %p17824_p6 = scmp.lt.s32.totalorder %s302_s6, %s302_s6 }
  0xf0   :  { %p17825_p7 = scmp.lt.s32.totalorder %s17823_s10, %s17819_s7 }
  0xf2   :  { %p17826_p8 = por %p17825_p7, %p17824_p6 }
  0xf4   :  { %p17827_p9 = pnand %p17826_p8, %p17820_p5 }
  0xf6   :  { %17830 = shalt.err (!%p17827_p9)
}
  0xf7   :  { %304 = dma.hbm_to_vmem [thread:$0]  %s19026_s20, 16, %s302_s6, [#allocation12]  }
  0xf8   :  { %s17831_s4 = scalar_lea.hbm %s19036_s14, 16 }
  0xf9   :  { %p17832_p10 = scmp.ne.s32.totalorder %s19036_s14, %s17831_s4  ;;  %p17835_p11 = scmp.lt.u32.totalorder %s17831_s4, %s19036_s14 }
  0xfb   :  { %p17837_p12 = pnand %p17835_p11, %p17832_p10 }
  0xfd   :  { %17840 = shalt.err (!%p17837_p12)
}
  0xfe   :  { %s17841_s11 = scalar_lea.vmem %s322_s2, 16  ;;  %s17845_s15 = scalar_lea.vmem %s322_s2, 32 }
  0xff   :  { %p17842_p13 = scmp.ne.s32.totalorder %s322_s2, %s17841_s11  ;;  %p17846_p0 = scmp.lt.s32.totalorder %s322_s2, %s322_s2 }
 0x100   :  { %p17847_p1 = scmp.lt.s32.totalorder %s17845_s15, %s17841_s11 }
 0x102   :  { %p17848_p2 = por %p17847_p1, %p17846_p0 }
 0x104   :  { %p17849_p3 = pnand %p17848_p2, %p17842_p13 }
 0x106   :  { %17852 = shalt.err (!%p17849_p3)
}
 0x107   :  { %324 = dma.hbm_to_vmem [thread:$0]  %s19036_s14, 16, %s322_s2, [#allocation15]  }
 0x108   :  { %s18878_s16 = smov [#allocation17]   ;;  %s18879_s18 = smov [#allocation20]  }
 0x109   :  { %s341_s20 = sshll.u32 %s18878_s16, 4  ;;  %s373_s22 = sshll.u32 %s18879_s18, 4  ;;  %s342_s20 = int_to_ptr.vmem [resolvable:$true] %s341_s20  ;;  %s374_s22 = int_to_ptr.vmem [resolvable:$true] %s373_s22 }
 0x10a   :  { %s17853_s23 = scalar_lea.hbm %s19046_s3, 16 }
 0x10b   :  { %p17854_p4 = scmp.ne.s32.totalorder %s19046_s3, %s17853_s23  ;;  %p17857_p5 = scmp.lt.u32.totalorder %s17853_s23, %s19046_s3 }
 0x10d   :  { %p17859_p6 = pnand %p17857_p5, %p17854_p4 }
 0x10f   :  { %17862 = shalt.err (!%p17859_p6)
}
 0x110   :  { %s17863_s26 = scalar_lea.vmem %s342_s20, 16  ;;  %s17867_s28 = scalar_lea.vmem %s342_s20, 32 }
 0x111   :  { %p17864_p7 = scmp.ne.s32.totalorder %s342_s20, %s17863_s26  ;;  %p17868_p8 = scmp.lt.s32.totalorder %s342_s20, %s342_s20 }
 0x112   :  { %p17869_p9 = scmp.lt.s32.totalorder %s17867_s28, %s17863_s26 }
 0x114   :  { %p17870_p10 = por %p17869_p9, %p17868_p8 }
 0x116   :  { %p17871_p11 = pnand %p17870_p10, %p17864_p7 }
 0x118   :  { %17874 = shalt.err (!%p17871_p11)
}
 0x119   :  { %344 = dma.hbm_to_vmem [thread:$0]  %s19046_s3, 16, %s342_s20, [#allocation18]  }
 0x11a   :  { %s17875_s14 = scalar_lea.hbm %s19086_s8, 16 }
 0x11b   :  { %p17876_p12 = scmp.ne.s32.totalorder %s19086_s8, %s17875_s14  ;;  %p17879_p13 = scmp.lt.u32.totalorder %s17875_s14, %s19086_s8 }
 0x11d   :  { %p17881_p0 = pnand %p17879_p13, %p17876_p12 }
 0x11f   :  { %17884 = shalt.err (!%p17881_p0)
}
 0x120   :  { %s17885_s6 = scalar_lea.vmem %s374_s22, 16  ;;  %s17889_s1 = scalar_lea.vmem %s374_s22, 32 }
 0x121   :  { %p17886_p1 = scmp.ne.s32.totalorder %s374_s22, %s17885_s6  ;;  %p17890_p2 = scmp.lt.s32.totalorder %s374_s22, %s374_s22 }
 0x122   :  { %p17891_p3 = scmp.lt.s32.totalorder %s17889_s1, %s17885_s6 }
 0x124   :  { %p17892_p4 = por %p17891_p3, %p17890_p2 }
 0x126   :  { %p17893_p5 = pnand %p17892_p4, %p17886_p1 }
 0x128   :  { %17896 = shalt.err (!%p17893_p5)
}
 0x129   :  { %376 = dma.hbm_to_vmem [thread:$0]  %s19086_s8, 16, %s374_s22, [#allocation21]  }
 0x12a   :  { %s18880_s2 = smov [#allocation23]   ;;  %s18881_s0 = smov [#allocation26]  }
 0x12b   :  { %s405_s3 = sshll.u32 %s18880_s2, 4  ;;  %s429_s7 = sshll.u32 %s18881_s0, 4  ;;  %s406_s3 = int_to_ptr.vmem [resolvable:$true] %s405_s3  ;;  %s430_s7 = int_to_ptr.vmem [resolvable:$true] %s429_s7 }
 0x12c   :  { %s17897_s10 = scalar_lea.hbm %s19126_s24, 16 }
 0x12d   :  { %p17898_p6 = scmp.ne.s32.totalorder %s19126_s24, %s17897_s10  ;;  %p17901_p7 = scmp.lt.u32.totalorder %s17897_s10, %s19126_s24 }
 0x12f   :  { %p17903_p8 = pnand %p17901_p7, %p17898_p6 }
 0x131   :  { %17906 = shalt.err (!%p17903_p8)
}
 0x132   :  { %s17907_s4 = scalar_lea.vmem %s406_s3, 16  ;;  %s17911_s11 = scalar_lea.vmem %s406_s3, 32 }
 0x133   :  { %p17908_p9 = scmp.ne.s32.totalorder %s406_s3, %s17907_s4  ;;  %p17912_p10 = scmp.lt.s32.totalorder %s406_s3, %s406_s3 }
 0x134   :  { %p17913_p11 = scmp.lt.s32.totalorder %s17911_s11, %s17907_s4 }
 0x136   :  { %p17914_p12 = por %p17913_p11, %p17912_p10 }
 0x138   :  { %p17915_p13 = pnand %p17914_p12, %p17908_p9 }
 0x13a   :  { %17918 = shalt.err (!%p17915_p13)
}
 0x13b   :  { %408 = dma.hbm_to_vmem [thread:$0]  %s19126_s24, 16, %s406_s3, [#allocation24]  }
 0x13c   :  { %s17919_s8 = scalar_lea.hbm %s19146_s5, 16 }
 0x13d   :  { %p17920_p0 = scmp.ne.s32.totalorder %s19146_s5, %s17919_s8  ;;  %p17923_p1 = scmp.lt.u32.totalorder %s17919_s8, %s19146_s5 }
 0x13f   :  { %p17925_p2 = pnand %p17923_p1, %p17920_p0 }
 0x141   :  { %17928 = shalt.err (!%p17925_p2)
}
 0x142   :  { %s17929_s15 = scalar_lea.vmem %s430_s7, 16  ;;  %s17933_s16 = scalar_lea.vmem %s430_s7, 32 }
 0x143   :  { %p17930_p3 = scmp.ne.s32.totalorder %s430_s7, %s17929_s15  ;;  %p17934_p4 = scmp.lt.s32.totalorder %s430_s7, %s430_s7 }
 0x144   :  { %p17935_p5 = scmp.lt.s32.totalorder %s17933_s16, %s17929_s15 }
 0x146   :  { %p17936_p6 = por %p17935_p5, %p17934_p4 }
 0x148   :  { %p17937_p7 = pnand %p17936_p6, %p17930_p3 }
 0x14a   :  { %17940 = shalt.err (!%p17937_p7)
}
 0x14b   :  { %432 = dma.hbm_to_vmem [thread:$0]  %s19146_s5, 16, %s430_s7, [#allocation27]  }
 0x14c   :  { %s18882_s20 = smov [#allocation29]   ;;  %s18883_s18 = smov [#allocation32]  }
 0x14d   :  { %s449_s24 = sshll.u32 %s18882_s20, 4  ;;  %s469_s22 = sshll.u32 %s18883_s18, 4  ;;  %s450_s24 = int_to_ptr.vmem [resolvable:$true] %s449_s24  ;;  %s470_s22 = int_to_ptr.vmem [resolvable:$true] %s469_s22 }
 0x14e   :  { %s17941_s23 = scalar_lea.hbm %s19156_s19, 16 }
 0x14f   :  { %p17942_p8 = scmp.ne.s32.totalorder %s19156_s19, %s17941_s23  ;;  %p17945_p9 = scmp.lt.u32.totalorder %s17941_s23, %s19156_s19 }
 0x151   :  { %p17947_p10 = pnand %p17945_p9, %p17942_p8 }
 0x153   :  { %17950 = shalt.err (!%p17947_p10)
}
 0x154   :  { %s17951_s26 = scalar_lea.vmem %s450_s24, 16  ;;  %s17955_s28 = scalar_lea.vmem %s450_s24, 32 }
 0x155   :  { %p17952_p11 = scmp.ne.s32.totalorder %s450_s24, %s17951_s26  ;;  %p17956_p12 = scmp.lt.s32.totalorder %s450_s24, %s450_s24 }
 0x156   :  { %p17957_p13 = scmp.lt.s32.totalorder %s17955_s28, %s17951_s26 }
 0x158   :  { %p17958_p0 = por %p17957_p13, %p17956_p12 }
 0x15a   :  { %p17959_p1 = pnand %p17958_p0, %p17952_p11 }
 0x15c   :  { %17962 = shalt.err (!%p17959_p1)
}
 0x15d   :  { %452 = dma.hbm_to_vmem [thread:$0]  %s19156_s19, 16, %s450_s24, [#allocation30]  }
 0x15e   :  { %s17963_s5 = scalar_lea.hbm %s19166_s9, 16 }
 0x15f   :  { %p17964_p2 = scmp.ne.s32.totalorder %s19166_s9, %s17963_s5  ;;  %p17967_p3 = scmp.lt.u32.totalorder %s17963_s5, %s19166_s9 }
 0x161   :  { %p17969_p4 = pnand %p17967_p3, %p17964_p2 }
 0x163   :  { %17972 = shalt.err (!%p17969_p4)
}
 0x164   :  { %s17973_s14 = scalar_lea.vmem %s470_s22, 16  ;;  %s17977_s6 = scalar_lea.vmem %s470_s22, 32 }
 0x165   :  { %p17974_p5 = scmp.ne.s32.totalorder %s470_s22, %s17973_s14  ;;  %p17978_p6 = scmp.lt.s32.totalorder %s470_s22, %s470_s22 }
 0x166   :  { %p17979_p7 = scmp.lt.s32.totalorder %s17977_s6, %s17973_s14 }
 0x168   :  { %p17980_p8 = por %p17979_p7, %p17978_p6 }
 0x16a   :  { %p17981_p9 = pnand %p17980_p8, %p17974_p5 }
 0x16c   :  { %17984 = shalt.err (!%p17981_p9)
}
 0x16d   :  { %472 = dma.hbm_to_vmem [thread:$0]  %s19166_s9, 16, %s470_s22, [#allocation33]  }
 0x16e   :  { %s18884_s1 = smov [#allocation35]   ;;  %s18885_s2 = smov [#allocation38]  }
 0x16f   :  { %s489_s19 = sshll.u32 %s18884_s1, 4  ;;  %s521_s3 = sshll.u32 %s18885_s2, 4  ;;  %s490_s19 = int_to_ptr.vmem [resolvable:$true] %s489_s19  ;;  %s522_s3 = int_to_ptr.vmem [resolvable:$true] %s521_s3 }
 0x170   :  { %s17985_s0 = scalar_lea.hbm %s19176_s21, 16 }
 0x171   :  { %p17986_p10 = scmp.ne.s32.totalorder %s19176_s21, %s17985_s0  ;;  %p17989_p11 = scmp.lt.u32.totalorder %s17985_s0, %s19176_s21 }
 0x173   :  { %p17991_p12 = pnand %p17989_p11, %p17986_p10 }
 0x175   :  { %17994 = shalt.err (!%p17991_p12)
}
 0x176   :  { %s17995_s7 = scalar_lea.vmem %s490_s19, 16  ;;  %s17999_s10 = scalar_lea.vmem %s490_s19, 32 }
 0x177   :  { %p17996_p13 = scmp.ne.s32.totalorder %s490_s19, %s17995_s7  ;;  %p18000_p0 = scmp.lt.s32.totalorder %s490_s19, %s490_s19 }
 0x178   :  { %p18001_p1 = scmp.lt.s32.totalorder %s17999_s10, %s17995_s7 }
 0x17a   :  { %p18002_p2 = por %p18001_p1, %p18000_p0 }
 0x17c   :  { %p18003_p3 = pnand %p18002_p2, %p17996_p13 }
 0x17e   :  { %18006 = shalt.err (!%p18003_p3)
}
 0x17f   :  { %492 = dma.hbm_to_vmem [thread:$0]  %s19176_s21, 16, %s490_s19, [#allocation36]  }
 0x180   :  { %s18007_s9 = scalar_lea.hbm %s19216_s25, 16 }
 0x181   :  { %p18008_p4 = scmp.ne.s32.totalorder %s19216_s25, %s18007_s9  ;;  %p18011_p5 = scmp.lt.u32.totalorder %s18007_s9, %s19216_s25 }
 0x183   :  { %p18013_p6 = pnand %p18011_p5, %p18008_p4 }
 0x185   :  { %18016 = shalt.err (!%p18013_p6)
}
 0x186   :  { %s18017_s4 = scalar_lea.vmem %s522_s3, 16  ;;  %s18021_s11 = scalar_lea.vmem %s522_s3, 32 }
 0x187   :  { %p18018_p7 = scmp.ne.s32.totalorder %s522_s3, %s18017_s4  ;;  %p18022_p8 = scmp.lt.s32.totalorder %s522_s3, %s522_s3 }
 0x188   :  { %p18023_p9 = scmp.lt.s32.totalorder %s18021_s11, %s18017_s4 }
 0x18a   :  { %p18024_p10 = por %p18023_p9, %p18022_p8 }
 0x18c   :  { %p18025_p11 = pnand %p18024_p10, %p18018_p7 }
 0x18e   :  { %18028 = shalt.err (!%p18025_p11)
}
 0x18f   :  { %524 = dma.hbm_to_vmem [thread:$0]  %s19216_s25, 16, %s522_s3, [#allocation39]  }
 0x190   :  { %s18886_s8 = smov [#allocation41]   ;;  %s18887_s15 = smov [#allocation44]  }
 0x191   :  { %s541_s21 = sshll.u32 %s18886_s8, 4  ;;  %s565_s16 = sshll.u32 %s18887_s15, 4  ;;  %s542_s21 = int_to_ptr.vmem [resolvable:$true] %s541_s21  ;;  %s566_s16 = int_to_ptr.vmem [resolvable:$true] %s565_s16 }
 0x192   :  { %s18029_s20 = scalar_lea.hbm %s19226_s29, 16 }
 0x193   :  { %p18030_p12 = scmp.ne.s32.totalorder %s19226_s29, %s18029_s20  ;;  %p18033_p13 = scmp.lt.u32.totalorder %s18029_s20, %s19226_s29 }
 0x195   :  { %p18035_p0 = pnand %p18033_p13, %p18030_p12 }
 0x197   :  { %18038 = shalt.err (!%p18035_p0)
}
 0x198   :  { %s18039_s24 = scalar_lea.vmem %s542_s21, 16  ;;  %s18043_s18 = scalar_lea.vmem %s542_s21, 32 }
 0x199   :  { %p18040_p1 = scmp.ne.s32.totalorder %s542_s21, %s18039_s24  ;;  %p18044_p2 = scmp.lt.s32.totalorder %s542_s21, %s542_s21 }
 0x19a   :  { %p18045_p3 = scmp.lt.s32.totalorder %s18043_s18, %s18039_s24 }
 0x19c   :  { %p18046_p4 = por %p18045_p3, %p18044_p2 }
 0x19e   :  { %p18047_p5 = pnand %p18046_p4, %p18040_p1 }
 0x1a0   :  { %18050 = shalt.err (!%p18047_p5)
}
 0x1a1   :  { %544 = dma.hbm_to_vmem [thread:$0]  %s19226_s29, 16, %s542_s21, [#allocation42]  }
 0x1a2   :  { %s18051_s25 = scalar_lea.hbm %s19246_s27, 16 }
 0x1a3   :  { %p18052_p6 = scmp.ne.s32.totalorder %s19246_s27, %s18051_s25  ;;  %p18055_p7 = scmp.lt.u32.totalorder %s18051_s25, %s19246_s27 }
 0x1a5   :  { %p18057_p8 = pnand %p18055_p7, %p18052_p6 }
 0x1a7   :  { %18060 = shalt.err (!%p18057_p8)
}
 0x1a8   :  { %s18061_s22 = scalar_lea.vmem %s566_s16, 16  ;;  %s18065_s23 = scalar_lea.vmem %s566_s16, 32 }
 0x1a9   :  { %p18062_p9 = scmp.ne.s32.totalorder %s566_s16, %s18061_s22  ;;  %p18066_p10 = scmp.lt.s32.totalorder %s566_s16, %s566_s16 }
 0x1aa   :  { %p18067_p11 = scmp.lt.s32.totalorder %s18065_s23, %s18061_s22 }
 0x1ac   :  { %p18068_p12 = por %p18067_p11, %p18066_p10 }
 0x1ae   :  { %p18069_p13 = pnand %p18068_p12, %p18062_p9 }
 0x1b0   :  { %18072 = shalt.err (!%p18069_p13)
}
 0x1b1   :  { %s20995_s26 = sld [smem:[#allocation145_spill]]  ;;  %s18888_s28 = smov [#allocation47]  }
 0x1b2   :  { %568 = dma.hbm_to_vmem [thread:$0]  %s19246_s27, 16, %s566_s16, [#allocation45]  }
 0x1b3   :  { %s585_s29 = sshll.u32 %s18888_s28, 4  ;;  %s18889_s5 = smov [#allocation50]   ;;  %s586_s29 = int_to_ptr.vmem [resolvable:$true] %s585_s29 }
 0x1b4   :  { %s605_s14 = sshll.u32 %s18889_s5, 4  ;;  %s606_s14 = int_to_ptr.vmem [resolvable:$true] %s605_s14 }
 0x1b7   :  { %s18073_s6 = scalar_lea.hbm %s20995_s26, 16 }
 0x1b8   :  { %p18074_p0 = scmp.ne.s32.totalorder %s20995_s26, %s18073_s6  ;;  %p18077_p1 = scmp.lt.u32.totalorder %s18073_s6, %s20995_s26 }
 0x1ba   :  { %p18079_p2 = pnand %p18077_p1, %p18074_p0 }
 0x1bc   :  { %18082 = shalt.err (!%p18079_p2)
}
 0x1bd   :  { %s18083_s1 = scalar_lea.vmem %s586_s29, 16  ;;  %s18087_s19 = scalar_lea.vmem %s586_s29, 32 }
 0x1be   :  { %p18084_p3 = scmp.ne.s32.totalorder %s586_s29, %s18083_s1  ;;  %p18088_p4 = scmp.lt.s32.totalorder %s586_s29, %s586_s29 }
 0x1bf   :  { %p18089_p5 = scmp.lt.s32.totalorder %s18087_s19, %s18083_s1 }
 0x1c1   :  { %p18090_p6 = por %p18089_p5, %p18088_p4 }
 0x1c3   :  { %p18091_p7 = pnand %p18090_p6, %p18084_p3 }
 0x1c5   :  { %18094 = shalt.err (!%p18091_p7)
}
 0x1c6   :  { %s20996_s27 = sld [smem:[#allocation147_spill]] }
 0x1c7   :  { %588 = dma.hbm_to_vmem [thread:$0]  %s20995_s26, 16, %s586_s29, [#allocation48]  }
 0x1cc   :  { %s18095_s2 = scalar_lea.hbm %s20996_s27, 16 }
 0x1cd   :  { %p18096_p8 = scmp.ne.s32.totalorder %s20996_s27, %s18095_s2  ;;  %p18099_p9 = scmp.lt.u32.totalorder %s18095_s2, %s20996_s27 }
 0x1cf   :  { %p18101_p10 = pnand %p18099_p9, %p18096_p8 }
 0x1d1   :  { %18104 = shalt.err (!%p18101_p10)
}
 0x1d2   :  { %s18105_s3 = scalar_lea.vmem %s606_s14, 16  ;;  %s18109_s0 = scalar_lea.vmem %s606_s14, 32 }
 0x1d3   :  { %p18106_p11 = scmp.ne.s32.totalorder %s606_s14, %s18105_s3  ;;  %p18110_p12 = scmp.lt.s32.totalorder %s606_s14, %s606_s14 }
 0x1d4   :  { %p18111_p13 = scmp.lt.s32.totalorder %s18109_s0, %s18105_s3 }
 0x1d6   :  { %p18112_p0 = por %p18111_p13, %p18110_p12 }
 0x1d8   :  { %p18113_p1 = pnand %p18112_p0, %p18106_p11 }
 0x1da   :  { %18116 = shalt.err (!%p18113_p1)
}
 0x1db   :  { %s20997_s7 = sld [smem:[#allocation155_spill]]  ;;  %s18890_s10 = smov [#allocation53]  }
 0x1dc   :  { %608 = dma.hbm_to_vmem [thread:$0]  %s20996_s27, 16, %s606_s14, [#allocation51]  }
 0x1dd   :  { %s637_s9 = sshll.u32 %s18890_s10, 4  ;;  %s18891_s4 = smov [#allocation56]   ;;  %s638_s9 = int_to_ptr.vmem [resolvable:$true] %s637_s9 }
 0x1de   :  { %s661_s11 = sshll.u32 %s18891_s4, 4  ;;  %s662_s11 = int_to_ptr.vmem [resolvable:$true] %s661_s11 }
 0x1e1   :  { %s18117_s8 = scalar_lea.hbm %s20997_s7, 16 }
 0x1e2   :  { %p18118_p2 = scmp.ne.s32.totalorder %s20997_s7, %s18117_s8  ;;  %p18121_p3 = scmp.lt.u32.totalorder %s18117_s8, %s20997_s7 }
 0x1e4   :  { %p18123_p4 = pnand %p18121_p3, %p18118_p2 }
 0x1e6   :  { %18126 = shalt.err (!%p18123_p4)
}
 0x1e7   :  { %s18127_s21 = scalar_lea.vmem %s638_s9, 16  ;;  %s18131_s15 = scalar_lea.vmem %s638_s9, 32 }
 0x1e8   :  { %p18128_p5 = scmp.ne.s32.totalorder %s638_s9, %s18127_s21  ;;  %p18132_p6 = scmp.lt.s32.totalorder %s638_s9, %s638_s9 }
 0x1e9   :  { %p18133_p7 = scmp.lt.s32.totalorder %s18131_s15, %s18127_s21 }
 0x1eb   :  { %p18134_p8 = por %p18133_p7, %p18132_p6 }
 0x1ed   :  { %p18135_p9 = pnand %p18134_p8, %p18128_p5 }
 0x1ef   :  { %18138 = shalt.err (!%p18135_p9)
}
 0x1f0   :  { %s20998_s16 = sld [smem:[#allocation159_spill]] }
 0x1f1   :  { %640 = dma.hbm_to_vmem [thread:$0]  %s20997_s7, 16, %s638_s9, [#allocation54]  }
 0x1f6   :  { %s18139_s20 = scalar_lea.hbm %s20998_s16, 16 }
 0x1f7   :  { %p18140_p10 = scmp.ne.s32.totalorder %s20998_s16, %s18139_s20  ;;  %p18143_p11 = scmp.lt.u32.totalorder %s18139_s20, %s20998_s16 }
 0x1f9   :  { %p18145_p12 = pnand %p18143_p11, %p18140_p10 }
 0x1fb   :  { %18148 = shalt.err (!%p18145_p12)
}
 0x1fc   :  { %s18149_s24 = scalar_lea.vmem %s662_s11, 16  ;;  %s18153_s18 = scalar_lea.vmem %s662_s11, 32 }
 0x1fd   :  { %p18150_p13 = scmp.ne.s32.totalorder %s662_s11, %s18149_s24  ;;  %p18154_p0 = scmp.lt.s32.totalorder %s662_s11, %s662_s11 }
 0x1fe   :  { %p18155_p1 = scmp.lt.s32.totalorder %s18153_s18, %s18149_s24 }
 0x200   :  { %p18156_p2 = por %p18155_p1, %p18154_p0 }
 0x202   :  { %p18157_p3 = pnand %p18156_p2, %p18150_p13 }
 0x204   :  { %18160 = shalt.err (!%p18157_p3)
}
 0x205   :  { %s20999_s25 = sld [smem:[#allocation161_spill]]  ;;  %s18892_s22 = smov [#allocation59]  }
 0x206   :  { %664 = dma.hbm_to_vmem [thread:$0]  %s20998_s16, 16, %s662_s11, [#allocation57]  }
 0x207   :  { %s681_s23 = sshll.u32 %s18892_s22, 4  ;;  %s18893_s26 = smov [#allocation62]   ;;  %s682_s23 = int_to_ptr.vmem [resolvable:$true] %s681_s23 }
 0x208   :  { %s701_s28 = sshll.u32 %s18893_s26, 4  ;;  %s702_s28 = int_to_ptr.vmem [resolvable:$true] %s701_s28 }
 0x20b   :  { %s18161_s29 = scalar_lea.hbm %s20999_s25, 16 }
 0x20c   :  { %p18162_p4 = scmp.ne.s32.totalorder %s20999_s25, %s18161_s29  ;;  %p18165_p5 = scmp.lt.u32.totalorder %s18161_s29, %s20999_s25 }
 0x20e   :  { %p18167_p6 = pnand %p18165_p5, %p18162_p4 }
 0x210   :  { %18170 = shalt.err (!%p18167_p6)
}
 0x211   :  { %s18171_s5 = scalar_lea.vmem %s682_s23, 16  ;;  %s18175_s14 = scalar_lea.vmem %s682_s23, 32 }
 0x212   :  { %p18172_p7 = scmp.ne.s32.totalorder %s682_s23, %s18171_s5  ;;  %p18176_p8 = scmp.lt.s32.totalorder %s682_s23, %s682_s23 }
 0x213   :  { %p18177_p9 = scmp.lt.s32.totalorder %s18175_s14, %s18171_s5 }
 0x215   :  { %p18178_p10 = por %p18177_p9, %p18176_p8 }
 0x217   :  { %p18179_p11 = pnand %p18178_p10, %p18172_p7 }
 0x219   :  { %18182 = shalt.err (!%p18179_p11)
}
 0x21a   :  { %s21000_s6 = sld [smem:[#allocation163_spill]] }
 0x21b   :  { %684 = dma.hbm_to_vmem [thread:$0]  %s20999_s25, 16, %s682_s23, [#allocation60]  }
 0x220   :  { %s18183_s1 = scalar_lea.hbm %s21000_s6, 16 }
 0x221   :  { %p18184_p12 = scmp.ne.s32.totalorder %s21000_s6, %s18183_s1  ;;  %p18187_p13 = scmp.lt.u32.totalorder %s18183_s1, %s21000_s6 }
 0x223   :  { %p18189_p0 = pnand %p18187_p13, %p18184_p12 }
 0x225   :  { %18192 = shalt.err (!%p18189_p0)
}
 0x226   :  { %s18193_s19 = scalar_lea.vmem %s702_s28, 16  ;;  %s18197_s27 = scalar_lea.vmem %s702_s28, 32 }
 0x227   :  { %p18194_p1 = scmp.ne.s32.totalorder %s702_s28, %s18193_s19  ;;  %p18198_p2 = scmp.lt.s32.totalorder %s702_s28, %s702_s28 }
 0x228   :  { %p18199_p3 = scmp.lt.s32.totalorder %s18197_s27, %s18193_s19 }
 0x22a   :  { %p18200_p4 = por %p18199_p3, %p18198_p2 }
 0x22c   :  { %p18201_p5 = pnand %p18200_p4, %p18194_p1 }
 0x22e   :  { %18204 = shalt.err (!%p18201_p5)
}
 0x22f   :  { %s21001_s2 = sld [smem:[#allocation106_spill]]  ;;  %s18894_s3 = smov [#allocation2]  }
 0x230   :  { %704 = dma.hbm_to_vmem [thread:$0]  %s21000_s6, 16, %s702_s28, [#allocation63]  }
 0x231   :  { %s247_s0 = sshll.u32 %s18894_s3, 4  ;;  %s18895_s7 = smov [#allocation7]   ;;  %s248_s0 = int_to_ptr.vmem [resolvable:$true] %s247_s0 }
 0x232   :  { %s271_s10 = sshll.u32 %s18895_s7, 4  ;;  %s272_s10 = int_to_ptr.vmem [resolvable:$true] %s271_s10 }
 0x235   :  { %s18205_s9 = scalar_lea.hbm %s21001_s2, 16 }
 0x236   :  { %p18206_p6 = scmp.ne.s32.totalorder %s21001_s2, %s18205_s9  ;;  %p18209_p7 = scmp.lt.u32.totalorder %s18205_s9, %s21001_s2 }
 0x238   :  { %p18211_p8 = pnand %p18209_p7, %p18206_p6 }
 0x23a   :  { %18214 = shalt.err (!%p18211_p8)
}
 0x23b   :  { %s18215_s4 = scalar_lea.vmem %s248_s0, 16  ;;  %s18219_s11 = scalar_lea.vmem %s248_s0, 32 }
 0x23c   :  { %p18216_p9 = scmp.ne.s32.totalorder %s248_s0, %s18215_s4  ;;  %p18220_p10 = scmp.lt.s32.totalorder %s248_s0, %s248_s0 }
 0x23d   :  { %p18221_p11 = scmp.lt.s32.totalorder %s18219_s11, %s18215_s4 }
 0x23f   :  { %p18222_p12 = por %p18221_p11, %p18220_p10 }
 0x241   :  { %p18223_p13 = pnand %p18222_p12, %p18216_p9 }
 0x243   :  { %18226 = shalt.err (!%p18223_p13)
}
 0x244   :  { %s21002_s8 = sld [smem:[#allocation109_spill]] }
 0x245   :  { %250 = dma.hbm_to_vmem [thread:$0]  %s21001_s2, 16, %s248_s0, [#allocation3]  }
 0x24a   :  { %s18227_s21 = scalar_lea.hbm %s21002_s8, 16 }
 0x24b   :  { %p18228_p0 = scmp.ne.s32.totalorder %s21002_s8, %s18227_s21  ;;  %p18231_p1 = scmp.lt.u32.totalorder %s18227_s21, %s21002_s8 }
 0x24d   :  { %p18233_p2 = pnand %p18231_p1, %p18228_p0 }
 0x24f   :  { %18236 = shalt.err (!%p18233_p2)
}
 0x250   :  { %s18237_s15 = scalar_lea.vmem %s272_s10, 16  ;;  %s18241_s16 = scalar_lea.vmem %s272_s10, 32 }
 0x251   :  { %p18238_p3 = scmp.ne.s32.totalorder %s272_s10, %s18237_s15  ;;  %p18242_p4 = scmp.lt.s32.totalorder %s272_s10, %s272_s10 }
 0x252   :  { %p18243_p5 = scmp.lt.s32.totalorder %s18241_s16, %s18237_s15 }
 0x254   :  { %p18244_p6 = por %p18243_p5, %p18242_p4 }
 0x256   :  { %p18245_p7 = pnand %p18244_p6, %p18238_p3 }
 0x258   :  { %18248 = shalt.err (!%p18245_p7)
}
 0x259   :  { %s21003_s20 = sld [smem:[#allocation110_spill]]  ;;  %s18896_s24 = smov [#allocation10]  }
 0x25a   :  { %274 = dma.hbm_to_vmem [thread:$0]  %s21002_s8, 16, %s272_s10, [#allocation6]  }
 0x25b   :  { %s291_s18 = sshll.u32 %s18896_s24, 4  ;;  %s18897_s25 = smov [#allocation13]   ;;  %s292_s18 = int_to_ptr.vmem [resolvable:$true] %s291_s18 }
 0x25c   :  { %s311_s22 = sshll.u32 %s18897_s25, 4  ;;  %s312_s22 = int_to_ptr.vmem [resolvable:$true] %s311_s22 }
 0x25f   :  { %s18249_s23 = scalar_lea.hbm %s21003_s20, 16 }
 0x260   :  { %p18250_p8 = scmp.ne.s32.totalorder %s21003_s20, %s18249_s23  ;;  %p18253_p9 = scmp.lt.u32.totalorder %s18249_s23, %s21003_s20 }
 0x262   :  { %p18255_p10 = pnand %p18253_p9, %p18250_p8 }
 0x264   :  { %18258 = shalt.err (!%p18255_p10)
}
 0x265   :  { %s18259_s26 = scalar_lea.vmem %s292_s18, 16  ;;  %s18263_s28 = scalar_lea.vmem %s292_s18, 32 }
 0x266   :  { %p18260_p11 = scmp.ne.s32.totalorder %s292_s18, %s18259_s26  ;;  %p18264_p12 = scmp.lt.s32.totalorder %s292_s18, %s292_s18 }
 0x267   :  { %p18265_p13 = scmp.lt.s32.totalorder %s18263_s28, %s18259_s26 }
 0x269   :  { %p18266_p0 = por %p18265_p13, %p18264_p12 }
 0x26b   :  { %p18267_p1 = pnand %p18266_p0, %p18260_p11 }
 0x26d   :  { %18270 = shalt.err (!%p18267_p1)
}
 0x26e   :  { %s21004_s29 = sld [smem:[#allocation111_spill]] }
 0x26f   :  { %294 = dma.hbm_to_vmem [thread:$0]  %s21003_s20, 16, %s292_s18, [#allocation9]  }
 0x274   :  { %s18271_s5 = scalar_lea.hbm %s21004_s29, 16 }
 0x275   :  { %p18272_p2 = scmp.ne.s32.totalorder %s21004_s29, %s18271_s5  ;;  %p18275_p3 = scmp.lt.u32.totalorder %s18271_s5, %s21004_s29 }
 0x277   :  { %p18277_p4 = pnand %p18275_p3, %p18272_p2 }
 0x279   :  { %18280 = shalt.err (!%p18277_p4)
}
 0x27a   :  { %s18281_s14 = scalar_lea.vmem %s312_s22, 16  ;;  %s18285_s6 = scalar_lea.vmem %s312_s22, 32 }
 0x27b   :  { %p18282_p5 = scmp.ne.s32.totalorder %s312_s22, %s18281_s14  ;;  %p18286_p6 = scmp.lt.s32.totalorder %s312_s22, %s312_s22 }
 0x27c   :  { %p18287_p7 = scmp.lt.s32.totalorder %s18285_s6, %s18281_s14 }
 0x27e   :  { %p18288_p8 = por %p18287_p7, %p18286_p6 }
 0x280   :  { %p18289_p9 = pnand %p18288_p8, %p18282_p5 }
 0x282   :  { %18292 = shalt.err (!%p18289_p9)
}
 0x283   :  { %s21005_s1 = sld [smem:[#allocation112_spill]]  ;;  %s18898_s19 = smov [#allocation16]  }
 0x284   :  { %314 = dma.hbm_to_vmem [thread:$0]  %s21004_s29, 16, %s312_s22, [#allocation12]  }
 0x285   :  { %s331_s27 = sshll.u32 %s18898_s19, 4  ;;  %s18899_s2 = smov [#allocation19]   ;;  %s332_s27 = int_to_ptr.vmem [resolvable:$true] %s331_s27 }
 0x286   :  { %s363_s3 = sshll.u32 %s18899_s2, 4  ;;  %s364_s3 = int_to_ptr.vmem [resolvable:$true] %s363_s3 }
 0x289   :  { %s18293_s0 = scalar_lea.hbm %s21005_s1, 16 }
 0x28a   :  { %p18294_p10 = scmp.ne.s32.totalorder %s21005_s1, %s18293_s0  ;;  %p18297_p11 = scmp.lt.u32.totalorder %s18293_s0, %s21005_s1 }
 0x28c   :  { %p18299_p12 = pnand %p18297_p11, %p18294_p10 }
 0x28e   :  { %18302 = shalt.err (!%p18299_p12)
}
 0x28f   :  { %s18303_s7 = scalar_lea.vmem %s332_s27, 16  ;;  %s18307_s10 = scalar_lea.vmem %s332_s27, 32 }
 0x290   :  { %p18304_p13 = scmp.ne.s32.totalorder %s332_s27, %s18303_s7  ;;  %p18308_p0 = scmp.lt.s32.totalorder %s332_s27, %s332_s27 }
 0x291   :  { %p18309_p1 = scmp.lt.s32.totalorder %s18307_s10, %s18303_s7 }
 0x293   :  { %p18310_p2 = por %p18309_p1, %p18308_p0 }
 0x295   :  { %p18311_p3 = pnand %p18310_p2, %p18304_p13 }
 0x297   :  { %18314 = shalt.err (!%p18311_p3)
}
 0x298   :  { %s21006_s9 = sld [smem:[#allocation119_spill]] }
 0x299   :  { %334 = dma.hbm_to_vmem [thread:$0]  %s21005_s1, 16, %s332_s27, [#allocation15]  }
 0x29e   :  { %s18315_s4 = scalar_lea.hbm %s21006_s9, 16 }
 0x29f   :  { %p18316_p4 = scmp.ne.s32.totalorder %s21006_s9, %s18315_s4  ;;  %p18319_p5 = scmp.lt.u32.totalorder %s18315_s4, %s21006_s9 }
 0x2a1   :  { %p18321_p6 = pnand %p18319_p5, %p18316_p4 }
 0x2a3   :  { %18324 = shalt.err (!%p18321_p6)
}
 0x2a4   :  { %s18325_s11 = scalar_lea.vmem %s364_s3, 16  ;;  %s18329_s8 = scalar_lea.vmem %s364_s3, 32 }
 0x2a5   :  { %p18326_p7 = scmp.ne.s32.totalorder %s364_s3, %s18325_s11  ;;  %p18330_p8 = scmp.lt.s32.totalorder %s364_s3, %s364_s3 }
 0x2a6   :  { %p18331_p9 = scmp.lt.s32.totalorder %s18329_s8, %s18325_s11 }
 0x2a8   :  { %p18332_p10 = por %p18331_p9, %p18330_p8 }
 0x2aa   :  { %p18333_p11 = pnand %p18332_p10, %p18326_p7 }
 0x2ac   :  { %18336 = shalt.err (!%p18333_p11)
}
 0x2ad   :  { %s21007_s21 = sld [smem:[#allocation126_spill]]  ;;  %s18900_s15 = smov [#allocation22]  }
 0x2ae   :  { %366 = dma.hbm_to_vmem [thread:$0]  %s21006_s9, 16, %s364_s3, [#allocation18]  }
 0x2af   :  { %s395_s16 = sshll.u32 %s18900_s15, 4  ;;  %s18901_s20 = smov [#allocation25]   ;;  %s396_s16 = int_to_ptr.vmem [resolvable:$true] %s395_s16 }
 0x2b0   :  { %s419_s24 = sshll.u32 %s18901_s20, 4  ;;  %s420_s24 = int_to_ptr.vmem [resolvable:$true] %s419_s24 }
 0x2b3   :  { %s18337_s18 = scalar_lea.hbm %s21007_s21, 16 }
 0x2b4   :  { %p18338_p12 = scmp.ne.s32.totalorder %s21007_s21, %s18337_s18  ;;  %p18341_p13 = scmp.lt.u32.totalorder %s18337_s18, %s21007_s21 }
 0x2b6   :  { %p18343_p0 = pnand %p18341_p13, %p18338_p12 }
 0x2b8   :  { %18346 = shalt.err (!%p18343_p0)
}
 0x2b9   :  { %s18347_s25 = scalar_lea.vmem %s396_s16, 16  ;;  %s18351_s22 = scalar_lea.vmem %s396_s16, 32 }
 0x2ba   :  { %p18348_p1 = scmp.ne.s32.totalorder %s396_s16, %s18347_s25  ;;  %p18352_p2 = scmp.lt.s32.totalorder %s396_s16, %s396_s16 }
 0x2bb   :  { %p18353_p3 = scmp.lt.s32.totalorder %s18351_s22, %s18347_s25 }
 0x2bd   :  { %p18354_p4 = por %p18353_p3, %p18352_p2 }
 0x2bf   :  { %p18355_p5 = pnand %p18354_p4, %p18348_p1 }
 0x2c1   :  { %18358 = shalt.err (!%p18355_p5)
}
 0x2c2   :  { %s21008_s23 = sld [smem:[#allocation129_spill]] }
 0x2c3   :  { %398 = dma.hbm_to_vmem [thread:$0]  %s21007_s21, 16, %s396_s16, [#allocation21]  }
 0x2c8   :  { %s18359_s26 = scalar_lea.hbm %s21008_s23, 16 }
 0x2c9   :  { %p18360_p6 = scmp.ne.s32.totalorder %s21008_s23, %s18359_s26  ;;  %p18363_p7 = scmp.lt.u32.totalorder %s18359_s26, %s21008_s23 }
 0x2cb   :  { %p18365_p8 = pnand %p18363_p7, %p18360_p6 }
 0x2cd   :  { %18368 = shalt.err (!%p18365_p8)
}
 0x2ce   :  { %s18369_s28 = scalar_lea.vmem %s420_s24, 16  ;;  %s18373_s29 = scalar_lea.vmem %s420_s24, 32 }
 0x2cf   :  { %p18370_p9 = scmp.ne.s32.totalorder %s420_s24, %s18369_s28  ;;  %p18374_p10 = scmp.lt.s32.totalorder %s420_s24, %s420_s24 }
 0x2d0   :  { %p18375_p11 = scmp.lt.s32.totalorder %s18373_s29, %s18369_s28 }
 0x2d2   :  { %p18376_p12 = por %p18375_p11, %p18374_p10 }
 0x2d4   :  { %p18377_p13 = pnand %p18376_p12, %p18370_p9 }
 0x2d6   :  { %18380 = shalt.err (!%p18377_p13)
}
 0x2d7   :  { %s21009_s5 = sld [smem:[#allocation130_spill]]  ;;  %s18902_s14 = smov [#allocation28]  }
 0x2d8   :  { %422 = dma.hbm_to_vmem [thread:$0]  %s21008_s23, 16, %s420_s24, [#allocation24]  }
 0x2d9   :  { %s439_s6 = sshll.u32 %s18902_s14, 4  ;;  %s18903_s1 = smov [#allocation31]   ;;  %s440_s6 = int_to_ptr.vmem [resolvable:$true] %s439_s6 }
 0x2da   :  { %s459_s19 = sshll.u32 %s18903_s1, 4  ;;  %s460_s19 = int_to_ptr.vmem [resolvable:$true] %s459_s19 }
 0x2dd   :  { %s18381_s27 = scalar_lea.hbm %s21009_s5, 16 }
 0x2de   :  { %p18382_p0 = scmp.ne.s32.totalorder %s21009_s5, %s18381_s27  ;;  %p18385_p1 = scmp.lt.u32.totalorder %s18381_s27, %s21009_s5 }
 0x2e0   :  { %p18387_p2 = pnand %p18385_p1, %p18382_p0 }
 0x2e2   :  { %18390 = shalt.err (!%p18387_p2)
}
 0x2e3   :  { %s18391_s2 = scalar_lea.vmem %s440_s6, 16  ;;  %s18395_s3 = scalar_lea.vmem %s440_s6, 32 }
 0x2e4   :  { %p18392_p3 = scmp.ne.s32.totalorder %s440_s6, %s18391_s2  ;;  %p18396_p4 = scmp.lt.s32.totalorder %s440_s6, %s440_s6 }
 0x2e5   :  { %p18397_p5 = scmp.lt.s32.totalorder %s18395_s3, %s18391_s2 }
 0x2e7   :  { %p18398_p6 = por %p18397_p5, %p18396_p4 }
 0x2e9   :  { %p18399_p7 = pnand %p18398_p6, %p18392_p3 }
 0x2eb   :  { %18402 = shalt.err (!%p18399_p7)
}
 0x2ec   :  { %s21010_s0 = sld [smem:[#allocation131_spill]] }
 0x2ed   :  { %442 = dma.hbm_to_vmem [thread:$0]  %s21009_s5, 16, %s440_s6, [#allocation27]  }
 0x2f2   :  { %s18403_s7 = scalar_lea.hbm %s21010_s0, 16 }
 0x2f3   :  { %p18404_p8 = scmp.ne.s32.totalorder %s21010_s0, %s18403_s7  ;;  %p18407_p9 = scmp.lt.u32.totalorder %s18403_s7, %s21010_s0 }
 0x2f5   :  { %p18409_p10 = pnand %p18407_p9, %p18404_p8 }
 0x2f7   :  { %18412 = shalt.err (!%p18409_p10)
}
 0x2f8   :  { %s18413_s10 = scalar_lea.vmem %s460_s19, 16  ;;  %s18417_s9 = scalar_lea.vmem %s460_s19, 32 }
 0x2f9   :  { %p18414_p11 = scmp.ne.s32.totalorder %s460_s19, %s18413_s10  ;;  %p18418_p12 = scmp.lt.s32.totalorder %s460_s19, %s460_s19 }
 0x2fa   :  { %p18419_p13 = scmp.lt.s32.totalorder %s18417_s9, %s18413_s10 }
 0x2fc   :  { %p18420_p0 = por %p18419_p13, %p18418_p12 }
 0x2fe   :  { %p18421_p1 = pnand %p18420_p0, %p18414_p11 }
 0x300   :  { %18424 = shalt.err (!%p18421_p1)
}
 0x301   :  { %s21011_s4 = sld [smem:[#allocation132_spill]]  ;;  %s18904_s11 = smov [#allocation34]  }
 0x302   :  { %462 = dma.hbm_to_vmem [thread:$0]  %s21010_s0, 16, %s460_s19, [#allocation30]  }
 0x303   :  { %s479_s8 = sshll.u32 %s18904_s11, 4  ;;  %s18905_s21 = smov [#allocation37]   ;;  %s480_s8 = int_to_ptr.vmem [resolvable:$true] %s479_s8 }
 0x304   :  { %s511_s15 = sshll.u32 %s18905_s21, 4  ;;  %s512_s15 = int_to_ptr.vmem [resolvable:$true] %s511_s15 }
 0x307   :  { %s18425_s16 = scalar_lea.hbm %s21011_s4, 16 }
 0x308   :  { %p18426_p2 = scmp.ne.s32.totalorder %s21011_s4, %s18425_s16  ;;  %p18429_p3 = scmp.lt.u32.totalorder %s18425_s16, %s21011_s4 }
 0x30a   :  { %p18431_p4 = pnand %p18429_p3, %p18426_p2 }
 0x30c   :  { %18434 = shalt.err (!%p18431_p4)
}
 0x30d   :  { %s18435_s20 = scalar_lea.vmem %s480_s8, 16  ;;  %s18439_s24 = scalar_lea.vmem %s480_s8, 32 }
 0x30e   :  { %p18436_p5 = scmp.ne.s32.totalorder %s480_s8, %s18435_s20  ;;  %p18440_p6 = scmp.lt.s32.totalorder %s480_s8, %s480_s8 }
 0x30f   :  { %p18441_p7 = scmp.lt.s32.totalorder %s18439_s24, %s18435_s20 }
 0x311   :  { %p18442_p8 = por %p18441_p7, %p18440_p6 }
 0x313   :  { %p18443_p9 = pnand %p18442_p8, %p18436_p5 }
 0x315   :  { %18446 = shalt.err (!%p18443_p9)
}
 0x316   :  { %s21012_s18 = sld [smem:[#allocation139_spill]] }
 0x317   :  { %482 = dma.hbm_to_vmem [thread:$0]  %s21011_s4, 16, %s480_s8, [#allocation33]  }
 0x31c   :  { %s18447_s25 = scalar_lea.hbm %s21012_s18, 16 }
 0x31d   :  { %p18448_p10 = scmp.ne.s32.totalorder %s21012_s18, %s18447_s25  ;;  %p18451_p11 = scmp.lt.u32.totalorder %s18447_s25, %s21012_s18 }
 0x31f   :  { %p18453_p12 = pnand %p18451_p11, %p18448_p10 }
 0x321   :  { %18456 = shalt.err (!%p18453_p12)
}
 0x322   :  { %s18457_s22 = scalar_lea.vmem %s512_s15, 16  ;;  %s18461_s23 = scalar_lea.vmem %s512_s15, 32 }
 0x323   :  { %p18458_p13 = scmp.ne.s32.totalorder %s512_s15, %s18457_s22  ;;  %p18462_p0 = scmp.lt.s32.totalorder %s512_s15, %s512_s15 }
 0x324   :  { %p18463_p1 = scmp.lt.s32.totalorder %s18461_s23, %s18457_s22 }
 0x326   :  { %p18464_p2 = por %p18463_p1, %p18462_p0 }
 0x328   :  { %p18465_p3 = pnand %p18464_p2, %p18458_p13 }
 0x32a   :  { %18468 = shalt.err (!%p18465_p3)
}
 0x32b   :  { %s21013_s26 = sld [smem:[#allocation140_spill]]  ;;  %s18906_s28 = smov [#allocation40]  }
 0x32c   :  { %514 = dma.hbm_to_vmem [thread:$0]  %s21012_s18, 16, %s512_s15, [#allocation36]  }
 0x32d   :  { %s531_s29 = sshll.u32 %s18906_s28, 4  ;;  %s18907_s5 = smov [#allocation43]   ;;  %s532_s29 = int_to_ptr.vmem [resolvable:$true] %s531_s29 }
 0x32e   :  { %s555_s14 = sshll.u32 %s18907_s5, 4  ;;  %s556_s14 = int_to_ptr.vmem [resolvable:$true] %s555_s14 }
 0x331   :  { %s18469_s6 = scalar_lea.hbm %s21013_s26, 16 }
 0x332   :  { %p18470_p4 = scmp.ne.s32.totalorder %s21013_s26, %s18469_s6  ;;  %p18473_p5 = scmp.lt.u32.totalorder %s18469_s6, %s21013_s26 }
 0x334   :  { %p18475_p6 = pnand %p18473_p5, %p18470_p4 }
 0x336   :  { %18478 = shalt.err (!%p18475_p6)
}
 0x337   :  { %s18479_s1 = scalar_lea.vmem %s532_s29, 16  ;;  %s18483_s19 = scalar_lea.vmem %s532_s29, 32 }
 0x338   :  { %p18480_p7 = scmp.ne.s32.totalorder %s532_s29, %s18479_s1  ;;  %p18484_p8 = scmp.lt.s32.totalorder %s532_s29, %s532_s29 }
 0x339   :  { %p18485_p9 = scmp.lt.s32.totalorder %s18483_s19, %s18479_s1 }
 0x33b   :  { %p18486_p10 = por %p18485_p9, %p18484_p8 }
 0x33d   :  { %p18487_p11 = pnand %p18486_p10, %p18480_p7 }
 0x33f   :  { %18490 = shalt.err (!%p18487_p11)
}
 0x340   :  { %s21014_s27 = sld [smem:[#allocation143_spill]] }
 0x341   :  { %534 = dma.hbm_to_vmem [thread:$0]  %s21013_s26, 16, %s532_s29, [#allocation39]  }
 0x346   :  { %s18491_s2 = scalar_lea.hbm %s21014_s27, 16 }
 0x347   :  { %p18492_p12 = scmp.ne.s32.totalorder %s21014_s27, %s18491_s2  ;;  %p18495_p13 = scmp.lt.u32.totalorder %s18491_s2, %s21014_s27 }
 0x349   :  { %p18497_p0 = pnand %p18495_p13, %p18492_p12 }
 0x34b   :  { %18500 = shalt.err (!%p18497_p0)
}
 0x34c   :  { %s18501_s3 = scalar_lea.vmem %s556_s14, 16  ;;  %s18505_s0 = scalar_lea.vmem %s556_s14, 32 }
 0x34d   :  { %p18502_p1 = scmp.ne.s32.totalorder %s556_s14, %s18501_s3  ;;  %p18506_p2 = scmp.lt.s32.totalorder %s556_s14, %s556_s14 }
 0x34e   :  { %p18507_p3 = scmp.lt.s32.totalorder %s18505_s0, %s18501_s3 }
 0x350   :  { %p18508_p4 = por %p18507_p3, %p18506_p2 }
 0x352   :  { %p18509_p5 = pnand %p18508_p4, %p18502_p1 }
 0x354   :  { %18512 = shalt.err (!%p18509_p5)
}
 0x355   :  { %s21015_s7 = sld [smem:[#allocation144_spill]]  ;;  %s18908_s10 = smov [#allocation46]  }
 0x356   :  { %558 = dma.hbm_to_vmem [thread:$0]  %s21014_s27, 16, %s556_s14, [#allocation42]  }
 0x357   :  { %s575_s9 = sshll.u32 %s18908_s10, 4  ;;  %s18909_s4 = smov [#allocation49]   ;;  %s576_s9 = int_to_ptr.vmem [resolvable:$true] %s575_s9 }
 0x358   :  { %s595_s11 = sshll.u32 %s18909_s4, 4  ;;  %s596_s11 = int_to_ptr.vmem [resolvable:$true] %s595_s11 }
 0x35b   :  { %s18513_s8 = scalar_lea.hbm %s21015_s7, 16 }
 0x35c   :  { %p18514_p6 = scmp.ne.s32.totalorder %s21015_s7, %s18513_s8  ;;  %p18517_p7 = scmp.lt.u32.totalorder %s18513_s8, %s21015_s7 }
 0x35e   :  { %p18519_p8 = pnand %p18517_p7, %p18514_p6 }
 0x360   :  { %18522 = shalt.err (!%p18519_p8)
}
 0x361   :  { %s18523_s21 = scalar_lea.vmem %s576_s9, 16  ;;  %s18527_s15 = scalar_lea.vmem %s576_s9, 32 }
 0x362   :  { %p18524_p9 = scmp.ne.s32.totalorder %s576_s9, %s18523_s21  ;;  %p18528_p10 = scmp.lt.s32.totalorder %s576_s9, %s576_s9 }
 0x363   :  { %p18529_p11 = scmp.lt.s32.totalorder %s18527_s15, %s18523_s21 }
 0x365   :  { %p18530_p12 = por %p18529_p11, %p18528_p10 }
 0x367   :  { %p18531_p13 = pnand %p18530_p12, %p18524_p9 }
 0x369   :  { %18534 = shalt.err (!%p18531_p13)
}
 0x36a   :  { %s21016_s16 = sld [smem:[#allocation146_spill]] }
 0x36b   :  { %578 = dma.hbm_to_vmem [thread:$0]  %s21015_s7, 16, %s576_s9, [#allocation45]  }
 0x370   :  { %s18535_s20 = scalar_lea.hbm %s21016_s16, 16 }
 0x371   :  { %p18536_p0 = scmp.ne.s32.totalorder %s21016_s16, %s18535_s20  ;;  %p18539_p1 = scmp.lt.u32.totalorder %s18535_s20, %s21016_s16 }
 0x373   :  { %p18541_p2 = pnand %p18539_p1, %p18536_p0 }
 0x375   :  { %18544 = shalt.err (!%p18541_p2)
}
 0x376   :  { %s18545_s24 = scalar_lea.vmem %s596_s11, 16  ;;  %s18549_s18 = scalar_lea.vmem %s596_s11, 32 }
 0x377   :  { %p18546_p3 = scmp.ne.s32.totalorder %s596_s11, %s18545_s24  ;;  %p18550_p4 = scmp.lt.s32.totalorder %s596_s11, %s596_s11 }
 0x378   :  { %p18551_p5 = scmp.lt.s32.totalorder %s18549_s18, %s18545_s24 }
 0x37a   :  { %p18552_p6 = por %p18551_p5, %p18550_p4 }
 0x37c   :  { %p18553_p7 = pnand %p18552_p6, %p18546_p3 }
 0x37e   :  { %18556 = shalt.err (!%p18553_p7)
}
 0x37f   :  { %s21017_s25 = sld [smem:[#allocation154_spill]]  ;;  %s18910_s22 = smov [#allocation52]  }
 0x380   :  { %598 = dma.hbm_to_vmem [thread:$0]  %s21016_s16, 16, %s596_s11, [#allocation48]  }
 0x381   :  { %s627_s23 = sshll.u32 %s18910_s22, 4  ;;  %s18911_s26 = smov [#allocation55]   ;;  %s628_s23 = int_to_ptr.vmem [resolvable:$true] %s627_s23 }
 0x382   :  { %s651_s28 = sshll.u32 %s18911_s26, 4  ;;  %s652_s28 = int_to_ptr.vmem [resolvable:$true] %s651_s28 }
 0x385   :  { %s18557_s29 = scalar_lea.hbm %s21017_s25, 16 }
 0x386   :  { %p18558_p8 = scmp.ne.s32.totalorder %s21017_s25, %s18557_s29  ;;  %p18561_p9 = scmp.lt.u32.totalorder %s18557_s29, %s21017_s25 }
 0x388   :  { %p18563_p10 = pnand %p18561_p9, %p18558_p8 }
 0x38a   :  { %18566 = shalt.err (!%p18563_p10)
}
 0x38b   :  { %s18567_s5 = scalar_lea.vmem %s628_s23, 16  ;;  %s18571_s14 = scalar_lea.vmem %s628_s23, 32 }
 0x38c   :  { %p18568_p11 = scmp.ne.s32.totalorder %s628_s23, %s18567_s5  ;;  %p18572_p12 = scmp.lt.s32.totalorder %s628_s23, %s628_s23 }
 0x38d   :  { %p18573_p13 = scmp.lt.s32.totalorder %s18571_s14, %s18567_s5 }
 0x38f   :  { %p18574_p0 = por %p18573_p13, %p18572_p12 }
 0x391   :  { %p18575_p1 = pnand %p18574_p0, %p18568_p11 }
 0x393   :  { %18578 = shalt.err (!%p18575_p1)
}
 0x394   :  { %s21018_s6 = sld [smem:[#allocation158_spill]] }
 0x395   :  { %630 = dma.hbm_to_vmem [thread:$0]  %s21017_s25, 16, %s628_s23, [#allocation51]  }
 0x39a   :  { %s18579_s1 = scalar_lea.hbm %s21018_s6, 16 }
 0x39b   :  { %p18580_p2 = scmp.ne.s32.totalorder %s21018_s6, %s18579_s1  ;;  %p18583_p3 = scmp.lt.u32.totalorder %s18579_s1, %s21018_s6 }
 0x39d   :  { %p18585_p4 = pnand %p18583_p3, %p18580_p2 }
 0x39f   :  { %18588 = shalt.err (!%p18585_p4)
}
 0x3a0   :  { %s18589_s19 = scalar_lea.vmem %s652_s28, 16  ;;  %s18593_s27 = scalar_lea.vmem %s652_s28, 32 }
 0x3a1   :  { %p18590_p5 = scmp.ne.s32.totalorder %s652_s28, %s18589_s19  ;;  %p18594_p6 = scmp.lt.s32.totalorder %s652_s28, %s652_s28 }
 0x3a2   :  { %p18595_p7 = scmp.lt.s32.totalorder %s18593_s27, %s18589_s19 }
 0x3a4   :  { %p18596_p8 = por %p18595_p7, %p18594_p6 }
 0x3a6   :  { %p18597_p9 = pnand %p18596_p8, %p18590_p5 }
 0x3a8   :  { %18600 = shalt.err (!%p18597_p9)
}
 0x3a9   :  { %s21019_s2 = sld [smem:[#allocation160_spill]]  ;;  %s18912_s3 = smov [#allocation58]  }
 0x3aa   :  { %654 = dma.hbm_to_vmem [thread:$0]  %s21018_s6, 16, %s652_s28, [#allocation54]  }
 0x3ab   :  { %s671_s0 = sshll.u32 %s18912_s3, 4  ;;  %s18913_s7 = smov [#allocation61]   ;;  %s672_s0 = int_to_ptr.vmem [resolvable:$true] %s671_s0 }
 0x3ac   :  { %s691_s10 = sshll.u32 %s18913_s7, 4  ;;  %s692_s10 = int_to_ptr.vmem [resolvable:$true] %s691_s10 }
 0x3af   :  { %s18601_s9 = scalar_lea.hbm %s21019_s2, 16 }
 0x3b0   :  { %p18602_p10 = scmp.ne.s32.totalorder %s21019_s2, %s18601_s9  ;;  %p18605_p11 = scmp.lt.u32.totalorder %s18601_s9, %s21019_s2 }
 0x3b2   :  { %p18607_p12 = pnand %p18605_p11, %p18602_p10 }
 0x3b4   :  { %18610 = shalt.err (!%p18607_p12)
}
 0x3b5   :  { %s18611_s4 = scalar_lea.vmem %s672_s0, 16  ;;  %s18615_s11 = scalar_lea.vmem %s672_s0, 32 }
 0x3b6   :  { %p18612_p13 = scmp.ne.s32.totalorder %s672_s0, %s18611_s4  ;;  %p18616_p0 = scmp.lt.s32.totalorder %s672_s0, %s672_s0 }
 0x3b7   :  { %p18617_p1 = scmp.lt.s32.totalorder %s18615_s11, %s18611_s4 }
 0x3b9   :  { %p18618_p2 = por %p18617_p1, %p18616_p0 }
 0x3bb   :  { %p18619_p3 = pnand %p18618_p2, %p18612_p13 }
 0x3bd   :  { %18622 = shalt.err (!%p18619_p3)
}
 0x3be   :  { %s21020_s8 = sld [smem:[#allocation162_spill]] }
 0x3bf   :  { %674 = dma.hbm_to_vmem [thread:$0]  %s21019_s2, 16, %s672_s0, [#allocation57]  }
 0x3c4   :  { %s18623_s21 = scalar_lea.hbm %s21020_s8, 16 }
 0x3c5   :  { %p18624_p4 = scmp.ne.s32.totalorder %s21020_s8, %s18623_s21  ;;  %p18627_p5 = scmp.lt.u32.totalorder %s18623_s21, %s21020_s8 }
 0x3c7   :  { %p18629_p6 = pnand %p18627_p5, %p18624_p4 }
 0x3c9   :  { %18632 = shalt.err (!%p18629_p6)
}
 0x3ca   :  { %s18633_s15 = scalar_lea.vmem %s692_s10, 16  ;;  %s18637_s16 = scalar_lea.vmem %s692_s10, 32 }
 0x3cb   :  { %p18634_p7 = scmp.ne.s32.totalorder %s692_s10, %s18633_s15  ;;  %p18638_p8 = scmp.lt.s32.totalorder %s692_s10, %s692_s10 }
 0x3cc   :  { %p18639_p9 = scmp.lt.s32.totalorder %s18637_s16, %s18633_s15 }
 0x3ce   :  { %p18640_p10 = por %p18639_p9, %p18638_p8 }
 0x3d0   :  { %p18641_p11 = pnand %p18640_p10, %p18634_p7 }
 0x3d2   :  { %18644 = shalt.err (!%p18641_p11)
}
 0x3d3   :  { %694 = dma.hbm_to_vmem [thread:$0]  %s21020_s8, 16, %s692_s10, [#allocation60]  }
 0x3d4   :  { %s18914_s20 = smov [#allocation64]   ;;  %s18915_s18 = smov [#allocation65]  }
 0x3d5   :  { %s723_s24 = sshll.u32 %s18914_s20, 4  ;;  %s733_s25 = sshll.u32 %s18915_s18, 4  ;;  %s724_s24 = int_to_ptr.vmem [resolvable:$true] %s723_s24  ;;  %s734_s25 = int_to_ptr.vmem [resolvable:$true] %s733_s25 }
 0x3d6   :  { %s18645_s22 = scalar_lea.hbm %s19381_s13, 16 }
 0x3d7   :  { %p18646_p12 = scmp.ne.s32.totalorder %s19381_s13, %s18645_s22  ;;  %p18649_p13 = scmp.lt.u32.totalorder %s18645_s22, %s19381_s13 }
 0x3d9   :  { %p18651_p0 = pnand %p18649_p13, %p18646_p12 }
 0x3db   :  { %18654 = shalt.err (!%p18651_p0)
}
 0x3dc   :  { %s18655_s23 = scalar_lea.vmem %s724_s24, 16  ;;  %s18659_s26 = scalar_lea.vmem %s724_s24, 32 }
 0x3dd   :  { %p18656_p1 = scmp.ne.s32.totalorder %s724_s24, %s18655_s23  ;;  %p18660_p2 = scmp.lt.s32.totalorder %s724_s24, %s724_s24 }
 0x3de   :  { %p18661_p3 = scmp.lt.s32.totalorder %s18659_s26, %s18655_s23 }
 0x3e0   :  { %p18662_p4 = por %p18661_p3, %p18660_p2 }
 0x3e2   :  { %p18663_p5 = pnand %p18662_p4, %p18656_p1 }
 0x3e4   :  { %18666 = shalt.err (!%p18663_p5)
}
 0x3e5   :  { %726 = dma.hbm_to_vmem [thread:$0]  %s19381_s13, 16, %s724_s24, [#allocation63]  }
 0x3e6   :  { %s18667_s28 = scalar_lea.hbm %s19386_s30, 16 }
 0x3e7   :  { %p18668_p6 = scmp.ne.s32.totalorder %s19386_s30, %s18667_s28  ;;  %p18671_p7 = scmp.lt.u32.totalorder %s18667_s28, %s19386_s30 }
 0x3e9   :  { %p18673_p8 = pnand %p18671_p7, %p18668_p6 }
 0x3eb   :  { %18676 = shalt.err (!%p18673_p8)
}
 0x3ec   :  { %s18677_s29 = scalar_lea.vmem %s734_s25, 16  ;;  %s18681_s5 = scalar_lea.vmem %s734_s25, 32 }
 0x3ed   :  { %p18678_p9 = scmp.ne.s32.totalorder %s734_s25, %s18677_s29  ;;  %p18682_p10 = scmp.lt.s32.totalorder %s734_s25, %s734_s25 }
 0x3ee   :  { %p18683_p11 = scmp.lt.s32.totalorder %s18681_s5, %s18677_s29 }
 0x3f0   :  { %p18684_p12 = por %p18683_p11, %p18682_p10 }
 0x3f2   :  { %p18685_p13 = pnand %p18684_p12, %p18678_p9 }
 0x3f4   :  { %18688 = shalt.err (!%p18685_p13)
}
 0x3f5   :  { %736 = dma.hbm_to_vmem [thread:$0]  %s19386_s30, 16, %s734_s25, [#allocation66]  }
 0x3f6   :  { %18733 = dma.done.wait [#allocation3], 16  }
 0x3f7   :  { %18734 = vsyncadd [#allocation3], 4294967280 }
 0x3f8   :  { %18735 = dma.done.wait [#allocation6], 32  }
 0x3f9   :  { %18736 = vsyncadd [#allocation6], 4294967264 }
 0x3fa   :  { %18737 = dma.done.wait [#allocation9], 32  }
 0x3fb   :  { %18738 = vsyncadd [#allocation9], 4294967264 }
 0x3fc   :  { %18739 = dma.done.wait [#allocation12], 32  }
 0x3fd   :  { %18740 = vsyncadd [#allocation12], 4294967264 }
 0x3fe   :  { %18741 = dma.done.wait [#allocation15], 32  }
 0x3ff   :  { %18742 = vsyncadd [#allocation15], 4294967264 }
 0x400   :  { %18743 = dma.done.wait [#allocation18], 32  }
 0x401   :  { %18744 = vsyncadd [#allocation18], 4294967264 }
 0x402   :  { %18745 = dma.done.wait [#allocation21], 32  }
 0x403   :  { %18746 = vsyncadd [#allocation21], 4294967264 }
 0x404   :  { %18747 = dma.done.wait [#allocation24], 32  }
 0x405   :  { %18748 = vsyncadd [#allocation24], 4294967264 }
 0x406   :  { %18749 = dma.done.wait [#allocation27], 32  }
 0x407   :  { %18750 = vsyncadd [#allocation27], 4294967264 }
 0x408   :  { %18751 = dma.done.wait [#allocation30], 32  }
 0x409   :  { %18752 = vsyncadd [#allocation30], 4294967264 }
 0x40a   :  { %18753 = dma.done.wait [#allocation33], 32  }
 0x40b   :  { %18754 = vsyncadd [#allocation33], 4294967264 }
 0x40c   :  { %18755 = dma.done.wait [#allocation36], 32  }
 0x40d   :  { %18756 = vsyncadd [#allocation36], 4294967264 }
 0x40e   :  { %18757 = dma.done.wait [#allocation39], 32  }
 0x40f   :  { %18758 = vsyncadd [#allocation39], 4294967264 }
 0x410   :  { %18759 = dma.done.wait [#allocation42], 32  }
 0x411   :  { %18760 = vsyncadd [#allocation42], 4294967264 }
 0x412   :  { %18761 = dma.done.wait [#allocation45], 32  }
 0x413   :  { %18762 = vsyncadd [#allocation45], 4294967264 }
 0x414   :  { %18763 = dma.done.wait [#allocation48], 32  }
 0x415   :  { %18764 = vsyncadd [#allocation48], 4294967264 }
 0x416   :  { %18765 = dma.done.wait [#allocation51], 32  }
 0x417   :  { %18766 = vsyncadd [#allocation51], 4294967264 }
 0x418   :  { %18767 = dma.done.wait [#allocation54], 32  }
 0x419   :  { %18768 = vsyncadd [#allocation54], 4294967264 }
 0x41a   :  { %18769 = dma.done.wait [#allocation57], 32  }
 0x41b   :  { %18770 = vsyncadd [#allocation57], 4294967264 }
 0x41c   :  { %18771 = dma.done.wait [#allocation60], 32  }
 0x41d   :  { %18772 = vsyncadd [#allocation60], 4294967264 }
 0x41e   :  { %18773 = dma.done.wait [#allocation63], 32  }
 0x41f   :  { %18774 = vsyncadd [#allocation63], 4294967264 }
 0x420   :  { %18775 = dma.done.wait [#allocation66], 16  }
 0x421   :  { %18776 = vsyncadd [#allocation66], 4294967280  ;;  %s21021_s13 = sld [smem:[#allocation150_spill]]  ;;  %s21023_s14 = sld [smem:[#allocation152_spill]]  ;;  %vm880_vm0 = vcmask 261120   ;;  %vm1138_vm1 = vcmask 64512  }
 0x422   :  { %s21022_s30 = sld [smem:[#allocation94_spill]]  ;;  %s21024_s6 = sld [smem:[#allocation153_spill]]  ;;  %v14039_v14 = vld [vmem:[#allocation49] ss:$0 sm:$0xff]  ;;  %vm19598_vm2 = vmpackc.low %vm1138_vm1, %vm1138_vm1  ;;  %vm1230_vm3 = vcmask 130048   ;;  %vm2995_vm6 = vcmask 523264  }
 0x423   :  { %s21025_s1 = sld [smem:[#allocation148_spill]]  ;;  %s18916_s19 = smov 120  }
 0x424   :  { %s21028_s27 = sld [smem:[#allocation96_spill]]  ;;  %s21029_s2 = sld [smem:[#allocation149_spill]] }
 0x425   :  { %s18917_s3 = smov 112   ;;  %s21030_s0 = sld [smem:[#allocation151_spill]] }
 0x426   :  { %s18918_s7 = smov 104   ;;  %s21031_s10 = sld [smem:[#allocation141_spill]] }
 0x427   :  { %v869_v0 = vld [vmem:[%s21021_s13] sm:$0xff]  ;;  %v870_v1 = vld [vmem:[%s21021_s13 + $0x8] sm:$0xff]  ;;  %v871_v2 = vld [vmem:[%s21021_s13 + $0x10] sm:$0xff]  ;;  %s21032_s9 = sld [smem:[#allocation142_spill]]  ;;  %s21034_s11 = sld [smem:[#allocation169_spill]] }
 0x428   :  { %v16449_v3 = vpack.c.bf16 %v870_v1, %v869_v0  ;;  %v872_v4 = vld [vmem:[%s21021_s13 + $0x18] sm:$0xff]  ;;  %v19571_v5 = vld [vmem:[%s21022_s30] sm:$0xff]  ;;  %v967_v8 = vld [vmem:[%s21023_s14 + $0x8] sm:$0xff]  ;;  %s21033_s4 = sld [smem:[#allocation166_spill]]  ;;  %s21035_s8 = sld [smem:[#allocation168_spill]] }
 0x429   :  { %v16453_v6 = vpack.c.bf16 %v872_v4, %v871_v2  ;;  %15287 = vmatprep.mubr.msk.f32.mxu1 %vm880_vm0, %v19571_v5  ;;  %v966_v7 = vld [vmem:[%s21023_s14] sm:$0xff]  ;;  %15309 = vmatprep.mubr.msk.f32.mxu0 %vm880_vm0, %v19571_v5  ;;  %v968_v10 = vld [vmem:[%s21023_s14 + $0x10] sm:$0xff]  ;;  %v969_v11 = vld [vmem:[%s21023_s14 + $0x18] sm:$0xff]  ;;  %s21036_s21 = sld [smem:[#allocation165_spill]]  ;;  %s21037_s15 = sld [smem:[#allocation164_spill]] }
 0x42a   :  { %16450 = vmatprep.subr.bf16.mxu1 %v16449_v3  ;;  %v16457_v9 = vpack.c.bf16 %v967_v8, %v966_v7  ;;  %v19582_v12 = vld [vmem:[%s21022_s30 + $0x8] sm:$0xff]  ;;  %v16461_v13 = vpack.c.bf16 %v969_v11, %v968_v10  ;;  %v1052_v15 = vld [vmem:[%s21024_s6] sm:$0xff]  ;;  %v1054_v17 = vld [vmem:[%s21024_s6 + $0x10] sm:$0xff]  ;;  %s21038_s16 = sld [smem:[#allocation167_spill]]  ;;  %s21039_s20 = sld [smem:[#allocation156_spill]] }
 0x42b   :  { %16452 = vmatpush3.bf16.msra.mxu1 %v16449_v3  ;;  %v1053_v16 = vld [vmem:[%s21024_s6 + $0x8] sm:$0xff]  ;;  %v1055_v19 = vld [vmem:[%s21024_s6 + $0x18] sm:$0xff]  ;;  %v14054_v21 = vld [vmem:[%s21023_s14 + $0x20] sm:$0xff]  ;;  %s21040_s24 = sld [smem:[#allocation115_spill]]  ;;  %s21041_s18 = sld [smem:[#allocation95_spill]] }
 0x42c   :  { %16454 = vmatprep.subr.bf16.mxu1 %v16453_v6  ;;  %v16465_v18 = vpack.c.bf16 %v1053_v16, %v1052_v15  ;;  %v14055_v22 = vld [vmem:[%s21023_s14 + $0x28] sm:$0xff]  ;;  %v16469_v23 = vpack.c.bf16 %v1055_v19, %v1054_v17  ;;  %v14042_v31 = vld [vmem:[%s21025_s1] ss:$0 sm:$0xff]  ;;  %v14056_v34 = vld [vmem:[%s21023_s14 + $0x30] sm:$0xff]  ;;  %s21042_s25 = sld [smem:[#allocation117_spill]]  ;;  %s21044_s23 = sld [smem:[#allocation118_spill]] }
 0x42d   :  { %v16483_v28 = vpack.c.bf16 %v14055_v22, %v14054_v21  ;;  %v14057_v35 = vld [vmem:[%s21023_s14 + $0x38] sm:$0xff]  ;;  %v19626_v44 = vld [vmem:[%s21028_s27 + $0x8] sm:$0xff]  ;;  %v19629_v47 = vld [vmem:[%s21028_s27] sm:$0xff]  ;;  %s21043_s22 = sld [smem:[#allocation157_spill]]  ;;  %s21045_s26 = sld [smem:[#allocation113_spill]] }
 0x42e   :  { %16466 = vmatprep.subr.bf16.mxu0 %v16465_v18  ;;  %v16487_v38 = vpack.c.bf16 %v14057_v35, %v14056_v34  ;;  %v14059_v53 = vld [vmem:[%s21025_s1 + $0x1] ss:$0 sm:$0xff]  ;;  %v14045_v59 = vld [vmem:[%s21029_s2] ss:$0 sm:$0xff]  ;;  %v14063_v1 = vld [vmem:[%s21024_s6 + $0x28] sm:$0xff]  ;;  %s21046_s28 = sld [smem:[#allocation97_spill]] }
 0x42f   :  { %16456 = vmatpush3.bf16.msra.mxu1 %v16453_v6  ;;  %16468 = vmatpush3.bf16.msra.mxu0 %v16465_v18  ;;  %v14062_v0 = vld [vmem:[%s21024_s6 + $0x20] sm:$0xff]  ;;  %v14081_v4 = vld [vmem:[%s21023_s14 + $0x48] sm:$0xff]  ;;  %v14082_v7 = vld [vmem:[%s21023_s14 + $0x50] sm:$0xff]  ;;  %s21047_s29 = sld [smem:[#allocation114_spill]]  ;;  %s21048_s5 = sld [smem:[#allocation116_spill]] }
 0x430   :  { %16458 = vmatprep.subr.bf16.mxu1 %v16457_v9  ;;  %16470 = vmatprep.subr.bf16.mxu0 %v16469_v23  ;;  %v16491_v2 = vpack.c.bf16 %v14063_v1, %v14062_v0  ;;  %v14080_v3 = vld [vmem:[%s21023_s14 + $0x40] sm:$0xff]  ;;  %v14083_v8 = vld [vmem:[%s21023_s14 + $0x58] sm:$0xff]  ;;  %v14064_v17 = vld [vmem:[%s21024_s6 + $0x30] sm:$0xff]  ;;  %s21049_s13 = sld [smem:[#allocation102_spill]]  ;;  %s21050_s30 = sld [smem:[#allocation105_spill]] }
 0x431   :  { %v16509_v6 = vpack.c.bf16 %v14081_v4, %v14080_v3  ;;  %v14065_v18 = vld [vmem:[%s21024_s6 + $0x38] sm:$0xff]  ;;  %v14105_v0 = vld [vmem:[%s21023_s14 + $0x68] sm:$0xff]  ;;  %v14106_v1 = vld [vmem:[%s21023_s14 + $0x70] sm:$0xff] }
 0x432   :  { %15288 = vmatmul.mubr.msk.f32.vlgmr.msra.gmra.mrb[0].mxu1 %vm880_vm0, %v19582_v12  ;;  %v14107_v3 = vld [vmem:[%s21023_s14 + $0x78] sm:$0xff] }
 0x433   :  { %16460 = vmatpush3.bf16.msra.mxu1 %v16457_v9  ;;  %15298 = vmatprep.mubr.msk.f32.mxu1 %vm880_vm0, %v19571_v5  ;;  %v16513_v9 = vpack.c.bf16 %v14083_v8, %v14082_v7  ;;  %v16539_v4 = vpack.c.bf16 %v14107_v3, %v14106_v1  ;;  %v962_v7 = vld [vmem:[%s21030_s0] sm:$0xff]  ;;  %v964_v1 = vld [vmem:[%s21030_s0 + $0x10] sm:$0xff]  ;;  %v14113_v3 = vld [vmem:[%s21024_s6 + $0x68] sm:$0xff] }
 0x434   :  { %16462 = vmatprep.subr.bf16.mxu1 %v16461_v13  ;;  %16472 = vmatpush3.bf16.msra.mxu0 %v16469_v23 }
 0x437   :  { %16464 = vmatpush3.bf16.msra.mxu1 %v16461_v13  ;;  %15310 = vmatmul.mubr.msk.f32.vlgmr.msra.gmra.mrb[0].mxu0 %vm880_vm0, %v19582_v12 }
 0x43a   :  { %15299 = vmatmul.mubr.msk.f32.vlgmr.msra.gmra.mrb[2].mxu1 %vm880_vm0, %v19582_v12 }
 0x505   :  { %v15289_v20 = vpop.f32.mrb[0].mxu1 }
 0x506   :  { %v959_v24 = vadd.f32 %v15289_v20, %v14039_v14  ;;  %v953_v25 = vpop.f32.mrb[1].mxu1  ;;  %v16495_v20 = vpack.c.bf16 %v14065_v18, %v14064_v17  ;;  %v14088_v18 = vld [vmem:[%s21024_s6 + $0x40] sm:$0xff] }
 0x507   :  { %v954_v26 = vadd.f32 %v14039_v14, %v953_v25 }
 0x509   :  { %v19602_v29 = vpack.i.bf16 %v959_v24, %v954_v26  ;;  %v16473_v30 = vpack.c.bf16 %v959_v24, %v954_v26 }
 0x50a   :  { %v15311_v58 = vpop.f32.mrb[0].mxu0 }
 0x50b   :  { %17396 = vrot.lane.b32.xlu0 %v19602_v29, %s18916_s19  ;;  %16475 = vmatprep.subr.msk.bf16.mxu1 %vm19598_vm2, %v16473_v30  ;;  %v1129_v60 = vpop.f32.mrb[1].mxu0  ;;  %v1135_v61 = vadd.f32 %v15311_v58, %v14045_v59 }
 0x50c   :  { %16478 = vmatpush3.bf16.xpose.msk.msra.mxu1 %vm19598_vm2, %v16473_v30  ;;  %v1130_v62 = vadd.f32 %v14045_v59, %v1129_v60 }
 0x50d   :  { %v15300_v32 = vpop.f32.mrb[2].mxu1  ;;  %16484 = vmatprep.subr.bf16.mxu1 %v16483_v28 }
 0x50e   :  { %v1043_v33 = vpop.f32.mrb[3].mxu1  ;;  %v1049_v37 = vadd.f32 %v15300_v32, %v14042_v31  ;;  %v16479_v63 = vpack.c.bf16 %v1135_v61, %v1130_v62  ;;  %v14085_v32 = vld [vmem:[%s21025_s1 + $0x2] ss:$0 sm:$0xff] }
 0x50f   :  { %v1044_v36 = vadd.f32 %v14042_v31, %v1043_v33 }
 0x510   :  { %16480 = vmatprep.subr.bf16.mxu0 %v16479_v63 }
 0x511   :  { %15316 = vmatprep.mubr.msk.f32.mxu1 %vm1138_vm1, %v1044_v36  ;;  %16482 = vmatpush3.bf16.msra.mxu0 %v16479_v63  ;;  %v14104_v63 = vld [vmem:[%s21023_s14 + $0x60] sm:$0xff]  ;;  %s21051_s14 = sld [smem:[#allocation104_spill]] }
 0x512   :  { %16492 = vmatprep.subr.bf16.mxu0 %v16491_v2 }
 0x513   :  { %15317 = vmatmul.mubr.msk.f32.vlgmr.msra.gmra.mrb[4].mxu1 %vm1138_vm1, %v1049_v37 }
 0x514   :  { %16486 = vmatpush3.bf16.msra.mxu1 %v16483_v28  ;;  %15334 = vmatprep.mubr.msk.f32.mxu1 %vm880_vm0, %v19571_v5 }
 0x515   :  { %16488 = vmatprep.subr.bf16.mxu1 %v16487_v38 }
 0x518   :  { %16490 = vmatpush3.bf16.msra.mxu1 %v16487_v38 }
 0x51b   :  { %15335 = vmatmul.mubr.msk.f32.vlgmr.msra.gmra.mrb[6].mxu1 %vm880_vm0, %v19582_v12 }
 0x57d   :  { %v17397_v39 = vpop.permute.xlu0 %17396 }
 0x57e   :  { %v17399_v40 = vunpack.i.h.bf16 %v17397_v39  ;;  %v17398_v41 = vunpack.i.l.bf16 %v17397_v39 }
 0x580   :  { %v16499_v42 = vpack.c.bf16 %v17399_v40, %v17398_v41 }
 0x582   :  { %16501 = vmatprep.subr.msk.bf16.mxu1 %vm19598_vm2, %v16499_v42 }
 0x583   :  { %16504 = vmatpush3.bf16.xpose.msk.msra.mxu1 %vm19598_vm2, %v16499_v42 }
 0x584   :  { %16510 = vmatprep.subr.bf16.mxu1 %v16509_v6 }
 0x5e6   :  { %v15318_v43 = vpop.f32.mrb[4].mxu1 }
 0x5e7   :  { %v1227_v45 = vmul.f32 0.35355338, %v15318_v43  ;;  %v1217_v46 = vpop.f32.mrb[5].mxu1 }
 0x5e8   :  { %v1226_v48 = vmul.f32 0.35355338, %v1217_v46 }
 0x5e9   :  { %v1229_v49 = vadd.f32 %v1227_v45, %v19626_v44 }
 0x5ea   :  { %v1228_v50 = vadd.f32 %v1226_v48, %v19629_v47 }
 0x5eb   :  { %v1234_v51 = vsel %vm1230_vm3, %v1229_v49, -inf }
 0x5ec   :  { %1235 = vmax.xlane.f32.xlu1 %v1234_v51  ;;  %v1231_v52 = vsel %vm1230_vm3, %v1228_v50, -inf }
 0x5ed   :  { %1232 = vmax.xlane.f32.xlu0 %v1231_v52 }
 0x5ee   :  { %v15336_v54 = vpop.f32.mrb[6].mxu1 }
 0x5ef   :  { %v1419_v55 = vadd.f32 %v15336_v54, %v14059_v53  ;;  %v1413_v56 = vpop.f32.mrb[7].mxu1 }
 0x5f0   :  { %v1414_v57 = vadd.f32 %v14059_v53, %v1413_v56 }
 0x5f2   :  { %15352 = vmatprep.mubr.msk.f32.mxu1 %vm1138_vm1, %v1414_v57 }
 0x5f3   :  { %15353 = vmatmul.mubr.msk.f32.vlgmr.msra.gmra.mrb[8].mxu1 %vm1138_vm1, %v1419_v55 }
 0x5f4   :  { %15380 = vmatprep.mubr.msk.f32.mxu1 %vm880_vm0, %v19571_v5  ;;  %16512 = vmatpush3.bf16.msra.mxu1 %v16509_v6  ;;  %v963_v6 = vld [vmem:[%s21030_s0 + $0x8] sm:$0xff] }
 0x5f5   :  { %16514 = vmatprep.subr.bf16.mxu1 %v16513_v9 }
 0x5f8   :  { %16516 = vmatpush3.bf16.msra.mxu1 %v16513_v9 }
 0x5fb   :  { %15381 = vmatmul.mubr.msk.f32.vlgmr.msra.gmra.mrb[10].mxu1 %vm880_vm0, %v19582_v12 }
 0x679   :  { %v1236_v10 = vpop.xlane.xlu1 %1235 }
 0x67a   :  { %v1238_v11 = vsub.f32 %v1229_v49, %v1236_v10  ;;  %v1233_v13 = vpop.xlane.xlu0 %1232 }
 0x67b   :  { %v1237_v14 = vsub.f32 %v1228_v50, %v1233_v13  ;;  %v14067_v50 = vld [vmem:[%s21029_s2 + $0x1] ss:$0 sm:$0xff] }
 0x67c   :  { %v1241_v15 = vmul.f32 1.442695, %v1238_v11 }
 0x67d   :  { %v1239_v16 = vmul.f32 1.442695, %v1237_v14 }
 0x67f   :  { %17485 = vpow2.f32 %v1239_v16 }
 0x680   :  { %17487 = vpow2.f32 %v1241_v15 }
 0x689   :  { %v17486_v19 = vpop.eup %17485 }
 0x68a   :  { %v17488_v21 = vpop.eup %17487  ;;  %15323 = vmatprep.mubr.msk.f32.mxu0 %vm1230_vm3, %v17486_v19  ;;  %v1243_v61 = vsel %vm1230_vm3, %v17486_v19, 0.0  ;;  %v14089_v19 = vld [vmem:[%s21024_s6 + $0x48] sm:$0xff] }
 0x68b   :  { %15324 = vmatmul.mubr.msk.f32.vlgmr.msra.gmra.mrb[2].mxu0 %vm1230_vm3, %v17488_v21  ;;  %v1246_v62 = vsel %vm1230_vm3, %v17488_v21, 0.0 }
 0x68c   :  { %16494 = vmatpush3.bf16.msra.mxu0 %v16491_v2  ;;  %15345 = vmatprep.mubr.msk.f32.mxu0 %vm880_vm0, %v19571_v5  ;;  %v16535_v2 = vpack.c.bf16 %v14105_v0, %v14104_v63 }
 0x68d   :  { %16496 = vmatprep.subr.bf16.mxu0 %v16495_v20 }
 0x690   :  { %16498 = vmatpush3.bf16.msra.mxu0 %v16495_v20 }
 0x693   :  { %15346 = vmatmul.mubr.msk.f32.vlgmr.msra.gmra.mrb[4].mxu0 %vm880_vm0, %v19582_v12 }
 0x6c6   :  { %v15354_v22 = vpop.f32.mrb[8].mxu1 }
 0x6c7   :  { %v1590_v23 = vpop.f32.mrb[9].mxu1  ;;  %v1600_v24 = vmul.f32 0.35355338, %v15354_v22 }
 0x6c8   :  { %v1599_v25 = vmul.f32 0.35355338, %v1590_v23 }
 0x6c9   :  { %v1602_v30 = vadd.f32 %v1600_v24, %v19626_v44 }
 0x6ca   :  { %v1601_v26 = vadd.f32 %v1599_v25, %v19629_v47 }
 0x6cb   :  { %v1606_v31 = vsel %vm1230_vm3, %v1602_v30, -inf }
 0x6cc   :  { %v1603_v28 = vsel %vm1230_vm3, %v1601_v26, -inf }
 0x6cd   :  { %1604 = vmax.xlane.f32.xlu1 %v1603_v28  ;;  %v16517_v28 = vpack.c.bf16 %v14089_v19, %v14088_v18  ;;  %v14114_v18 = vld [vmem:[%s21024_s6 + $0x70] sm:$0xff]  ;;  %v14115_v19 = vld [vmem:[%s21024_s6 + $0x78] sm:$0xff] }
 0x6ce   :  { %v15382_v33 = vpop.f32.mrb[10].mxu1 }
 0x6cf   :  { %v1953_v34 = vadd.f32 %v15382_v33, %v14085_v32  ;;  %v1947_v35 = vpop.f32.mrb[11].mxu1 }
 0x6d0   :  { %v1948_v36 = vadd.f32 %v14085_v32, %v1947_v35  ;;  %v14090_v35 = vld [vmem:[%s21024_s6 + $0x50] sm:$0xff] }
 0x6d1   :  { %1607 = vmax.xlane.f32.xlu1 %v1606_v31 }
 0x6d2   :  { %15398 = vmatprep.mubr.msk.f32.mxu1 %vm1138_vm1, %v1948_v36  ;;  %v14091_v36 = vld [vmem:[%s21024_s6 + $0x58] sm:$0xff] }
 0x6e2   :  { %17401 = vrot.lane.b32.xlu1 %v19602_v29, %s18917_s3 }
 0x75a   :  { %v1605_v37 = vpop.xlane.xlu1 %1604 }
 0x75b   :  { %v1609_v38 = vsub.f32 %v1601_v26, %v1605_v37 }
 0x75d   :  { %v1611_v39 = vmul.f32 1.442695, %v1609_v38  ;;  %v16521_v38 = vpack.c.bf16 %v14091_v36, %v14090_v35  ;;  %v14117_v36 = vld [vmem:[%s21029_s2 + $0x3] ss:$0 sm:$0xff] }
 0x75e   :  { %v1608_v40 = vpop.xlane.xlu1 %1607  ;;  %v19665_v41 = vpop.f32.mrb[2].mxu0 }
 0x75f   :  { %17489 = vpow2.f32 %v1611_v39  ;;  %v1610_v42 = vsub.f32 %v1602_v30, %v1608_v40  ;;  %v19667_v43 = vpop.f32.mrb[3].mxu0  ;;  %v14109_v40 = vld [vmem:[%s21025_s1 + $0x3] ss:$0 sm:$0xff]  ;;  %s21053_s1 = sld [smem:[#allocation101_spill]] }
 0x761   :  { %v1613_v45 = vmul.f32 1.442695, %v1610_v42 }
 0x762   :  { %v17402_v46 = vpop.permute.xlu1 %17401 }
 0x763   :  { %17491 = vpow2.f32 %v1613_v45  ;;  %v17404_v48 = vunpack.i.h.bf16 %v17402_v46  ;;  %v17403_v49 = vunpack.i.l.bf16 %v17402_v46 }
 0x765   :  { %v16525_v51 = vpack.c.bf16 %v17404_v48, %v17403_v49 }
 0x766   :  { %v15347_v52 = vpop.f32.mrb[4].mxu0 }
 0x767   :  { %v1507_v53 = vadd.f32 %v15347_v52, %v14067_v50  ;;  %v1501_v54 = vpop.f32.mrb[5].mxu0  ;;  %16527 = vmatprep.subr.msk.bf16.mxu1 %vm19598_vm2, %v16525_v51 }
 0x768   :  { %v1502_v55 = vadd.f32 %v14067_v50, %v1501_v54  ;;  %16530 = vmatpush3.bf16.xpose.msk.msra.mxu1 %vm19598_vm2, %v16525_v51 }
 0x769   :  { %v17490_v56 = vpop.eup %17489  ;;  %16536 = vmatprep.subr.bf16.mxu1 %v16535_v2 }
 0x76a   :  { %v16505_v57 = vpack.c.bf16 %v1507_v53, %v1502_v55  ;;  %15359 = vmatprep.mubr.msk.f32.mxu0 %vm1230_vm3, %v17490_v56  ;;  %v1615_v58 = vsel %vm1230_vm3, %v17490_v56, 0.0 }
 0x76b   :  { %1616 = vadd.xlane.f32.xlu1 %v1615_v58 }
 0x76c   :  { %16506 = vmatprep.subr.bf16.mxu0 %v16505_v57 }
 0x76d   :  { %v17492_v59 = vpop.eup %17491  ;;  %16508 = vmatpush3.bf16.msra.mxu0 %v16505_v57 }
 0x76e   :  { %v1618_v60 = vsel %vm1230_vm3, %v17492_v59, 0.0  ;;  %15362 = vmatprep.subr.mxu0 %v963_v6 }
 0x76f   :  { %15399 = vmatmul.mubr.msk.f32.vlgmr.msra.gmra.mrb[12].mxu1 %vm1138_vm1, %v1953_v34  ;;  %1619 = vadd.xlane.f32.xlu0 %v1618_v60 }
 0x770   :  { %15360 = vmatmul.mubr.msk.f32.vlgmr.msra.gmra.mrb[6].mxu0 %vm1230_vm3, %v17492_v59  ;;  %15421 = vmatprep.mubr.msk.f32.mxu1 %vm880_vm0, %v19571_v5  ;;  %v14093_v59 = vld [vmem:[%s21029_s2 + $0x2] ss:$0 sm:$0xff]  ;;  %s21054_s2 = sld [smem:[#allocation100_spill]] }
 0x771   :  { %16538 = vmatpush3.bf16.msra.mxu1 %v16535_v2  ;;  %15363 = vmatpush3.msra.mxu0 %v963_v6  ;;  %v14112_v2 = vld [vmem:[%s21024_s6 + $0x60] sm:$0xff]  ;;  %s21052_s6 = sld [smem:[#allocation98_spill]] }
 0x772   :  { %16540 = vmatprep.subr.bf16.mxu1 %v16539_v4  ;;  %15367 = vmatprep.subr.mxu0 %v962_v7 }
 0x773   :  { %1244 = vadd.xlane.f32.xlu0 %v1243_v61 }
 0x775   :  { %16542 = vmatpush3.bf16.msra.mxu1 %v16539_v4  ;;  %v16543_v4 = vpack.c.bf16 %v14113_v3, %v14112_v2 }
 0x777   :  { %1247 = vadd.xlane.f32.xlu0 %v1246_v62 }
 0x778   :  { %15422 = vmatmul.mubr.msk.f32.vlgmr.msra.gmra.mrb[14].mxu1 %vm880_vm0, %v19582_v12 }
 0x7f8   :  { %v1617_v9 = vpop.xlane.xlu1 %1616 }
 0x7f9   :  { %17493 = vrcp.f32 %v1617_v9 }
 0x7fc   :  { %v1620_v8 = vpop.xlane.xlu0 %1619 }
 0x800   :  { %v1245_v10 = vpop.xlane.xlu0 %1244 }
 0x801   :  { %17495 = vrcp.f32 %v1245_v10 }
 0x802   :  { %17497 = vrcp.f32 %v1620_v8 }
 0x803   :  { %v17494_v14 = vpop.eup %17493 }
 0x804   :  { %v1248_v11 = vpop.xlane.xlu0 %1247 }
 0x805   :  { %17499 = vrcp.f32 %v1248_v11 }
 0x80b   :  { %v17496_v20 = vpop.eup %17495 }
 0x80c   :  { %v17498_v23 = vpop.eup %17497  ;;  %v1332_v30 = vmul.f32 %v17496_v20, %v19667_v43 }
 0x80f   :  { %v17500_v33 = vpop.eup %17499 }
 0x810   :  { %v1333_v37 = vmul.f32 %v17500_v33, %v19665_v41 }
 0x842   :  { %v15400_v13 = vpop.f32.mrb[12].mxu1 }
 0x843   :  { %v15361_v15 = vpop.f32.mrb[6].mxu0  ;;  %v2134_v16 = vmul.f32 0.35355338, %v15400_v13  ;;  %v2124_v17 = vpop.f32.mrb[13].mxu1 }
 0x844   :  { %v1693_v21 = vpop.f32.mrb[7].mxu0  ;;  %v2133_v22 = vmul.f32 0.35355338, %v2124_v17  ;;  %v1705_v25 = vmul.f32 %v17498_v23, %v15361_v15 }
 0x845   :  { %v1704_v24 = vmul.f32 %v17494_v14, %v1693_v21  ;;  %v2136_v31 = vadd.f32 %v2134_v16, %v19626_v44 }
 0x846   :  { %v2135_v26 = vadd.f32 %v2133_v22, %v19629_v47 }
 0x847   :  { %15364 = vmatprep.mubr.msk.f32.mxu0 %vm1138_vm1, %v1704_v24  ;;  %v2140_v34 = vsel %vm1230_vm3, %v2136_v31, -inf  ;;  %v16547_v24 = vpack.c.bf16 %v14115_v19, %v14114_v18 }
 0x848   :  { %15365 = vmatmul.mubr.msk.f32.vlgmr.msra.gmra.mrb[8].mxu0 %vm1138_vm1, %v1705_v25  ;;  %v2137_v32 = vsel %vm1230_vm3, %v2135_v26, -inf }
 0x849   :  { %15368 = vmatpush3.msra.mxu0 %v962_v7  ;;  %15369 = vmatprep.mubr.msk.f32.mxu0 %vm1138_vm1, %v1332_v30 }
 0x84a   :  { %2138 = vmax.xlane.f32.xlu0 %v2137_v32  ;;  %16518 = vmatprep.subr.bf16.mxu0 %v16517_v28 }
 0x84b   :  { %v15423_v39 = vpop.f32.mrb[14].mxu1 }
 0x84c   :  { %v2408_v42 = vadd.f32 %v15423_v39, %v14109_v40  ;;  %v2402_v41 = vpop.f32.mrb[15].mxu1 }
 0x84d   :  { %v2403_v43 = vadd.f32 %v14109_v40, %v2402_v41  ;;  %v965_v41 = vld [vmem:[%s21030_s0 + $0x18] sm:$0xff]  ;;  %s21055_s0 = sld [smem:[#allocation103_spill]] }
 0x84e   :  { %2141 = vmax.xlane.f32.xlu0 %v2140_v34 }
 0x84f   :  { %15439 = vmatprep.mubr.msk.f32.mxu1 %vm1138_vm1, %v2403_v43 }
 0x850   :  { %15370 = vmatmul.mubr.msk.f32.vlgmr.msra.gmra.mrb[8].mxu0 %vm1138_vm1, %v1333_v37 }
 0x851   :  { %16520 = vmatpush3.bf16.msra.mxu0 %v16517_v28  ;;  %15391 = vmatprep.mubr.msk.f32.mxu0 %vm880_vm0, %v19571_v5 }
 0x852   :  { %16522 = vmatprep.subr.bf16.mxu0 %v16521_v38 }
 0x855   :  { %16524 = vmatpush3.bf16.msra.mxu0 %v16521_v38 }
 0x858   :  { %15392 = vmatmul.mubr.msk.f32.vlgmr.msra.gmra.mrb[10].mxu0 %vm880_vm0, %v19582_v12 }
 0x864   :  { %17406 = vrot.lane.b32.xlu0 %v19602_v29, %s18918_s7 }
 0x8d7   :  { %v2139_v45 = vpop.xlane.xlu0 %2138 }
 0x8d8   :  { %v2143_v46 = vsub.f32 %v2135_v26, %v2139_v45 }
 0x8da   :  { %v2145_v48 = vmul.f32 1.442695, %v2143_v46 }
 0x8db   :  { %v2142_v49 = vpop.xlane.xlu0 %2141 }
 0x8dc   :  { %17501 = vpow2.f32 %v2145_v48  ;;  %v2144_v50 = vsub.f32 %v2136_v31, %v2142_v49 }
 0x8de   :  { %v2147_v51 = vmul.f32 1.442695, %v2144_v50 }
 0x8df   :  { %v17407_v52 = vpop.permute.xlu0 %17406 }
 0x8e0   :  { %17503 = vpow2.f32 %v2147_v51  ;;  %v17409_v53 = vunpack.i.h.bf16 %v17407_v52  ;;  %v17408_v54 = vunpack.i.l.bf16 %v17407_v52 }
 0x8e2   :  { %v16551_v29 = vpack.c.bf16 %v17409_v53, %v17408_v54  ;;  %v14128_v53 = vld [vmem:[#allocation50] ss:$0 sm:$0xff] }
 0x8e4   :  { %16553 = vmatprep.subr.msk.bf16.mxu1 %vm19598_vm2, %v16551_v29 }
 0x8e5   :  { %16556 = vmatpush3.bf16.xpose.msk.msra.mxu1 %vm19598_vm2, %v16551_v29 }
 0x8e6   :  { %v17502_v55 = vpop.eup %17501 }
 0x8e7   :  { %15405 = vmatprep.mubr.msk.f32.mxu0 %vm1230_vm3, %v17502_v55  ;;  %v2149_v56 = vsel %vm1230_vm3, %v17502_v55, 0.0 }
 0x8e8   :  { %2150 = vadd.xlane.f32.xlu1 %v2149_v56 }
 0x8ea   :  { %v17504_v57 = vpop.eup %17503 }
 0x8eb   :  { %v2152_v58 = vsel %vm1230_vm3, %v17504_v57, 0.0 }
 0x8ec   :  { %2153 = vadd.xlane.f32.xlu1 %v2152_v58  ;;  %15440 = vmatmul.mubr.msk.f32.vlgmr.msra.gmra.mrb[16].mxu1 %vm1138_vm1, %v2408_v42 }
 0x92b   :  { %v15393_v60 = vpop.f32.mrb[10].mxu0 }
 0x92c   :  { %v2041_v61 = vadd.f32 %v15393_v60, %v14093_v59  ;;  %v2035_v62 = vpop.f32.mrb[11].mxu0 }
 0x92d   :  { %v2036_v63 = vadd.f32 %v14093_v59, %v2035_v62 }
 0x92f   :  { %v16531_v0 = vpack.c.bf16 %v2041_v61, %v2036_v63 }
 0x931   :  { %16532 = vmatprep.subr.bf16.mxu0 %v16531_v0 }
 0x932   :  { %16534 = vmatpush3.bf16.msra.mxu0 %v16531_v0 }
 0x933   :  { %15408 = vmatprep.subr.mxu0 %v964_v1 }
 0x935   :  { %15406 = vmatmul.mubr.msk.f32.vlgmr.msra.gmra.mrb[12].mxu0 %vm1230_vm3, %v17504_v57 }
 0x936   :  { %15409 = vmatpush3.msra.mxu0 %v964_v1 }
 0x937   :  { %16544 = vmatprep.subr.bf16.mxu0 %v16543_v4 }
 0x975   :  { %v2151_v15 = vpop.xlane.xlu1 %2150 }
 0x976   :  { %17505 = vrcp.f32 %v2151_v15 }
 0x979   :  { %v2154_v16 = vpop.xlane.xlu1 %2153 }
 0x97a   :  { %17507 = vrcp.f32 %v2154_v16 }
 0x980   :  { %v17506_v20 = vpop.eup %17505 }
 0x984   :  { %v17508_v22 = vpop.eup %17507 }
 0x9bf   :  { %v15441_v6 = vpop.f32.mrb[16].mxu1 }
 0x9c0   :  { %v2589_v7 = vmul.f32 0.35355338, %v15441_v6  ;;  %v2579_v8 = vpop.f32.mrb[17].mxu1  ;;  %v2834_v6 = vld [vmem:[%s21031_s10] sm:$0xff] }
 0x9c1   :  { %v2588_v9 = vmul.f32 0.35355338, %v2579_v8  ;;  %v2836_v8 = vld [vmem:[%s21031_s10 + $0x10] sm:$0xff] }
 0x9c2   :  { %v2591_v10 = vadd.f32 %v2589_v7, %v19626_v44  ;;  %v2835_v7 = vld [vmem:[%s21031_s10 + $0x8] sm:$0xff] }
 0x9c3   :  { %v2590_v11 = vadd.f32 %v2588_v9, %v19629_v47  ;;  %v16561_v9 = vpack.c.bf16 %v2835_v7, %v2834_v6 }
 0x9c4   :  { %v2595_v13 = vsel %vm1230_vm3, %v2591_v10, -inf }
 0x9c5   :  { %2596 = vmax.xlane.f32.xlu0 %v2595_v13  ;;  %v2592_v14 = vsel %vm1230_vm3, %v2590_v11, -inf  ;;  %16562 = vmatprep.subr.bf16.mxu1 %v16561_v9 }
 0x9c6   :  { %2593 = vmax.xlane.f32.xlu1 %v2592_v14  ;;  %16564 = vmatpush3.bf16.msra.mxu1 %v16561_v9 }
 0xa08   :  { %v15407_v17 = vpop.f32.mrb[12].mxu0 }
 0xa09   :  { %v2227_v21 = vpop.f32.mrb[13].mxu0  ;;  %v2239_v44 = vmul.f32 %v17508_v22, %v15407_v17  ;;  %v14130_v22 = vld [vmem:[#allocation43] ss:$0 sm:$0xff] }
 0xa0a   :  { %v2238_v23 = vmul.f32 %v17506_v20, %v2227_v21  ;;  %v14129_v20 = vld [vmem:[#allocation44] ss:$0 sm:$0xff] }
 0xa0c   :  { %15410 = vmatprep.mubr.msk.f32.mxu0 %vm1138_vm1, %v2238_v23 }
 0xa0d   :  { %15411 = vmatmul.mubr.msk.f32.vlgmr.msra.gmra.mrb[8].mxu0 %vm1138_vm1, %v2239_v44 }
 0xa0e   :  { %16546 = vmatpush3.bf16.msra.mxu0 %v16543_v4  ;;  %15432 = vmatprep.mubr.msk.f32.mxu0 %vm880_vm0, %v19571_v5 }
 0xa0f   :  { %16548 = vmatprep.subr.bf16.mxu0 %v16547_v24 }
 0xa12   :  { %16550 = vmatpush3.bf16.msra.mxu0 %v16547_v24 }
 0xa15   :  { %15433 = vmatmul.mubr.msk.f32.vlgmr.msra.gmra.mrb[14].mxu0 %vm880_vm0, %v19582_v12 }
 0xa52   :  { %v2597_v47 = vpop.xlane.xlu0 %2596 }
 0xa53   :  { %v2599_v25 = vsub.f32 %v2591_v10, %v2597_v47  ;;  %v2594_v26 = vpop.xlane.xlu1 %2593  ;;  %v2837_v10 = vld [vmem:[%s21031_s10 + $0x18] sm:$0xff]  ;;  %s21056_s10 = sld [smem:[#allocation99_spill]] }
 0xa54   :  { %v2598_v28 = vsub.f32 %v2590_v11, %v2594_v26  ;;  %v16565_v11 = vpack.c.bf16 %v2837_v10, %v2836_v8 }
 0xa55   :  { %v2602_v30 = vmul.f32 1.442695, %v2599_v25 }
 0xa56   :  { %v2600_v31 = vmul.f32 1.442695, %v2598_v28  ;;  %16566 = vmatprep.subr.bf16.mxu1 %v16565_v11  ;;  %v2980_v28 = vld [vmem:[%s21032_s9] sm:$0xff] }
 0xa57   :  { %16568 = vmatpush3.bf16.msra.mxu1 %v16565_v11 }
 0xa58   :  { %17509 = vpow2.f32 %v2600_v31 }
 0xa59   :  { %17511 = vpow2.f32 %v2602_v30  ;;  %v2981_v30 = vld [vmem:[%s21032_s9 + $0x8] sm:$0xff] }
 0xa5a   :  { %v16569_v31 = vpack.c.bf16 %v2981_v30, %v2980_v28 }
 0xa62   :  { %v17510_v32 = vpop.eup %17509 }
 0xa63   :  { %15446 = vmatprep.mubr.msk.f32.mxu0 %vm1230_vm3, %v17510_v32  ;;  %v2604_v33 = vsel %vm1230_vm3, %v17510_v32, 0.0  ;;  %v17512_v34 = vpop.eup %17511  ;;  %v2982_v32 = vld [vmem:[%s21032_s9 + $0x10] sm:$0xff] }
 0xa64   :  { %2605 = vadd.xlane.f32.xlu1 %v2604_v33  ;;  %v2607_v35 = vsel %vm1230_vm3, %v17512_v34, 0.0  ;;  %v2983_v33 = vld [vmem:[%s21032_s9 + $0x18] sm:$0xff] }
 0xa68   :  { %2608 = vadd.xlane.f32.xlu1 %v2607_v35  ;;  %v2984_v35 = vld [vmem:[%s21032_s9 + $0x20] sm:$0xff] }
 0xae8   :  { %v15434_v37 = vpop.f32.mrb[14].mxu0 }
 0xae9   :  { %v2496_v38 = vadd.f32 %v15434_v37, %v14117_v36  ;;  %v2490_v39 = vpop.f32.mrb[15].mxu0 }
 0xaea   :  { %v2491_v40 = vadd.f32 %v14117_v36, %v2490_v39  ;;  %v2985_v36 = vld [vmem:[%s21032_s9 + $0x28] sm:$0xff]  ;;  %v2987_v39 = vld [vmem:[%s21032_s9 + $0x38] sm:$0xff] }
 0xaeb   :  { %v16577_v37 = vpack.c.bf16 %v2985_v36, %v2984_v35  ;;  %v14134_v35 = vld [vmem:[#allocation41] ss:$0 sm:$0xff] }
 0xaec   :  { %v16557_v42 = vpack.c.bf16 %v2496_v38, %v2491_v40  ;;  %v2986_v38 = vld [vmem:[%s21032_s9 + $0x30] sm:$0xff]  ;;  %s21057_s9 = sld [smem:[#allocation107_spill]] }
 0xaed   :  { %v16581_v40 = vpack.c.bf16 %v2987_v39, %v2986_v38 }
 0xaee   :  { %16558 = vmatprep.subr.bf16.mxu0 %v16557_v42 }
 0xaef   :  { %16560 = vmatpush3.bf16.msra.mxu0 %v16557_v42  ;;  %v14131_v42 = vld [vmem:[#allocation40] ss:$0 sm:$0xff] }
 0xaf0   :  { %15449 = vmatprep.subr.mxu0 %v965_v41 }
 0xaf1   :  { %v2606_v43 = vpop.xlane.xlu1 %2605 }
 0xaf2   :  { %15447 = vmatmul.mubr.msk.f32.vlgmr.msra.gmra.mrb[16].mxu0 %vm1230_vm3, %v17512_v34  ;;  %17513 = vrcp.f32 %v2606_v43  ;;  %v16573_v34 = vpack.c.bf16 %v2983_v33, %v2982_v32 }
 0xaf3   :  { %15450 = vmatpush3.msra.mxu0 %v965_v41 }
 0xaf4   :  { %16570 = vmatprep.subr.bf16.mxu0 %v16569_v31 }
 0xaf5   :  { %v2609_v45 = vpop.xlane.xlu1 %2608 }
 0xaf6   :  { %17515 = vrcp.f32 %v2609_v45 }
 0xafc   :  { %v17514_v48 = vpop.eup %17513 }
 0xb00   :  { %v17516_v50 = vpop.eup %17515 }
 0xbc5   :  { %v15448_v46 = vpop.f32.mrb[16].mxu0 }
 0xbc6   :  { %v2682_v49 = vpop.f32.mrb[17].mxu0  ;;  %v2694_v52 = vmul.f32 %v17516_v50, %v15448_v46 }
 0xbc7   :  { %v2693_v51 = vmul.f32 %v17514_v48, %v2682_v49 }
 0xbc9   :  { %15451 = vmatprep.mubr.msk.f32.mxu0 %vm1138_vm1, %v2693_v51 }
 0xbca   :  { %15452 = vmatmul.mubr.msk.f32.vlgmr.msra.gmra.mrb[8].mxu0 %vm1138_vm1, %v2694_v52 }
 0xbcb   :  { %16572 = vmatpush3.bf16.msra.mxu0 %v16569_v31 }
 0xbcc   :  { %16574 = vmatprep.subr.bf16.mxu0 %v16573_v34 }
 0xbcf   :  { %16576 = vmatpush3.bf16.msra.mxu0 %v16573_v34 }
 0xbd0   :  { %16578 = vmatprep.subr.bf16.mxu0 %v16577_v37 }
 0xbd3   :  { %16580 = vmatpush3.bf16.msra.mxu0 %v16577_v37 }
 0xbd4   :  { %16582 = vmatprep.subr.bf16.mxu0 %v16581_v40 }
 0xbd7   :  { %16584 = vmatpush3.bf16.msra.mxu0 %v16581_v40 }
 0xc9d   :  { %v15453_v54 = vpop.f32.mrb[8].mxu0 }
 0xc9e   :  { %v2767_v29 = vpop.f32.mrb[9].mxu0  ;;  %v2786_v55 = vadd.f32 %v15453_v54, %v14128_v53 }
 0xc9f   :  { %v2785_v56 = vadd.f32 %v14128_v53, %v2767_v29 }
 0xca0   :  { %v2788_v59 = vadd.f32 %v2786_v55, %v19582_v12 }
 0xca1   :  { %v2787_v57 = vadd.f32 %v2785_v56, %v19571_v5 }
 0xca2   :  { %v2792_v60 = vsel %vm880_vm0, %v2788_v59, 0.0 }
 0xca3   :  { %v2789_v58 = vsel %vm880_vm0, %v2787_v57, 0.0 }
 0xca4   :  { %2790 = vadd.xlane.f32.xlu1 %v2789_v58 }
 0xca8   :  { %2793 = vadd.xlane.f32.xlu1 %v2792_v60 }
 0xd31   :  { %v2791_v61 = vpop.xlane.xlu1 %2790 }
 0xd32   :  { %v2796_v62 = vmul.f32 0.03125, %v2791_v61 }
 0xd34   :  { %v2798_v63 = vsub.f32 %v2787_v57, %v2796_v62 }
 0xd35   :  { %v2794_v0 = vpop.xlane.xlu1 %2793 }
 0xd36   :  { %v2797_v1 = vmul.f32 0.03125, %v2794_v0  ;;  %v2800_v2 = vmul.f32 %v2798_v63, %v2798_v63 }
 0xd38   :  { %v2799_v3 = vsub.f32 %v2788_v59, %v2797_v1  ;;  %v2802_v5 = vsel %vm880_vm0, %v2800_v2, 0.0 }
 0xd39   :  { %2803 = vadd.xlane.f32.xlu1 %v2802_v5 }
 0xd3a   :  { %v2801_v4 = vmul.f32 %v2799_v3, %v2799_v3 }
 0xd3c   :  { %v2805_v12 = vsel %vm880_vm0, %v2801_v4, 0.0 }
 0xd3d   :  { %2806 = vadd.xlane.f32.xlu1 %v2805_v12 }
 0xdc6   :  { %v2804_v13 = vpop.xlane.xlu1 %2803 }
 0xdc7   :  { %v2808_v14 = vmul.f32 0.03125, %v2804_v13 }
 0xdc9   :  { %v2810_v15 = vadd.f32 1e-05, %v2808_v14 }
 0xdca   :  { %v2807_v16 = vpop.xlane.xlu1 %2806 }
 0xdcb   :  { %17517 = vrsqrt.f32 %v2810_v15  ;;  %v2809_v17 = vmul.f32 0.03125, %v2807_v16 }
 0xdcd   :  { %v2811_v18 = vadd.f32 1e-05, %v2809_v17 }
 0xdcf   :  { %17519 = vrsqrt.f32 %v2811_v18 }
 0xdd5   :  { %v17518_v19 = vpop.eup %17517 }
 0xdd6   :  { %v2814_v21 = vmul.f32 %v17518_v19, %v2798_v63 }
 0xdd8   :  { %v2823_v23 = vmul.f32 %v14129_v20, %v2814_v21 }
 0xdd9   :  { %v17520_v44 = vpop.eup %17519 }
 0xdda   :  { %v2815_v24 = vmul.f32 %v17520_v44, %v2799_v3  ;;  %v19756_v47 = vadd.f32 %v14130_v22, %v2823_v23 }
 0xddc   :  { %v2824_v25 = vmul.f32 %v14129_v20, %v2815_v24  ;;  %15462 = vmatprep.mubr.msk.f32.mxu1 %vm880_vm0, %v19756_v47 }
 0xdde   :  { %v19760_v26 = vadd.f32 %v14130_v22, %v2824_v25 }
 0xde0   :  { %15463 = vmatmul.mubr.msk.f32.vlgmr.msra.gmra.mrb[18].mxu1 %vm880_vm0, %v19760_v26 }
 0xeb3   :  { %v15464_v41 = vpop.f32.mrb[18].mxu1 }
 0xeb4   :  { %v2923_v43 = vadd.f32 %v15464_v41, %v14131_v42  ;;  %v2917_v45 = vpop.f32.mrb[19].mxu1 }
 0xeb5   :  { %v2918_v46 = vadd.f32 %v14131_v42, %v2917_v45 }
 0xeb6   :  { %v2927_v48 = vmul.f32 0.70710677, %v2923_v43  ;;  %v2975_v32 = vmul.f32 0.5, %v2923_v43 }
 0xeb7   :  { %v2926_v49 = vmul.f32 0.70710677, %v2918_v46  ;;  %v2974_v30 = vmul.f32 0.5, %v2918_v46 }
 0xeb8   :  { %v2929_v50 = vand.u32 2147483647, %v2927_v48  ;;  %vm2969_vm4 = vcmp.lt.f32.partialorder %v2927_v48, 0.0 }
 0xeb9   :  { %v2928_v51 = vand.u32 2147483647, %v2926_v49  ;;  %vm2968_vm5 = vcmp.lt.f32.partialorder %v2926_v49, 0.0 }
 0xeba   :  { %v2931_v52 = vmul.f32 0.3275911, %v2929_v50  ;;  %v2957_v55 = vsub.f32 0.0, %v2929_v50 }
 0xebb   :  { %v2930_v53 = vmul.f32 0.3275911, %v2928_v51  ;;  %v2956_v56 = vsub.f32 0.0, %v2928_v51 }
 0xebc   :  { %v2933_v54 = vadd.f32 1.0, %v2931_v52  ;;  %v2959_v58 = vmul.f32 %v2957_v55, %v2929_v50 }
 0xebd   :  { %v2932_v29 = vadd.f32 1.0, %v2930_v53  ;;  %v2958_v61 = vmul.f32 %v2956_v56, %v2928_v51  ;;  %v3305_v56 = vld [vmem:[%s21034_s11] sm:$0xff] }
 0xebe   :  { %17521 = vrcp.f32 %v2933_v54  ;;  %v2962_v0 = vmul.f32 1.442695, %v2959_v58  ;;  %v3123_v54 = vld [vmem:[%s21033_s4] sm:$0xff] }
 0xebf   :  { %17523 = vrcp.f32 %v2932_v29  ;;  %v2960_v3 = vmul.f32 1.442695, %v2958_v61  ;;  %v3124_v29 = vld [vmem:[%s21033_s4 + $0x8] sm:$0xff] }
 0xec0   :  { %17525 = vpow2.f32 %v2962_v0  ;;  %v16585_v55 = vpack.c.bf16 %v3124_v29, %v3123_v54 }
 0xec1   :  { %17527 = vpow2.f32 %v2960_v3 }
 0xec2   :  { %16586 = vmatprep.subr.bf16.mxu1 %v16585_v55 }
 0xec3   :  { %16588 = vmatpush3.bf16.msra.mxu1 %v16585_v55 }
 0xec8   :  { %v17522_v57 = vpop.eup %17521 }
 0xec9   :  { %v17524_v59 = vpop.eup %17523  ;;  %v2939_v60 = vmul.f32 1.0614054, %v17522_v57 }
 0xeca   :  { %v2938_v62 = vmul.f32 1.0614054, %v17524_v59  ;;  %v17526_v16 = vpop.eup %17525 }
 0xecb   :  { %v2941_v63 = vadd.f32 -1.4531521, %v2939_v60  ;;  %v17528_v18 = vpop.eup %17527  ;;  %v3126_v60 = vld [vmem:[%s21033_s4 + $0x18] sm:$0xff] }
 0xecc   :  { %v2940_v1 = vadd.f32 -1.4531521, %v2938_v62  ;;  %v3307_v62 = vld [vmem:[%s21034_s11 + $0x10] sm:$0xff] }
 0xecd   :  { %v2943_v2 = vmul.f32 %v17522_v57, %v2941_v63  ;;  %v3308_v63 = vld [vmem:[%s21034_s11 + $0x18] sm:$0xff] }
 0xece   :  { %v2942_v5 = vmul.f32 %v17524_v59, %v2940_v1  ;;  %v16605_v0 = vpack.c.bf16 %v3308_v63, %v3307_v62  ;;  %v3219_v1 = vld [vmem:[%s21035_s8] sm:$0xff]  ;;  %v19840_v62 = vld [vmem:[%s21028_s27 + $0x8] sm:$0xff] }
 0xecf   :  { %v2945_v4 = vadd.f32 1.4214138, %v2943_v2  ;;  %v3220_v2 = vld [vmem:[%s21035_s8 + $0x8] sm:$0xff] }
 0xed0   :  { %v2944_v12 = vadd.f32 1.4214138, %v2942_v5  ;;  %v16593_v3 = vpack.c.bf16 %v3220_v2, %v3219_v1  ;;  %v14182_v2 = vld [vmem:[%s21035_s8 + $0x50] sm:$0xff] }
 0xed1   :  { %v2947_v6 = vmul.f32 %v17522_v57, %v2945_v4 }
 0xed2   :  { %v2946_v7 = vmul.f32 %v17524_v59, %v2944_v12 }
 0xed3   :  { %v2949_v8 = vadd.f32 -0.28449672, %v2947_v6 }
 0xed4   :  { %v2948_v9 = vadd.f32 -0.28449672, %v2946_v7 }
 0xed5   :  { %v2951_v10 = vmul.f32 %v17522_v57, %v2949_v8 }
 0xed6   :  { %v2950_v11 = vmul.f32 %v17524_v59, %v2948_v9 }
 0xed7   :  { %v2953_v13 = vadd.f32 0.2548296, %v2951_v10  ;;  %v14137_v10 = vld [vmem:[#allocation47] ss:$0 sm:$0xff] }
 0xed8   :  { %v2952_v14 = vadd.f32 0.2548296, %v2950_v11 }
 0xed9   :  { %v2955_v15 = vmul.f32 %v17522_v57, %v2953_v13  ;;  %v3306_v57 = vld [vmem:[%s21034_s11 + $0x8] sm:$0xff]  ;;  %v14138_v13 = vld [vmem:[#allocation46] ss:$0 sm:$0xff] }
 0xeda   :  { %v2954_v17 = vmul.f32 %v17524_v59, %v2952_v14  ;;  %v16601_v58 = vpack.c.bf16 %v3306_v57, %v3305_v56  ;;  %v3125_v59 = vld [vmem:[%s21033_s4 + $0x10] sm:$0xff]  ;;  %s21058_s4 = sld [smem:[#allocation108_spill]] }
 0xedb   :  { %v2965_v19 = vmul.f32 %v17526_v16, %v2955_v15  ;;  %v16589_v61 = vpack.c.bf16 %v3126_v60, %v3125_v59  ;;  %v19835_v59 = vld [vmem:[%s21028_s27] sm:$0xff] }
 0xedc   :  { %v2964_v20 = vmul.f32 %v17528_v18, %v2954_v17  ;;  %16602 = vmatprep.subr.bf16.mxu0 %v16601_v58  ;;  %v3221_v18 = vld [vmem:[%s21035_s8 + $0x10] sm:$0xff] }
 0xedd   :  { %v2967_v21 = vsub.f32 1.0, %v2965_v19  ;;  %16590 = vmatprep.subr.bf16.mxu1 %v16589_v61  ;;  %v3222_v19 = vld [vmem:[%s21035_s8 + $0x18] sm:$0xff] }
 0xede   :  { %v2966_v22 = vsub.f32 1.0, %v2964_v20  ;;  %16592 = vmatpush3.bf16.msra.mxu1 %v16589_v61 }
 0xedf   :  { %v2971_v23 = vsub.f32 0.0, %v2967_v21  ;;  %16594 = vmatprep.subr.bf16.mxu1 %v16593_v3 }
 0xee0   :  { %v2970_v44 = vsub.f32 0.0, %v2966_v22 }
 0xee1   :  { %v2973_v24 = vsel %vm2969_vm4, %v2971_v23, %v2967_v21  ;;  %v14139_v23 = vld [vmem:[#allocation61] ss:$0 sm:$0xff] }
 0xee2   :  { %v2977_v25 = vadd.f32 1.0, %v2973_v24  ;;  %v2972_v28 = vsel %vm2968_vm5, %v2970_v44, %v2966_v22  ;;  %v16597_v22 = vpack.c.bf16 %v3222_v19, %v3221_v18  ;;  %v14145_v44 = vld [vmem:[%s21036_s21] ss:$0 sm:$0xff] }
 0xee3   :  { %v2976_v31 = vadd.f32 1.0, %v2972_v28 }
 0xee4   :  { %v2979_v34 = vmul.f32 %v2977_v25, %v2975_v32 }
 0xee5   :  { %v2978_v33 = vmul.f32 %v2976_v31, %v2974_v30 }
 0xee7   :  { %15481 = vmatprep.mubr.msk.f32.mxu0 %vm2995_vm6, %v2978_v33 }
 0xee8   :  { %15482 = vmatmul.mubr.msk.f32.vlgmr.msra.gmra.mrb[18].mxu0 %vm2995_vm6, %v2979_v34 }
 0xee9   :  { %16604 = vmatpush3.bf16.msra.mxu0 %v16601_v58 }
 0xeea   :  { %16606 = vmatprep.subr.bf16.mxu0 %v16605_v0 }
 0xeed   :  { %16608 = vmatpush3.bf16.msra.mxu0 %v16605_v0  ;;  %v14159_v0 = vld [vmem:[%s21037_s15 + $0x1] ss:$0 sm:$0xff] }
 0xfbb   :  { %v15483_v36 = vpop.f32.mrb[18].mxu0 }
 0xfbc   :  { %v3068_v37 = vpop.f32.mrb[19].mxu0  ;;  %v3074_v38 = vadd.f32 %v15483_v36, %v14134_v35  ;;  %v14155_v36 = vld [vmem:[%s21035_s8 + $0x28] sm:$0xff] }
 0xfbd   :  { %v3069_v39 = vadd.f32 %v14134_v35, %v3068_v37  ;;  %v14154_v35 = vld [vmem:[%s21035_s8 + $0x20] sm:$0xff] }
 0xfbe   :  { %v3078_v41 = vadd.f32 %v3074_v38, %v19760_v26 }
 0xfbf   :  { %v3077_v40 = vadd.f32 %v3069_v39, %v19756_v47 }
 0xfc0   :  { %v3082_v43 = vsel %vm880_vm0, %v3078_v41, 0.0 }
 0xfc1   :  { %v3079_v42 = vsel %vm880_vm0, %v3077_v40, 0.0 }
 0xfc2   :  { %3080 = vadd.xlane.f32.xlu1 %v3079_v42  ;;  %v14142_v42 = vld [vmem:[%s21037_s15] ss:$0 sm:$0xff] }
 0xfc6   :  { %3083 = vadd.xlane.f32.xlu1 %v3082_v43 }
0x104f   :  { %v3081_v45 = vpop.xlane.xlu1 %3080 }
0x1050   :  { %v3085_v46 = vmul.f32 0.03125, %v3081_v45 }
0x1052   :  { %v3087_v48 = vsub.f32 %v3077_v40, %v3085_v46  ;;  %v16619_v40 = vpack.c.bf16 %v14155_v36, %v14154_v35  ;;  %v14156_v46 = vld [vmem:[%s21035_s8 + $0x30] sm:$0xff] }
0x1053   :  { %v3084_v49 = vpop.xlane.xlu1 %3083 }
0x1054   :  { %v3086_v50 = vmul.f32 0.03125, %v3084_v49  ;;  %v3089_v51 = vmul.f32 %v3087_v48, %v3087_v48 }
0x1056   :  { %v3088_v47 = vsub.f32 %v3078_v41, %v3086_v50  ;;  %v3091_v52 = vsel %vm880_vm0, %v3089_v51, 0.0 }
0x1057   :  { %3092 = vadd.xlane.f32.xlu0 %v3091_v52  ;;  %v14181_v52 = vld [vmem:[%s21035_s8 + $0x48] sm:$0xff] }
0x1058   :  { %v3090_v26 = vmul.f32 %v3088_v47, %v3088_v47 }
0x105a   :  { %v3094_v53 = vsel %vm880_vm0, %v3090_v26, 0.0 }
0x105b   :  { %3095 = vadd.xlane.f32.xlu1 %v3094_v53 }
0x10e4   :  { %v3093_v5 = vpop.xlane.xlu0 %3092 }
0x10e5   :  { %v3097_v4 = vmul.f32 0.03125, %v3093_v5 }
0x10e7   :  { %v3099_v12 = vadd.f32 1e-05, %v3097_v4 }
0x10e8   :  { %v3096_v6 = vpop.xlane.xlu1 %3095 }
0x10e9   :  { %17529 = vrsqrt.f32 %v3099_v12  ;;  %v3098_v7 = vmul.f32 0.03125, %v3096_v6 }
0x10eb   :  { %v3100_v8 = vadd.f32 1e-05, %v3098_v7 }
0x10ed   :  { %17531 = vrsqrt.f32 %v3100_v8  ;;  %v14162_v8 = vld [vmem:[%s21034_s11 + $0x20] sm:$0xff] }
0x10f3   :  { %v17530_v9 = vpop.eup %17529 }
0x10f4   :  { %v3103_v11 = vmul.f32 %v17530_v9, %v3087_v48  ;;  %v14157_v48 = vld [vmem:[%s21035_s8 + $0x38] sm:$0xff]  ;;  %v14163_v9 = vld [vmem:[%s21034_s11 + $0x28] sm:$0xff] }
0x10f5   :  { %v16623_v50 = vpack.c.bf16 %v14157_v48, %v14156_v46 }
0x10f6   :  { %v3112_v14 = vmul.f32 %v14137_v10, %v3103_v11 }
0x10f7   :  { %v17532_v15 = vpop.eup %17531 }
0x10f8   :  { %v19790_v16 = vadd.f32 %v14138_v13, %v3112_v14  ;;  %v3104_v17 = vmul.f32 %v17532_v15, %v3088_v47  ;;  %v14180_v47 = vld [vmem:[%s21035_s8 + $0x40] sm:$0xff] }
0x10f9   :  { %v16645_v29 = vpack.c.bf16 %v14181_v52, %v14180_v47  ;;  %v14204_v47 = vld [vmem:[%s21035_s8 + $0x60] sm:$0xff]  ;;  %v14205_v52 = vld [vmem:[%s21035_s8 + $0x68] sm:$0xff] }
0x10fa   :  { %v3113_v20 = vmul.f32 %v14137_v10, %v3104_v17  ;;  %15492 = vmatprep.mubr.msk.f32.mxu1 %vm880_vm0, %v19790_v16  ;;  %15514 = vmatprep.mubr.msk.f32.mxu0 %vm880_vm0, %v19790_v16  ;;  %v16627_v10 = vpack.c.bf16 %v14163_v9, %v14162_v8  ;;  %v3215_v8 = vld [vmem:[%s21038_s16] sm:$0xff] }
0x10fc   :  { %v19798_v21 = vadd.f32 %v14138_v13, %v3113_v20  ;;  %v14164_v20 = vld [vmem:[%s21034_s11 + $0x30] sm:$0xff] }
0x10fe   :  { %15493 = vmatmul.mubr.msk.f32.vlgmr.msra.gmra.mrb[20].mxu1 %vm880_vm0, %v19798_v21  ;;  %15515 = vmatmul.mubr.msk.f32.vlgmr.msra.gmra.mrb[20].mxu0 %vm880_vm0, %v19798_v21 }
0x10ff   :  { %16596 = vmatpush3.bf16.msra.mxu1 %v16593_v3  ;;  %15503 = vmatprep.mubr.msk.f32.mxu1 %vm880_vm0, %v19790_v16  ;;  %v14183_v3 = vld [vmem:[%s21035_s8 + $0x58] sm:$0xff] }
0x1100   :  { %16598 = vmatprep.subr.bf16.mxu1 %v16597_v22  ;;  %v16649_v7 = vpack.c.bf16 %v14183_v3, %v14182_v2  ;;  %v14206_v2 = vld [vmem:[%s21035_s8 + $0x70] sm:$0xff]  ;;  %v14207_v3 = vld [vmem:[%s21035_s8 + $0x78] sm:$0xff]  ;;  %s21060_s8 = sld [smem:[#allocation138_spill]] }
0x1103   :  { %16600 = vmatpush3.bf16.msra.mxu1 %v16597_v22  ;;  %v14165_v22 = vld [vmem:[%s21034_s11 + $0x38] sm:$0xff] }
0x1106   :  { %15504 = vmatmul.mubr.msk.f32.vlgmr.msra.gmra.mrb[22].mxu1 %vm880_vm0, %v19798_v21 }
0x11d1   :  { %v15494_v24 = vpop.f32.mrb[20].mxu1  ;;  %v15516_v25 = vpop.f32.mrb[20].mxu0 }
0x11d2   :  { %v3212_v28 = vadd.f32 %v15494_v24, %v14139_v23  ;;  %v3388_v30 = vadd.f32 %v15516_v25, %v14145_v44  ;;  %v3206_v31 = vpop.f32.mrb[21].mxu1  ;;  %v3382_v32 = vpop.f32.mrb[21].mxu0 }
0x11d3   :  { %v3207_v33 = vadd.f32 %v14139_v23, %v3206_v31  ;;  %v3383_v34 = vadd.f32 %v14145_v44, %v3382_v32  ;;  %v16631_v23 = vpack.c.bf16 %v14165_v22, %v14164_v20  ;;  %v14185_v32 = vld [vmem:[%s21037_s15 + $0x2] ss:$0 sm:$0xff] }
0x11d5   :  { %v16615_v37 = vpack.c.bf16 %v3388_v30, %v3383_v34  ;;  %v19811_v38 = vpack.i.bf16 %v3212_v28, %v3207_v33  ;;  %v16609_v39 = vpack.c.bf16 %v3212_v28, %v3207_v33 }
0x11d7   :  { %16616 = vmatprep.subr.bf16.mxu0 %v16615_v37  ;;  %17411 = vrot.lane.b32.xlu0 %v19811_v38, %s18916_s19 }
0x11d8   :  { %16611 = vmatprep.subr.msk.bf16.mxu1 %vm19598_vm2, %v16609_v39  ;;  %16618 = vmatpush3.bf16.msra.mxu0 %v16615_v37 }
0x11d9   :  { %v15505_v41 = vpop.f32.mrb[22].mxu1  ;;  %16614 = vmatpush3.bf16.xpose.msk.msra.mxu1 %vm19598_vm2, %v16609_v39  ;;  %16628 = vmatprep.subr.bf16.mxu0 %v16627_v10 }
0x11da   :  { %v3296_v43 = vpop.f32.mrb[23].mxu1  ;;  %16620 = vmatprep.subr.bf16.mxu1 %v16619_v40  ;;  %v3302_v49 = vadd.f32 %v15505_v41, %v14142_v42 }
0x11db   :  { %v3297_v45 = vadd.f32 %v14142_v42, %v3296_v43 }
0x11dd   :  { %15521 = vmatprep.mubr.msk.f32.mxu1 %vm1138_vm1, %v3297_v45 }
0x11e0   :  { %15522 = vmatmul.mubr.msk.f32.vlgmr.msra.gmra.mrb[24].mxu1 %vm1138_vm1, %v3302_v49 }
0x11e1   :  { %16622 = vmatpush3.bf16.msra.mxu1 %v16619_v40  ;;  %15539 = vmatprep.mubr.msk.f32.mxu1 %vm880_vm0, %v19790_v16 }
0x11e2   :  { %16624 = vmatprep.subr.bf16.mxu1 %v16623_v50 }
0x11e5   :  { %16626 = vmatpush3.bf16.msra.mxu1 %v16623_v50 }
0x11e8   :  { %15540 = vmatmul.mubr.msk.f32.vlgmr.msra.gmra.mrb[26].mxu1 %vm880_vm0, %v19798_v21 }
0x1249   :  { %v17412_v51 = vpop.permute.xlu0 %17411 }
0x124a   :  { %v17414_v26 = vunpack.i.h.bf16 %v17412_v51  ;;  %v17413_v53 = vunpack.i.l.bf16 %v17412_v51 }
0x124c   :  { %v16635_v54 = vpack.c.bf16 %v17414_v26, %v17413_v53 }
0x124e   :  { %16637 = vmatprep.subr.msk.bf16.mxu1 %vm19598_vm2, %v16635_v54 }
0x124f   :  { %16640 = vmatpush3.bf16.xpose.msk.msra.mxu1 %vm19598_vm2, %v16635_v54 }
0x1250   :  { %16646 = vmatprep.subr.bf16.mxu1 %v16645_v29 }
0x12b3   :  { %v15523_v55 = vpop.f32.mrb[24].mxu1 }
0x12b4   :  { %v3469_v56 = vpop.f32.mrb[25].mxu1  ;;  %v3479_v57 = vmul.f32 0.35355338, %v15523_v55  ;;  %v14167_v55 = vld [vmem:[%s21036_s21 + $0x1] ss:$0 sm:$0xff] }
0x12b5   :  { %v3478_v58 = vmul.f32 0.35355338, %v3469_v56 }
0x12b6   :  { %v3481_v63 = vadd.f32 %v19840_v62, %v3479_v57 }
0x12b7   :  { %v3480_v60 = vadd.f32 %v19835_v59, %v3478_v58 }
0x12b8   :  { %v3485_v12 = vsel %vm1230_vm3, %v3481_v63, -inf }
0x12b9   :  { %v3482_v61 = vsel %vm1230_vm3, %v3480_v60, -inf }
0x12ba   :  { %3483 = vmax.xlane.f32.xlu1 %v3482_v61 }
0x12bb   :  { %v15541_v1 = vpop.f32.mrb[26].mxu1 }
0x12bc   :  { %v3664_v5 = vpop.f32.mrb[27].mxu1  ;;  %v3670_v6 = vadd.f32 %v15541_v1, %v14159_v0 }
0x12bd   :  { %v3665_v4 = vadd.f32 %v14159_v0, %v3664_v5 }
0x12be   :  { %3486 = vmax.xlane.f32.xlu1 %v3485_v12  ;;  %v16675_v12 = vpack.c.bf16 %v14207_v3, %v14206_v2 }
0x12bf   :  { %15557 = vmatprep.mubr.msk.f32.mxu1 %vm1138_vm1, %v3665_v4 }
0x12c0   :  { %15558 = vmatmul.mubr.msk.f32.vlgmr.msra.gmra.mrb[28].mxu1 %vm1138_vm1, %v3670_v6 }
0x12c1   :  { %16648 = vmatpush3.bf16.msra.mxu1 %v16645_v29  ;;  %15585 = vmatprep.mubr.msk.f32.mxu1 %vm880_vm0, %v19790_v16  ;;  %v16671_v29 = vpack.c.bf16 %v14205_v52, %v14204_v47 }
0x12c2   :  { %16650 = vmatprep.subr.bf16.mxu1 %v16649_v7 }
0x12c5   :  { %16652 = vmatpush3.bf16.msra.mxu1 %v16649_v7  ;;  %v3216_v7 = vld [vmem:[%s21038_s16 + $0x8] sm:$0xff] }
0x12c8   :  { %15586 = vmatmul.mubr.msk.f32.vlgmr.msra.gmra.mrb[30].mxu1 %vm880_vm0, %v19798_v21 }
0x1347   :  { %v3484_v11 = vpop.xlane.xlu1 %3483 }
0x1348   :  { %v3488_v13 = vsub.f32 %v3480_v60, %v3484_v11 }
0x134a   :  { %v3490_v14 = vmul.f32 1.442695, %v3488_v13 }
0x134b   :  { %v3487_v15 = vpop.xlane.xlu1 %3486 }
0x134c   :  { %17533 = vpow2.f32 %v3490_v14  ;;  %v3489_v17 = vsub.f32 %v3481_v63, %v3487_v15 }
0x134e   :  { %v3492_v18 = vmul.f32 1.442695, %v3489_v17  ;;  %v14188_v17 = vld [vmem:[%s21034_s11 + $0x40] sm:$0xff] }
0x1350   :  { %17535 = vpow2.f32 %v3492_v18 }
0x1356   :  { %v17534_v19 = vpop.eup %17533 }
0x1357   :  { %15528 = vmatprep.mubr.msk.f32.mxu0 %vm1230_vm3, %v17534_v19  ;;  %v3494_v5 = vsel %vm1230_vm3, %v17534_v19, 0.0 }
0x135a   :  { %v19858_v44 = vpop.eup %17535 }
0x135b   :  { %15529 = vmatmul.mubr.msk.f32.vlgmr.msra.gmra.mrb[22].mxu0 %vm1230_vm3, %v19858_v44  ;;  %v3497_v6 = vsel %vm1230_vm3, %v19858_v44, 0.0 }
0x135c   :  { %16630 = vmatpush3.bf16.msra.mxu0 %v16627_v10  ;;  %15550 = vmatprep.mubr.msk.f32.mxu0 %vm880_vm0, %v19790_v16 }
0x135d   :  { %16632 = vmatprep.subr.bf16.mxu0 %v16631_v23 }
0x1360   :  { %16634 = vmatpush3.bf16.msra.mxu0 %v16631_v23  ;;  %v14189_v23 = vld [vmem:[%s21034_s11 + $0x48] sm:$0xff] }
0x1363   :  { %15551 = vmatmul.mubr.msk.f32.vlgmr.msra.gmra.mrb[24].mxu0 %vm880_vm0, %v19798_v21 }
0x1393   :  { %v15559_v24 = vpop.f32.mrb[28].mxu1 }
0x1394   :  { %v3841_v25 = vpop.f32.mrb[29].mxu1  ;;  %v3851_v28 = vmul.f32 0.35355338, %v15559_v24 }
0x1395   :  { %v3850_v30 = vmul.f32 0.35355338, %v3841_v25 }
0x1396   :  { %v3853_v34 = vadd.f32 %v19840_v62, %v3851_v28 }
0x1397   :  { %v3852_v31 = vadd.f32 %v19835_v59, %v3850_v30 }
0x1398   :  { %v3857_v40 = vsel %vm1230_vm3, %v3853_v34, -inf }
0x1399   :  { %v3854_v33 = vsel %vm1230_vm3, %v3852_v31, -inf }
0x139a   :  { %3855 = vmax.xlane.f32.xlu1 %v3854_v33 }
0x139b   :  { %v15587_v35 = vpop.f32.mrb[30].mxu1 }
0x139c   :  { %v4204_v36 = vadd.f32 %v15587_v35, %v14185_v32  ;;  %v4198_v37 = vpop.f32.mrb[31].mxu1 }
0x139d   :  { %v4199_v39 = vadd.f32 %v14185_v32, %v4198_v37  ;;  %v16653_v32 = vpack.c.bf16 %v14189_v23, %v14188_v17 }
0x139e   :  { %3858 = vmax.xlane.f32.xlu1 %v3857_v40 }
0x139f   :  { %15603 = vmatprep.mubr.msk.f32.mxu1 %vm1138_vm1, %v4199_v39 }
0x13af   :  { %17416 = vrot.lane.b32.xlu1 %v19811_v38, %s18917_s3 }
0x1427   :  { %v3856_v42 = vpop.xlane.xlu1 %3855 }
0x1428   :  { %v3860_v41 = vsub.f32 %v3852_v31, %v3856_v42 }
0x142a   :  { %v3862_v43 = vmul.f32 1.442695, %v3860_v41 }
0x142b   :  { %v3859_v45 = vpop.xlane.xlu1 %3858 }
0x142c   :  { %17537 = vpow2.f32 %v3862_v43  ;;  %v3861_v46 = vsub.f32 %v3853_v34, %v3859_v45  ;;  %v14209_v34 = vld [vmem:[%s21037_s15 + $0x3] ss:$0 sm:$0xff]  ;;  %v14190_v45 = vld [vmem:[%s21034_s11 + $0x50] sm:$0xff]  ;;  %s21062_s15 = sld [smem:[#allocation134_spill]] }
0x142e   :  { %v3864_v48 = vmul.f32 1.442695, %v3861_v46  ;;  %v19874_v49 = vpop.f32.mrb[22].mxu0  ;;  %v14191_v46 = vld [vmem:[%s21034_s11 + $0x58] sm:$0xff] }
0x142f   :  { %v19876_v50 = vpop.f32.mrb[23].mxu0  ;;  %v17417_v51 = vpop.permute.xlu1 %17416 }
0x1430   :  { %17539 = vpow2.f32 %v3864_v48  ;;  %v17419_v26 = vunpack.i.h.bf16 %v17417_v51  ;;  %v17418_v53 = vunpack.i.l.bf16 %v17417_v51 }
0x1432   :  { %v16661_v54 = vpack.c.bf16 %v17419_v26, %v17418_v53 }
0x1434   :  { %16663 = vmatprep.subr.msk.bf16.mxu1 %vm19598_vm2, %v16661_v54 }
0x1435   :  { %16666 = vmatpush3.bf16.xpose.msk.msra.mxu1 %vm19598_vm2, %v16661_v54 }
0x1436   :  { %v17538_v56 = vpop.eup %17537  ;;  %v15552_v57 = vpop.f32.mrb[24].mxu0  ;;  %16672 = vmatprep.subr.bf16.mxu1 %v16671_v29 }
0x1437   :  { %v3758_v58 = vadd.f32 %v15552_v57, %v14167_v55  ;;  %v3752_v60 = vpop.f32.mrb[25].mxu0  ;;  %15564 = vmatprep.mubr.msk.f32.mxu0 %vm1230_vm3, %v17538_v56  ;;  %v3866_v61 = vsel %vm1230_vm3, %v17538_v56, 0.0 }
0x1438   :  { %v3753_v63 = vadd.f32 %v14167_v55, %v3752_v60  ;;  %3867 = vadd.xlane.f32.xlu0 %v3866_v61  ;;  %v14193_v61 = vld [vmem:[%s21036_s21 + $0x2] ss:$0 sm:$0xff] }
0x143a   :  { %v17540_v0 = vpop.eup %17539  ;;  %v16641_v1 = vpack.c.bf16 %v3758_v58, %v3753_v63 }
0x143b   :  { %v3869_v4 = vsel %vm1230_vm3, %v17540_v0, 0.0 }
0x143c   :  { %16642 = vmatprep.subr.bf16.mxu0 %v16641_v1  ;;  %3495 = vadd.xlane.f32.xlu0 %v3494_v5  ;;  %v3217_v5 = vld [vmem:[%s21038_s16 + $0x10] sm:$0xff] }
0x143d   :  { %16644 = vmatpush3.bf16.msra.mxu0 %v16641_v1  ;;  %3870 = vadd.xlane.f32.xlu1 %v3869_v4  ;;  %v14212_v4 = vld [vmem:[%s21034_s11 + $0x60] sm:$0xff] }
0x143e   :  { %15604 = vmatmul.mubr.msk.f32.vlgmr.msra.gmra.mrb[32].mxu1 %vm1138_vm1, %v4204_v36  ;;  %15567 = vmatprep.subr.mxu0 %v3216_v7 }
0x143f   :  { %16674 = vmatpush3.bf16.msra.mxu1 %v16671_v29  ;;  %15626 = vmatprep.mubr.msk.f32.mxu1 %vm880_vm0, %v19790_v16 }
0x1440   :  { %15565 = vmatmul.mubr.msk.f32.vlgmr.msra.gmra.mrb[26].mxu0 %vm1230_vm3, %v17540_v0  ;;  %3498 = vadd.xlane.f32.xlu0 %v3497_v6 }
0x1441   :  { %16676 = vmatprep.subr.bf16.mxu1 %v16675_v12  ;;  %15568 = vmatpush3.msra.mxu0 %v3216_v7 }
0x1442   :  { %15572 = vmatprep.subr.mxu0 %v3215_v8 }
0x1443   :  { %16678 = vmatpush3.bf16.msra.mxu1 %v16675_v12  ;;  %v14213_v12 = vld [vmem:[%s21034_s11 + $0x68] sm:$0xff] }
0x1444   :  { %v16679_v6 = vpack.c.bf16 %v14213_v12, %v14212_v4 }
0x1446   :  { %15627 = vmatmul.mubr.msk.f32.vlgmr.msra.gmra.mrb[34].mxu1 %vm880_vm0, %v19798_v21 }
0x14c5   :  { %v3868_v9 = vpop.xlane.xlu0 %3867 }
0x14c6   :  { %17541 = vrcp.f32 %v3868_v9 }
0x14c9   :  { %v3496_v10 = vpop.xlane.xlu0 %3495 }
0x14ca   :  { %v3871_v11 = vpop.xlane.xlu1 %3870  ;;  %17543 = vrcp.f32 %v3496_v10 }
0x14cb   :  { %17545 = vrcp.f32 %v3871_v11 }
0x14cd   :  { %v3499_v13 = vpop.xlane.xlu0 %3498 }
0x14ce   :  { %17547 = vrcp.f32 %v3499_v13 }
0x14d0   :  { %v17542_v18 = vpop.eup %17541 }
0x14d4   :  { %v17544_v44 = vpop.eup %17543 }
0x14d5   :  { %v17546_v25 = vpop.eup %17545  ;;  %v3583_v35 = vmul.f32 %v17544_v44, %v19876_v50  ;;  %v16657_v50 = vpack.c.bf16 %v14191_v46, %v14190_v45 }
0x14d8   :  { %v17548_v42 = vpop.eup %17547 }
0x14d9   :  { %v3584_v48 = vmul.f32 %v17548_v42, %v19874_v49 }
0x1511   :  { %v15605_v14 = vpop.f32.mrb[32].mxu1 }
0x1512   :  { %v4375_v15 = vpop.f32.mrb[33].mxu1  ;;  %v4385_v19 = vmul.f32 0.35355338, %v15605_v14 }
0x1513   :  { %v4384_v20 = vmul.f32 0.35355338, %v4375_v15  ;;  %v15566_v22 = vpop.f32.mrb[26].mxu0 }
0x1514   :  { %v3944_v24 = vpop.f32.mrb[27].mxu0  ;;  %v3956_v31 = vmul.f32 %v17546_v25, %v15566_v22  ;;  %v4387_v36 = vadd.f32 %v19840_v62, %v4385_v19  ;;  %v14215_v22 = vld [vmem:[%s21034_s11 + $0x78] sm:$0xff] }
0x1515   :  { %v3955_v28 = vmul.f32 %v17542_v18, %v3944_v24  ;;  %v4386_v30 = vadd.f32 %v19835_v59, %v4384_v20  ;;  %v14214_v20 = vld [vmem:[%s21034_s11 + $0x70] sm:$0xff]  ;;  %s21059_s11 = sld [smem:[#allocation135_spill]] }
0x1516   :  { %v4391_v43 = vsel %vm1230_vm3, %v4387_v36, -inf }
0x1517   :  { %15569 = vmatprep.mubr.msk.f32.mxu0 %vm1138_vm1, %v3955_v28  ;;  %v4388_v33 = vsel %vm1230_vm3, %v4386_v30, -inf  ;;  %v16683_v28 = vpack.c.bf16 %v14215_v22, %v14214_v20 }
0x1518   :  { %4389 = vmax.xlane.f32.xlu0 %v4388_v33  ;;  %15570 = vmatmul.mubr.msk.f32.vlgmr.msra.gmra.mrb[28].mxu0 %vm1138_vm1, %v3956_v31 }
0x1519   :  { %v15628_v37 = vpop.f32.mrb[34].mxu1  ;;  %15573 = vmatpush3.msra.mxu0 %v3215_v8  ;;  %15574 = vmatprep.mubr.msk.f32.mxu0 %vm1138_vm1, %v3583_v35 }
0x151a   :  { %v4659_v39 = vadd.f32 %v15628_v37, %v14209_v34  ;;  %v4653_v40 = vpop.f32.mrb[35].mxu1  ;;  %16654 = vmatprep.subr.bf16.mxu0 %v16653_v32 }
0x151b   :  { %v4654_v41 = vadd.f32 %v14209_v34, %v4653_v40  ;;  %v14217_v40 = vld [vmem:[%s21036_s21 + $0x3] ss:$0 sm:$0xff]  ;;  %s21061_s21 = sld [smem:[#allocation137_spill]] }
0x151c   :  { %4392 = vmax.xlane.f32.xlu0 %v4391_v43 }
0x151d   :  { %15644 = vmatprep.mubr.msk.f32.mxu1 %vm1138_vm1, %v4654_v41 }
0x1520   :  { %15575 = vmatmul.mubr.msk.f32.vlgmr.msra.gmra.mrb[28].mxu0 %vm1138_vm1, %v3584_v48  ;;  %v3218_v48 = vld [vmem:[%s21038_s16 + $0x18] sm:$0xff]  ;;  %s21063_s16 = sld [smem:[#allocation133_spill]] }
0x1521   :  { %16656 = vmatpush3.bf16.msra.mxu0 %v16653_v32  ;;  %15596 = vmatprep.mubr.msk.f32.mxu0 %vm880_vm0, %v19790_v16 }
0x1522   :  { %16658 = vmatprep.subr.bf16.mxu0 %v16657_v50 }
0x1525   :  { %16660 = vmatpush3.bf16.msra.mxu0 %v16657_v50 }
0x1528   :  { %15597 = vmatmul.mubr.msk.f32.vlgmr.msra.gmra.mrb[30].mxu0 %vm880_vm0, %v19798_v21 }
0x1532   :  { %17421 = vrot.lane.b32.xlu0 %v19811_v38, %s18918_s7 }
0x15a5   :  { %v4390_v51 = vpop.xlane.xlu0 %4389 }
0x15a6   :  { %v4394_v47 = vsub.f32 %v4386_v30, %v4390_v51 }
0x15a8   :  { %v4396_v52 = vmul.f32 1.442695, %v4394_v47 }
0x15a9   :  { %v4393_v26 = vpop.xlane.xlu0 %4392 }
0x15aa   :  { %17549 = vpow2.f32 %v4396_v52  ;;  %v4395_v49 = vsub.f32 %v4387_v36, %v4393_v26 }
0x15ac   :  { %v4398_v53 = vmul.f32 1.442695, %v4395_v49 }
0x15ad   :  { %v17422_v54 = vpop.permute.xlu0 %17421 }
0x15ae   :  { %17551 = vpow2.f32 %v4398_v53  ;;  %v17424_v29 = vunpack.i.h.bf16 %v17422_v54  ;;  %v17423_v55 = vunpack.i.l.bf16 %v17422_v54 }
0x15b0   :  { %v16687_v56 = vpack.c.bf16 %v17424_v29, %v17423_v55  ;;  %v14228_v29 = vld [vmem:[#allocation62] ss:$0 sm:$0xff] }
0x15b2   :  { %16689 = vmatprep.subr.msk.bf16.mxu1 %vm19598_vm2, %v16687_v56 }
0x15b3   :  { %16692 = vmatpush3.bf16.xpose.msk.msra.mxu1 %vm19598_vm2, %v16687_v56 }
0x15b4   :  { %v17550_v38 = vpop.eup %17549 }
0x15b5   :  { %15610 = vmatprep.mubr.msk.f32.mxu0 %vm1230_vm3, %v17550_v38  ;;  %v4400_v57 = vsel %vm1230_vm3, %v17550_v38, 0.0 }
0x15b6   :  { %4401 = vadd.xlane.f32.xlu1 %v4400_v57 }
0x15b8   :  { %v17552_v58 = vpop.eup %17551 }
0x15b9   :  { %v4403_v60 = vsel %vm1230_vm3, %v17552_v58, 0.0 }
0x15ba   :  { %4404 = vadd.xlane.f32.xlu1 %v4403_v60  ;;  %15645 = vmatmul.mubr.msk.f32.vlgmr.msra.gmra.mrb[36].mxu1 %vm1138_vm1, %v4659_v39 }
0x15fb   :  { %v15598_v63 = vpop.f32.mrb[30].mxu0 }
0x15fc   :  { %v4292_v0 = vadd.f32 %v15598_v63, %v14193_v61  ;;  %v4286_v1 = vpop.f32.mrb[31].mxu0 }
0x15fd   :  { %v4287_v2 = vadd.f32 %v14193_v61, %v4286_v1 }
0x15ff   :  { %v16667_v3 = vpack.c.bf16 %v4292_v0, %v4287_v2 }
0x1601   :  { %16668 = vmatprep.subr.bf16.mxu0 %v16667_v3 }
0x1602   :  { %16670 = vmatpush3.bf16.msra.mxu0 %v16667_v3 }
0x1603   :  { %15613 = vmatprep.subr.mxu0 %v3217_v5 }
0x1605   :  { %15611 = vmatmul.mubr.msk.f32.vlgmr.msra.gmra.mrb[32].mxu0 %vm1230_vm3, %v17552_v58 }
0x1606   :  { %15614 = vmatpush3.msra.mxu0 %v3217_v5 }
0x1607   :  { %16680 = vmatprep.subr.bf16.mxu0 %v16679_v6 }
0x1643   :  { %v4402_v17 = vpop.xlane.xlu1 %4401 }
0x1644   :  { %17553 = vrcp.f32 %v4402_v17 }
0x1647   :  { %v4405_v18 = vpop.xlane.xlu1 %4404 }
0x1648   :  { %17555 = vrcp.f32 %v4405_v18 }
0x164e   :  { %v17554_v23 = vpop.eup %17553 }
0x1652   :  { %v17556_v24 = vpop.eup %17555 }
0x168d   :  { %v15646_v7 = vpop.f32.mrb[36].mxu1 }
0x168e   :  { %v4830_v8 = vpop.f32.mrb[37].mxu1  ;;  %v4840_v9 = vmul.f32 0.35355338, %v15646_v7  ;;  %v5084_v7 = vld [vmem:[%s21039_s20] sm:$0xff] }
0x168f   :  { %v4839_v10 = vmul.f32 0.35355338, %v4830_v8  ;;  %v5085_v8 = vld [vmem:[%s21039_s20 + $0x8] sm:$0xff] }
0x1690   :  { %v4842_v14 = vadd.f32 %v19840_v62, %v4840_v9  ;;  %v5086_v9 = vld [vmem:[%s21039_s20 + $0x10] sm:$0xff] }
0x1691   :  { %v4841_v11 = vadd.f32 %v19835_v59, %v4839_v10  ;;  %v16697_v10 = vpack.c.bf16 %v5085_v8, %v5084_v7 }
0x1692   :  { %v4846_v15 = vsel %vm1230_vm3, %v4842_v14, -inf }
0x1693   :  { %v4843_v13 = vsel %vm1230_vm3, %v4841_v11, -inf  ;;  %16698 = vmatprep.subr.bf16.mxu1 %v16697_v10 }
0x1694   :  { %4844 = vmax.xlane.f32.xlu1 %v4843_v13  ;;  %16700 = vmatpush3.bf16.msra.mxu1 %v16697_v10 }
0x1698   :  { %4847 = vmax.xlane.f32.xlu1 %v4846_v15  ;;  %v5421_v15 = vld [vmem:[%s21040_s24 + $0x8] sm:$0xff] }
0x16d8   :  { %v15612_v19 = vpop.f32.mrb[32].mxu0 }
0x16d9   :  { %v4478_v44 = vpop.f32.mrb[33].mxu0  ;;  %v4490_v59 = vmul.f32 %v17556_v24, %v15612_v19 }
0x16da   :  { %v4489_v25 = vmul.f32 %v17554_v23, %v4478_v44 }
0x16dc   :  { %15615 = vmatprep.mubr.msk.f32.mxu0 %vm1138_vm1, %v4489_v25  ;;  %v14229_v25 = vld [vmem:[#allocation56] ss:$0 sm:$0xff] }
0x16dd   :  { %15616 = vmatmul.mubr.msk.f32.vlgmr.msra.gmra.mrb[28].mxu0 %vm1138_vm1, %v4490_v59 }
0x16de   :  { %16682 = vmatpush3.bf16.msra.mxu0 %v16679_v6  ;;  %15637 = vmatprep.mubr.msk.f32.mxu0 %vm880_vm0, %v19790_v16 }
0x16df   :  { %16684 = vmatprep.subr.bf16.mxu0 %v16683_v28 }
0x16e2   :  { %16686 = vmatpush3.bf16.msra.mxu0 %v16683_v28  ;;  %v14230_v28 = vld [vmem:[#allocation55] ss:$0 sm:$0xff] }
0x16e5   :  { %15638 = vmatmul.mubr.msk.f32.vlgmr.msra.gmra.mrb[34].mxu0 %vm880_vm0, %v19798_v21 }
0x1721   :  { %v4845_v62 = vpop.xlane.xlu1 %4844 }
0x1722   :  { %v4849_v30 = vsub.f32 %v4841_v11, %v4845_v62  ;;  %v5087_v11 = vld [vmem:[%s21039_s20 + $0x18] sm:$0xff]  ;;  %s21064_s20 = sld [smem:[#allocation136_spill]] }
0x1723   :  { %v16701_v13 = vpack.c.bf16 %v5087_v11, %v5086_v9  ;;  %v14256_v11 = vld [vmem:[%s21042_s25 + $0x20] sm:$0xff] }
0x1724   :  { %v4851_v31 = vmul.f32 1.442695, %v4849_v30 }
0x1725   :  { %v4848_v32 = vpop.xlane.xlu1 %4847  ;;  %16702 = vmatprep.subr.bf16.mxu1 %v16701_v13 }
0x1726   :  { %17557 = vpow2.f32 %v4851_v31  ;;  %v4850_v33 = vsub.f32 %v4842_v14, %v4848_v32  ;;  %16704 = vmatpush3.bf16.msra.mxu1 %v16701_v13  ;;  %v5420_v14 = vld [vmem:[%s21040_s24] sm:$0xff]  ;;  %v14257_v13 = vld [vmem:[%s21042_s25 + $0x28] sm:$0xff] }
0x1727   :  { %v16721_v17 = vpack.c.bf16 %v5421_v15, %v5420_v14 }
0x1728   :  { %v4853_v34 = vmul.f32 1.442695, %v4850_v33  ;;  %v5422_v33 = vld [vmem:[%s21040_s24 + $0x10] sm:$0xff] }
0x1729   :  { %16722 = vmatprep.subr.bf16.mxu1 %v16721_v17 }
0x172a   :  { %17559 = vpow2.f32 %v4853_v34  ;;  %v5423_v34 = vld [vmem:[%s21040_s24 + $0x18] sm:$0xff]  ;;  %s21065_s24 = sld [smem:[#allocation122_spill]] }
0x1730   :  { %v17558_v35 = vpop.eup %17557 }
0x1731   :  { %15651 = vmatprep.mubr.msk.f32.mxu0 %vm1230_vm3, %v17558_v35  ;;  %v4855_v36 = vsel %vm1230_vm3, %v17558_v35, 0.0 }
0x1732   :  { %4856 = vadd.xlane.f32.xlu1 %v4855_v36 }
0x1734   :  { %v17560_v37 = vpop.eup %17559 }
0x1735   :  { %v4858_v39 = vsel %vm1230_vm3, %v17560_v37, 0.0 }
0x1736   :  { %4859 = vadd.xlane.f32.xlu1 %v4858_v39  ;;  %v19977_v39 = vld [vmem:[%s21041_s18] sm:$0xff] }
0x17b8   :  { %v15639_v42 = vpop.f32.mrb[34].mxu0 }
0x17b9   :  { %v4747_v41 = vadd.f32 %v15639_v42, %v14217_v40  ;;  %v4741_v43 = vpop.f32.mrb[35].mxu0  ;;  %v5517_v42 = vld [vmem:[%s21042_s25 + $0x8] sm:$0xff] }
0x17ba   :  { %v4742_v45 = vadd.f32 %v14217_v40, %v4741_v43  ;;  %v5516_v40 = vld [vmem:[%s21042_s25] sm:$0xff]  ;;  %v5518_v43 = vld [vmem:[%s21042_s25 + $0x10] sm:$0xff] }
0x17bc   :  { %v16693_v46 = vpack.c.bf16 %v4747_v41, %v4742_v45  ;;  %v16729_v41 = vpack.c.bf16 %v5517_v42, %v5516_v40  ;;  %v5519_v45 = vld [vmem:[%s21042_s25 + $0x18] sm:$0xff] }
0x17be   :  { %16694 = vmatprep.subr.bf16.mxu0 %v16693_v46 }
0x17bf   :  { %16696 = vmatpush3.bf16.msra.mxu0 %v16693_v46  ;;  %v4857_v50 = vpop.xlane.xlu1 %4856  ;;  %v19988_v46 = vld [vmem:[%s21041_s18 + $0x8] sm:$0xff]  ;;  %s21066_s18 = sld [smem:[#allocation125_spill]] }
0x17c0   :  { %15654 = vmatprep.subr.mxu0 %v3218_v48  ;;  %17561 = vrcp.f32 %v4857_v50  ;;  %v5230_v50 = vld [vmem:[%s21043_s22] sm:$0xff] }
0x17c2   :  { %15652 = vmatmul.mubr.msk.f32.vlgmr.msra.gmra.mrb[36].mxu0 %vm1230_vm3, %v17560_v37  ;;  %v16725_v37 = vpack.c.bf16 %v5423_v34, %v5422_v33 }
0x17c3   :  { %15655 = vmatpush3.msra.mxu0 %v3218_v48  ;;  %v4860_v51 = vpop.xlane.xlu1 %4859  ;;  %v16733_v48 = vpack.c.bf16 %v5519_v45, %v5518_v43 }
0x17c4   :  { %17563 = vrcp.f32 %v4860_v51  ;;  %v5231_v51 = vld [vmem:[%s21043_s22 + $0x8] sm:$0xff] }
0x17ca   :  { %v17562_v52 = vpop.eup %17561 }
0x17ce   :  { %v17564_v49 = vpop.eup %17563 }
0x1895   :  { %v15653_v47 = vpop.f32.mrb[36].mxu0 }
0x1896   :  { %v4933_v26 = vpop.f32.mrb[37].mxu0  ;;  %v4945_v54 = vmul.f32 %v17564_v49, %v15653_v47  ;;  %v16705_v47 = vpack.c.bf16 %v5231_v51, %v5230_v50 }
0x1897   :  { %v4944_v53 = vmul.f32 %v17562_v52, %v4933_v26  ;;  %v5232_v52 = vld [vmem:[%s21043_s22 + $0x10] sm:$0xff]  ;;  %v5233_v26 = vld [vmem:[%s21043_s22 + $0x18] sm:$0xff] }
0x1898   :  { %16706 = vmatprep.subr.bf16.mxu0 %v16705_v47  ;;  %v16709_v49 = vpack.c.bf16 %v5233_v26, %v5232_v52 }
0x1899   :  { %15656 = vmatprep.mubr.msk.f32.mxu0 %vm1138_vm1, %v4944_v53  ;;  %v5234_v53 = vld [vmem:[%s21043_s22 + $0x20] sm:$0xff] }
0x189a   :  { %15657 = vmatmul.mubr.msk.f32.vlgmr.msra.gmra.mrb[28].mxu0 %vm1138_vm1, %v4945_v54  ;;  %v5235_v54 = vld [vmem:[%s21043_s22 + $0x28] sm:$0xff] }
0x189b   :  { %16708 = vmatpush3.bf16.msra.mxu0 %v16705_v47 }
0x189c   :  { %16710 = vmatprep.subr.bf16.mxu0 %v16709_v49 }
0x189f   :  { %16712 = vmatpush3.bf16.msra.mxu0 %v16709_v49 }
0x196d   :  { %v15658_v55 = vpop.f32.mrb[28].mxu0 }
0x196e   :  { %v5037_v56 = vadd.f32 %v15658_v55, %v14228_v29  ;;  %v5018_v38 = vpop.f32.mrb[29].mxu0  ;;  %v5236_v55 = vld [vmem:[%s21043_s22 + $0x30] sm:$0xff] }
0x196f   :  { %v5036_v57 = vadd.f32 %v14228_v29, %v5018_v38  ;;  %v16713_v29 = vpack.c.bf16 %v5235_v54, %v5234_v53 }
0x1970   :  { %v5039_v58 = vadd.f32 %v5037_v56, %v19798_v21  ;;  %v5237_v56 = vld [vmem:[%s21043_s22 + $0x38] sm:$0xff]  ;;  %s21068_s22 = sld [smem:[#allocation124_spill]] }
0x1971   :  { %v5038_v60 = vadd.f32 %v5036_v57, %v19790_v16  ;;  %16714 = vmatprep.subr.bf16.mxu0 %v16713_v29  ;;  %v16717_v38 = vpack.c.bf16 %v5237_v56, %v5236_v55  ;;  %v14231_v57 = vld [vmem:[#allocation52] ss:$0 sm:$0xff] }
0x1972   :  { %v5043_v61 = vsel %vm880_vm0, %v5039_v58, 0.0  ;;  %16716 = vmatpush3.bf16.msra.mxu0 %v16713_v29 }
0x1973   :  { %5044 = vadd.xlane.f32.xlu1 %v5043_v61  ;;  %v5040_v63 = vsel %vm880_vm0, %v5038_v60, 0.0  ;;  %16718 = vmatprep.subr.bf16.mxu0 %v16717_v38 }
0x1974   :  { %5041 = vadd.xlane.f32.xlu0 %v5040_v63 }
0x1976   :  { %16720 = vmatpush3.bf16.msra.mxu0 %v16717_v38 }
0x1a00   :  { %v5045_v0 = vpop.xlane.xlu1 %5044 }
0x1a01   :  { %v5047_v1 = vmul.f32 0.03125, %v5045_v0  ;;  %v5042_v2 = vpop.xlane.xlu0 %5041 }
0x1a02   :  { %v5046_v3 = vmul.f32 0.03125, %v5042_v2 }
0x1a03   :  { %v5049_v5 = vsub.f32 %v5039_v58, %v5047_v1 }
0x1a04   :  { %v5048_v4 = vsub.f32 %v5038_v60, %v5046_v3 }
0x1a05   :  { %v5051_v21 = vmul.f32 %v5049_v5, %v5049_v5 }
0x1a06   :  { %v5050_v12 = vmul.f32 %v5048_v4, %v5048_v4 }
0x1a07   :  { %v5055_v6 = vsel %vm880_vm0, %v5051_v21, 0.0 }
0x1a08   :  { %v5052_v16 = vsel %vm880_vm0, %v5050_v12, 0.0  ;;  %v5603_v12 = vld [vmem:[%s21044_s23 + $0x8] sm:$0xff] }
0x1a09   :  { %5053 = vadd.xlane.f32.xlu1 %v5052_v16 }
0x1a0d   :  { %5056 = vadd.xlane.f32.xlu1 %v5055_v6 }
0x1a96   :  { %v5054_v18 = vpop.xlane.xlu1 %5053 }
0x1a97   :  { %v5058_v19 = vmul.f32 0.03125, %v5054_v18 }
0x1a99   :  { %v5060_v20 = vadd.f32 1e-05, %v5058_v19  ;;  %v16755_v19 = vpack.c.bf16 %v14257_v13, %v14256_v11  ;;  %v5604_v11 = vld [vmem:[%s21044_s23 + $0x10] sm:$0xff]  ;;  %v5605_v13 = vld [vmem:[%s21044_s23 + $0x18] sm:$0xff] }
0x1a9a   :  { %v5057_v22 = vpop.xlane.xlu1 %5056 }
0x1a9b   :  { %17565 = vrsqrt.f32 %v5060_v20  ;;  %v5059_v23 = vmul.f32 0.03125, %v5057_v22  ;;  %v14244_v20 = vld [vmem:[%s21045_s26] ss:$0 sm:$0xff] }
0x1a9d   :  { %v5061_v44 = vadd.f32 1e-05, %v5059_v23 }
0x1a9f   :  { %17567 = vrsqrt.f32 %v5061_v44 }
0x1aa5   :  { %v17566_v24 = vpop.eup %17565 }
0x1aa6   :  { %v5064_v59 = vmul.f32 %v17566_v24, %v5048_v4  ;;  %v5602_v4 = vld [vmem:[%s21044_s23] sm:$0xff]  ;;  %v14258_v24 = vld [vmem:[%s21042_s25 + $0x30] sm:$0xff] }
0x1aa7   :  { %v20018_v21 = vpack.c.bf16 %v5603_v12, %v5602_v4 }
0x1aa8   :  { %v5073_v62 = vmul.f32 %v14229_v25, %v5064_v59 }
0x1aa9   :  { %v17568_v30 = vpop.eup %17567  ;;  %16738 = vmatprep.subr.bf16.mxu0 %v20018_v21 }
0x1aaa   :  { %v5065_v31 = vmul.f32 %v17568_v30, %v5049_v5  ;;  %v19968_v32 = vadd.f32 %v14230_v28, %v5073_v62  ;;  %v14241_v5 = vld [vmem:[#allocation16] ss:$0 sm:$0xff] }
0x1aac   :  { %v5074_v35 = vmul.f32 %v14229_v25, %v5065_v31  ;;  %15667 = vmatprep.mubr.msk.f32.mxu1 %vm880_vm0, %v19968_v32  ;;  %v14259_v25 = vld [vmem:[%s21042_s25 + $0x38] sm:$0xff] }
0x1aad   :  { %v16759_v30 = vpack.c.bf16 %v14259_v25, %v14258_v24 }
0x1aae   :  { %v19974_v36 = vadd.f32 %v14230_v28, %v5074_v35 }
0x1ab0   :  { %15668 = vmatmul.mubr.msk.f32.vlgmr.msra.gmra.mrb[38].mxu1 %vm880_vm0, %v19974_v36 }
0x1ab1   :  { %16724 = vmatpush3.bf16.msra.mxu1 %v16721_v17  ;;  %15697 = vmatprep.mubr.msk.f32.mxu1 %vm880_vm0, %v19977_v39 }
0x1ab2   :  { %16726 = vmatprep.subr.bf16.mxu1 %v16725_v37 }
0x1ab5   :  { %16728 = vmatpush3.bf16.msra.mxu1 %v16725_v37 }
0x1ab6   :  { %16730 = vmatprep.subr.bf16.mxu1 %v16729_v41 }
0x1ab8   :  { %15698 = vmatmul.mubr.msk.f32.vlgmr.msra.gmra.mrb[40].mxu1 %vm880_vm0, %v19988_v46 }
0x1ab9   :  { %16732 = vmatpush3.bf16.msra.mxu1 %v16729_v41  ;;  %15708 = vmatprep.mubr.msk.f32.mxu1 %vm880_vm0, %v19977_v39 }
0x1aba   :  { %16734 = vmatprep.subr.bf16.mxu1 %v16733_v48 }
0x1abd   :  { %16736 = vmatpush3.bf16.msra.mxu1 %v16733_v48 }
0x1ac0   :  { %15709 = vmatmul.mubr.msk.f32.vlgmr.msra.gmra.mrb[42].mxu1 %vm880_vm0, %v19988_v46 }
0x1b83   :  { %v15669_v58 = vpop.f32.mrb[38].mxu1 }
0x1b84   :  { %v20004_v60 = vadd.f32 %v15669_v58, %v14231_v57  ;;  %v5167_v61 = vpop.f32.mrb[39].mxu1 }
0x1b85   :  { %v20006_v63 = vadd.f32 %v14231_v57, %v5167_v61 }
0x1b86   :  { %v20009_v0 = vmul.f32 0.70710677, %v20004_v60 }
0x1b87   :  { %v20012_v1 = vmul.f32 0.70710677, %v20006_v63 }
0x1b88   :  { %v5179_v2 = vand.u32 2147483647, %v20009_v0  ;;  %vm5219_vm7 = vcmp.lt.f32.partialorder %v20009_v0, 0.0 }
0x1b89   :  { %v5178_v3 = vand.u32 2147483647, %v20012_v1  ;;  %vm5218_vm8 = vcmp.lt.f32.partialorder %v20012_v1, 0.0 }
0x1b8a   :  { %v5181_v16 = vmul.f32 0.3275911, %v5179_v2  ;;  %v5207_v23 = vsub.f32 0.0, %v5179_v2 }
0x1b8b   :  { %v5180_v6 = vmul.f32 0.3275911, %v5178_v3  ;;  %v15699_v7 = vpop.f32.mrb[40].mxu1  ;;  %v5206_v59 = vsub.f32 0.0, %v5178_v3 }
0x1b8c   :  { %v5183_v8 = vadd.f32 1.0, %v5181_v16  ;;  %v5509_v9 = vadd.f32 %v15699_v7, %v14241_v5  ;;  %v5503_v10 = vpop.f32.mrb[41].mxu1  ;;  %v5209_v33 = vmul.f32 %v5207_v23, %v5179_v2 }
0x1b8d   :  { %v5182_v14 = vadd.f32 1.0, %v5180_v6  ;;  %v5504_v15 = vadd.f32 %v14241_v5, %v5503_v10  ;;  %v5208_v37 = vmul.f32 %v5206_v59, %v5178_v3 }
0x1b8e   :  { %17569 = vrcp.f32 %v5183_v8  ;;  %v5212_v41 = vmul.f32 1.442695, %v5209_v33 }
0x1b8f   :  { %17571 = vrcp.f32 %v5182_v14  ;;  %v20023_v17 = vpack.i.bf16 %v5509_v9, %v5504_v15  ;;  %v16745_v18 = vpack.c.bf16 %v5509_v9, %v5504_v15  ;;  %v5210_v48 = vmul.f32 1.442695, %v5208_v37 }
0x1b90   :  { %17573 = vpow2.f32 %v5212_v41  ;;  %v5224_v9 = vmul.f32 0.5, %v20006_v63  ;;  %v5225_v14 = vmul.f32 0.5, %v20004_v60 }
0x1b91   :  { %17426 = vrot.lane.b32.xlu1 %v20023_v17, %s18916_s19  ;;  %16747 = vmatprep.subr.msk.bf16.mxu1 %vm19598_vm2, %v16745_v18  ;;  %17575 = vpow2.f32 %v5210_v48 }
0x1b92   :  { %16750 = vmatpush3.bf16.xpose.msk.msra.mxu1 %vm19598_vm2, %v16745_v18 }
0x1b93   :  { %v15710_v22 = vpop.f32.mrb[42].mxu1  ;;  %16756 = vmatprep.subr.bf16.mxu1 %v16755_v19 }
0x1b94   :  { %v5593_v44 = vpop.f32.mrb[43].mxu1  ;;  %v5599_v62 = vadd.f32 %v15710_v22, %v14244_v20 }
0x1b95   :  { %v5594_v28 = vadd.f32 %v14244_v20, %v5593_v44  ;;  %v20058_v20 = vld [vmem:[%s21046_s28 + $0x8] sm:$0xff]  ;;  %v20061_v44 = vld [vmem:[%s21046_s28] sm:$0xff] }
0x1b97   :  { %15726 = vmatprep.mubr.msk.f32.mxu1 %vm1138_vm1, %v5594_v28 }
0x1b98   :  { %v17570_v31 = vpop.eup %17569 }
0x1b99   :  { %v17572_v34 = vpop.eup %17571  ;;  %v5189_v35 = vmul.f32 1.0614054, %v17570_v31  ;;  %15727 = vmatmul.mubr.msk.f32.vlgmr.msra.gmra.mrb[44].mxu1 %vm1138_vm1, %v5599_v62 }
0x1b9a   :  { %v5188_v40 = vmul.f32 1.0614054, %v17572_v34  ;;  %16758 = vmatpush3.bf16.msra.mxu1 %v16755_v19  ;;  %15744 = vmatprep.mubr.msk.f32.mxu1 %vm880_vm0, %v19977_v39  ;;  %v17574_v57 = vpop.eup %17573  ;;  %v16741_v19 = vpack.c.bf16 %v5605_v13, %v5604_v11 }
0x1b9b   :  { %v5191_v42 = vadd.f32 -1.4531521, %v5189_v35  ;;  %16760 = vmatprep.subr.bf16.mxu1 %v16759_v30  ;;  %v17576_v61 = vpop.eup %17575 }
0x1b9c   :  { %v5190_v43 = vadd.f32 -1.4531521, %v5188_v40 }
0x1b9d   :  { %v5193_v45 = vmul.f32 %v17570_v31, %v5191_v42  ;;  %v14247_v42 = vld [vmem:[%s21047_s29] ss:$0 sm:$0xff] }
0x1b9e   :  { %v5192_v50 = vmul.f32 %v17572_v34, %v5190_v43  ;;  %16762 = vmatpush3.bf16.msra.mxu1 %v16759_v30  ;;  %v14261_v30 = vld [vmem:[%s21045_s26 + $0x1] ss:$0 sm:$0xff] }
0x1b9f   :  { %v5195_v51 = vadd.f32 1.4214138, %v5193_v45  ;;  %v14282_v43 = vld [vmem:[%s21042_s25 + $0x40] sm:$0xff]  ;;  %v14283_v45 = vld [vmem:[%s21042_s25 + $0x48] sm:$0xff] }
0x1ba0   :  { %v5194_v47 = vadd.f32 1.4214138, %v5192_v50 }
0x1ba1   :  { %v5197_v52 = vmul.f32 %v17570_v31, %v5195_v51  ;;  %15745 = vmatmul.mubr.msk.f32.vlgmr.msra.gmra.mrb[46].mxu1 %vm880_vm0, %v19988_v46  ;;  %v14264_v51 = vld [vmem:[%s21044_s23 + $0x20] sm:$0xff] }
0x1ba2   :  { %v5196_v26 = vmul.f32 %v17572_v34, %v5194_v47  ;;  %v14265_v47 = vld [vmem:[%s21044_s23 + $0x28] sm:$0xff] }
0x1ba3   :  { %v5199_v49 = vadd.f32 -0.28449672, %v5197_v52  ;;  %v16781_v52 = vpack.c.bf16 %v14283_v45, %v14282_v43 }
0x1ba4   :  { %v5198_v53 = vadd.f32 -0.28449672, %v5196_v26 }
0x1ba5   :  { %v5201_v54 = vmul.f32 %v17570_v31, %v5199_v49 }
0x1ba6   :  { %v5200_v29 = vmul.f32 %v17572_v34, %v5198_v53  ;;  %v16763_v53 = vpack.c.bf16 %v14265_v47, %v14264_v51 }
0x1ba7   :  { %v5203_v55 = vadd.f32 0.2548296, %v5201_v54  ;;  %v14284_v54 = vld [vmem:[%s21042_s25 + $0x50] sm:$0xff] }
0x1ba8   :  { %v5202_v56 = vadd.f32 0.2548296, %v5200_v29  ;;  %v14285_v29 = vld [vmem:[%s21042_s25 + $0x58] sm:$0xff] }
0x1ba9   :  { %v5205_v38 = vmul.f32 %v17570_v31, %v5203_v55  ;;  %v16785_v55 = vpack.c.bf16 %v14285_v29, %v14284_v54  ;;  %v14309_v29 = vld [vmem:[%s21042_s25 + $0x78] sm:$0xff] }
0x1baa   :  { %v5204_v58 = vmul.f32 %v17572_v34, %v5202_v56 }
0x1bab   :  { %v5215_v2 = vmul.f32 %v17574_v57, %v5205_v38 }
0x1bac   :  { %v5214_v3 = vmul.f32 %v17576_v61, %v5204_v58 }
0x1bad   :  { %v5217_v5 = vsub.f32 1.0, %v5215_v2 }
0x1bae   :  { %v5216_v4 = vsub.f32 1.0, %v5214_v3  ;;  %v14266_v3 = vld [vmem:[%s21044_s23 + $0x30] sm:$0xff] }
0x1baf   :  { %v5221_v12 = vsub.f32 0.0, %v5217_v5 }
0x1bb0   :  { %v5220_v16 = vsub.f32 0.0, %v5216_v4 }
0x1bb1   :  { %v5223_v6 = vsel %vm5219_vm7, %v5221_v12, %v5217_v5  ;;  %v14267_v5 = vld [vmem:[%s21044_s23 + $0x38] sm:$0xff] }
0x1bb2   :  { %v5227_v7 = vadd.f32 1.0, %v5223_v6  ;;  %v5222_v8 = vsel %vm5218_vm8, %v5220_v16, %v5216_v4  ;;  %v16767_v12 = vpack.c.bf16 %v14267_v5, %v14266_v3 }
0x1bb3   :  { %v5226_v10 = vadd.f32 1.0, %v5222_v8 }
0x1bb4   :  { %v5229_v18 = vmul.f32 %v5227_v7, %v5225_v14 }
0x1bb5   :  { %v5228_v15 = vmul.f32 %v5226_v10, %v5224_v9 }
0x1bb7   :  { %15686 = vmatprep.mubr.msk.f32.mxu0 %vm2995_vm6, %v5228_v15  ;;  %v14287_v15 = vld [vmem:[%s21045_s26 + $0x2] ss:$0 sm:$0xff] }
0x1bb8   :  { %15687 = vmatmul.mubr.msk.f32.vlgmr.msra.gmra.mrb[38].mxu0 %vm2995_vm6, %v5229_v18 }
0x1bb9   :  { %16740 = vmatpush3.bf16.msra.mxu0 %v20018_v21  ;;  %15719 = vmatprep.mubr.msk.f32.mxu0 %vm880_vm0, %v19977_v39 }
0x1bba   :  { %16742 = vmatprep.subr.bf16.mxu0 %v16741_v19 }
0x1bbd   :  { %16744 = vmatpush3.bf16.msra.mxu0 %v16741_v19 }
0x1bc0   :  { %15720 = vmatmul.mubr.msk.f32.vlgmr.msra.gmra.mrb[40].mxu0 %vm880_vm0, %v19988_v46 }
0x1c03   :  { %v17427_v60 = vpop.permute.xlu1 %17426 }
0x1c04   :  { %v17429_v63 = vunpack.i.h.bf16 %v17427_v60  ;;  %v17428_v0 = vunpack.i.l.bf16 %v17427_v60 }
0x1c06   :  { %v16771_v1 = vpack.c.bf16 %v17429_v63, %v17428_v0 }
0x1c08   :  { %16773 = vmatprep.subr.msk.bf16.mxu1 %vm19598_vm2, %v16771_v1 }
0x1c09   :  { %16776 = vmatpush3.bf16.xpose.msk.msra.mxu1 %vm19598_vm2, %v16771_v1 }
0x1c0a   :  { %16782 = vmatprep.subr.bf16.mxu1 %v16781_v52 }
0x1c6c   :  { %v15728_v21 = vpop.f32.mrb[44].mxu1 }
0x1c6d   :  { %v5776_v22 = vmul.f32 0.35355338, %v15728_v21  ;;  %v5766_v23 = vpop.f32.mrb[45].mxu1 }
0x1c6e   :  { %v5775_v24 = vmul.f32 0.35355338, %v5766_v23 }
0x1c6f   :  { %v5778_v25 = vadd.f32 %v5776_v22, %v20058_v20 }
0x1c70   :  { %v5777_v59 = vadd.f32 %v5775_v24, %v20061_v44 }
0x1c71   :  { %v5782_v28 = vsel %vm1230_vm3, %v5778_v25, -inf }
0x1c72   :  { %5783 = vmax.xlane.f32.xlu1 %v5782_v28  ;;  %v5779_v62 = vsel %vm1230_vm3, %v5777_v59, -inf }
0x1c73   :  { %5780 = vmax.xlane.f32.xlu0 %v5779_v62 }
0x1c74   :  { %v15746_v31 = vpop.f32.mrb[46].mxu1 }
0x1c75   :  { %v5967_v33 = vadd.f32 %v15746_v31, %v14261_v30  ;;  %v5961_v34 = vpop.f32.mrb[47].mxu1  ;;  %v14269_v31 = vld [vmem:[%s21047_s29 + $0x1] ss:$0 sm:$0xff] }
0x1c76   :  { %v5962_v35 = vadd.f32 %v14261_v30, %v5961_v34 }
0x1c78   :  { %15762 = vmatprep.mubr.msk.f32.mxu1 %vm1138_vm1, %v5962_v35 }
0x1c79   :  { %15763 = vmatmul.mubr.msk.f32.vlgmr.msra.gmra.mrb[48].mxu1 %vm1138_vm1, %v5967_v33 }
0x1c7a   :  { %15790 = vmatprep.mubr.msk.f32.mxu1 %vm880_vm0, %v19977_v39  ;;  %16784 = vmatpush3.bf16.msra.mxu1 %v16781_v52 }
0x1c7b   :  { %16786 = vmatprep.subr.bf16.mxu1 %v16785_v55 }
0x1c7e   :  { %16788 = vmatpush3.bf16.msra.mxu1 %v16785_v55 }
0x1c81   :  { %15791 = vmatmul.mubr.msk.f32.vlgmr.msra.gmra.mrb[50].mxu1 %vm880_vm0, %v19988_v46 }
0x1c8b   :  { %v20072_v37 = vpop.f32.mrb[38].mxu0 }
0x1c8c   :  { %v20074_v40 = vpop.f32.mrb[39].mxu0 }
0x1c93   :  { %v15721_v41 = vpop.f32.mrb[40].mxu0 }
0x1c94   :  { %v5685_v48 = vadd.f32 %v15721_v41, %v14247_v42  ;;  %v5679_v50 = vpop.f32.mrb[41].mxu0 }
0x1c95   :  { %v5680_v26 = vadd.f32 %v14247_v42, %v5679_v50 }
0x1c97   :  { %v16751_v49 = vpack.c.bf16 %v5685_v48, %v5680_v26  ;;  %v14306_v26 = vld [vmem:[%s21042_s25 + $0x60] sm:$0xff] }
0x1c99   :  { %16752 = vmatprep.subr.bf16.mxu0 %v16751_v49 }
0x1c9a   :  { %16754 = vmatpush3.bf16.msra.mxu0 %v16751_v49  ;;  %v14307_v49 = vld [vmem:[%s21042_s25 + $0x68] sm:$0xff] }
0x1c9b   :  { %16764 = vmatprep.subr.bf16.mxu0 %v16763_v53  ;;  %v16807_v54 = vpack.c.bf16 %v14307_v49, %v14306_v26  ;;  %v14295_v26 = vld [vmem:[%s21047_s29 + $0x2] ss:$0 sm:$0xff] }
0x1cff   :  { %v5784_v56 = vpop.xlane.xlu1 %5783 }
0x1d00   :  { %v5786_v38 = vsub.f32 %v5778_v25, %v5784_v56  ;;  %v5781_v57 = vpop.xlane.xlu0 %5780  ;;  %v5513_v56 = vld [vmem:[%s21048_s5 + $0x8] sm:$0xff] }
0x1d01   :  { %v5785_v58 = vsub.f32 %v5777_v59, %v5781_v57 }
0x1d02   :  { %v5789_v61 = vmul.f32 1.442695, %v5786_v38  ;;  %v5512_v38 = vld [vmem:[%s21048_s5] sm:$0xff] }
0x1d03   :  { %v5787_v2 = vmul.f32 1.442695, %v5785_v58 }
0x1d05   :  { %17577 = vpow2.f32 %v5787_v2 }
0x1d06   :  { %17579 = vpow2.f32 %v5789_v61 }
0x1d0f   :  { %v17578_v4 = vpop.eup %17577 }
0x1d10   :  { %v17580_v16 = vpop.eup %17579  ;;  %15733 = vmatprep.mubr.msk.f32.mxu0 %vm1230_vm3, %v17578_v4  ;;  %v5791_v47 = vsel %vm1230_vm3, %v17578_v4, 0.0 }
0x1d11   :  { %15734 = vmatmul.mubr.msk.f32.vlgmr.msra.gmra.mrb[42].mxu0 %vm1230_vm3, %v17580_v16  ;;  %v5794_v52 = vsel %vm1230_vm3, %v17580_v16, 0.0 }
0x1d12   :  { %16766 = vmatpush3.bf16.msra.mxu0 %v16763_v53  ;;  %15755 = vmatprep.mubr.msk.f32.mxu0 %vm880_vm0, %v19977_v39  ;;  %v14308_v53 = vld [vmem:[%s21042_s25 + $0x70] sm:$0xff]  ;;  %s21067_s25 = sld [smem:[#allocation121_spill]] }
0x1d13   :  { %16768 = vmatprep.subr.bf16.mxu0 %v16767_v12  ;;  %v16811_v55 = vpack.c.bf16 %v14309_v29, %v14308_v53 }
0x1d16   :  { %16770 = vmatpush3.bf16.msra.mxu0 %v16767_v12 }
0x1d19   :  { %15756 = vmatmul.mubr.msk.f32.vlgmr.msra.gmra.mrb[44].mxu0 %vm880_vm0, %v19988_v46 }
0x1d4c   :  { %v15764_v6 = vpop.f32.mrb[48].mxu1 }
0x1d4d   :  { %v6138_v7 = vpop.f32.mrb[49].mxu1  ;;  %v6148_v8 = vmul.f32 0.35355338, %v15764_v6  ;;  %v14290_v6 = vld [vmem:[%s21044_s23 + $0x40] sm:$0xff] }
0x1d4e   :  { %v6147_v9 = vmul.f32 0.35355338, %v6138_v7  ;;  %v14291_v7 = vld [vmem:[%s21044_s23 + $0x48] sm:$0xff] }
0x1d4f   :  { %v6150_v13 = vadd.f32 %v6148_v8, %v20058_v20 }
0x1d50   :  { %v6149_v10 = vadd.f32 %v6147_v9, %v20061_v44 }
0x1d51   :  { %v6154_v14 = vsel %vm1230_vm3, %v6150_v13, -inf }
0x1d52   :  { %v6151_v11 = vsel %vm1230_vm3, %v6149_v10, -inf }
0x1d53   :  { %6152 = vmax.xlane.f32.xlu0 %v6151_v11 }
0x1d54   :  { %v15792_v18 = vpop.f32.mrb[50].mxu1 }
0x1d55   :  { %v6501_v19 = vadd.f32 %v15792_v18, %v14287_v15  ;;  %v6495_v60 = vpop.f32.mrb[51].mxu1  ;;  %v16789_v18 = vpack.c.bf16 %v14291_v7, %v14290_v6 }
0x1d56   :  { %v6496_v63 = vadd.f32 %v14287_v15, %v6495_v60 }
0x1d57   :  { %6155 = vmax.xlane.f32.xlu0 %v6154_v14 }
0x1d58   :  { %15808 = vmatprep.mubr.msk.f32.mxu1 %vm1138_vm1, %v6496_v63 }
0x1d6d   :  { %17431 = vrot.lane.b32.xlu0 %v20023_v17, %s18917_s3 }
0x1de0   :  { %v6153_v0 = vpop.xlane.xlu0 %6152 }
0x1de1   :  { %v6157_v1 = vsub.f32 %v6149_v10, %v6153_v0 }
0x1de3   :  { %v6159_v21 = vmul.f32 1.442695, %v6157_v1 }
0x1de4   :  { %v6156_v22 = vpop.xlane.xlu0 %6155  ;;  %v20101_v23 = vpop.f32.mrb[42].mxu0 }
0x1de5   :  { %17581 = vpow2.f32 %v6159_v21  ;;  %v6158_v24 = vsub.f32 %v6150_v13, %v6156_v22  ;;  %v20103_v25 = vpop.f32.mrb[43].mxu0  ;;  %v14292_v21 = vld [vmem:[%s21044_s23 + $0x50] sm:$0xff]  ;;  %v14293_v22 = vld [vmem:[%s21044_s23 + $0x58] sm:$0xff] }
0x1de7   :  { %v6161_v59 = vmul.f32 1.442695, %v6158_v24 }
0x1de8   :  { %v17432_v28 = vpop.permute.xlu0 %17431 }
0x1de9   :  { %17583 = vpow2.f32 %v6161_v59  ;;  %v17434_v62 = vunpack.i.h.bf16 %v17432_v28  ;;  %v17433_v30 = vunpack.i.l.bf16 %v17432_v28  ;;  %v14311_v28 = vld [vmem:[%s21045_s26 + $0x3] ss:$0 sm:$0xff] }
0x1deb   :  { %v16797_v33 = vpack.c.bf16 %v17434_v62, %v17433_v30 }
0x1dec   :  { %v15757_v34 = vpop.f32.mrb[44].mxu0 }
0x1ded   :  { %v6055_v35 = vadd.f32 %v15757_v34, %v14269_v31  ;;  %v6049_v42 = vpop.f32.mrb[45].mxu0  ;;  %16799 = vmatprep.subr.msk.bf16.mxu1 %vm19598_vm2, %v16797_v33 }
0x1dee   :  { %v6050_v41 = vadd.f32 %v14269_v31, %v6049_v42  ;;  %16802 = vmatpush3.bf16.xpose.msk.msra.mxu1 %vm19598_vm2, %v16797_v33 }
0x1def   :  { %v17582_v43 = vpop.eup %17581  ;;  %16808 = vmatprep.subr.bf16.mxu1 %v16807_v54 }
0x1df0   :  { %v16777_v45 = vpack.c.bf16 %v6055_v35, %v6050_v41  ;;  %15769 = vmatprep.mubr.msk.f32.mxu0 %vm1230_vm3, %v17582_v43  ;;  %v6163_v48 = vsel %vm1230_vm3, %v17582_v43, 0.0 }
0x1df1   :  { %6164 = vadd.xlane.f32.xlu0 %v6163_v48 }
0x1df2   :  { %16778 = vmatprep.subr.bf16.mxu0 %v16777_v45 }
0x1df3   :  { %v17584_v50 = vpop.eup %17583  ;;  %16780 = vmatpush3.bf16.msra.mxu0 %v16777_v45 }
0x1df4   :  { %v6166_v51 = vsel %vm1230_vm3, %v17584_v50, 0.0  ;;  %15772 = vmatprep.subr.mxu0 %v5513_v56 }
0x1df5   :  { %6167 = vadd.xlane.f32.xlu1 %v6166_v51  ;;  %15809 = vmatmul.mubr.msk.f32.vlgmr.msra.gmra.mrb[52].mxu1 %vm1138_vm1, %v6501_v19 }
0x1df6   :  { %15770 = vmatmul.mubr.msk.f32.vlgmr.msra.gmra.mrb[46].mxu0 %vm1230_vm3, %v17584_v50  ;;  %15831 = vmatprep.mubr.msk.f32.mxu1 %vm880_vm0, %v19977_v39 }
0x1df7   :  { %16810 = vmatpush3.bf16.msra.mxu1 %v16807_v54  ;;  %15773 = vmatpush3.msra.mxu0 %v5513_v56  ;;  %v5514_v56 = vld [vmem:[%s21048_s5 + $0x10] sm:$0xff] }
0x1df8   :  { %16812 = vmatprep.subr.bf16.mxu1 %v16811_v55  ;;  %15777 = vmatprep.subr.mxu0 %v5512_v38 }
0x1df9   :  { %5792 = vadd.xlane.f32.xlu1 %v5791_v47 }
0x1dfb   :  { %16814 = vmatpush3.bf16.msra.mxu1 %v16811_v55 }
0x1dfd   :  { %5795 = vadd.xlane.f32.xlu1 %v5794_v52 }
0x1dfe   :  { %15832 = vmatmul.mubr.msk.f32.vlgmr.msra.gmra.mrb[54].mxu1 %vm880_vm0, %v19988_v46 }
0x1e7e   :  { %v6165_v58 = vpop.xlane.xlu0 %6164 }
0x1e7f   :  { %17585 = vrcp.f32 %v6165_v58 }
0x1e82   :  { %v6168_v57 = vpop.xlane.xlu1 %6167 }
0x1e86   :  { %v5793_v61 = vpop.xlane.xlu1 %5792 }
0x1e87   :  { %17587 = vrcp.f32 %v5793_v61 }
0x1e88   :  { %17589 = vrcp.f32 %v6168_v57  ;;  %v14315_v57 = vld [vmem:[%s21044_s23 + $0x68] sm:$0xff] }
0x1e89   :  { %v17586_v5 = vpop.eup %17585 }
0x1e8a   :  { %v5796_v2 = vpop.xlane.xlu1 %5795 }
0x1e8b   :  { %17591 = vrcp.f32 %v5796_v2 }
0x1e91   :  { %v17588_v8 = vpop.eup %17587 }
0x1e92   :  { %v17590_v11 = vpop.eup %17589  ;;  %v5880_v19 = vmul.f32 %v17588_v8, %v20103_v25  ;;  %v16793_v25 = vpack.c.bf16 %v14293_v22, %v14292_v21  ;;  %v14234_v22 = vld [vmem:[#allocation53] ss:$0 sm:$0xff] }
0x1e95   :  { %v17592_v0 = vpop.eup %17591 }
0x1e96   :  { %v5881_v24 = vmul.f32 %v17592_v0, %v20101_v23 }
0x1ec8   :  { %v15810_v3 = vpop.f32.mrb[52].mxu1 }
0x1ec9   :  { %v15771_v4 = vpop.f32.mrb[46].mxu0  ;;  %v6682_v12 = vmul.f32 0.35355338, %v15810_v3  ;;  %v6672_v16 = vpop.f32.mrb[53].mxu1 }
0x1eca   :  { %v6241_v9 = vpop.f32.mrb[47].mxu0  ;;  %v6681_v10 = vmul.f32 0.35355338, %v6672_v16  ;;  %v6253_v14 = vmul.f32 %v17590_v11, %v15771_v4  ;;  %v14317_v11 = vld [vmem:[%s21044_s23 + $0x78] sm:$0xff] }
0x1ecb   :  { %v6252_v13 = vmul.f32 %v17586_v5, %v6241_v9  ;;  %v6684_v60 = vadd.f32 %v6682_v12, %v20058_v20 }
0x1ecc   :  { %v6683_v15 = vadd.f32 %v6681_v10, %v20061_v44  ;;  %v14316_v10 = vld [vmem:[%s21044_s23 + $0x70] sm:$0xff] }
0x1ecd   :  { %15774 = vmatprep.mubr.msk.f32.mxu0 %vm1138_vm1, %v6252_v13  ;;  %v6688_v1 = vsel %vm1230_vm3, %v6684_v60, -inf }
0x1ece   :  { %15775 = vmatmul.mubr.msk.f32.vlgmr.msra.gmra.mrb[48].mxu0 %vm1138_vm1, %v6253_v14  ;;  %v6685_v63 = vsel %vm1230_vm3, %v6683_v15, -inf }
0x1ecf   :  { %15778 = vmatpush3.msra.mxu0 %v5512_v38  ;;  %15779 = vmatprep.mubr.msk.f32.mxu0 %vm1138_vm1, %v5880_v19  ;;  %v14314_v38 = vld [vmem:[%s21044_s23 + $0x60] sm:$0xff]  ;;  %v16819_v19 = vpack.c.bf16 %v14317_v11, %v14316_v10  ;;  %s21069_s23 = sld [smem:[#allocation120_spill]] }
0x1ed0   :  { %6686 = vmax.xlane.f32.xlu1 %v6685_v63  ;;  %16790 = vmatprep.subr.bf16.mxu0 %v16789_v18  ;;  %v16815_v58 = vpack.c.bf16 %v14315_v57, %v14314_v38 }
0x1ed1   :  { %v15833_v59 = vpop.f32.mrb[54].mxu1 }
0x1ed2   :  { %v6956_v62 = vadd.f32 %v15833_v59, %v14311_v28  ;;  %v6950_v30 = vpop.f32.mrb[55].mxu1 }
0x1ed3   :  { %v6951_v23 = vadd.f32 %v14311_v28, %v6950_v30 }
0x1ed4   :  { %6689 = vmax.xlane.f32.xlu1 %v6688_v1 }
0x1ed5   :  { %15849 = vmatprep.mubr.msk.f32.mxu1 %vm1138_vm1, %v6951_v23 }
0x1ed6   :  { %15780 = vmatmul.mubr.msk.f32.vlgmr.msra.gmra.mrb[48].mxu0 %vm1138_vm1, %v5881_v24 }
0x1ed7   :  { %16792 = vmatpush3.bf16.msra.mxu0 %v16789_v18  ;;  %15801 = vmatprep.mubr.msk.f32.mxu0 %vm880_vm0, %v19977_v39 }
0x1ed8   :  { %16794 = vmatprep.subr.bf16.mxu0 %v16793_v25 }
0x1edb   :  { %16796 = vmatpush3.bf16.msra.mxu0 %v16793_v25  ;;  %v5318_v25 = vadd.f32 %v14234_v22, %v20074_v40 }
0x1edd   :  { %v5326_v23 = vadd.f32 %v5318_v25, %v19968_v32 }
0x1ede   :  { %15802 = vmatmul.mubr.msk.f32.vlgmr.msra.gmra.mrb[50].mxu0 %vm880_vm0, %v19988_v46 }
0x1ee5   :  { %17436 = vrot.lane.b32.xlu1 %v20023_v17, %s18918_s7 }
0x1f5d   :  { %v6687_v31 = vpop.xlane.xlu1 %6686 }
0x1f5e   :  { %v6691_v33 = vsub.f32 %v6683_v15, %v6687_v31  ;;  %v5328_v31 = vsel %vm880_vm0, %v5326_v23, 0.0 }
0x1f60   :  { %v6693_v34 = vmul.f32 1.442695, %v6691_v33 }
0x1f61   :  { %v6690_v35 = vpop.xlane.xlu1 %6689 }
0x1f62   :  { %17593 = vpow2.f32 %v6693_v34  ;;  %v6692_v42 = vsub.f32 %v6684_v60, %v6690_v35  ;;  %v14319_v34 = vld [vmem:[%s21047_s29 + $0x3] ss:$0 sm:$0xff] }
0x1f64   :  { %v6695_v41 = vmul.f32 1.442695, %v6692_v42 }
0x1f65   :  { %v17437_v43 = vpop.permute.xlu1 %17436 }
0x1f66   :  { %17595 = vpow2.f32 %v6695_v41  ;;  %v17439_v45 = vunpack.i.h.bf16 %v17437_v43  ;;  %v17438_v48 = vunpack.i.l.bf16 %v17437_v43 }
0x1f68   :  { %v16823_v17 = vpack.c.bf16 %v17439_v45, %v17438_v48 }
0x1f6a   :  { %16825 = vmatprep.subr.msk.bf16.mxu1 %vm19598_vm2, %v16823_v17 }
0x1f6b   :  { %16828 = vmatpush3.bf16.xpose.msk.msra.mxu1 %vm19598_vm2, %v16823_v17 }
0x1f6c   :  { %v17594_v50 = vpop.eup %17593 }
0x1f6d   :  { %15815 = vmatprep.mubr.msk.f32.mxu0 %vm1230_vm3, %v17594_v50  ;;  %v6697_v51 = vsel %vm1230_vm3, %v17594_v50, 0.0 }
0x1f6e   :  { %6698 = vadd.xlane.f32.xlu0 %v6697_v51 }
0x1f70   :  { %v17596_v47 = vpop.eup %17595 }
0x1f71   :  { %v6700_v52 = vsel %vm1230_vm3, %v17596_v47, 0.0 }
0x1f72   :  { %6701 = vadd.xlane.f32.xlu0 %v6700_v52  ;;  %15850 = vmatmul.mubr.msk.f32.vlgmr.msra.gmra.mrb[56].mxu1 %vm1138_vm1, %v6956_v62  ;;  %v5323_v62 = vadd.f32 %v20072_v37, %v14234_v22 }
0x1f74   :  { %v5327_v33 = vadd.f32 %v5323_v62, %v19974_v36 }
0x1f76   :  { %v5331_v40 = vsel %vm880_vm0, %v5327_v33, 0.0 }
0x1fb1   :  { %v15803_v49 = vpop.f32.mrb[50].mxu0 }
0x1fb2   :  { %v6589_v53 = vadd.f32 %v15803_v49, %v14295_v26  ;;  %v6583_v54 = vpop.f32.mrb[51].mxu0 }
0x1fb3   :  { %v6584_v29 = vadd.f32 %v14295_v26, %v6583_v54  ;;  %v5515_v54 = vld [vmem:[%s21048_s5 + $0x18] sm:$0xff] }
0x1fb5   :  { %v16803_v55 = vpack.c.bf16 %v6589_v53, %v6584_v29 }
0x1fb7   :  { %16804 = vmatprep.subr.bf16.mxu0 %v16803_v55 }
0x1fb8   :  { %16806 = vmatpush3.bf16.msra.mxu0 %v16803_v55 }
0x1fb9   :  { %15818 = vmatprep.subr.mxu0 %v5514_v56 }
0x1fbb   :  { %15816 = vmatmul.mubr.msk.f32.vlgmr.msra.gmra.mrb[52].mxu0 %vm1230_vm3, %v17596_v47 }
0x1fbc   :  { %15819 = vmatpush3.msra.mxu0 %v5514_v56 }
0x1fbd   :  { %16816 = vmatprep.subr.bf16.mxu0 %v16815_v58 }
0x1ffb   :  { %v6699_v7 = vpop.xlane.xlu0 %6698 }
0x1ffc   :  { %17597 = vrcp.f32 %v6699_v7 }
0x1fff   :  { %v6702_v8 = vpop.xlane.xlu0 %6701 }
0x2000   :  { %17599 = vrcp.f32 %v6702_v8 }
0x2006   :  { %v17598_v13 = vpop.eup %17597 }
0x200a   :  { %v17600_v15 = vpop.eup %17599 }
0x2045   :  { %v15851_v61 = vpop.f32.mrb[56].mxu1 }
0x2046   :  { %v7137_v2 = vmul.f32 0.35355338, %v15851_v61  ;;  %v7127_v3 = vpop.f32.mrb[57].mxu1 }
0x2047   :  { %v7136_v5 = vmul.f32 0.35355338, %v7127_v3 }
0x2048   :  { %v7139_v4 = vadd.f32 %v7137_v2, %v20058_v20  ;;  %v14237_v2 = vld [vmem:[#allocation59] ss:$0 sm:$0xff] }
0x2049   :  { %v7138_v12 = vadd.f32 %v7136_v5, %v20061_v44  ;;  %v14238_v5 = vld [vmem:[#allocation58] ss:$0 sm:$0xff] }
0x204a   :  { %v7143_v16 = vsel %vm1230_vm3, %v7139_v4, -inf }
0x204b   :  { %7144 = vmax.xlane.f32.xlu1 %v7143_v16  ;;  %v7140_v6 = vsel %vm1230_vm3, %v7138_v12, -inf }
0x204c   :  { %7141 = vmax.xlane.f32.xlu0 %v7140_v6 }
0x208e   :  { %v15817_v9 = vpop.f32.mrb[52].mxu0 }
0x208f   :  { %v6775_v14 = vpop.f32.mrb[53].mxu0  ;;  %v6787_v20 = vmul.f32 %v17600_v15, %v15817_v9 }
0x2090   :  { %v6786_v18 = vmul.f32 %v17598_v13, %v6775_v14 }
0x2092   :  { %15820 = vmatprep.mubr.msk.f32.mxu0 %vm1138_vm1, %v6786_v18 }
0x2093   :  { %15821 = vmatmul.mubr.msk.f32.vlgmr.msra.gmra.mrb[48].mxu0 %vm1138_vm1, %v6787_v20 }
0x2094   :  { %16818 = vmatpush3.bf16.msra.mxu0 %v16815_v58  ;;  %15842 = vmatprep.mubr.msk.f32.mxu0 %vm880_vm0, %v19977_v39 }
0x2095   :  { %16820 = vmatprep.subr.bf16.mxu0 %v16819_v19 }
0x2098   :  { %16822 = vmatpush3.bf16.msra.mxu0 %v16819_v19 }
0x209b   :  { %15843 = vmatmul.mubr.msk.f32.vlgmr.msra.gmra.mrb[54].mxu0 %vm880_vm0, %v19988_v46 }
0x20d8   :  { %v7145_v44 = vpop.xlane.xlu1 %7144 }
0x20d9   :  { %v7147_v60 = vsub.f32 %v7139_v4, %v7145_v44  ;;  %v7142_v63 = vpop.xlane.xlu0 %7141 }
0x20da   :  { %v7146_v0 = vsub.f32 %v7138_v12, %v7142_v63 }
0x20db   :  { %v7150_v1 = vmul.f32 1.442695, %v7147_v60 }
0x20dc   :  { %v7148_v21 = vmul.f32 1.442695, %v7146_v0  ;;  %v14330_v0 = vld [vmem:[#allocation17] ss:$0 sm:$0xff] }
0x20de   :  { %17601 = vpow2.f32 %v7148_v21 }
0x20df   :  { %17603 = vpow2.f32 %v7150_v1 }
0x20e8   :  { %v17602_v24 = vpop.eup %17601 }
0x20e9   :  { %15856 = vmatprep.mubr.msk.f32.mxu0 %vm1230_vm3, %v17602_v24  ;;  %v7152_v59 = vsel %vm1230_vm3, %v17602_v24, 0.0  ;;  %v17604_v28 = vpop.eup %17603 }
0x20ea   :  { %7153 = vadd.xlane.f32.xlu0 %v7152_v59  ;;  %v7155_v30 = vsel %vm1230_vm3, %v17604_v28, 0.0 }
0x20ee   :  { %7156 = vadd.xlane.f32.xlu0 %v7155_v30 }
0x20f2   :  { %5329 = vadd.xlane.f32.xlu0 %v5328_v31 }
0x20f6   :  { %5332 = vadd.xlane.f32.xlu0 %v5331_v40 }
0x216e   :  { %v15844_v35 = vpop.f32.mrb[54].mxu0 }
0x216f   :  { %v7044_v42 = vadd.f32 %v15844_v35, %v14319_v34  ;;  %v7038_v41 = vpop.f32.mrb[55].mxu0 }
0x2170   :  { %v7039_v43 = vadd.f32 %v14319_v34, %v7038_v41  ;;  %v7384_v41 = vld [vmem:[%s21049_s13 + $0x18] sm:$0xff] }
0x2172   :  { %v16829_v45 = vpack.c.bf16 %v7044_v42, %v7039_v43  ;;  %v7383_v42 = vld [vmem:[%s21049_s13 + $0x10] sm:$0xff] }
0x2173   :  { %v16837_v43 = vpack.c.bf16 %v7384_v41, %v7383_v42  ;;  %v14339_v41 = vld [vmem:[%s21053_s1] ss:$0 sm:$0xff] }
0x2174   :  { %16830 = vmatprep.subr.bf16.mxu0 %v16829_v45 }
0x2175   :  { %16832 = vmatpush3.bf16.msra.mxu0 %v16829_v45  ;;  %v7569_v45 = vld [vmem:[%s21050_s30] sm:$0xff] }
0x2176   :  { %15859 = vmatprep.subr.mxu0 %v5515_v54 }
0x2177   :  { %v7154_v37 = vpop.xlane.xlu0 %7153 }
0x2178   :  { %15857 = vmatmul.mubr.msk.f32.vlgmr.msra.gmra.mrb[56].mxu0 %vm1230_vm3, %v17604_v28 }
0x2179   :  { %15860 = vmatpush3.msra.mxu0 %v5515_v54 }
0x217b   :  { %v7157_v32 = vpop.xlane.xlu0 %7156 }
0x217f   :  { %v5330_v48 = vpop.xlane.xlu0 %5329 }
0x2180   :  { %v5334_v17 = vmul.f32 0.03125, %v5330_v48 }
0x2182   :  { %v5336_v36 = vsub.f32 %v5326_v23, %v5334_v17 }
0x2183   :  { %v5333_v50 = vpop.xlane.xlu0 %5332 }
0x2184   :  { %v5335_v51 = vmul.f32 0.03125, %v5333_v50  ;;  %v5338_v47 = vmul.f32 %v5336_v36, %v5336_v36 }
0x2186   :  { %v5337_v52 = vsub.f32 %v5327_v33, %v5335_v51  ;;  %v5340_v26 = vsel %vm880_vm0, %v5338_v47, 0.0 }
0x2187   :  { %5341 = vadd.xlane.f32.xlu0 %v5340_v26 }
0x2188   :  { %v5339_v49 = vmul.f32 %v5337_v52, %v5337_v52 }
0x218a   :  { %v5343_v53 = vsel %vm880_vm0, %v5339_v49, 0.0 }
0x218b   :  { %5344 = vadd.xlane.f32.xlu0 %v5343_v53 }
0x2214   :  { %v5342_v29 = vpop.xlane.xlu0 %5341 }
0x2215   :  { %v5346_v55 = vmul.f32 0.03125, %v5342_v29 }
0x2217   :  { %v5348_v56 = vadd.f32 1e-05, %v5346_v55 }
0x2218   :  { %v5345_v38 = vpop.xlane.xlu0 %5344 }
0x2219   :  { %17605 = vrsqrt.f32 %v5348_v56  ;;  %v5347_v57 = vmul.f32 0.03125, %v5345_v38 }
0x221b   :  { %v5349_v58 = vadd.f32 1e-05, %v5347_v57 }
0x221d   :  { %17607 = vrsqrt.f32 %v5349_v58 }
0x221e   :  { %17609 = vrcp.f32 %v7157_v32 }
0x221f   :  { %17611 = vrcp.f32 %v7154_v37  ;;  %v7570_v37 = vld [vmem:[%s21050_s30 + $0x8] sm:$0xff] }
0x2220   :  { %v16849_v32 = vpack.c.bf16 %v7570_v37, %v7569_v45 }
0x2223   :  { %v17606_v61 = vpop.eup %17605 }
0x2224   :  { %v5352_v3 = vmul.f32 %v17606_v61, %v5336_v36  ;;  %v14239_v61 = vld [vmem:[#allocation65] ss:$0 sm:$0xff] }
0x2226   :  { %v5361_v4 = vmul.f32 %v14237_v2, %v5352_v3 }
0x2227   :  { %v17608_v12 = vpop.eup %17607 }
0x2228   :  { %v5370_v16 = vadd.f32 %v14238_v5, %v5361_v4  ;;  %v5353_v6 = vmul.f32 %v17608_v12, %v5337_v52  ;;  %v17610_v11 = vpop.eup %17609 }
0x2229   :  { %v17612_v14 = vpop.eup %17611 }
0x222a   :  { %v5372_v7 = vsel %vm880_vm0, %v5370_v16, 0.0  ;;  %v5362_v8 = vmul.f32 %v14237_v2, %v5353_v6  ;;  %v7571_v6 = vld [vmem:[%s21050_s30 + $0x10] sm:$0xff] }
0x222b   :  { %5373 = vadd.xlane.f32.xlu0 %v5372_v7  ;;  %v7572_v7 = vld [vmem:[%s21050_s30 + $0x18] sm:$0xff] }
0x222c   :  { %v5371_v9 = vadd.f32 %v14238_v5, %v5362_v8  ;;  %v14240_v5 = vld [vmem:[#allocation64] ss:$0 sm:$0xff] }
0x222e   :  { %v5375_v10 = vsel %vm880_vm0, %v5371_v9, 0.0 }
0x222f   :  { %5376 = vadd.xlane.f32.xlu0 %v5375_v10  ;;  %v16853_v10 = vpack.c.bf16 %v7572_v7, %v7571_v6 }
0x224b   :  { %v15858_v13 = vpop.f32.mrb[56].mxu0 }
0x224c   :  { %v7242_v15 = vmul.f32 %v17610_v11, %v15858_v13  ;;  %v7230_v18 = vpop.f32.mrb[57].mxu0  ;;  %v7477_v11 = vld [vmem:[%s21051_s14] sm:$0xff]  ;;  %v7478_v13 = vld [vmem:[%s21051_s14 + $0x8] sm:$0xff] }
0x224d   :  { %v7241_v20 = vmul.f32 %v17612_v14, %v7230_v18  ;;  %v16841_v14 = vpack.c.bf16 %v7478_v13, %v7477_v11  ;;  %v7480_v18 = vld [vmem:[%s21051_s14 + $0x18] sm:$0xff]  ;;  %v14348_v13 = vld [vmem:[%s21051_s14 + $0x20] sm:$0xff] }
0x224f   :  { %15861 = vmatprep.mubr.msk.f32.mxu0 %vm1138_vm1, %v7241_v20  ;;  %16842 = vmatprep.subr.bf16.mxu0 %v16841_v14 }
0x2250   :  { %15862 = vmatmul.mubr.msk.f32.vlgmr.msra.gmra.mrb[48].mxu0 %vm1138_vm1, %v7242_v15  ;;  %v7479_v15 = vld [vmem:[%s21051_s14 + $0x10] sm:$0xff] }
0x2251   :  { %16844 = vmatpush3.bf16.msra.mxu0 %v16841_v14  ;;  %v16845_v20 = vpack.c.bf16 %v7480_v18, %v7479_v15  ;;  %v14349_v14 = vld [vmem:[%s21051_s14 + $0x28] sm:$0xff] }
0x2252   :  { %v16867_v15 = vpack.c.bf16 %v14349_v14, %v14348_v13 }
0x2253   :  { %16846 = vmatprep.subr.bf16.mxu0 %v16845_v20 }
0x2255   :  { %16848 = vmatpush3.bf16.msra.mxu0 %v16845_v20 }
0x22b8   :  { %v5374_v19 = vpop.xlane.xlu0 %5373 }
0x22b9   :  { %v5378_v63 = vmul.f32 0.03125, %v5374_v19 }
0x22bb   :  { %v5380_v25 = vsub.f32 %v5370_v16, %v5378_v63 }
0x22bc   :  { %v5377_v44 = vpop.xlane.xlu0 %5376 }
0x22bd   :  { %v5379_v60 = vmul.f32 0.03125, %v5377_v44  ;;  %v5382_v33 = vmul.f32 %v5380_v25, %v5380_v25 }
0x22bf   :  { %v5381_v21 = vsub.f32 %v5371_v9, %v5379_v60  ;;  %v5384_v34 = vsel %vm880_vm0, %v5382_v33, 0.0  ;;  %v14333_v33 = vld [vmem:[%s21052_s6] ss:$0 sm:$0xff] }
0x22c1   :  { %v5383_v23 = vmul.f32 %v5381_v21, %v5381_v21 }
0x22c3   :  { %v5387_v40 = vsel %vm880_vm0, %v5383_v23, 0.0 }
0x2323   :  { %v15863_v1 = vpop.f32.mrb[48].mxu0 }
0x2324   :  { %v7334_v22 = vadd.f32 %v15863_v1, %v14330_v0  ;;  %v7315_v24 = vpop.f32.mrb[49].mxu0 }
0x2325   :  { %v7333_v59 = vadd.f32 %v14330_v0, %v7315_v24 }
0x2326   :  { %v7336_v28 = vadd.f32 %v7334_v22, %v19988_v46  ;;  %v7381_v46 = vld [vmem:[%s21049_s13] sm:$0xff] }
0x2327   :  { %v7335_v62 = vadd.f32 %v7333_v59, %v19977_v39  ;;  %v7382_v39 = vld [vmem:[%s21049_s13 + $0x8] sm:$0xff]  ;;  %v14331_v22 = vld [vmem:[#allocation8] ss:$0 sm:$0xff] }
0x2328   :  { %v7340_v30 = vsel %vm880_vm0, %v7336_v28, 0.0  ;;  %v16833_v35 = vpack.c.bf16 %v7382_v39, %v7381_v46 }
0x2329   :  { %7341 = vadd.xlane.f32.xlu1 %v7340_v30  ;;  %v7337_v31 = vsel %vm880_vm0, %v7335_v62, 0.0 }
0x232a   :  { %7338 = vadd.xlane.f32.xlu0 %v7337_v31  ;;  %16834 = vmatprep.subr.bf16.mxu1 %v16833_v35 }
0x232b   :  { %16836 = vmatpush3.bf16.msra.mxu1 %v16833_v35 }
0x232c   :  { %16838 = vmatprep.subr.bf16.mxu1 %v16837_v43 }
0x232d   :  { %5388 = vadd.xlane.f32.xlu1 %v5387_v40 }
0x232e   :  { %5385 = vadd.xlane.f32.xlu0 %v5384_v34 }
0x232f   :  { %16840 = vmatpush3.bf16.msra.mxu1 %v16837_v43 }
0x2330   :  { %16850 = vmatprep.subr.bf16.mxu1 %v16849_v32 }
0x23b6   :  { %v7342_v48 = vpop.xlane.xlu1 %7341 }
0x23b7   :  { %v7344_v17 = vmul.f32 0.03125, %v7342_v48  ;;  %v7339_v36 = vpop.xlane.xlu0 %7338 }
0x23b8   :  { %v7343_v50 = vmul.f32 0.03125, %v7339_v36  ;;  %v14357_v36 = vld [vmem:[%s21050_s30 + $0x28] sm:$0xff] }
0x23b9   :  { %v7346_v51 = vsub.f32 %v7336_v28, %v7344_v17  ;;  %v14332_v28 = vld [vmem:[#allocation7] ss:$0 sm:$0xff] }
0x23ba   :  { %v7345_v47 = vsub.f32 %v7335_v62, %v7343_v50  ;;  %v5389_v52 = vpop.xlane.xlu1 %5388  ;;  %v14356_v17 = vld [vmem:[%s21050_s30 + $0x20] sm:$0xff] }
0x23bb   :  { %v5391_v26 = vmul.f32 0.03125, %v5389_v52  ;;  %v5386_v49 = vpop.xlane.xlu0 %5385  ;;  %v7348_v53 = vmul.f32 %v7346_v51, %v7346_v51  ;;  %v16875_v50 = vpack.c.bf16 %v14357_v36, %v14356_v17  ;;  %v14358_v52 = vld [vmem:[%s21050_s30 + $0x30] sm:$0xff] }
0x23bc   :  { %v5390_v54 = vmul.f32 0.03125, %v5386_v49  ;;  %v7347_v29 = vmul.f32 %v7345_v47, %v7345_v47 }
0x23bd   :  { %v5393_v55 = vadd.f32 1e-05, %v5391_v26  ;;  %v7352_v56 = vsel %vm880_vm0, %v7348_v53, 0.0  ;;  %v14359_v26 = vld [vmem:[%s21050_s30 + $0x38] sm:$0xff] }
0x23be   :  { %v5392_v38 = vadd.f32 1e-05, %v5390_v54  ;;  %7353 = vadd.xlane.f32.xlu1 %v7352_v56  ;;  %v7349_v57 = vsel %vm880_vm0, %v7347_v29, 0.0  ;;  %v16879_v29 = vpack.c.bf16 %v14359_v26, %v14358_v52  ;;  %v14379_v52 = vld [vmem:[%s21054_s2 + $0x2] ss:$0 sm:$0xff] }
0x23bf   :  { %17613 = vrsqrt.f32 %v5393_v55  ;;  %7350 = vadd.xlane.f32.xlu0 %v7349_v57 }
0x23c0   :  { %17615 = vrsqrt.f32 %v5392_v38 }
0x23c9   :  { %v17614_v58 = vpop.eup %17613 }
0x23ca   :  { %v17616_v2 = vpop.eup %17615  ;;  %v5397_v3 = vmul.f32 %v17614_v58, %v5381_v21  ;;  %v20256_v58 = vld [vmem:[%s21028_s27 + $0x8] sm:$0xff] }
0x23cb   :  { %v5396_v4 = vmul.f32 %v17616_v2, %v5380_v25  ;;  %v20260_v2 = vld [vmem:[%s21028_s27] sm:$0xff] }
0x23cc   :  { %v5406_v12 = vmul.f32 %v14239_v61, %v5397_v3 }
0x23cd   :  { %v5405_v16 = vmul.f32 %v14239_v61, %v5396_v4  ;;  %v14361_v4 = vld [vmem:[%s21053_s1 + $0x1] ss:$0 sm:$0xff] }
0x23ce   :  { %v20208_v8 = vadd.f32 %v14240_v5, %v5406_v12 }
0x23cf   :  { %v20210_v9 = vadd.f32 %v14240_v5, %v5405_v16 }
0x23d0   :  { %5417 = vst.msk [vmem:[#allocation68 + $0x8] sm:$0xff] %vm880_vm0, %v20208_v8 }
0x23d1   :  { %5416 = vst.msk [vmem:[#allocation68] sm:$0xff] %vm880_vm0, %v20210_v9  ;;  %15872 = vmatprep.mubr.msk.f32.mxu1 %vm880_vm0, %v20210_v9 }
0x23d2   :  { %15873 = vmatmul.mubr.msk.f32.vlgmr.msra.gmra.mrb[58].mxu1 %vm880_vm0, %v20208_v8 }
0x23d3   :  { %16852 = vmatpush3.bf16.msra.mxu1 %v16849_v32  ;;  %15894 = vmatprep.mubr.msk.f32.mxu1 %vm880_vm0, %v20210_v9 }
0x23d4   :  { %16854 = vmatprep.subr.bf16.mxu1 %v16853_v10 }
0x23d7   :  { %16856 = vmatpush3.bf16.msra.mxu1 %v16853_v10 }
0x23da   :  { %15895 = vmatmul.mubr.msk.f32.vlgmr.msra.gmra.mrb[60].mxu1 %vm880_vm0, %v20208_v8 }
0x244b   :  { %v7354_v19 = vpop.xlane.xlu1 %7353 }
0x244c   :  { %v7356_v44 = vmul.f32 0.03125, %v7354_v19  ;;  %v7351_v60 = vpop.xlane.xlu0 %7350 }
0x244d   :  { %v7355_v63 = vmul.f32 0.03125, %v7351_v60 }
0x244e   :  { %v7358_v0 = vadd.f32 1e-05, %v7356_v44 }
0x244f   :  { %v7357_v1 = vadd.f32 1e-05, %v7355_v63 }
0x2450   :  { %17617 = vrsqrt.f32 %v7358_v0  ;;  %v14350_v0 = vld [vmem:[%s21051_s14 + $0x30] sm:$0xff] }
0x2451   :  { %17619 = vrsqrt.f32 %v7357_v1  ;;  %v14351_v1 = vld [vmem:[%s21051_s14 + $0x38] sm:$0xff] }
0x245a   :  { %v17618_v21 = vpop.eup %17617 }
0x245b   :  { %v17620_v24 = vpop.eup %17619  ;;  %v7362_v25 = vmul.f32 %v17618_v21, %v7346_v51  ;;  %v14336_v51 = vld [vmem:[%s21054_s2] ss:$0 sm:$0xff] }
0x245c   :  { %v7361_v59 = vmul.f32 %v17620_v24, %v7345_v47  ;;  %v16871_v24 = vpack.c.bf16 %v14351_v1, %v14350_v0  ;;  %v7474_v1 = vld [vmem:[%s21055_s0 + $0x8] sm:$0xff] }
0x245d   :  { %v7371_v62 = vmul.f32 %v14331_v22, %v7362_v25 }
0x245e   :  { %v7370_v30 = vmul.f32 %v14331_v22, %v7361_v59 }
0x245f   :  { %v20230_v31 = vadd.f32 %v14332_v28, %v7371_v62 }
0x2460   :  { %v20228_v23 = vadd.f32 %v14332_v28, %v7370_v30  ;;  %v14374_v30 = vld [vmem:[%s21051_s14 + $0x40] sm:$0xff] }
0x2462   :  { %15883 = vmatprep.mubr.msk.f32.mxu0 %vm880_vm0, %v20228_v23 }
0x2463   :  { %15884 = vmatmul.mubr.msk.f32.vlgmr.msra.gmra.mrb[58].mxu0 %vm880_vm0, %v20230_v31 }
0x24a5   :  { %v15874_v40 = vpop.f32.mrb[58].mxu1 }
0x24a6   :  { %v7470_v34 = vadd.f32 %v15874_v40, %v14333_v33  ;;  %v7464_v46 = vpop.f32.mrb[59].mxu1 }
0x24a7   :  { %v7465_v39 = vadd.f32 %v14333_v33, %v7464_v46  ;;  %v14375_v33 = vld [vmem:[%s21051_s14 + $0x48] sm:$0xff] }
0x24a8   :  { %v16893_v40 = vpack.c.bf16 %v14375_v33, %v14374_v30  ;;  %v14382_v30 = vld [vmem:[%s21050_s30 + $0x40] sm:$0xff]  ;;  %v14383_v33 = vld [vmem:[%s21050_s30 + $0x48] sm:$0xff] }
0x24a9   :  { %v16857_v35 = vpack.c.bf16 %v7470_v34, %v7465_v39  ;;  %v20237_v42 = vpack.i.bf16 %v7470_v34, %v7465_v39  ;;  %v14353_v39 = vld [vmem:[%s21054_s2 + $0x1] ss:$0 sm:$0xff] }
0x24ab   :  { %16859 = vmatprep.subr.msk.bf16.mxu0 %vm19598_vm2, %v16857_v35 }
0x24ac   :  { %16862 = vmatpush3.bf16.xpose.msk.msra.mxu0 %vm19598_vm2, %v16857_v35 }
0x24ad   :  { %v15896_v43 = vpop.f32.mrb[60].mxu1  ;;  %16876 = vmatprep.subr.bf16.mxu0 %v16875_v50 }
0x24ae   :  { %v7652_v45 = vadd.f32 %v15896_v43, %v14339_v41  ;;  %v7646_v37 = vpop.f32.mrb[61].mxu1  ;;  %v14377_v43 = vld [vmem:[%s21051_s14 + $0x58] sm:$0xff] }
0x24af   :  { %v7647_v32 = vadd.f32 %v14339_v41, %v7646_v37  ;;  %v14376_v41 = vld [vmem:[%s21051_s14 + $0x50] sm:$0xff] }
0x24b1   :  { %v16863_v48 = vpack.c.bf16 %v7652_v45, %v7647_v32 }
0x24b3   :  { %16864 = vmatprep.subr.bf16.mxu1 %v16863_v48 }
0x24b4   :  { %16866 = vmatpush3.bf16.msra.mxu1 %v16863_v48  ;;  %v16897_v48 = vpack.c.bf16 %v14377_v43, %v14376_v41 }
0x24b5   :  { %16868 = vmatprep.subr.bf16.mxu1 %v16867_v15 }
0x2536   :  { %v15885_v47 = vpop.f32.mrb[58].mxu0 }
0x2537   :  { %v7560_v49 = vpop.f32.mrb[59].mxu0  ;;  %v7566_v54 = vadd.f32 %v15885_v47, %v14336_v51 }
0x2538   :  { %v7561_v53 = vadd.f32 %v14336_v51, %v7560_v49 }
0x253a   :  { %15901 = vmatprep.mubr.msk.f32.mxu0 %vm1138_vm1, %v7561_v53 }
0x253b   :  { %15902 = vmatmul.mubr.msk.f32.vlgmr.msra.gmra.mrb[60].mxu0 %vm1138_vm1, %v7566_v54 }
0x253c   :  { %16878 = vmatpush3.bf16.msra.mxu0 %v16875_v50  ;;  %15930 = vmatprep.mubr.msk.f32.mxu0 %vm880_vm0, %v20210_v9 }
0x253d   :  { %16880 = vmatprep.subr.bf16.mxu0 %v16879_v29 }
0x2540   :  { %16882 = vmatpush3.bf16.msra.mxu0 %v16879_v29 }
0x2543   :  { %15931 = vmatmul.mubr.msk.f32.vlgmr.msra.gmra.mrb[62].mxu0 %vm880_vm0, %v20208_v8 }
0x260e   :  { %v15903_v55 = vpop.f32.mrb[60].mxu0 }
0x260f   :  { %v7743_v56 = vmul.f32 0.35355338, %v15903_v55  ;;  %v7733_v38 = vpop.f32.mrb[61].mxu0 }
0x2610   :  { %v7742_v57 = vmul.f32 0.35355338, %v7733_v38 }
0x2611   :  { %v7745_v61 = vadd.f32 %v20256_v58, %v7743_v56 }
0x2612   :  { %v7744_v3 = vadd.f32 %v20260_v2, %v7742_v57 }
0x2613   :  { %v7749_v5 = vsel %vm1230_vm3, %v7745_v61, -inf }
0x2614   :  { %7750 = vmax.xlane.f32.xlu1 %v7749_v5  ;;  %v7746_v12 = vsel %vm1230_vm3, %v7744_v3, -inf }
0x2615   :  { %7747 = vmax.xlane.f32.xlu0 %v7746_v12 }
0x2616   :  { %v15932_v16 = vpop.f32.mrb[62].mxu0 }
0x2617   :  { %v8022_v6 = vadd.f32 %v15932_v16, %v14361_v4  ;;  %v8016_v7 = vpop.f32.mrb[63].mxu0  ;;  %v14398_v16 = vld [vmem:[%s21051_s14 + $0x60] sm:$0xff] }
0x2618   :  { %v8017_v10 = vadd.f32 %v14361_v4, %v8016_v7 }
0x261a   :  { %v16889_v11 = vpack.c.bf16 %v8022_v6, %v8017_v10  ;;  %v14399_v6 = vld [vmem:[%s21051_s14 + $0x68] sm:$0xff] }
0x261b   :  { %v16919_v13 = vpack.c.bf16 %v14399_v6, %v14398_v16 }
0x261c   :  { %16890 = vmatprep.subr.bf16.mxu0 %v16889_v11 }
0x261d   :  { %16892 = vmatpush3.bf16.msra.mxu0 %v16889_v11 }
0x261e   :  { %15947 = vmatprep.subr.mxu0 %v7474_v1 }
0x262b   :  { %17441 = vrot.lane.b32.xlu0 %v20237_v42, %s18916_s19 }
0x26a1   :  { %v7751_v18 = vpop.xlane.xlu1 %7750 }
0x26a2   :  { %v7753_v20 = vsub.f32 %v7745_v61, %v7751_v18  ;;  %v7748_v19 = vpop.xlane.xlu0 %7747  ;;  %v14400_v18 = vld [vmem:[%s21051_s14 + $0x70] sm:$0xff] }
0x26a3   :  { %v7752_v44 = vsub.f32 %v7744_v3, %v7748_v19 }
0x26a4   :  { %v7756_v60 = vmul.f32 1.442695, %v7753_v20  ;;  %v14401_v20 = vld [vmem:[%s21051_s14 + $0x78] sm:$0xff] }
0x26a5   :  { %v7754_v63 = vmul.f32 1.442695, %v7752_v44 }
0x26a6   :  { %v17442_v21 = vpop.permute.xlu0 %17441 }
0x26a7   :  { %17621 = vpow2.f32 %v7754_v63  ;;  %v17444_v59 = vunpack.i.h.bf16 %v17442_v21  ;;  %v17443_v28 = vunpack.i.l.bf16 %v17442_v21  ;;  %v16923_v63 = vpack.c.bf16 %v14401_v20, %v14400_v18  ;;  %v7473_v21 = vld [vmem:[%s21055_s0] sm:$0xff] }
0x26a8   :  { %17623 = vpow2.f32 %v7756_v60 }
0x26a9   :  { %v16883_v62 = vpack.c.bf16 %v17444_v59, %v17443_v28 }
0x26b1   :  { %v20272_v22 = vpop.eup %17621 }
0x26b2   :  { %v20274_v25 = vpop.eup %17623  ;;  %15908 = vmatprep.mubr.msk.f32.mxu1 %vm1230_vm3, %v20272_v22  ;;  %v7758_v44 = vsel %vm1230_vm3, %v20272_v22, 0.0 }
0x26b3   :  { %15909 = vmatmul.mubr.msk.f32.vlgmr.msra.gmra.mrb[62].mxu1 %vm1230_vm3, %v20274_v25  ;;  %v7761_v0 = vsel %vm1230_vm3, %v20274_v25, 0.0 }
0x26b4   :  { %16870 = vmatpush3.bf16.msra.mxu1 %v16867_v15  ;;  %15919 = vmatprep.mubr.msk.f32.mxu1 %vm880_vm0, %v20228_v23 }
0x26b5   :  { %16872 = vmatprep.subr.bf16.mxu1 %v16871_v24 }
0x26b8   :  { %16874 = vmatpush3.bf16.msra.mxu1 %v16871_v24 }
0x26b9   :  { %16885 = vmatprep.subr.msk.bf16.mxu1 %vm19598_vm2, %v16883_v62 }
0x26bb   :  { %15920 = vmatmul.mubr.msk.f32.vlgmr.msra.gmra.mrb[64].mxu1 %vm880_vm0, %v20230_v31 }
0x26c1   :  { %16888 = vmatpush3.bf16.xpose.msk.msra.mxu1 %vm19598_vm2, %v16883_v62 }
0x26c2   :  { %16894 = vmatprep.subr.bf16.mxu1 %v16893_v40 }
0x2786   :  { %v20290_v34 = vpop.f32.mrb[62].mxu1 }
0x2787   :  { %v20292_v46 = vpop.f32.mrb[63].mxu1 }
0x278e   :  { %v15921_v35 = vpop.f32.mrb[64].mxu1 }
0x278f   :  { %v7928_v45 = vpop.f32.mrb[65].mxu1  ;;  %v7934_v32 = vadd.f32 %v15921_v35, %v14353_v39 }
0x2790   :  { %v7929_v37 = vadd.f32 %v14353_v39, %v7928_v45 }
0x2792   :  { %15937 = vmatprep.mubr.msk.f32.mxu1 %vm1138_vm1, %v7929_v37 }
0x2793   :  { %15938 = vmatmul.mubr.msk.f32.vlgmr.msra.gmra.mrb[66].mxu1 %vm1138_vm1, %v7934_v32 }
0x2794   :  { %16896 = vmatpush3.bf16.msra.mxu1 %v16893_v40  ;;  %15965 = vmatprep.mubr.msk.f32.mxu1 %vm880_vm0, %v20228_v23 }
0x2795   :  { %16898 = vmatprep.subr.bf16.mxu1 %v16897_v48 }
0x2798   :  { %16900 = vmatpush3.bf16.msra.mxu1 %v16897_v48  ;;  %v16901_v48 = vpack.c.bf16 %v14383_v33, %v14382_v30 }
0x279b   :  { %15966 = vmatmul.mubr.msk.f32.vlgmr.msra.gmra.mrb[68].mxu1 %vm880_vm0, %v20230_v31 }
0x2866   :  { %v15939_v17 = vpop.f32.mrb[66].mxu1 }
0x2867   :  { %v8105_v36 = vpop.f32.mrb[67].mxu1  ;;  %v8115_v50 = vmul.f32 0.35355338, %v15939_v17 }
0x2868   :  { %v8114_v51 = vmul.f32 0.35355338, %v8105_v36 }
0x2869   :  { %v8117_v49 = vadd.f32 %v20256_v58, %v8115_v50 }
0x286a   :  { %v8116_v47 = vadd.f32 %v20260_v2, %v8114_v51 }
0x286b   :  { %v8121_v56 = vsel %vm1230_vm3, %v8117_v49, -inf }
0x286c   :  { %v8118_v26 = vsel %vm1230_vm3, %v8116_v47, -inf }
0x286d   :  { %8119 = vmax.xlane.f32.xlu1 %v8118_v26 }
0x286e   :  { %v15967_v53 = vpop.f32.mrb[68].mxu1 }
0x286f   :  { %v8468_v54 = vadd.f32 %v15967_v53, %v14379_v52  ;;  %v8462_v29 = vpop.f32.mrb[69].mxu1  ;;  %v14384_v53 = vld [vmem:[%s21050_s30 + $0x50] sm:$0xff] }
0x2870   :  { %v8463_v55 = vadd.f32 %v14379_v52, %v8462_v29 }
0x2871   :  { %8122 = vmax.xlane.f32.xlu1 %v8121_v56 }
0x2872   :  { %15983 = vmatprep.mubr.msk.f32.mxu1 %vm1138_vm1, %v8463_v55 }
0x2882   :  { %17446 = vrot.lane.b32.xlu1 %v20237_v42, %s18917_s3 }
0x28fa   :  { %v8120_v38 = vpop.xlane.xlu1 %8119 }
0x28fb   :  { %v8124_v57 = vsub.f32 %v8116_v47, %v8120_v38 }
0x28fd   :  { %v8126_v61 = vmul.f32 1.442695, %v8124_v57 }
0x28fe   :  { %v8123_v3 = vpop.xlane.xlu1 %8122 }
0x28ff   :  { %17625 = vpow2.f32 %v8126_v61  ;;  %v8125_v5 = vsub.f32 %v8117_v49, %v8123_v3  ;;  %v14403_v49 = vld [vmem:[%s21054_s2 + $0x3] ss:$0 sm:$0xff] }
0x2901   :  { %v8128_v4 = vmul.f32 1.442695, %v8125_v5 }
0x2902   :  { %v17447_v12 = vpop.permute.xlu1 %17446 }
0x2903   :  { %17627 = vpow2.f32 %v8128_v4  ;;  %v17449_v7 = vunpack.i.h.bf16 %v17447_v12  ;;  %v17448_v10 = vunpack.i.l.bf16 %v17447_v12 }
0x2905   :  { %v16909_v11 = vpack.c.bf16 %v17449_v7, %v17448_v10 }
0x2907   :  { %16911 = vmatprep.subr.msk.bf16.mxu1 %vm19598_vm2, %v16909_v11 }
0x2908   :  { %16914 = vmatpush3.bf16.xpose.msk.msra.mxu1 %vm19598_vm2, %v16909_v11 }
0x2909   :  { %v17626_v14 = vpop.eup %17625  ;;  %16920 = vmatprep.subr.bf16.mxu1 %v16919_v13 }
0x290a   :  { %15944 = vmatprep.mubr.msk.f32.mxu0 %vm1230_vm3, %v17626_v14  ;;  %v8130_v15 = vsel %vm1230_vm3, %v17626_v14, 0.0 }
0x290b   :  { %8131 = vadd.xlane.f32.xlu0 %v8130_v15  ;;  %v14387_v15 = vld [vmem:[%s21053_s1 + $0x2] ss:$0 sm:$0xff] }
0x290d   :  { %v17628_v19 = vpop.eup %17627 }
0x290e   :  { %15945 = vmatmul.mubr.msk.f32.vlgmr.msra.gmra.mrb[64].mxu0 %vm1230_vm3, %v17628_v19  ;;  %v8133_v60 = vsel %vm1230_vm3, %v17628_v19, 0.0 }
0x290f   :  { %7759 = vadd.xlane.f32.xlu0 %v7758_v44  ;;  %8134 = vadd.xlane.f32.xlu1 %v8133_v60 }
0x2910   :  { %15984 = vmatmul.mubr.msk.f32.vlgmr.msra.gmra.mrb[70].mxu1 %vm1138_vm1, %v8468_v54  ;;  %15948 = vmatpush3.msra.mxu0 %v7474_v1  ;;  %v14385_v54 = vld [vmem:[%s21050_s30 + $0x58] sm:$0xff]  ;;  %v14407_v1 = vld [vmem:[%s21050_s30 + $0x68] sm:$0xff] }
0x2911   :  { %16922 = vmatpush3.bf16.msra.mxu1 %v16919_v13  ;;  %16006 = vmatprep.mubr.msk.f32.mxu1 %vm880_vm0, %v20228_v23  ;;  %v16905_v38 = vpack.c.bf16 %v14385_v54, %v14384_v53 }
0x2912   :  { %16924 = vmatprep.subr.bf16.mxu1 %v16923_v63  ;;  %15952 = vmatprep.subr.mxu0 %v7473_v21 }
0x2913   :  { %7762 = vadd.xlane.f32.xlu0 %v7761_v0  ;;  %v14406_v0 = vld [vmem:[%s21050_s30 + $0x60] sm:$0xff] }
0x2915   :  { %16926 = vmatpush3.bf16.msra.mxu1 %v16923_v63  ;;  %v7475_v63 = vld [vmem:[%s21055_s0 + $0x10] sm:$0xff] }
0x2918   :  { %16007 = vmatmul.mubr.msk.f32.vlgmr.msra.gmra.mrb[72].mxu1 %vm880_vm0, %v20230_v31 }
0x2998   :  { %v8132_v22 = vpop.xlane.xlu0 %8131 }
0x2999   :  { %17629 = vrcp.f32 %v8132_v22 }
0x299c   :  { %v7760_v24 = vpop.xlane.xlu0 %7759  ;;  %v8135_v59 = vpop.xlane.xlu1 %8134 }
0x299d   :  { %17631 = vrcp.f32 %v7760_v24 }
0x299e   :  { %17633 = vrcp.f32 %v8135_v59 }
0x29a0   :  { %v7763_v25 = vpop.xlane.xlu0 %7762 }
0x29a1   :  { %17635 = vrcp.f32 %v7763_v25 }
0x29a3   :  { %v17630_v28 = vpop.eup %17629 }
0x29a7   :  { %v17632_v40 = vpop.eup %17631 }
0x29a8   :  { %v17634_v35 = vpop.eup %17633  ;;  %v7847_v36 = vmul.f32 %v17632_v40, %v20292_v46 }
0x29ab   :  { %v17636_v52 = vpop.eup %17635 }
0x29ac   :  { %v7848_v29 = vmul.f32 %v17636_v52, %v20290_v34 }
0x29e1   :  { %v15946_v62 = vpop.f32.mrb[64].mxu0 }
0x29e2   :  { %v8208_v39 = vpop.f32.mrb[65].mxu0  ;;  %v8220_v45 = vmul.f32 %v17634_v35, %v15946_v62 }
0x29e3   :  { %v8219_v41 = vmul.f32 %v17630_v28, %v8208_v39  ;;  %v15985_v43 = vpop.f32.mrb[70].mxu1 }
0x29e4   :  { %v8649_v37 = vmul.f32 0.35355338, %v15985_v43  ;;  %v8639_v32 = vpop.f32.mrb[71].mxu1  ;;  %v14409_v43 = vld [vmem:[%s21050_s30 + $0x78] sm:$0xff] }
0x29e5   :  { %v8648_v17 = vmul.f32 0.35355338, %v8639_v32  ;;  %15949 = vmatprep.mubr.msk.f32.mxu0 %vm1138_vm1, %v8219_v41  ;;  %v14408_v41 = vld [vmem:[%s21050_s30 + $0x70] sm:$0xff] }
0x29e6   :  { %v8651_v50 = vadd.f32 %v20256_v58, %v8649_v37  ;;  %15950 = vmatmul.mubr.msk.f32.vlgmr.msra.gmra.mrb[66].mxu0 %vm1138_vm1, %v8220_v45 }
0x29e7   :  { %15953 = vmatpush3.msra.mxu0 %v7473_v21  ;;  %15954 = vmatprep.mubr.msk.f32.mxu0 %vm1138_vm1, %v7847_v36  ;;  %v8650_v51 = vadd.f32 %v20260_v2, %v8648_v17  ;;  %v16927_v21 = vpack.c.bf16 %v14407_v1, %v14406_v0  ;;  %v16931_v17 = vpack.c.bf16 %v14409_v43, %v14408_v41 }
0x29e8   :  { %v8655_v47 = vsel %vm1230_vm3, %v8651_v50, -inf  ;;  %16902 = vmatprep.subr.bf16.mxu0 %v16901_v48 }
0x29e9   :  { %8656 = vmax.xlane.f32.xlu1 %v8655_v47  ;;  %v8652_v26 = vsel %vm1230_vm3, %v8650_v51, -inf }
0x29ea   :  { %8653 = vmax.xlane.f32.xlu0 %v8652_v26 }
0x29eb   :  { %v16008_v46 = vpop.f32.mrb[72].mxu1 }
0x29ec   :  { %v8923_v55 = vadd.f32 %v16008_v46, %v14403_v49  ;;  %v8917_v56 = vpop.f32.mrb[73].mxu1  ;;  %v14411_v46 = vld [vmem:[%s21053_s1 + $0x3] ss:$0 sm:$0xff] }
0x29ed   :  { %v8918_v57 = vadd.f32 %v14403_v49, %v8917_v56 }
0x29ee   :  { %15955 = vmatmul.mubr.msk.f32.vlgmr.msra.gmra.mrb[66].mxu0 %vm1138_vm1, %v7848_v29 }
0x29ef   :  { %16904 = vmatpush3.bf16.msra.mxu0 %v16901_v48  ;;  %16024 = vmatprep.mubr.msk.f32.mxu1 %vm1138_vm1, %v8918_v57 }
0x29f0   :  { %15976 = vmatprep.mubr.msk.f32.mxu0 %vm880_vm0, %v20210_v9  ;;  %16906 = vmatprep.subr.bf16.mxu0 %v16905_v38 }
0x29f3   :  { %16908 = vmatpush3.bf16.msra.mxu0 %v16905_v38 }
0x29f6   :  { %15977 = vmatmul.mubr.msk.f32.vlgmr.msra.gmra.mrb[68].mxu0 %vm880_vm0, %v20208_v8 }
0x2a00   :  { %17451 = vrot.lane.b32.xlu0 %v20237_v42, %s18918_s7 }
0x2a76   :  { %v8657_v34 = vpop.xlane.xlu1 %8656 }
0x2a77   :  { %v8659_v61 = vsub.f32 %v8651_v50, %v8657_v34  ;;  %v8654_v3 = vpop.xlane.xlu0 %8653  ;;  %v7476_v34 = vld [vmem:[%s21055_s0 + $0x18] sm:$0xff] }
0x2a78   :  { %v8658_v5 = vsub.f32 %v8650_v51, %v8654_v3 }
0x2a79   :  { %v8662_v4 = vmul.f32 1.442695, %v8659_v61 }
0x2a7a   :  { %v8660_v12 = vmul.f32 1.442695, %v8658_v5 }
0x2a7b   :  { %v17452_v16 = vpop.permute.xlu0 %17451 }
0x2a7c   :  { %17637 = vpow2.f32 %v8660_v12  ;;  %v17454_v6 = vunpack.i.h.bf16 %v17452_v16  ;;  %v17453_v7 = vunpack.i.l.bf16 %v17452_v16 }
0x2a7d   :  { %17639 = vpow2.f32 %v8662_v4 }
0x2a7e   :  { %v16935_v10 = vpack.c.bf16 %v17454_v6, %v17453_v7 }
0x2a80   :  { %16937 = vmatprep.subr.msk.bf16.mxu1 %vm19598_vm2, %v16935_v10 }
0x2a81   :  { %16940 = vmatpush3.bf16.xpose.msk.msra.mxu1 %vm19598_vm2, %v16935_v10  ;;  %v14422_v10 = vld [vmem:[%s21056_s10] ss:$0 sm:$0xff] }
0x2a86   :  { %v17638_v42 = vpop.eup %17637 }
0x2a87   :  { %15990 = vmatprep.mubr.msk.f32.mxu0 %vm1230_vm3, %v17638_v42  ;;  %v8664_v11 = vsel %vm1230_vm3, %v17638_v42, 0.0  ;;  %v17640_v13 = vpop.eup %17639 }
0x2a88   :  { %8665 = vadd.xlane.f32.xlu1 %v8664_v11  ;;  %16025 = vmatmul.mubr.msk.f32.vlgmr.msra.gmra.mrb[74].mxu1 %vm1138_vm1, %v8923_v55  ;;  %v8667_v14 = vsel %vm1230_vm3, %v17640_v13, 0.0 }
0x2a8c   :  { %8668 = vadd.xlane.f32.xlu1 %v8667_v14 }
0x2ac9   :  { %v15978_v18 = vpop.f32.mrb[68].mxu0 }
0x2aca   :  { %v8556_v20 = vadd.f32 %v15978_v18, %v14387_v15  ;;  %v8550_v19 = vpop.f32.mrb[69].mxu0 }
0x2acb   :  { %v8551_v44 = vadd.f32 %v14387_v15, %v8550_v19 }
0x2acd   :  { %v16915_v60 = vpack.c.bf16 %v8556_v20, %v8551_v44 }
0x2acf   :  { %16916 = vmatprep.subr.bf16.mxu0 %v16915_v60 }
0x2ad0   :  { %16918 = vmatpush3.bf16.msra.mxu0 %v16915_v60 }
0x2ad1   :  { %15993 = vmatprep.subr.mxu0 %v7475_v63 }
0x2ad3   :  { %15991 = vmatmul.mubr.msk.f32.vlgmr.msra.gmra.mrb[70].mxu0 %vm1230_vm3, %v17640_v13 }
0x2ad4   :  { %15994 = vmatpush3.msra.mxu0 %v7475_v63 }
0x2ad5   :  { %16928 = vmatprep.subr.bf16.mxu0 %v16927_v21 }
0x2b15   :  { %v8666_v40 = vpop.xlane.xlu1 %8665 }
0x2b16   :  { %17641 = vrcp.f32 %v8666_v40 }
0x2b19   :  { %v8669_v39 = vpop.xlane.xlu1 %8668 }
0x2b1a   :  { %17643 = vrcp.f32 %v8669_v39 }
0x2b20   :  { %v17642_v45 = vpop.eup %17641 }
0x2b24   :  { %v17644_v32 = vpop.eup %17643 }
0x2b5b   :  { %v16026_v22 = vpop.f32.mrb[74].mxu1 }
0x2b5c   :  { %v9094_v24 = vpop.f32.mrb[75].mxu1  ;;  %v9104_v59 = vmul.f32 0.35355338, %v16026_v22 }
0x2b5d   :  { %v9103_v25 = vmul.f32 0.35355338, %v9094_v24 }
0x2b5e   :  { %v9106_v62 = vadd.f32 %v20256_v58, %v9104_v59  ;;  %v9348_v59 = vld [vmem:[%s21057_s9] sm:$0xff] }
0x2b5f   :  { %v9105_v28 = vadd.f32 %v20260_v2, %v9103_v25  ;;  %v9349_v25 = vld [vmem:[%s21057_s9 + $0x8] sm:$0xff] }
0x2b60   :  { %v9110_v33 = vsel %vm1230_vm3, %v9106_v62, -inf }
0x2b61   :  { %v9107_v30 = vsel %vm1230_vm3, %v9105_v28, -inf }
0x2b62   :  { %9108 = vmax.xlane.f32.xlu1 %v9107_v30  ;;  %v9351_v30 = vld [vmem:[%s21057_s9 + $0x18] sm:$0xff] }
0x2b66   :  { %9111 = vmax.xlane.f32.xlu1 %v9110_v33 }
0x2ba6   :  { %v15992_v35 = vpop.f32.mrb[70].mxu0 }
0x2ba7   :  { %v8742_v37 = vpop.f32.mrb[71].mxu0  ;;  %v8754_v2 = vmul.f32 %v17644_v32, %v15992_v35  ;;  %v14423_v32 = vld [vmem:[#allocation11] ss:$0 sm:$0xff] }
0x2ba8   :  { %v8753_v48 = vmul.f32 %v17642_v45, %v8742_v37 }
0x2baa   :  { %15995 = vmatprep.mubr.msk.f32.mxu0 %vm1138_vm1, %v8753_v48 }
0x2bab   :  { %15996 = vmatmul.mubr.msk.f32.vlgmr.msra.gmra.mrb[66].mxu0 %vm1138_vm1, %v8754_v2  ;;  %v14424_v2 = vld [vmem:[#allocation10] ss:$0 sm:$0xff] }
0x2bac   :  { %16930 = vmatpush3.bf16.msra.mxu0 %v16927_v21  ;;  %16017 = vmatprep.mubr.msk.f32.mxu0 %vm880_vm0, %v20210_v9 }
0x2bad   :  { %16932 = vmatprep.subr.bf16.mxu0 %v16931_v17 }
0x2bb0   :  { %16934 = vmatpush3.bf16.msra.mxu0 %v16931_v17 }
0x2bb3   :  { %16018 = vmatmul.mubr.msk.f32.vlgmr.msra.gmra.mrb[72].mxu0 %vm880_vm0, %v20208_v8 }
0x2bef   :  { %v9109_v58 = vpop.xlane.xlu1 %9108 }
0x2bf0   :  { %v9113_v36 = vsub.f32 %v9105_v28, %v9109_v58  ;;  %v16945_v28 = vpack.c.bf16 %v9349_v25, %v9348_v59 }
0x2bf2   :  { %v9115_v50 = vmul.f32 1.442695, %v9113_v36  ;;  %16946 = vmatprep.subr.bf16.mxu1 %v16945_v28 }
0x2bf3   :  { %v9112_v51 = vpop.xlane.xlu1 %9111  ;;  %16948 = vmatpush3.bf16.msra.mxu1 %v16945_v28 }
0x2bf4   :  { %17645 = vpow2.f32 %v9115_v50  ;;  %v9114_v47 = vsub.f32 %v9106_v62, %v9112_v51  ;;  %v9350_v62 = vld [vmem:[%s21057_s9 + $0x10] sm:$0xff] }
0x2bf5   :  { %v16949_v33 = vpack.c.bf16 %v9351_v30, %v9350_v62 }
0x2bf6   :  { %v9117_v52 = vmul.f32 1.442695, %v9114_v47 }
0x2bf7   :  { %16950 = vmatprep.subr.bf16.mxu1 %v16949_v33 }
0x2bf8   :  { %17647 = vpow2.f32 %v9117_v52  ;;  %16952 = vmatpush3.bf16.msra.mxu1 %v16949_v33  ;;  %v9494_v52 = vld [vmem:[%s21058_s4] sm:$0xff] }
0x2bfe   :  { %v17646_v26 = vpop.eup %17645 }
0x2bff   :  { %16031 = vmatprep.mubr.msk.f32.mxu0 %vm1230_vm3, %v17646_v26  ;;  %v9119_v49 = vsel %vm1230_vm3, %v17646_v26, 0.0  ;;  %v9495_v26 = vld [vmem:[%s21058_s4 + $0x8] sm:$0xff] }
0x2c00   :  { %9120 = vadd.xlane.f32.xlu1 %v9119_v49  ;;  %v16953_v49 = vpack.c.bf16 %v9495_v26, %v9494_v52 }
0x2c02   :  { %v17648_v53 = vpop.eup %17647 }
0x2c03   :  { %v9122_v54 = vsel %vm1230_vm3, %v17648_v53, 0.0 }
0x2c04   :  { %9123 = vadd.xlane.f32.xlu1 %v9122_v54  ;;  %v9497_v54 = vld [vmem:[%s21058_s4 + $0x18] sm:$0xff] }
0x2c86   :  { %v16019_v29 = vpop.f32.mrb[72].mxu0 }
0x2c87   :  { %v9011_v55 = vadd.f32 %v16019_v29, %v14411_v46  ;;  %v9005_v56 = vpop.f32.mrb[73].mxu0  ;;  %v9498_v29 = vld [vmem:[%s21058_s4 + $0x20] sm:$0xff] }
0x2c88   :  { %v9006_v38 = vadd.f32 %v14411_v46, %v9005_v56 }
0x2c8a   :  { %v16941_v57 = vpack.c.bf16 %v9011_v55, %v9006_v38  ;;  %v9499_v55 = vld [vmem:[%s21058_s4 + $0x28] sm:$0xff]  ;;  %v9500_v38 = vld [vmem:[%s21058_s4 + $0x30] sm:$0xff] }
0x2c8b   :  { %v16961_v56 = vpack.c.bf16 %v9499_v55, %v9498_v29 }
0x2c8c   :  { %16942 = vmatprep.subr.bf16.mxu0 %v16941_v57 }
0x2c8d   :  { %16944 = vmatpush3.bf16.msra.mxu0 %v16941_v57  ;;  %v9121_v61 = vpop.xlane.xlu1 %9120  ;;  %v9501_v57 = vld [vmem:[%s21058_s4 + $0x38] sm:$0xff] }
0x2c8e   :  { %16034 = vmatprep.subr.mxu0 %v7476_v34  ;;  %17649 = vrcp.f32 %v9121_v61  ;;  %v14425_v61 = vld [vmem:[#allocation2] ss:$0 sm:$0xff] }
0x2c90   :  { %16032 = vmatmul.mubr.msk.f32.vlgmr.msra.gmra.mrb[74].mxu0 %vm1230_vm3, %v17648_v53  ;;  %v9496_v53 = vld [vmem:[%s21058_s4 + $0x10] sm:$0xff] }
0x2c91   :  { %16035 = vmatpush3.msra.mxu0 %v7476_v34  ;;  %v9124_v3 = vpop.xlane.xlu1 %9123  ;;  %v16957_v46 = vpack.c.bf16 %v9497_v54, %v9496_v53  ;;  %v16965_v34 = vpack.c.bf16 %v9501_v57, %v9500_v38 }
0x2c92   :  { %17651 = vrcp.f32 %v9124_v3  ;;  %16954 = vmatprep.subr.bf16.mxu0 %v16953_v49 }
0x2c98   :  { %v17650_v4 = vpop.eup %17649 }
0x2c9c   :  { %v17652_v16 = vpop.eup %17651 }
0x2d63   :  { %v16033_v5 = vpop.f32.mrb[74].mxu0 }
0x2d64   :  { %v9197_v12 = vpop.f32.mrb[75].mxu0  ;;  %v9209_v7 = vmul.f32 %v17652_v16, %v16033_v5 }
0x2d65   :  { %v9208_v6 = vmul.f32 %v17650_v4, %v9197_v12 }
0x2d67   :  { %16036 = vmatprep.mubr.msk.f32.mxu0 %vm1138_vm1, %v9208_v6 }
0x2d68   :  { %16037 = vmatmul.mubr.msk.f32.vlgmr.msra.gmra.mrb[66].mxu0 %vm1138_vm1, %v9209_v7 }
0x2d69   :  { %16956 = vmatpush3.bf16.msra.mxu0 %v16953_v49 }
0x2d6a   :  { %16958 = vmatprep.subr.bf16.mxu0 %v16957_v46 }
0x2d6d   :  { %16960 = vmatpush3.bf16.msra.mxu0 %v16957_v46 }
0x2d6e   :  { %16962 = vmatprep.subr.bf16.mxu0 %v16961_v56 }
0x2d71   :  { %16964 = vmatpush3.bf16.msra.mxu0 %v16961_v56  ;;  %v14428_v56 = vld [vmem:[#allocation5] ss:$0 sm:$0xff] }
0x2d72   :  { %16966 = vmatprep.subr.bf16.mxu0 %v16965_v34 }
0x2d75   :  { %16968 = vmatpush3.bf16.msra.mxu0 %v16965_v34 }
0x2e3b   :  { %v16038_v42 = vpop.f32.mrb[66].mxu0 }
0x2e3c   :  { %v9301_v11 = vadd.f32 %v16038_v42, %v14422_v10  ;;  %v9282_v13 = vpop.f32.mrb[67].mxu0 }
0x2e3d   :  { %v9300_v14 = vadd.f32 %v14422_v10, %v9282_v13 }
0x2e3e   :  { %v9303_v15 = vadd.f32 %v9301_v11, %v20230_v31 }
0x2e3f   :  { %v9302_v18 = vadd.f32 %v9300_v14, %v20228_v23 }
0x2e40   :  { %v9307_v20 = vsel %vm880_vm0, %v9303_v15, 0.0 }
0x2e41   :  { %9308 = vadd.xlane.f32.xlu1 %v9307_v20  ;;  %v9304_v19 = vsel %vm880_vm0, %v9302_v18, 0.0 }
0x2e42   :  { %9305 = vadd.xlane.f32.xlu0 %v9304_v19 }
0x2ece   :  { %v9309_v44 = vpop.xlane.xlu1 %9308 }
0x2ecf   :  { %v9311_v60 = vmul.f32 0.03125, %v9309_v44  ;;  %v9306_v63 = vpop.xlane.xlu0 %9305 }
0x2ed0   :  { %v9310_v0 = vmul.f32 0.03125, %v9306_v63 }
0x2ed1   :  { %v9313_v1 = vsub.f32 %v9303_v15, %v9311_v60 }
0x2ed2   :  { %v9312_v21 = vsub.f32 %v9302_v18, %v9310_v0 }
0x2ed3   :  { %v9315_v23 = vmul.f32 %v9313_v1, %v9313_v1 }
0x2ed4   :  { %v9314_v22 = vmul.f32 %v9312_v21, %v9312_v21 }
0x2ed5   :  { %v9319_v24 = vsel %vm880_vm0, %v9315_v23, 0.0 }
0x2ed6   :  { %v9316_v31 = vsel %vm880_vm0, %v9314_v22, 0.0 }
0x2ed7   :  { %9317 = vadd.xlane.f32.xlu1 %v9316_v31 }
0x2edb   :  { %9320 = vadd.xlane.f32.xlu1 %v9319_v24 }
0x2f64   :  { %v9318_v40 = vpop.xlane.xlu1 %9317 }
0x2f65   :  { %v9322_v39 = vmul.f32 0.03125, %v9318_v40 }
0x2f67   :  { %v9324_v35 = vadd.f32 1e-05, %v9322_v39 }
0x2f68   :  { %v9321_v41 = vpop.xlane.xlu1 %9320 }
0x2f69   :  { %17653 = vrsqrt.f32 %v9324_v35  ;;  %v9323_v43 = vmul.f32 0.03125, %v9321_v41 }
0x2f6b   :  { %v9325_v45 = vadd.f32 1e-05, %v9323_v43 }
0x2f6d   :  { %17655 = vrsqrt.f32 %v9325_v45 }
0x2f73   :  { %v17654_v37 = vpop.eup %17653 }
0x2f74   :  { %v9328_v48 = vmul.f32 %v17654_v37, %v9312_v21 }
0x2f76   :  { %v9337_v17 = vmul.f32 %v14423_v32, %v9328_v48 }
0x2f77   :  { %v17656_v58 = vpop.eup %17655 }
0x2f78   :  { %v9329_v36 = vmul.f32 %v17656_v58, %v9313_v1  ;;  %v20400_v50 = vadd.f32 %v14424_v2, %v9337_v17 }
0x2f7a   :  { %v9338_v51 = vmul.f32 %v14423_v32, %v9329_v36  ;;  %16047 = vmatprep.mubr.msk.f32.mxu1 %vm880_vm0, %v20400_v50 }
0x2f7c   :  { %v20404_v47 = vadd.f32 %v14424_v2, %v9338_v51 }
0x2f7e   :  { %16048 = vmatmul.mubr.msk.f32.vlgmr.msra.gmra.mrb[76].mxu1 %vm880_vm0, %v20404_v47 }
0x3051   :  { %v16049_v3 = vpop.f32.mrb[76].mxu1 }
0x3052   :  { %v9437_v5 = vadd.f32 %v16049_v3, %v14425_v61  ;;  %v9431_v4 = vpop.f32.mrb[77].mxu1 }
0x3053   :  { %v9432_v12 = vadd.f32 %v14425_v61, %v9431_v4 }
0x3054   :  { %v9441_v16 = vmul.f32 0.70710677, %v9437_v5  ;;  %v9489_v46 = vmul.f32 0.5, %v9437_v5 }
0x3055   :  { %v9440_v6 = vmul.f32 0.70710677, %v9432_v12  ;;  %v9488_v53 = vmul.f32 0.5, %v9432_v12 }
0x3056   :  { %v9443_v7 = vand.u32 2147483647, %v9441_v16  ;;  %vm9483_vm9 = vcmp.lt.f32.partialorder %v9441_v16, 0.0 }
0x3057   :  { %v9442_v10 = vand.u32 2147483647, %v9440_v6  ;;  %vm9482_vm10 = vcmp.lt.f32.partialorder %v9440_v6, 0.0 }
0x3058   :  { %v9445_v42 = vmul.f32 0.3275911, %v9443_v7  ;;  %v9471_v15 = vsub.f32 0.0, %v9443_v7 }
0x3059   :  { %v9444_v11 = vmul.f32 0.3275911, %v9442_v10  ;;  %v9470_v18 = vsub.f32 0.0, %v9442_v10 }
0x305a   :  { %v9447_v13 = vadd.f32 1.0, %v9445_v42  ;;  %v9473_v19 = vmul.f32 %v9471_v15, %v9443_v7  ;;  %v9636_v15 = vld [vmem:[%s21059_s11] sm:$0xff] }
0x305b   :  { %v9446_v14 = vadd.f32 1.0, %v9444_v11  ;;  %v9472_v63 = vmul.f32 %v9470_v18, %v9442_v10  ;;  %v9637_v18 = vld [vmem:[%s21059_s11 + $0x8] sm:$0xff] }
0x305c   :  { %17657 = vrcp.f32 %v9447_v13  ;;  %v9476_v21 = vmul.f32 1.442695, %v9473_v19  ;;  %v9818_v19 = vld [vmem:[%s21060_s8] sm:$0xff] }
0x305d   :  { %17659 = vrcp.f32 %v9446_v14  ;;  %v9474_v23 = vmul.f32 1.442695, %v9472_v63  ;;  %v9638_v63 = vld [vmem:[%s21059_s11 + $0x10] sm:$0xff] }
0x305e   :  { %17661 = vpow2.f32 %v9476_v21  ;;  %v9820_v21 = vld [vmem:[%s21060_s8 + $0x10] sm:$0xff] }
0x305f   :  { %17663 = vpow2.f32 %v9474_v23  ;;  %v9732_v23 = vld [vmem:[%s21061_s21] sm:$0xff] }
0x3066   :  { %v17658_v20 = vpop.eup %17657 }
0x3067   :  { %v17660_v44 = vpop.eup %17659  ;;  %v9453_v60 = vmul.f32 1.0614054, %v17658_v20 }
0x3068   :  { %v9452_v0 = vmul.f32 1.0614054, %v17660_v44  ;;  %v17662_v45 = vpop.eup %17661 }
0x3069   :  { %v9455_v1 = vadd.f32 -1.4531521, %v9453_v60  ;;  %v17664_v32 = vpop.eup %17663 }
0x306a   :  { %v9454_v22 = vadd.f32 -1.4531521, %v9452_v0  ;;  %v9639_v0 = vld [vmem:[%s21059_s11 + $0x18] sm:$0xff] }
0x306b   :  { %v9457_v31 = vmul.f32 %v17658_v20, %v9455_v1  ;;  %v16973_v1 = vpack.c.bf16 %v9639_v0, %v9638_v63 }
0x306c   :  { %v9456_v24 = vmul.f32 %v17660_v44, %v9454_v22  ;;  %v9821_v22 = vld [vmem:[%s21060_s8 + $0x18] sm:$0xff] }
0x306d   :  { %v9459_v59 = vadd.f32 1.4214138, %v9457_v31  ;;  %v16989_v31 = vpack.c.bf16 %v9821_v22, %v9820_v21  ;;  %v20483_v22 = vld [vmem:[%s21046_s28 + $0x8] sm:$0xff] }
0x306e   :  { %v9458_v25 = vadd.f32 1.4214138, %v9456_v24  ;;  %v9733_v24 = vld [vmem:[%s21061_s21 + $0x8] sm:$0xff] }
0x306f   :  { %v9461_v28 = vmul.f32 %v17658_v20, %v9459_v59  ;;  %v16977_v59 = vpack.c.bf16 %v9733_v24, %v9732_v23  ;;  %v14453_v24 = vld [vmem:[%s21063_s16 + $0x1] ss:$0 sm:$0xff] }
0x3070   :  { %v9460_v62 = vmul.f32 %v17660_v44, %v9458_v25 }
0x3071   :  { %v9463_v30 = vadd.f32 -0.28449672, %v9461_v28 }
0x3072   :  { %v9462_v33 = vadd.f32 -0.28449672, %v9460_v62 }
0x3073   :  { %v9465_v40 = vmul.f32 %v17658_v20, %v9463_v30 }
0x3074   :  { %v9464_v39 = vmul.f32 %v17660_v44, %v9462_v33 }
0x3075   :  { %v9467_v35 = vadd.f32 0.2548296, %v9465_v40 }
0x3076   :  { %v9466_v41 = vadd.f32 0.2548296, %v9464_v39 }
0x3077   :  { %v9469_v43 = vmul.f32 %v17658_v20, %v9467_v35  ;;  %v16969_v20 = vpack.c.bf16 %v9637_v18, %v9636_v15  ;;  %v14431_v35 = vld [vmem:[#allocation14] ss:$0 sm:$0xff] }
0x3078   :  { %v9468_v37 = vmul.f32 %v17660_v44, %v9466_v41  ;;  %v9819_v44 = vld [vmem:[%s21060_s8 + $0x8] sm:$0xff] }
0x3079   :  { %v9479_v48 = vmul.f32 %v17662_v45, %v9469_v43  ;;  %v16985_v60 = vpack.c.bf16 %v9819_v44, %v9818_v19  ;;  %16970 = vmatprep.subr.bf16.mxu1 %v16969_v20  ;;  %v14432_v43 = vld [vmem:[#allocation13] ss:$0 sm:$0xff] }
0x307a   :  { %v9478_v2 = vmul.f32 %v17664_v32, %v9468_v37  ;;  %16972 = vmatpush3.bf16.msra.mxu1 %v16969_v20 }
0x307b   :  { %v9481_v17 = vsub.f32 1.0, %v9479_v48  ;;  %16986 = vmatprep.subr.bf16.mxu0 %v16985_v60  ;;  %16974 = vmatprep.subr.bf16.mxu1 %v16973_v1 }
0x307c   :  { %v9480_v58 = vsub.f32 1.0, %v9478_v2  ;;  %v9734_v2 = vld [vmem:[%s21061_s21 + $0x10] sm:$0xff] }
0x307d   :  { %v9485_v36 = vsub.f32 0.0, %v9481_v17 }
0x307e   :  { %v9484_v51 = vsub.f32 0.0, %v9480_v58  ;;  %16976 = vmatpush3.bf16.msra.mxu1 %v16973_v1  ;;  %v20479_v1 = vld [vmem:[%s21046_s28] sm:$0xff] }
0x307f   :  { %v9487_v52 = vsel %vm9483_vm9, %v9485_v36, %v9481_v17  ;;  %16978 = vmatprep.subr.bf16.mxu1 %v16977_v59  ;;  %v9735_v17 = vld [vmem:[%s21061_s21 + $0x18] sm:$0xff] }
0x3080   :  { %v9491_v26 = vadd.f32 1.0, %v9487_v52  ;;  %v9486_v49 = vsel %vm9482_vm10, %v9484_v51, %v9480_v58  ;;  %v16981_v51 = vpack.c.bf16 %v9735_v17, %v9734_v2  ;;  %v14433_v52 = vld [vmem:[#allocation34] ss:$0 sm:$0xff] }
0x3081   :  { %v9490_v54 = vadd.f32 1.0, %v9486_v49 }
0x3082   :  { %v9493_v55 = vmul.f32 %v9491_v26, %v9489_v46  ;;  %v14439_v26 = vld [vmem:[%s21062_s15] ss:$0 sm:$0xff] }
0x3083   :  { %v9492_v29 = vmul.f32 %v9490_v54, %v9488_v53 }
0x3085   :  { %16066 = vmatprep.mubr.msk.f32.mxu0 %vm2995_vm6, %v9492_v29 }
0x3086   :  { %16067 = vmatmul.mubr.msk.f32.vlgmr.msra.gmra.mrb[76].mxu0 %vm2995_vm6, %v9493_v55 }
0x3087   :  { %16988 = vmatpush3.bf16.msra.mxu0 %v16985_v60 }
0x3088   :  { %16990 = vmatprep.subr.bf16.mxu0 %v16989_v31 }
0x308b   :  { %16992 = vmatpush3.bf16.msra.mxu0 %v16989_v31 }
0x3159   :  { %v16068_v38 = vpop.f32.mrb[76].mxu0 }
0x315a   :  { %v9581_v57 = vpop.f32.mrb[77].mxu0  ;;  %v9587_v34 = vadd.f32 %v16068_v38, %v14428_v56 }
0x315b   :  { %v9582_v61 = vadd.f32 %v14428_v56, %v9581_v57  ;;  %v14448_v57 = vld [vmem:[%s21061_s21 + $0x20] sm:$0xff] }
0x315c   :  { %v9591_v4 = vadd.f32 %v9587_v34, %v20404_v47  ;;  %v14449_v34 = vld [vmem:[%s21061_s21 + $0x28] sm:$0xff] }
0x315d   :  { %v9590_v3 = vadd.f32 %v9582_v61, %v20400_v50 }
0x315e   :  { %v9595_v5 = vsel %vm880_vm0, %v9591_v4, 0.0 }
0x315f   :  { %v9592_v16 = vsel %vm880_vm0, %v9590_v3, 0.0 }
0x3160   :  { %9593 = vadd.xlane.f32.xlu1 %v9592_v16  ;;  %v17003_v16 = vpack.c.bf16 %v14449_v34, %v14448_v57  ;;  %v14479_v57 = vld [vmem:[%s21063_s16 + $0x2] ss:$0 sm:$0xff] }
0x3164   :  { %9596 = vadd.xlane.f32.xlu1 %v9595_v5  ;;  %v14436_v5 = vld [vmem:[%s21063_s16] ss:$0 sm:$0xff] }
0x31ed   :  { %v9594_v12 = vpop.xlane.xlu1 %9593 }
0x31ee   :  { %v9598_v6 = vmul.f32 0.03125, %v9594_v12 }
0x31f0   :  { %v9600_v7 = vsub.f32 %v9590_v3, %v9598_v6 }
0x31f1   :  { %v9597_v10 = vpop.xlane.xlu1 %9596 }
0x31f2   :  { %v9599_v42 = vmul.f32 0.03125, %v9597_v10  ;;  %v9602_v11 = vmul.f32 %v9600_v7, %v9600_v7  ;;  %v14450_v10 = vld [vmem:[%s21061_s21 + $0x30] sm:$0xff] }
0x31f4   :  { %v9601_v50 = vsub.f32 %v9591_v4, %v9599_v42  ;;  %v9604_v47 = vsel %vm880_vm0, %v9602_v11, 0.0  ;;  %v14451_v42 = vld [vmem:[%s21061_s21 + $0x38] sm:$0xff] }
0x31f5   :  { %9605 = vadd.xlane.f32.xlu1 %v9604_v47 }
0x31f6   :  { %v9603_v13 = vmul.f32 %v9601_v50, %v9601_v50 }
0x31f8   :  { %v9607_v14 = vsel %vm880_vm0, %v9603_v13, 0.0  ;;  %v14474_v13 = vld [vmem:[%s21061_s21 + $0x40] sm:$0xff] }
0x31f9   :  { %9608 = vadd.xlane.f32.xlu1 %v9607_v14  ;;  %v14475_v14 = vld [vmem:[%s21061_s21 + $0x48] sm:$0xff] }
0x31fa   :  { %v17029_v19 = vpack.c.bf16 %v14475_v14, %v14474_v13 }
0x3282   :  { %v9606_v25 = vpop.xlane.xlu1 %9605 }
0x3283   :  { %v9610_v28 = vmul.f32 0.03125, %v9606_v25  ;;  %v14476_v25 = vld [vmem:[%s21061_s21 + $0x50] sm:$0xff] }
0x3285   :  { %v9612_v62 = vadd.f32 1e-05, %v9610_v28  ;;  %v14477_v28 = vld [vmem:[%s21061_s21 + $0x58] sm:$0xff] }
0x3286   :  { %v9609_v30 = vpop.xlane.xlu1 %9608 }
0x3287   :  { %17665 = vrsqrt.f32 %v9612_v62  ;;  %v9611_v33 = vmul.f32 0.03125, %v9609_v30 }
0x3289   :  { %v9613_v40 = vadd.f32 1e-05, %v9611_v33 }
0x328b   :  { %17667 = vrsqrt.f32 %v9613_v40 }
0x3291   :  { %v17666_v39 = vpop.eup %17665 }
0x3292   :  { %v9616_v41 = vmul.f32 %v17666_v39, %v9600_v7  ;;  %v17033_v39 = vpack.c.bf16 %v14477_v28, %v14476_v25 }
0x3294   :  { %v9625_v45 = vmul.f32 %v14431_v35, %v9616_v41  ;;  %v14457_v41 = vld [vmem:[%s21060_s8 + $0x28] sm:$0xff] }
0x3295   :  { %v17668_v37 = vpop.eup %17667 }
0x3296   :  { %v20434_v32 = vadd.f32 %v14432_v43, %v9625_v45  ;;  %v9617_v48 = vmul.f32 %v17668_v37, %v9601_v50  ;;  %v17007_v50 = vpack.c.bf16 %v14451_v42, %v14450_v10 }
0x3298   :  { %v9626_v58 = vmul.f32 %v14431_v35, %v9617_v48  ;;  %16077 = vmatprep.mubr.msk.f32.mxu1 %vm880_vm0, %v20434_v32  ;;  %16099 = vmatprep.mubr.msk.f32.mxu0 %vm880_vm0, %v20434_v32  ;;  %v14456_v35 = vld [vmem:[%s21060_s8 + $0x20] sm:$0xff] }
0x329a   :  { %v20442_v36 = vadd.f32 %v14432_v43, %v9626_v58  ;;  %v17011_v43 = vpack.c.bf16 %v14457_v41, %v14456_v35  ;;  %v9729_v41 = vld [vmem:[%s21064_s20 + $0x8] sm:$0xff] }
0x329c   :  { %16078 = vmatmul.mubr.msk.f32.vlgmr.msra.gmra.mrb[78].mxu1 %vm880_vm0, %v20442_v36  ;;  %16100 = vmatmul.mubr.msk.f32.vlgmr.msra.gmra.mrb[78].mxu0 %vm880_vm0, %v20442_v36 }
0x329d   :  { %16980 = vmatpush3.bf16.msra.mxu1 %v16977_v59  ;;  %16088 = vmatprep.mubr.msk.f32.mxu1 %vm880_vm0, %v20434_v32 }
0x329e   :  { %16982 = vmatprep.subr.bf16.mxu1 %v16981_v51 }
0x32a1   :  { %16984 = vmatpush3.bf16.msra.mxu1 %v16981_v51 }
0x32a4   :  { %16089 = vmatmul.mubr.msk.f32.vlgmr.msra.gmra.mrb[80].mxu1 %vm880_vm0, %v20442_v36 }
0x336f   :  { %v16079_v49 = vpop.f32.mrb[78].mxu1  ;;  %v16101_v53 = vpop.f32.mrb[78].mxu0 }
0x3370   :  { %v9725_v54 = vadd.f32 %v16079_v49, %v14433_v52  ;;  %v9901_v46 = vadd.f32 %v16101_v53, %v14439_v26  ;;  %v9719_v29 = vpop.f32.mrb[79].mxu1  ;;  %v9895_v55 = vpop.f32.mrb[79].mxu0 }
0x3371   :  { %v9720_v56 = vadd.f32 %v14433_v52, %v9719_v29  ;;  %v9896_v38 = vadd.f32 %v14439_v26, %v9895_v55  ;;  %v14458_v52 = vld [vmem:[%s21060_s8 + $0x30] sm:$0xff]  ;;  %v14459_v26 = vld [vmem:[%s21060_s8 + $0x38] sm:$0xff] }
0x3372   :  { %v17015_v49 = vpack.c.bf16 %v14459_v26, %v14458_v52 }
0x3373   :  { %v16999_v61 = vpack.c.bf16 %v9901_v46, %v9896_v38  ;;  %v20455_v3 = vpack.i.bf16 %v9725_v54, %v9720_v56  ;;  %v16993_v4 = vpack.c.bf16 %v9725_v54, %v9720_v56 }
0x3375   :  { %17000 = vmatprep.subr.bf16.mxu0 %v16999_v61  ;;  %17456 = vrot.lane.b32.xlu0 %v20455_v3, %s18916_s19 }
0x3376   :  { %16995 = vmatprep.subr.msk.bf16.mxu1 %vm19598_vm2, %v16993_v4  ;;  %17002 = vmatpush3.bf16.msra.mxu0 %v16999_v61 }
0x3377   :  { %v16090_v12 = vpop.f32.mrb[80].mxu1  ;;  %16998 = vmatpush3.bf16.xpose.msk.msra.mxu1 %vm19598_vm2, %v16993_v4  ;;  %17012 = vmatprep.subr.bf16.mxu0 %v17011_v43 }
0x3378   :  { %v9809_v6 = vpop.f32.mrb[81].mxu1  ;;  %17004 = vmatprep.subr.bf16.mxu1 %v17003_v16  ;;  %v9815_v11 = vadd.f32 %v16090_v12, %v14436_v5 }
0x3379   :  { %v9810_v7 = vadd.f32 %v14436_v5, %v9809_v6 }
0x337b   :  { %16106 = vmatprep.mubr.msk.f32.mxu1 %vm1138_vm1, %v9810_v7 }
0x337e   :  { %16107 = vmatmul.mubr.msk.f32.vlgmr.msra.gmra.mrb[82].mxu1 %vm1138_vm1, %v9815_v11 }
0x337f   :  { %17006 = vmatpush3.bf16.msra.mxu1 %v17003_v16  ;;  %16124 = vmatprep.mubr.msk.f32.mxu1 %vm880_vm0, %v20434_v32 }
0x3380   :  { %17008 = vmatprep.subr.bf16.mxu1 %v17007_v50 }
0x3383   :  { %17010 = vmatpush3.bf16.msra.mxu1 %v17007_v50 }
0x3386   :  { %16125 = vmatmul.mubr.msk.f32.vlgmr.msra.gmra.mrb[84].mxu1 %vm880_vm0, %v20442_v36 }
0x33e7   :  { %v17457_v47 = vpop.permute.xlu0 %17456 }
0x33e8   :  { %v17459_v15 = vunpack.i.h.bf16 %v17457_v47  ;;  %v17458_v18 = vunpack.i.l.bf16 %v17457_v47 }
0x33ea   :  { %v17019_v20 = vpack.c.bf16 %v17459_v15, %v17458_v18  ;;  %v14498_v15 = vld [vmem:[%s21061_s21 + $0x60] sm:$0xff]  ;;  %v14499_v18 = vld [vmem:[%s21061_s21 + $0x68] sm:$0xff] }
0x33ec   :  { %17021 = vmatprep.subr.msk.bf16.mxu1 %vm19598_vm2, %v17019_v20 }
0x33ed   :  { %17024 = vmatpush3.bf16.xpose.msk.msra.mxu1 %vm19598_vm2, %v17019_v20 }
0x33ee   :  { %17030 = vmatprep.subr.bf16.mxu1 %v17029_v19 }
0x3451   :  { %v16108_v44 = vpop.f32.mrb[82].mxu1 }
0x3452   :  { %v9982_v60 = vpop.f32.mrb[83].mxu1  ;;  %v9992_v63 = vmul.f32 0.35355338, %v16108_v44 }
0x3453   :  { %v9991_v0 = vmul.f32 0.35355338, %v9982_v60  ;;  %v17055_v60 = vpack.c.bf16 %v14499_v18, %v14498_v15 }
0x3454   :  { %v9994_v31 = vadd.f32 %v20483_v22, %v9992_v63  ;;  %v14461_v63 = vld [vmem:[%s21062_s15 + $0x1] ss:$0 sm:$0xff] }
0x3455   :  { %v9993_v21 = vadd.f32 %v20479_v1, %v9991_v0 }
0x3456   :  { %v9998_v33 = vsel %vm1230_vm3, %v9994_v31, -inf }
0x3457   :  { %v9995_v23 = vsel %vm1230_vm3, %v9993_v21, -inf }
0x3458   :  { %9996 = vmax.xlane.f32.xlu1 %v9995_v23 }
0x3459   :  { %v16126_v59 = vpop.f32.mrb[84].mxu1 }
0x345a   :  { %v10177_v62 = vpop.f32.mrb[85].mxu1  ;;  %v10183_v40 = vadd.f32 %v16126_v59, %v14453_v24 }
0x345b   :  { %v10178_v30 = vadd.f32 %v14453_v24, %v10177_v62  ;;  %v14500_v62 = vld [vmem:[%s21061_s21 + $0x70] sm:$0xff] }
0x345c   :  { %9999 = vmax.xlane.f32.xlu1 %v9998_v33 }
0x345d   :  { %16142 = vmatprep.mubr.msk.f32.mxu1 %vm1138_vm1, %v10178_v30  ;;  %v14501_v30 = vld [vmem:[%s21061_s21 + $0x78] sm:$0xff] }
0x345e   :  { %16143 = vmatmul.mubr.msk.f32.vlgmr.msra.gmra.mrb[86].mxu1 %vm1138_vm1, %v10183_v40 }
0x345f   :  { %17032 = vmatpush3.bf16.msra.mxu1 %v17029_v19  ;;  %16170 = vmatprep.mubr.msk.f32.mxu1 %vm880_vm0, %v20434_v32 }
0x3460   :  { %17034 = vmatprep.subr.bf16.mxu1 %v17033_v39 }
0x3463   :  { %17036 = vmatpush3.bf16.msra.mxu1 %v17033_v39  ;;  %v17059_v39 = vpack.c.bf16 %v14501_v30, %v14500_v62  ;;  %v11600_v62 = vld [vmem:[%s21065_s24 + $0x18] sm:$0xff] }
0x3466   :  { %16171 = vmatmul.mubr.msk.f32.vlgmr.msra.gmra.mrb[88].mxu1 %vm880_vm0, %v20442_v36 }
0x34e5   :  { %v9997_v45 = vpop.xlane.xlu1 %9996 }
0x34e6   :  { %v10001_v37 = vsub.f32 %v9993_v21, %v9997_v45 }
0x34e8   :  { %v10003_v48 = vmul.f32 1.442695, %v10001_v37 }
0x34e9   :  { %v10000_v2 = vpop.xlane.xlu1 %9999 }
0x34ea   :  { %17669 = vpow2.f32 %v10003_v48  ;;  %v10002_v17 = vsub.f32 %v9994_v31, %v10000_v2 }
0x34ec   :  { %v10005_v58 = vmul.f32 1.442695, %v10002_v17 }
0x34ee   :  { %17671 = vpow2.f32 %v10005_v58 }
0x34f4   :  { %v17670_v51 = vpop.eup %17669 }
0x34f5   :  { %16113 = vmatprep.mubr.msk.f32.mxu0 %vm1230_vm3, %v17670_v51  ;;  %v10007_v33 = vsel %vm1230_vm3, %v17670_v51, 0.0  ;;  %v14482_v51 = vld [vmem:[%s21060_s8 + $0x40] sm:$0xff] }
0x34f8   :  { %v20502_v53 = vpop.eup %17671 }
0x34f9   :  { %16114 = vmatmul.mubr.msk.f32.vlgmr.msra.gmra.mrb[80].mxu0 %vm1230_vm3, %v20502_v53  ;;  %v10010_v35 = vsel %vm1230_vm3, %v20502_v53, 0.0 }
0x34fa   :  { %17014 = vmatpush3.bf16.msra.mxu0 %v17011_v43  ;;  %16135 = vmatprep.mubr.msk.f32.mxu0 %vm880_vm0, %v20434_v32  ;;  %v9728_v43 = vld [vmem:[%s21064_s20] sm:$0xff] }
0x34fb   :  { %17016 = vmatprep.subr.bf16.mxu0 %v17015_v49 }
0x34fe   :  { %17018 = vmatpush3.bf16.msra.mxu0 %v17015_v49 }
0x3501   :  { %16136 = vmatmul.mubr.msk.f32.vlgmr.msra.gmra.mrb[82].mxu0 %vm880_vm0, %v20442_v36 }
0x3531   :  { %v16144_v54 = vpop.f32.mrb[86].mxu1 }
0x3532   :  { %v10354_v46 = vpop.f32.mrb[87].mxu1  ;;  %v10364_v29 = vmul.f32 0.35355338, %v16144_v54  ;;  %v14483_v54 = vld [vmem:[%s21060_s8 + $0x48] sm:$0xff] }
0x3533   :  { %v10363_v55 = vmul.f32 0.35355338, %v10354_v46 }
0x3534   :  { %v10366_v38 = vadd.f32 %v20483_v22, %v10364_v29 }
0x3535   :  { %v10365_v56 = vadd.f32 %v20479_v1, %v10363_v55 }
0x3536   :  { %v10370_v12 = vsel %vm1230_vm3, %v10366_v38, -inf }
0x3537   :  { %v10367_v34 = vsel %vm1230_vm3, %v10365_v56, -inf }
0x3538   :  { %10368 = vmax.xlane.f32.xlu1 %v10367_v34  ;;  %v17037_v34 = vpack.c.bf16 %v14483_v54, %v14482_v51 }
0x3539   :  { %v16172_v61 = vpop.f32.mrb[88].mxu1 }
0x353a   :  { %v10717_v4 = vadd.f32 %v16172_v61, %v14479_v57  ;;  %v10711_v16 = vpop.f32.mrb[89].mxu1 }
0x353b   :  { %v10712_v5 = vadd.f32 %v14479_v57, %v10711_v16  ;;  %v14503_v16 = vld [vmem:[%s21063_s16 + $0x3] ss:$0 sm:$0xff] }
0x353c   :  { %10371 = vmax.xlane.f32.xlu1 %v10370_v12 }
0x353d   :  { %16188 = vmatprep.mubr.msk.f32.mxu1 %vm1138_vm1, %v10712_v5 }
0x354d   :  { %17461 = vrot.lane.b32.xlu1 %v20455_v3, %s18917_s3 }
0x35c5   :  { %v10369_v6 = vpop.xlane.xlu1 %10368 }
0x35c6   :  { %v10373_v7 = vsub.f32 %v10365_v56, %v10369_v6 }
0x35c8   :  { %v10375_v10 = vmul.f32 1.442695, %v10373_v7 }
0x35c9   :  { %v10372_v42 = vpop.xlane.xlu1 %10371 }
0x35ca   :  { %17673 = vpow2.f32 %v10375_v10  ;;  %v10374_v11 = vsub.f32 %v10366_v38, %v10372_v42 }
0x35cc   :  { %v10377_v50 = vmul.f32 1.442695, %v10374_v11  ;;  %v20518_v47 = vpop.f32.mrb[80].mxu0 }
0x35cd   :  { %v20520_v13 = vpop.f32.mrb[81].mxu0  ;;  %v17462_v14 = vpop.permute.xlu1 %17461 }
0x35ce   :  { %17675 = vpow2.f32 %v10377_v50  ;;  %v17464_v20 = vunpack.i.h.bf16 %v17462_v14  ;;  %v17463_v19 = vunpack.i.l.bf16 %v17462_v14  ;;  %v14484_v50 = vld [vmem:[%s21060_s8 + $0x50] sm:$0xff]  ;;  %v14485_v14 = vld [vmem:[%s21060_s8 + $0x58] sm:$0xff] }
0x35cf   :  { %v17041_v15 = vpack.c.bf16 %v14485_v14, %v14484_v50 }
0x35d0   :  { %v17045_v44 = vpack.c.bf16 %v17464_v20, %v17463_v19 }
0x35d2   :  { %17047 = vmatprep.subr.msk.bf16.mxu1 %vm19598_vm2, %v17045_v44 }
0x35d3   :  { %17050 = vmatpush3.bf16.xpose.msk.msra.mxu1 %vm19598_vm2, %v17045_v44 }
0x35d4   :  { %v17674_v0 = vpop.eup %17673  ;;  %v16137_v21 = vpop.f32.mrb[82].mxu0  ;;  %17056 = vmatprep.subr.bf16.mxu1 %v17055_v60 }
0x35d5   :  { %v10271_v31 = vadd.f32 %v16137_v21, %v14461_v63  ;;  %v10265_v23 = vpop.f32.mrb[83].mxu0  ;;  %16149 = vmatprep.mubr.msk.f32.mxu0 %vm1230_vm3, %v17674_v0  ;;  %v10379_v24 = vsel %vm1230_vm3, %v17674_v0, 0.0  ;;  %v11597_v0 = vld [vmem:[%s21065_s24] sm:$0xff]  ;;  %v11598_v21 = vld [vmem:[%s21065_s24 + $0x8] sm:$0xff] }
0x35d6   :  { %v10266_v59 = vadd.f32 %v14461_v63, %v10265_v23  ;;  %10380 = vadd.xlane.f32.xlu0 %v10379_v24 }
0x35d8   :  { %v17676_v25 = vpop.eup %17675  ;;  %v17025_v28 = vpack.c.bf16 %v10271_v31, %v10266_v59  ;;  %v17081_v59 = vpack.c.bf16 %v11598_v21, %v11597_v0 }
0x35d9   :  { %v10382_v40 = vsel %vm1230_vm3, %v17676_v25, 0.0 }
0x35da   :  { %17026 = vmatprep.subr.bf16.mxu0 %v17025_v28  ;;  %10008 = vadd.xlane.f32.xlu0 %v10007_v33 }
0x35db   :  { %17028 = vmatpush3.bf16.msra.mxu0 %v17025_v28  ;;  %10383 = vadd.xlane.f32.xlu1 %v10382_v40  ;;  %v11599_v28 = vld [vmem:[%s21065_s24 + $0x10] sm:$0xff] }
0x35dc   :  { %16189 = vmatmul.mubr.msk.f32.vlgmr.msra.gmra.mrb[90].mxu1 %vm1138_vm1, %v10717_v4  ;;  %16152 = vmatprep.subr.mxu0 %v9729_v41  ;;  %v17085_v33 = vpack.c.bf16 %v11600_v62, %v11599_v28 }
0x35dd   :  { %17058 = vmatpush3.bf16.msra.mxu1 %v17055_v60  ;;  %16211 = vmatprep.mubr.msk.f32.mxu1 %vm880_vm0, %v20434_v32 }
0x35de   :  { %16150 = vmatmul.mubr.msk.f32.vlgmr.msra.gmra.mrb[84].mxu0 %vm1230_vm3, %v17676_v25  ;;  %10011 = vadd.xlane.f32.xlu0 %v10010_v35  ;;  %v11780_v35 = vld [vmem:[%s21066_s18 + $0x8] sm:$0xff] }
0x35df   :  { %17060 = vmatprep.subr.bf16.mxu1 %v17059_v39  ;;  %16153 = vmatpush3.msra.mxu0 %v9729_v41 }
0x35e0   :  { %16157 = vmatprep.subr.mxu0 %v9728_v43 }
0x35e1   :  { %17062 = vmatpush3.bf16.msra.mxu1 %v17059_v39  ;;  %v11779_v39 = vld [vmem:[%s21066_s18] sm:$0xff] }
0x35e2   :  { %v17097_v41 = vpack.c.bf16 %v11780_v35, %v11779_v39 }
0x35e4   :  { %16212 = vmatmul.mubr.msk.f32.vlgmr.msra.gmra.mrb[92].mxu1 %vm880_vm0, %v20442_v36 }
0x3663   :  { %v10381_v45 = vpop.xlane.xlu0 %10380 }
0x3664   :  { %17677 = vrcp.f32 %v10381_v45  ;;  %v11782_v45 = vld [vmem:[%s21066_s18 + $0x18] sm:$0xff] }
0x3667   :  { %v10009_v37 = vpop.xlane.xlu0 %10008 }
0x3668   :  { %v10384_v48 = vpop.xlane.xlu1 %10383  ;;  %17679 = vrcp.f32 %v10009_v37 }
0x3669   :  { %17681 = vrcp.f32 %v10384_v48  ;;  %v14487_v48 = vld [vmem:[%s21062_s15 + $0x2] ss:$0 sm:$0xff] }
0x366b   :  { %v10012_v2 = vpop.xlane.xlu0 %10011 }
0x366c   :  { %17683 = vrcp.f32 %v10012_v2 }
0x366e   :  { %v17678_v52 = vpop.eup %17677 }
0x3672   :  { %v17680_v46 = vpop.eup %17679 }
0x3673   :  { %v17682_v55 = vpop.eup %17681  ;;  %v10096_v5 = vmul.f32 %v17680_v46, %v20520_v13 }
0x3676   :  { %v17684_v10 = vpop.eup %17683 }
0x3677   :  { %v10097_v13 = vmul.f32 %v17684_v10, %v20518_v47 }
0x36af   :  { %v16190_v17 = vpop.f32.mrb[90].mxu1 }
0x36b0   :  { %v10888_v58 = vpop.f32.mrb[91].mxu1  ;;  %v10898_v26 = vmul.f32 0.35355338, %v16190_v17 }
0x36b1   :  { %v10897_v49 = vmul.f32 0.35355338, %v10888_v58  ;;  %v16151_v53 = vpop.f32.mrb[84].mxu0 }
0x36b2   :  { %v10457_v29 = vpop.f32.mrb[85].mxu0  ;;  %v10469_v57 = vmul.f32 %v17682_v55, %v16151_v53  ;;  %v10900_v61 = vadd.f32 %v20483_v22, %v10898_v26  ;;  %v9730_v26 = vld [vmem:[%s21064_s20 + $0x10] sm:$0xff]  ;;  %v14507_v53 = vld [vmem:[%s21060_s8 + $0x68] sm:$0xff] }
0x36b3   :  { %v10899_v56 = vadd.f32 %v20479_v1, %v10897_v49  ;;  %v10468_v38 = vmul.f32 %v17678_v52, %v10457_v29  ;;  %v14506_v49 = vld [vmem:[%s21060_s8 + $0x60] sm:$0xff] }
0x36b4   :  { %v10904_v11 = vsel %vm1230_vm3, %v10900_v61, -inf  ;;  %v17063_v54 = vpack.c.bf16 %v14507_v53, %v14506_v49  ;;  %v11690_v49 = vld [vmem:[%s21068_s22 + $0x18] sm:$0xff] }
0x36b5   :  { %16154 = vmatprep.mubr.msk.f32.mxu0 %vm1138_vm1, %v10468_v38  ;;  %v10901_v4 = vsel %vm1230_vm3, %v10899_v56, -inf }
0x36b6   :  { %10902 = vmax.xlane.f32.xlu0 %v10901_v4  ;;  %16155 = vmatmul.mubr.msk.f32.vlgmr.msra.gmra.mrb[86].mxu0 %vm1138_vm1, %v10469_v57 }
0x36b7   :  { %v16213_v12 = vpop.f32.mrb[92].mxu1  ;;  %16158 = vmatpush3.msra.mxu0 %v9728_v43  ;;  %16159 = vmatprep.mubr.msk.f32.mxu0 %vm1138_vm1, %v10096_v5  ;;  %v11781_v43 = vld [vmem:[%s21066_s18 + $0x10] sm:$0xff] }
0x36b8   :  { %v11172_v6 = vadd.f32 %v16213_v12, %v14503_v16  ;;  %v11166_v7 = vpop.f32.mrb[93].mxu1  ;;  %17038 = vmatprep.subr.bf16.mxu0 %v17037_v34  ;;  %v17101_v37 = vpack.c.bf16 %v11782_v45, %v11781_v43 }
0x36b9   :  { %v11167_v42 = vadd.f32 %v14503_v16, %v11166_v7 }
0x36ba   :  { %10905 = vmax.xlane.f32.xlu0 %v10904_v11 }
0x36bb   :  { %16229 = vmatprep.mubr.msk.f32.mxu1 %vm1138_vm1, %v11167_v42 }
0x36be   :  { %16160 = vmatmul.mubr.msk.f32.vlgmr.msra.gmra.mrb[86].mxu0 %vm1138_vm1, %v10097_v13 }
0x36bf   :  { %17040 = vmatpush3.bf16.msra.mxu0 %v17037_v34  ;;  %16181 = vmatprep.mubr.msk.f32.mxu0 %vm880_vm0, %v20434_v32 }
0x36c0   :  { %17042 = vmatprep.subr.bf16.mxu0 %v17041_v15 }
0x36c3   :  { %17044 = vmatpush3.bf16.msra.mxu0 %v17041_v15 }
0x36c6   :  { %16182 = vmatmul.mubr.msk.f32.vlgmr.msra.gmra.mrb[88].mxu0 %vm880_vm0, %v20442_v36 }
0x36d0   :  { %17466 = vrot.lane.b32.xlu0 %v20455_v3, %s18918_s7 }
0x3743   :  { %v10903_v18 = vpop.xlane.xlu0 %10902 }
0x3744   :  { %v10907_v20 = vsub.f32 %v10899_v56, %v10903_v18 }
0x3746   :  { %v10909_v47 = vmul.f32 1.442695, %v10907_v20  ;;  %v14508_v20 = vld [vmem:[%s21060_s8 + $0x70] sm:$0xff] }
0x3747   :  { %v10906_v19 = vpop.xlane.xlu0 %10905 }
0x3748   :  { %17685 = vpow2.f32 %v10909_v47  ;;  %v10908_v44 = vsub.f32 %v10900_v61, %v10906_v19  ;;  %v14525_v61 = vld [vmem:[#allocation19] ss:$0 sm:$0xff]  ;;  %v14509_v47 = vld [vmem:[%s21060_s8 + $0x78] sm:$0xff] }
0x3749   :  { %v17067_v21 = vpack.c.bf16 %v14509_v47, %v14508_v20 }
0x374a   :  { %v10911_v60 = vmul.f32 1.442695, %v10908_v44 }
0x374b   :  { %v17467_v63 = vpop.permute.xlu0 %17466 }
0x374c   :  { %17687 = vpow2.f32 %v10911_v60  ;;  %v17469_v31 = vunpack.i.h.bf16 %v17467_v63  ;;  %v17468_v23 = vunpack.i.l.bf16 %v17467_v63 }
0x374e   :  { %v17071_v24 = vpack.c.bf16 %v17469_v31, %v17468_v23 }
0x3750   :  { %17073 = vmatprep.subr.msk.bf16.mxu1 %vm19598_vm2, %v17071_v24 }
0x3751   :  { %17076 = vmatpush3.bf16.xpose.msk.msra.mxu1 %vm19598_vm2, %v17071_v24 }
0x3752   :  { %v17686_v3 = vpop.eup %17685  ;;  %17082 = vmatprep.subr.bf16.mxu1 %v17081_v59 }
0x3753   :  { %16195 = vmatprep.mubr.msk.f32.mxu0 %vm1230_vm3, %v17686_v3  ;;  %v10913_v25 = vsel %vm1230_vm3, %v17686_v3, 0.0 }
0x3754   :  { %10914 = vadd.xlane.f32.xlu1 %v10913_v25 }
0x3756   :  { %v17688_v30 = vpop.eup %17687 }
0x3757   :  { %v10916_v40 = vsel %vm1230_vm3, %v17688_v30, 0.0 }
0x3758   :  { %10917 = vadd.xlane.f32.xlu1 %v10916_v40  ;;  %16230 = vmatmul.mubr.msk.f32.vlgmr.msra.gmra.mrb[94].mxu1 %vm1138_vm1, %v11172_v6  ;;  %v14511_v40 = vld [vmem:[%s21062_s15 + $0x3] ss:$0 sm:$0xff] }
0x3759   :  { %17084 = vmatpush3.bf16.msra.mxu1 %v17081_v59  ;;  %16252 = vmatprep.mubr.msk.f32.mxu1 %vm880_vm0, %v20210_v9 }
0x375a   :  { %17086 = vmatprep.subr.bf16.mxu1 %v17085_v33 }
0x375d   :  { %17088 = vmatpush3.bf16.msra.mxu1 %v17085_v33 }
0x375e   :  { %17098 = vmatprep.subr.bf16.mxu1 %v17097_v41 }
0x3760   :  { %16253 = vmatmul.mubr.msk.f32.vlgmr.msra.gmra.mrb[96].mxu1 %vm880_vm0, %v20208_v8 }
0x3761   :  { %17100 = vmatpush3.bf16.msra.mxu1 %v17097_v41  ;;  %16274 = vmatprep.mubr.msk.f32.mxu1 %vm880_vm0, %v20210_v9 }
0x3762   :  { %17102 = vmatprep.subr.bf16.mxu1 %v17101_v37 }
0x3765   :  { %17104 = vmatpush3.bf16.msra.mxu1 %v17101_v37  ;;  %v9731_v37 = vld [vmem:[%s21064_s20 + $0x18] sm:$0xff] }
0x3768   :  { %16275 = vmatmul.mubr.msk.f32.vlgmr.msra.gmra.mrb[98].mxu1 %vm880_vm0, %v20208_v8 }
0x3799   :  { %v16183_v2 = vpop.f32.mrb[88].mxu0 }
0x379a   :  { %v10805_v17 = vadd.f32 %v16183_v2, %v14487_v48  ;;  %v10799_v58 = vpop.f32.mrb[89].mxu0  ;;  %v11688_v2 = vld [vmem:[%s21068_s22 + $0x8] sm:$0xff] }
0x379b   :  { %v10800_v51 = vadd.f32 %v14487_v48, %v10799_v58  ;;  %v11687_v48 = vld [vmem:[%s21068_s22] sm:$0xff] }
0x379d   :  { %v17051_v52 = vpack.c.bf16 %v10805_v17, %v10800_v51  ;;  %v17089_v17 = vpack.c.bf16 %v11688_v2, %v11687_v48 }
0x379f   :  { %17052 = vmatprep.subr.bf16.mxu0 %v17051_v52 }
0x37a0   :  { %17054 = vmatpush3.bf16.msra.mxu0 %v17051_v52 }
0x37a1   :  { %16198 = vmatprep.subr.mxu0 %v9730_v26 }
0x37a3   :  { %16196 = vmatmul.mubr.msk.f32.vlgmr.msra.gmra.mrb[90].mxu0 %vm1230_vm3, %v17688_v30 }
0x37a4   :  { %16199 = vmatpush3.msra.mxu0 %v9730_v26  ;;  %v11689_v26 = vld [vmem:[%s21068_s22 + $0x10] sm:$0xff] }
0x37a5   :  { %17064 = vmatprep.subr.bf16.mxu0 %v17063_v54 }
0x37e1   :  { %v10915_v13 = vpop.xlane.xlu1 %10914 }
0x37e2   :  { %17689 = vrcp.f32 %v10915_v13 }
0x37e5   :  { %v10918_v15 = vpop.xlane.xlu1 %10917 }
0x37e6   :  { %17691 = vrcp.f32 %v10918_v15 }
0x37ec   :  { %v17690_v19 = vpop.eup %17689 }
0x37f0   :  { %v17692_v60 = vpop.eup %17691 }
0x382b   :  { %v16231_v46 = vpop.f32.mrb[94].mxu1 }
0x382c   :  { %v11343_v29 = vpop.f32.mrb[95].mxu1  ;;  %v11353_v55 = vmul.f32 0.35355338, %v16231_v46 }
0x382d   :  { %v11352_v56 = vmul.f32 0.35355338, %v11343_v29 }
0x382e   :  { %v11355_v57 = vadd.f32 %v20483_v22, %v11353_v55 }
0x382f   :  { %v11354_v38 = vadd.f32 %v20479_v1, %v11352_v56  ;;  %v14531_v1 = vld [vmem:[%s21067_s25] ss:$0 sm:$0xff]  ;;  %v17093_v56 = vpack.c.bf16 %v11690_v49, %v11689_v26  ;;  %v20661_v26 = vld [vmem:[%s21028_s27 + $0x8] sm:$0xff] }
0x3830   :  { %v11359_v6 = vsel %vm1230_vm3, %v11355_v57, -inf }
0x3831   :  { %v11356_v34 = vsel %vm1230_vm3, %v11354_v38, -inf }
0x3832   :  { %11357 = vmax.xlane.f32.xlu1 %v11356_v34 }
0x3833   :  { %v16254_v4 = vpop.f32.mrb[96].mxu1 }
0x3834   :  { %v11680_v16 = vadd.f32 %v16254_v4, %v14525_v61  ;;  %v11674_v5 = vpop.f32.mrb[97].mxu1 }
0x3835   :  { %v11675_v12 = vadd.f32 %v14525_v61, %v11674_v5 }
0x3836   :  { %11360 = vmax.xlane.f32.xlu1 %v11359_v6 }
0x3837   :  { %v20600_v7 = vpack.c.bf16 %v11680_v16, %v11675_v12  ;;  %v20602_v10 = vpack.i.bf16 %v11680_v16, %v11675_v12 }
0x383b   :  { %v16276_v42 = vpop.f32.mrb[98].mxu1 }
0x383c   :  { %v11862_v22 = vadd.f32 %v16276_v42, %v14531_v1  ;;  %v11856_v11 = vpop.f32.mrb[99].mxu1 }
0x383d   :  { %v11857_v50 = vadd.f32 %v14531_v1, %v11856_v11 }
0x383f   :  { %v17111_v14 = vpack.c.bf16 %v11862_v22, %v11857_v50 }
0x3841   :  { %17112 = vmatprep.subr.bf16.mxu1 %v17111_v14 }
0x3842   :  { %17114 = vmatpush3.bf16.msra.mxu1 %v17111_v14 }
0x3876   :  { %v16197_v18 = vpop.f32.mrb[90].mxu0 }
0x3877   :  { %v10991_v44 = vpop.f32.mrb[91].mxu0  ;;  %v11003_v0 = vmul.f32 %v17692_v60, %v16197_v18 }
0x3878   :  { %v11002_v63 = vmul.f32 %v17690_v19, %v10991_v44 }
0x387a   :  { %16200 = vmatprep.mubr.msk.f32.mxu0 %vm1138_vm1, %v11002_v63 }
0x387b   :  { %16201 = vmatmul.mubr.msk.f32.vlgmr.msra.gmra.mrb[86].mxu0 %vm1138_vm1, %v11003_v0  ;;  %v14523_v0 = vld [vmem:[#allocation26] ss:$0 sm:$0xff] }
0x387c   :  { %17066 = vmatpush3.bf16.msra.mxu0 %v17063_v54  ;;  %16222 = vmatprep.mubr.msk.f32.mxu0 %vm880_vm0, %v20434_v32 }
0x387d   :  { %17068 = vmatprep.subr.bf16.mxu0 %v17067_v21 }
0x3880   :  { %17070 = vmatpush3.bf16.msra.mxu0 %v17067_v21 }
0x3883   :  { %16223 = vmatmul.mubr.msk.f32.vlgmr.msra.gmra.mrb[92].mxu0 %vm880_vm0, %v20442_v36 }
0x38bf   :  { %v11358_v31 = vpop.xlane.xlu1 %11357 }
0x38c0   :  { %v11362_v23 = vsub.f32 %v11354_v38, %v11358_v31  ;;  %v14522_v38 = vld [vmem:[#allocation35] ss:$0 sm:$0xff]  ;;  %v14524_v31 = vld [vmem:[#allocation25] ss:$0 sm:$0xff] }
0x38c2   :  { %v11364_v24 = vmul.f32 1.442695, %v11362_v23 }
0x38c3   :  { %v11361_v59 = vpop.xlane.xlu1 %11360 }
0x38c4   :  { %17693 = vpow2.f32 %v11364_v24  ;;  %v11363_v3 = vsub.f32 %v11355_v57, %v11361_v59 }
0x38c6   :  { %v11366_v25 = vmul.f32 1.442695, %v11363_v3 }
0x38c8   :  { %17695 = vpow2.f32 %v11366_v25 }
0x38ce   :  { %v17694_v28 = vpop.eup %17693 }
0x38cf   :  { %16236 = vmatprep.mubr.msk.f32.mxu0 %vm1230_vm3, %v17694_v28  ;;  %v11368_v62 = vsel %vm1230_vm3, %v17694_v28, 0.0 }
0x38d0   :  { %11369 = vadd.xlane.f32.xlu1 %v11368_v62  ;;  %v14548_v62 = vld [vmem:[%s21066_s18 + $0x20] sm:$0xff] }
0x38d2   :  { %v17696_v30 = vpop.eup %17695 }
0x38d3   :  { %v11371_v33 = vsel %vm1230_vm3, %v17696_v30, 0.0 }
0x38d4   :  { %11372 = vadd.xlane.f32.xlu1 %v11371_v33 }
0x3956   :  { %v16224_v39 = vpop.f32.mrb[92].mxu0 }
0x3957   :  { %v11260_v35 = vadd.f32 %v16224_v39, %v14511_v40  ;;  %v11254_v41 = vpop.f32.mrb[93].mxu0 }
0x3958   :  { %v11255_v43 = vadd.f32 %v14511_v40, %v11254_v41  ;;  %v14528_v40 = vld [vmem:[%s21069_s23] ss:$0 sm:$0xff]  ;;  %v14551_v41 = vld [vmem:[%s21066_s18 + $0x38] sm:$0xff] }
0x395a   :  { %v17077_v45 = vpack.c.bf16 %v11260_v35, %v11255_v43  ;;  %v14550_v35 = vld [vmem:[%s21066_s18 + $0x30] sm:$0xff] }
0x395b   :  { %v17127_v48 = vpack.c.bf16 %v14551_v41, %v14550_v35  ;;  %v14571_v41 = vld [vmem:[%s21069_s23 + $0x2] ss:$0 sm:$0xff] }
0x395c   :  { %17078 = vmatprep.subr.bf16.mxu0 %v17077_v45 }
0x395d   :  { %17080 = vmatpush3.bf16.msra.mxu0 %v17077_v45  ;;  %v11370_v58 = vpop.xlane.xlu1 %11369 }
0x395e   :  { %16239 = vmatprep.subr.mxu0 %v9731_v37  ;;  %17697 = vrcp.f32 %v11370_v58 }
0x3960   :  { %16237 = vmatmul.mubr.msk.f32.vlgmr.msra.gmra.mrb[94].mxu0 %vm1230_vm3, %v17696_v30  ;;  %v14549_v30 = vld [vmem:[%s21066_s18 + $0x28] sm:$0xff] }
0x3961   :  { %16240 = vmatpush3.msra.mxu0 %v9731_v37  ;;  %v11373_v51 = vpop.xlane.xlu1 %11372  ;;  %v17123_v33 = vpack.c.bf16 %v14549_v30, %v14548_v62 }
0x3962   :  { %17090 = vmatprep.subr.bf16.mxu0 %v17089_v17  ;;  %17699 = vrcp.f32 %v11373_v51  ;;  %v20657_v51 = vld [vmem:[%s21028_s27] sm:$0xff]  ;;  %s21071_s27 = sld [smem:[#allocation127_spill]] }
0x3968   :  { %v17698_v53 = vpop.eup %17697 }
0x396c   :  { %v17700_v46 = vpop.eup %17699 }
0x3a33   :  { %v16238_v52 = vpop.f32.mrb[94].mxu0 }
0x3a34   :  { %v11446_v54 = vpop.f32.mrb[95].mxu0  ;;  %v11458_v55 = vmul.f32 %v17700_v46, %v16238_v52 }
0x3a35   :  { %v11457_v29 = vmul.f32 %v17698_v53, %v11446_v54  ;;  %v14553_v53 = vld [vmem:[%s21067_s25 + $0x1] ss:$0 sm:$0xff] }
0x3a37   :  { %16241 = vmatprep.mubr.msk.f32.mxu0 %vm1138_vm1, %v11457_v29 }
0x3a38   :  { %16242 = vmatmul.mubr.msk.f32.vlgmr.msra.gmra.mrb[86].mxu0 %vm1138_vm1, %v11458_v55 }
0x3a39   :  { %17092 = vmatpush3.bf16.msra.mxu0 %v17089_v17 }
0x3a3a   :  { %17094 = vmatprep.subr.bf16.mxu0 %v17093_v56 }
0x3a3d   :  { %17096 = vmatpush3.bf16.msra.mxu0 %v17093_v56 }
0x3a3e   :  { %17107 = vmatprep.subr.msk.bf16.mxu0 %vm19598_vm2, %v20600_v7 }
0x3b0b   :  { %v16243_v57 = vpop.f32.mrb[86].mxu0 }
0x3b0c   :  { %v11550_v34 = vadd.f32 %v16243_v57, %v14522_v38  ;;  %v11531_v61 = vpop.f32.mrb[87].mxu0 }
0x3b0d   :  { %v11549_v4 = vadd.f32 %v14522_v38, %v11531_v61  ;;  %v14541_v61 = vld [vmem:[%s21068_s22 + $0x28] sm:$0xff] }
0x3b0e   :  { %v11552_v16 = vadd.f32 %v11550_v34, %v20442_v36  ;;  %v14540_v34 = vld [vmem:[%s21068_s22 + $0x20] sm:$0xff] }
0x3b0f   :  { %v11551_v5 = vadd.f32 %v11549_v4, %v20434_v32  ;;  %v17115_v4 = vpack.c.bf16 %v14541_v61, %v14540_v34 }
0x3b10   :  { %v11556_v12 = vsel %vm880_vm0, %v11552_v16, 0.0 }
0x3b11   :  { %11557 = vadd.xlane.f32.xlu1 %v11556_v12  ;;  %v11553_v6 = vsel %vm880_vm0, %v11551_v5, 0.0  ;;  %17116 = vmatprep.subr.bf16.mxu1 %v17115_v4 }
0x3b12   :  { %11554 = vadd.xlane.f32.xlu0 %v11553_v6 }
0x3b9e   :  { %v11558_v1 = vpop.xlane.xlu1 %11557 }
0x3b9f   :  { %v11560_v42 = vmul.f32 0.03125, %v11558_v1  ;;  %v11555_v22 = vpop.xlane.xlu0 %11554 }
0x3ba0   :  { %v11559_v11 = vmul.f32 0.03125, %v11555_v22 }
0x3ba1   :  { %v11562_v50 = vsub.f32 %v11552_v16, %v11560_v42 }
0x3ba2   :  { %v11561_v14 = vsub.f32 %v11551_v5, %v11559_v11  ;;  %v14542_v11 = vld [vmem:[%s21068_s22 + $0x30] sm:$0xff] }
0x3ba3   :  { %v11564_v18 = vmul.f32 %v11562_v50, %v11562_v50 }
0x3ba4   :  { %v11563_v13 = vmul.f32 %v11561_v14, %v11561_v14 }
0x3ba5   :  { %v11568_v36 = vsel %vm880_vm0, %v11564_v18, 0.0 }
0x3ba6   :  { %v11565_v15 = vsel %vm880_vm0, %v11563_v13, 0.0 }
0x3ba7   :  { %11566 = vadd.xlane.f32.xlu1 %v11565_v15 }
0x3bab   :  { %11569 = vadd.xlane.f32.xlu1 %v11568_v36 }
0x3c34   :  { %v11567_v32 = vpop.xlane.xlu1 %11566 }
0x3c35   :  { %v11571_v20 = vmul.f32 0.03125, %v11567_v32 }
0x3c37   :  { %v11573_v47 = vadd.f32 1e-05, %v11571_v20  ;;  %v14566_v20 = vld [vmem:[%s21068_s22 + $0x40] sm:$0xff] }
0x3c38   :  { %v11570_v19 = vpop.xlane.xlu1 %11569 }
0x3c39   :  { %17701 = vrsqrt.f32 %v11573_v47  ;;  %v11572_v44 = vmul.f32 0.03125, %v11570_v19  ;;  %v14567_v47 = vld [vmem:[%s21068_s22 + $0x48] sm:$0xff] }
0x3c3a   :  { %v17141_v19 = vpack.c.bf16 %v14567_v47, %v14566_v20  ;;  %v14574_v20 = vld [vmem:[%s21066_s18 + $0x40] sm:$0xff]  ;;  %v14575_v47 = vld [vmem:[%s21066_s18 + $0x48] sm:$0xff] }
0x3c3b   :  { %v11574_v60 = vadd.f32 1e-05, %v11572_v44 }
0x3c3d   :  { %17703 = vrsqrt.f32 %v11574_v60 }
0x3c43   :  { %v17702_v63 = vpop.eup %17701 }
0x3c44   :  { %v11577_v21 = vmul.f32 %v17702_v63, %v11561_v14  ;;  %v14545_v63 = vld [vmem:[%s21069_s23 + $0x1] ss:$0 sm:$0xff] }
0x3c46   :  { %v11586_v23 = vmul.f32 %v14523_v0, %v11577_v21  ;;  %v14568_v21 = vld [vmem:[%s21068_s22 + $0x50] sm:$0xff] }
0x3c47   :  { %v17704_v24 = vpop.eup %17703 }
0x3c48   :  { %v11578_v59 = vmul.f32 %v17704_v24, %v11562_v50  ;;  %v20634_v3 = vadd.f32 %v14524_v31, %v11586_v23  ;;  %v14543_v50 = vld [vmem:[%s21068_s22 + $0x38] sm:$0xff] }
0x3c49   :  { %v17119_v13 = vpack.c.bf16 %v14543_v50, %v14542_v11 }
0x3c4a   :  { %16263 = vmatprep.mubr.msk.f32.mxu0 %vm880_vm0, %v20634_v3  ;;  %v11587_v25 = vmul.f32 %v14523_v0, %v11578_v59 }
0x3c4c   :  { %v20638_v28 = vadd.f32 %v14524_v31, %v11587_v25  ;;  %v14569_v31 = vld [vmem:[%s21068_s22 + $0x58] sm:$0xff] }
0x3c4d   :  { %v17145_v25 = vpack.c.bf16 %v14569_v31, %v14568_v21 }
0x3c4e   :  { %16264 = vmatmul.mubr.msk.f32.vlgmr.msra.gmra.mrb[96].mxu0 %vm880_vm0, %v20638_v28 }
0x3c4f   :  { %17110 = vmatpush3.bf16.xpose.msk.msra.mxu0 %vm19598_vm2, %v20600_v7 }
0x3c50   :  { %17124 = vmatprep.subr.bf16.mxu0 %v17123_v33 }
0x3d21   :  { %v16265_v39 = vpop.f32.mrb[96].mxu0 }
0x3d22   :  { %v11770_v43 = vpop.f32.mrb[97].mxu0  ;;  %v11776_v37 = vadd.f32 %v16265_v39, %v14528_v40 }
0x3d23   :  { %v11771_v45 = vadd.f32 %v14528_v40, %v11770_v43 }
0x3d25   :  { %16281 = vmatprep.mubr.msk.f32.mxu0 %vm1138_vm1, %v11771_v45 }
0x3d26   :  { %16282 = vmatmul.mubr.msk.f32.vlgmr.msra.gmra.mrb[98].mxu0 %vm1138_vm1, %v11776_v37 }
0x3d27   :  { %17126 = vmatpush3.bf16.msra.mxu0 %v17123_v33  ;;  %16310 = vmatprep.mubr.msk.f32.mxu0 %vm880_vm0, %v20210_v9 }
0x3d28   :  { %17128 = vmatprep.subr.bf16.mxu0 %v17127_v48 }
0x3d2b   :  { %17130 = vmatpush3.bf16.msra.mxu0 %v17127_v48 }
0x3d2e   :  { %16311 = vmatmul.mubr.msk.f32.vlgmr.msra.gmra.mrb[100].mxu0 %vm880_vm0, %v20208_v8 }
0x3df9   :  { %v16283_v7 = vpop.f32.mrb[98].mxu0 }
0x3dfa   :  { %v11943_v2 = vpop.f32.mrb[99].mxu0  ;;  %v11953_v17 = vmul.f32 0.35355338, %v16283_v7 }
0x3dfb   :  { %v11952_v58 = vmul.f32 0.35355338, %v11943_v2 }
0x3dfc   :  { %v11955_v49 = vadd.f32 %v20661_v26, %v11953_v17 }
0x3dfd   :  { %v11954_v52 = vadd.f32 %v20657_v51, %v11952_v58 }
0x3dfe   :  { %v11959_v38 = vsel %vm1230_vm3, %v11955_v49, -inf }
0x3dff   :  { %v11956_v54 = vsel %vm1230_vm3, %v11954_v52, -inf }
0x3e00   :  { %11957 = vmax.xlane.f32.xlu1 %v11956_v54 }
0x3e01   :  { %v16312_v46 = vpop.f32.mrb[100].mxu0 }
0x3e02   :  { %v12232_v29 = vadd.f32 %v16312_v46, %v14553_v53  ;;  %v12226_v55 = vpop.f32.mrb[101].mxu0 }
0x3e03   :  { %v12227_v56 = vadd.f32 %v14553_v53, %v12226_v55  ;;  %v14591_v55 = vld [vmem:[%s21068_s22 + $0x68] sm:$0xff] }
0x3e04   :  { %11960 = vmax.xlane.f32.xlu1 %v11959_v38 }
0x3e05   :  { %v17137_v57 = vpack.c.bf16 %v12232_v29, %v12227_v56  ;;  %v14590_v29 = vld [vmem:[%s21068_s22 + $0x60] sm:$0xff] }
0x3e06   :  { %v17167_v34 = vpack.c.bf16 %v14591_v55, %v14590_v29 }
0x3e07   :  { %17138 = vmatprep.subr.bf16.mxu0 %v17137_v57 }
0x3e08   :  { %17140 = vmatpush3.bf16.msra.mxu0 %v17137_v57 }
0x3e15   :  { %17471 = vrot.lane.b32.xlu1 %v20602_v10, %s18916_s19  ;;  %s21070_s19 = sld [smem:[#allocation123_spill]] }
0x3e1b   :  { %v11683_v50 = vld [vmem:[%s21070_s19] sm:$0xff] }
0x3e8d   :  { %v11958_v16 = vpop.xlane.xlu1 %11957 }
0x3e8e   :  { %v11962_v5 = vsub.f32 %v11954_v52, %v11958_v16  ;;  %v14592_v16 = vld [vmem:[%s21068_s22 + $0x70] sm:$0xff] }
0x3e90   :  { %v11964_v12 = vmul.f32 1.442695, %v11962_v5  ;;  %v14593_v5 = vld [vmem:[%s21068_s22 + $0x78] sm:$0xff] }
0x3e91   :  { %v11961_v6 = vpop.xlane.xlu1 %11960 }
0x3e92   :  { %17705 = vpow2.f32 %v11964_v12  ;;  %v11963_v1 = vsub.f32 %v11955_v49, %v11961_v6 }
0x3e94   :  { %v11966_v42 = vmul.f32 1.442695, %v11963_v1 }
0x3e95   :  { %v17472_v14 = vpop.permute.xlu1 %17471 }
0x3e96   :  { %17707 = vpow2.f32 %v11966_v42  ;;  %v17474_v18 = vunpack.i.h.bf16 %v17472_v14  ;;  %v17473_v36 = vunpack.i.l.bf16 %v17472_v14  ;;  %v17171_v42 = vpack.c.bf16 %v14593_v5, %v14592_v16 }
0x3e98   :  { %v17131_v32 = vpack.c.bf16 %v17474_v18, %v17473_v36 }
0x3e9c   :  { %v20671_v22 = vpop.eup %17705 }
0x3e9d   :  { %16288 = vmatprep.mubr.msk.f32.mxu1 %vm1230_vm3, %v20671_v22  ;;  %v11968_v6 = vsel %vm1230_vm3, %v20671_v22, 0.0  ;;  %v11684_v22 = vld [vmem:[%s21070_s19 + $0x8] sm:$0xff] }
0x3e9e   :  { %16327 = vmatprep.subr.mxu0 %v11684_v22 }
0x3ea0   :  { %v20677_v15 = vpop.eup %17707 }
0x3ea1   :  { %16289 = vmatmul.mubr.msk.f32.vlgmr.msra.gmra.mrb[100].mxu1 %vm1230_vm3, %v20677_v15  ;;  %v11971_v11 = vsel %vm1230_vm3, %v20677_v15, 0.0 }
0x3ea2   :  { %17118 = vmatpush3.bf16.msra.mxu1 %v17115_v4  ;;  %16299 = vmatprep.mubr.msk.f32.mxu1 %vm880_vm0, %v20634_v3 }
0x3ea3   :  { %17120 = vmatprep.subr.bf16.mxu1 %v17119_v13 }
0x3ea6   :  { %17122 = vmatpush3.bf16.msra.mxu1 %v17119_v13 }
0x3ea7   :  { %17133 = vmatprep.subr.msk.bf16.mxu1 %vm19598_vm2, %v17131_v32 }
0x3ea9   :  { %16300 = vmatmul.mubr.msk.f32.vlgmr.msra.gmra.mrb[102].mxu1 %vm880_vm0, %v20638_v28 }
0x3eaf   :  { %17136 = vmatpush3.bf16.xpose.msk.msra.mxu1 %vm19598_vm2, %v17131_v32 }
0x3eb0   :  { %17142 = vmatprep.subr.bf16.mxu1 %v17141_v19 }
0x3f74   :  { %v20691_v44 = vpop.f32.mrb[100].mxu1 }
0x3f75   :  { %v20693_v60 = vpop.f32.mrb[101].mxu1 }
0x3f7c   :  { %v16301_v0 = vpop.f32.mrb[102].mxu1 }
0x3f7d   :  { %v12138_v23 = vpop.f32.mrb[103].mxu1  ;;  %v12144_v59 = vadd.f32 %v16301_v0, %v14545_v63 }
0x3f7e   :  { %v12139_v24 = vadd.f32 %v14545_v63, %v12138_v23 }
0x3f80   :  { %16317 = vmatprep.mubr.msk.f32.mxu1 %vm1138_vm1, %v12139_v24 }
0x3f81   :  { %16318 = vmatmul.mubr.msk.f32.vlgmr.msra.gmra.mrb[104].mxu1 %vm1138_vm1, %v12144_v59  ;;  %v17149_v59 = vpack.c.bf16 %v14575_v47, %v14574_v20 }
0x3f82   :  { %17144 = vmatpush3.bf16.msra.mxu1 %v17141_v19  ;;  %16345 = vmatprep.mubr.msk.f32.mxu1 %vm880_vm0, %v20634_v3 }
0x3f83   :  { %17146 = vmatprep.subr.bf16.mxu1 %v17145_v25 }
0x3f86   :  { %17148 = vmatpush3.bf16.msra.mxu1 %v17145_v25 }
0x3f89   :  { %16346 = vmatmul.mubr.msk.f32.vlgmr.msra.gmra.mrb[106].mxu1 %vm880_vm0, %v20638_v28 }
0x4054   :  { %v16319_v62 = vpop.f32.mrb[104].mxu1 }
0x4055   :  { %v12315_v30 = vpop.f32.mrb[105].mxu1  ;;  %v12325_v33 = vmul.f32 0.35355338, %v16319_v62 }
0x4056   :  { %v12324_v40 = vmul.f32 0.35355338, %v12315_v30 }
0x4057   :  { %v12327_v35 = vadd.f32 %v20661_v26, %v12325_v33 }
0x4058   :  { %v12326_v39 = vadd.f32 %v20657_v51, %v12324_v40 }
0x4059   :  { %v12331_v2 = vsel %vm1230_vm3, %v12327_v35, -inf }
0x405a   :  { %v12328_v43 = vsel %vm1230_vm3, %v12326_v39, -inf }
0x405b   :  { %12329 = vmax.xlane.f32.xlu0 %v12328_v43  ;;  %v14576_v43 = vld [vmem:[%s21066_s18 + $0x50] sm:$0xff] }
0x405c   :  { %v16347_v45 = vpop.f32.mrb[106].mxu1 }
0x405d   :  { %v12678_v37 = vadd.f32 %v16347_v45, %v14571_v41  ;;  %v12672_v48 = vpop.f32.mrb[107].mxu1  ;;  %v14577_v45 = vld [vmem:[%s21066_s18 + $0x58] sm:$0xff] }
0x405e   :  { %v12673_v7 = vadd.f32 %v14571_v41, %v12672_v48  ;;  %v14595_v41 = vld [vmem:[%s21069_s23 + $0x3] ss:$0 sm:$0xff] }
0x405f   :  { %12332 = vmax.xlane.f32.xlu0 %v12331_v2  ;;  %v17153_v2 = vpack.c.bf16 %v14577_v45, %v14576_v43 }
0x4060   :  { %16363 = vmatprep.mubr.msk.f32.mxu1 %vm1138_vm1, %v12673_v7 }
0x4075   :  { %17476 = vrot.lane.b32.xlu0 %v20602_v10, %s18917_s3  ;;  %s21072_s3 = sld [smem:[#allocation128_spill]] }
0x40e8   :  { %v12330_v17 = vpop.xlane.xlu0 %12329 }
0x40e9   :  { %v12334_v58 = vsub.f32 %v12326_v39, %v12330_v17 }
0x40eb   :  { %v12336_v52 = vmul.f32 1.442695, %v12334_v58 }
0x40ec   :  { %v12333_v49 = vpop.xlane.xlu0 %12332 }
0x40ed   :  { %17709 = vpow2.f32 %v12336_v52  ;;  %v12335_v53 = vsub.f32 %v12327_v35, %v12333_v49 }
0x40ef   :  { %v12338_v54 = vmul.f32 1.442695, %v12335_v53 }
0x40f0   :  { %v17477_v46 = vpop.permute.xlu0 %17476 }
0x40f1   :  { %17711 = vpow2.f32 %v12338_v54  ;;  %v17479_v56 = vunpack.i.h.bf16 %v17477_v46  ;;  %v17478_v38 = vunpack.i.l.bf16 %v17477_v46 }
0x40f3   :  { %v17157_v57 = vpack.c.bf16 %v17479_v56, %v17478_v38 }
0x40f5   :  { %17159 = vmatprep.subr.msk.bf16.mxu1 %vm19598_vm2, %v17157_v57 }
0x40f6   :  { %17162 = vmatpush3.bf16.xpose.msk.msra.mxu1 %vm19598_vm2, %v17157_v57 }
0x40f7   :  { %v17710_v61 = vpop.eup %17709  ;;  %17168 = vmatprep.subr.bf16.mxu1 %v17167_v34 }
0x40f8   :  { %16324 = vmatprep.mubr.msk.f32.mxu0 %vm1230_vm3, %v17710_v61  ;;  %v12340_v4 = vsel %vm1230_vm3, %v17710_v61, 0.0 }
0x40f9   :  { %12341 = vadd.xlane.f32.xlu1 %v12340_v4  ;;  %v14579_v4 = vld [vmem:[%s21067_s25 + $0x2] ss:$0 sm:$0xff] }
0x40fb   :  { %v17712_v12 = vpop.eup %17711 }
0x40fc   :  { %16325 = vmatmul.mubr.msk.f32.vlgmr.msra.gmra.mrb[102].mxu0 %vm1230_vm3, %v17712_v12  ;;  %v12343_v1 = vsel %vm1230_vm3, %v17712_v12, 0.0 }
0x40fd   :  { %11969 = vadd.xlane.f32.xlu1 %v11968_v6  ;;  %12344 = vadd.xlane.f32.xlu0 %v12343_v1  ;;  %v11685_v1 = vld [vmem:[%s21070_s19 + $0x10] sm:$0xff] }
0x40fe   :  { %16364 = vmatmul.mubr.msk.f32.vlgmr.msra.gmra.mrb[108].mxu1 %vm1138_vm1, %v12678_v37  ;;  %16328 = vmatpush3.msra.mxu0 %v11684_v22 }
0x40ff   :  { %17170 = vmatpush3.bf16.msra.mxu1 %v17167_v34  ;;  %16386 = vmatprep.mubr.msk.f32.mxu1 %vm880_vm0, %v20634_v3 }
0x4100   :  { %17172 = vmatprep.subr.bf16.mxu1 %v17171_v42  ;;  %16332 = vmatprep.subr.mxu0 %v11683_v50 }
0x4101   :  { %11972 = vadd.xlane.f32.xlu1 %v11971_v11  ;;  %v14599_v11 = vld [vmem:[%s21066_s18 + $0x68] sm:$0xff] }
0x4103   :  { %17174 = vmatpush3.bf16.msra.mxu1 %v17171_v42  ;;  %v14598_v42 = vld [vmem:[%s21066_s18 + $0x60] sm:$0xff] }
0x4104   :  { %v17175_v22 = vpack.c.bf16 %v14599_v11, %v14598_v42 }
0x4106   :  { %16387 = vmatmul.mubr.msk.f32.vlgmr.msra.gmra.mrb[110].mxu1 %vm880_vm0, %v20638_v28 }
0x4186   :  { %v12342_v14 = vpop.xlane.xlu1 %12341 }
0x4187   :  { %17713 = vrcp.f32 %v12342_v14 }
0x418a   :  { %v11970_v13 = vpop.xlane.xlu1 %11969  ;;  %v12345_v18 = vpop.xlane.xlu0 %12344 }
0x418b   :  { %17715 = vrcp.f32 %v11970_v13 }
0x418c   :  { %17717 = vrcp.f32 %v12345_v18 }
0x418e   :  { %v11973_v15 = vpop.xlane.xlu1 %11972 }
0x418f   :  { %17719 = vrcp.f32 %v11973_v15 }
0x4191   :  { %v17714_v36 = vpop.eup %17713 }
0x4195   :  { %v17716_v19 = vpop.eup %17715 }
0x4196   :  { %v17718_v0 = vpop.eup %17717  ;;  %v12057_v30 = vmul.f32 %v17716_v19, %v20693_v60 }
0x4199   :  { %v17720_v40 = vpop.eup %17719 }
0x419a   :  { %v12058_v60 = vmul.f32 %v17720_v40, %v20691_v44 }
0x41cf   :  { %v16326_v32 = vpop.f32.mrb[102].mxu0 }
0x41d0   :  { %v12418_v63 = vpop.f32.mrb[103].mxu0  ;;  %v12430_v23 = vmul.f32 %v17718_v0, %v16326_v32  ;;  %v14600_v0 = vld [vmem:[%s21066_s18 + $0x70] sm:$0xff] }
0x41d1   :  { %v12429_v21 = vmul.f32 %v17714_v36, %v12418_v63  ;;  %v16365_v31 = vpop.f32.mrb[108].mxu1 }
0x41d2   :  { %v12849_v24 = vpop.f32.mrb[109].mxu1  ;;  %v12859_v25 = vmul.f32 0.35355338, %v16365_v31 }
0x41d3   :  { %v12858_v62 = vmul.f32 0.35355338, %v12849_v24  ;;  %16329 = vmatprep.mubr.msk.f32.mxu0 %vm1138_vm1, %v12429_v21  ;;  %v14601_v21 = vld [vmem:[%s21066_s18 + $0x78] sm:$0xff] }
0x41d4   :  { %16330 = vmatmul.mubr.msk.f32.vlgmr.msra.gmra.mrb[104].mxu0 %vm1138_vm1, %v12430_v23  ;;  %v12861_v39 = vadd.f32 %v20661_v26, %v12859_v25  ;;  %v17179_v25 = vpack.c.bf16 %v14601_v21, %v14600_v0  ;;  %v14615_v21 = vld [vmem:[#allocation29] ss:$0 sm:$0xff] }
0x41d5   :  { %v12860_v33 = vadd.f32 %v20657_v51, %v12858_v62  ;;  %16333 = vmatpush3.msra.mxu0 %v11683_v50  ;;  %16334 = vmatprep.mubr.msk.f32.mxu0 %vm1138_vm1, %v12057_v30 }
0x41d6   :  { %17150 = vmatprep.subr.bf16.mxu0 %v17149_v59  ;;  %v12865_v58 = vsel %vm1230_vm3, %v12861_v39, -inf }
0x41d7   :  { %v12862_v35 = vsel %vm1230_vm3, %v12860_v33, -inf }
0x41d8   :  { %12863 = vmax.xlane.f32.xlu1 %v12862_v35 }
0x41d9   :  { %v16388_v37 = vpop.f32.mrb[110].mxu1 }
0x41da   :  { %v13133_v48 = vadd.f32 %v16388_v37, %v14595_v41  ;;  %v13127_v7 = vpop.f32.mrb[111].mxu1 }
0x41db   :  { %v13128_v17 = vadd.f32 %v14595_v41, %v13127_v7 }
0x41dc   :  { %12866 = vmax.xlane.f32.xlu1 %v12865_v58  ;;  %16335 = vmatmul.mubr.msk.f32.vlgmr.msra.gmra.mrb[104].mxu0 %vm1138_vm1, %v12058_v60 }
0x41dd   :  { %17152 = vmatpush3.bf16.msra.mxu0 %v17149_v59  ;;  %16404 = vmatprep.mubr.msk.f32.mxu1 %vm1138_vm1, %v13128_v17 }
0x41de   :  { %16356 = vmatprep.mubr.msk.f32.mxu0 %vm880_vm0, %v20210_v9  ;;  %17154 = vmatprep.subr.bf16.mxu0 %v17153_v2 }
0x41e1   :  { %17156 = vmatpush3.bf16.msra.mxu0 %v17153_v2  ;;  %v11686_v2 = vld [vmem:[%s21070_s19 + $0x18] sm:$0xff] }
0x41e4   :  { %16357 = vmatmul.mubr.msk.f32.vlgmr.msra.gmra.mrb[106].mxu0 %vm880_vm0, %v20208_v8 }
0x41ed   :  { %17481 = vrot.lane.b32.xlu1 %v20602_v10, %s18918_s7  ;;  %s18919_s7 = smov [#allocation68]  }
0x41ee   :  { %s13909_s26 = sshll.u32 %s18919_s7, 4  ;;  %s13910_s26 = int_to_ptr.vmem [resolvable:$true] %s13909_s26 }
0x41ef   :  { %s18689_s28 = scalar_lea.vmem %s13910_s26, 256  ;;  %p18694_p1 = scmp.lt.s32.totalorder %s13910_s26, %s13910_s26 }
0x41f0   :  { %p18690_p0 = scmp.ne.s32.totalorder %s13910_s26, %s18689_s28  ;;  %p18695_p2 = scmp.lt.s32.totalorder %s18689_s28, %s18689_s28 }
0x41f2   :  { %p18696_p3 = por %p18695_p2, %p18694_p1 }
0x41f4   :  { %p18697_p4 = pnand %p18696_p3, %p18690_p0 }
0x4265   :  { %v12864_v44 = vpop.xlane.xlu1 %12863 }
0x4266   :  { %v12868_v52 = vsub.f32 %v12860_v33, %v12864_v44 }
0x4268   :  { %v12870_v49 = vmul.f32 1.442695, %v12868_v52 }
0x4269   :  { %v12867_v53 = vpop.xlane.xlu1 %12866 }
0x426a   :  { %17721 = vpow2.f32 %v12870_v49  ;;  %v12869_v54 = vsub.f32 %v12861_v39, %v12867_v53 }
0x426c   :  { %v12872_v46 = vmul.f32 1.442695, %v12869_v54 }
0x426d   :  { %v17482_v29 = vpop.permute.xlu1 %17481 }
0x426e   :  { %17723 = vpow2.f32 %v12872_v46  ;;  %v17484_v55 = vunpack.i.h.bf16 %v17482_v29  ;;  %v17483_v56 = vunpack.i.l.bf16 %v17482_v29  ;;  %v14614_v29 = vld [vmem:[#allocation20] ss:$0 sm:$0xff] }
0x4270   :  { %v17183_v38 = vpack.c.bf16 %v17484_v55, %v17483_v56 }
0x4272   :  { %17185 = vmatprep.subr.msk.bf16.mxu1 %vm19598_vm2, %v17183_v38 }
0x4273   :  { %17188 = vmatpush3.bf16.xpose.msk.msra.mxu1 %vm19598_vm2, %v17183_v38 }
0x4274   :  { %v17722_v10 = vpop.eup %17721 }
0x4275   :  { %16370 = vmatprep.mubr.msk.f32.mxu0 %vm1230_vm3, %v17722_v10  ;;  %v12874_v57 = vsel %vm1230_vm3, %v17722_v10, 0.0 }
0x4276   :  { %12875 = vadd.xlane.f32.xlu0 %v12874_v57 }
0x4278   :  { %v17724_v34 = vpop.eup %17723 }
0x4279   :  { %v12877_v61 = vsel %vm1230_vm3, %v17724_v34, 0.0 }
0x427a   :  { %12878 = vadd.xlane.f32.xlu0 %v12877_v61  ;;  %16405 = vmatmul.mubr.msk.f32.vlgmr.msra.gmra.mrb[112].mxu1 %vm1138_vm1, %v13133_v48 }
0x42b7   :  { %v16358_v16 = vpop.f32.mrb[106].mxu0 }
0x42b8   :  { %v12766_v5 = vadd.f32 %v16358_v16, %v14579_v4  ;;  %v12760_v27 = vpop.f32.mrb[107].mxu0 }
0x42b9   :  { %v12761_v12 = vadd.f32 %v14579_v4, %v12760_v27 }
0x42bb   :  { %v17163_v6 = vpack.c.bf16 %v12766_v5, %v12761_v12 }
0x42bd   :  { %17164 = vmatprep.subr.bf16.mxu0 %v17163_v6 }
0x42be   :  { %17166 = vmatpush3.bf16.msra.mxu0 %v17163_v6 }
0x42bf   :  { %16373 = vmatprep.subr.mxu0 %v11685_v1 }
0x42c1   :  { %16371 = vmatmul.mubr.msk.f32.vlgmr.msra.gmra.mrb[108].mxu0 %vm1230_vm3, %v17724_v34 }
0x42c2   :  { %16374 = vmatpush3.msra.mxu0 %v11685_v1 }
0x42c3   :  { %17176 = vmatprep.subr.bf16.mxu0 %v17175_v22 }
0x4303   :  { %v12876_v47 = vpop.xlane.xlu0 %12875 }
0x4304   :  { %17725 = vrcp.f32 %v12876_v47 }
0x4307   :  { %v12879_v19 = vpop.xlane.xlu0 %12878 }
0x4308   :  { %17727 = vrcp.f32 %v12879_v19 }
0x430e   :  { %v17726_v31 = vpop.eup %17725 }
0x4312   :  { %v17728_v24 = vpop.eup %17727 }
0x434d   :  { %v16406_v50 = vpop.f32.mrb[112].mxu1 }
0x434e   :  { %v13304_v14 = vpop.f32.mrb[113].mxu1  ;;  %v13314_v13 = vmul.f32 0.35355338, %v16406_v50  ;;  %v13559_v50 = vld [vmem:[%s21071_s27 + $0x8] sm:$0xff] }
0x434f   :  { %v13313_v18 = vmul.f32 0.35355338, %v13304_v14 }
0x4350   :  { %v13316_v36 = vadd.f32 %v20661_v26, %v13314_v13  ;;  %v13560_v13 = vld [vmem:[%s21071_s27 + $0x10] sm:$0xff] }
0x4351   :  { %v13315_v15 = vadd.f32 %v20657_v51, %v13313_v18  ;;  %v13561_v18 = vld [vmem:[%s21071_s27 + $0x18] sm:$0xff] }
0x4352   :  { %v13320_v20 = vsel %vm1230_vm3, %v13316_v36, -inf }
0x4353   :  { %v13317_v32 = vsel %vm1230_vm3, %v13315_v15, -inf }
0x4354   :  { %13318 = vmax.xlane.f32.xlu0 %v13317_v32 }
0x4358   :  { %13321 = vmax.xlane.f32.xlu0 %v13320_v20 }
0x4394   :  { %v16372_v63 = vpop.f32.mrb[108].mxu0 }
0x4395   :  { %v12952_v23 = vpop.f32.mrb[109].mxu0  ;;  %v12964_v51 = vmul.f32 %v17728_v24, %v16372_v63 }
0x4396   :  { %v12963_v59 = vmul.f32 %v17726_v31, %v12952_v23  ;;  %v14616_v23 = vld [vmem:[#allocation28] ss:$0 sm:$0xff] }
0x4398   :  { %16375 = vmatprep.mubr.msk.f32.mxu0 %vm1138_vm1, %v12963_v59 }
0x4399   :  { %16376 = vmatmul.mubr.msk.f32.vlgmr.msra.gmra.mrb[104].mxu0 %vm1138_vm1, %v12964_v51 }
0x439a   :  { %17178 = vmatpush3.bf16.msra.mxu0 %v17175_v22  ;;  %16397 = vmatprep.mubr.msk.f32.mxu0 %vm880_vm0, %v20210_v9  ;;  %v13558_v22 = vld [vmem:[%s21071_s27] sm:$0xff] }
0x439b   :  { %17180 = vmatprep.subr.bf16.mxu0 %v17179_v25  ;;  %v17193_v14 = vpack.c.bf16 %v13559_v50, %v13558_v22 }
0x439d   :  { %17194 = vmatprep.subr.bf16.mxu1 %v17193_v14 }
0x439e   :  { %17182 = vmatpush3.bf16.msra.mxu0 %v17179_v25  ;;  %17196 = vmatpush3.bf16.msra.mxu1 %v17193_v14 }
0x43a1   :  { %16398 = vmatmul.mubr.msk.f32.vlgmr.msra.gmra.mrb[110].mxu0 %vm880_vm0, %v20208_v8  ;;  %v14603_v8 = vld [vmem:[%s21067_s25 + $0x3] ss:$0 sm:$0xff] }
0x43e1   :  { %v13319_v26 = vpop.xlane.xlu0 %13318 }
0x43e2   :  { %v13323_v62 = vsub.f32 %v13315_v15, %v13319_v26  ;;  %v17197_v15 = vpack.c.bf16 %v13561_v18, %v13560_v13 }
0x43e4   :  { %v13325_v30 = vmul.f32 1.442695, %v13323_v62  ;;  %17198 = vmatprep.subr.bf16.mxu1 %v17197_v15 }
0x43e5   :  { %v13322_v33 = vpop.xlane.xlu0 %13321  ;;  %17200 = vmatpush3.bf16.msra.mxu1 %v17197_v15 }
0x43e6   :  { %17729 = vpow2.f32 %v13325_v30  ;;  %v13324_v40 = vsub.f32 %v13316_v36, %v13322_v33  ;;  %v13704_v30 = vld [vmem:[%s21072_s3] sm:$0xff]  ;;  %v13705_v33 = vld [vmem:[%s21072_s3 + $0x8] sm:$0xff] }
0x43e8   :  { %v13327_v39 = vmul.f32 1.442695, %v13324_v40  ;;  %v17201_v40 = vpack.c.bf16 %v13705_v33, %v13704_v30 }
0x43ea   :  { %17731 = vpow2.f32 %v13327_v39  ;;  %v13706_v39 = vld [vmem:[%s21072_s3 + $0x10] sm:$0xff] }
0x43f0   :  { %v17730_v35 = vpop.eup %17729 }
0x43f1   :  { %16411 = vmatprep.mubr.msk.f32.mxu0 %vm1230_vm3, %v17730_v35  ;;  %v13329_v9 = vsel %vm1230_vm3, %v17730_v35, 0.0  ;;  %v13707_v35 = vld [vmem:[%s21072_s3 + $0x18] sm:$0xff] }
0x43f2   :  { %13330 = vadd.xlane.f32.xlu0 %v13329_v9  ;;  %v17205_v9 = vpack.c.bf16 %v13707_v35, %v13706_v39 }
0x43f4   :  { %v17732_v41 = vpop.eup %17731 }
0x43f5   :  { %v13332_v43 = vsel %vm1230_vm3, %v17732_v41, 0.0 }
0x43f6   :  { %13333 = vadd.xlane.f32.xlu1 %v13332_v43  ;;  %v13709_v43 = vld [vmem:[%s21072_s3 + $0x28] sm:$0xff] }
0x4474   :  { %v16399_v45 = vpop.f32.mrb[110].mxu0 }
0x4475   :  { %v13221_v37 = vadd.f32 %v16399_v45, %v14603_v8  ;;  %v13215_v60 = vpop.f32.mrb[111].mxu0  ;;  %v13710_v45 = vld [vmem:[%s21072_s3 + $0x30] sm:$0xff] }
0x4476   :  { %v13216_v48 = vadd.f32 %v14603_v8, %v13215_v60 }
0x4478   :  { %v17189_v7 = vpack.c.bf16 %v13221_v37, %v13216_v48  ;;  %v13711_v37 = vld [vmem:[%s21072_s3 + $0x38] sm:$0xff] }
0x4479   :  { %v17213_v60 = vpack.c.bf16 %v13711_v37, %v13710_v45  ;;  %v14617_v48 = vld [vmem:[#allocation22] ss:$0 sm:$0xff] }
0x447a   :  { %17190 = vmatprep.subr.bf16.mxu0 %v17189_v7 }
0x447b   :  { %17192 = vmatpush3.bf16.msra.mxu0 %v17189_v7 }
0x447c   :  { %16414 = vmatprep.subr.mxu0 %v11686_v2 }
0x447e   :  { %16412 = vmatmul.mubr.msk.f32.vlgmr.msra.gmra.mrb[112].mxu0 %vm1230_vm3, %v17732_v41  ;;  %v13708_v41 = vld [vmem:[%s21072_s3 + $0x20] sm:$0xff] }
0x447f   :  { %16415 = vmatpush3.msra.mxu0 %v11686_v2  ;;  %v13331_v17 = vpop.xlane.xlu0 %13330  ;;  %v17209_v8 = vpack.c.bf16 %v13709_v43, %v13708_v41 }
0x4480   :  { %17733 = vrcp.f32 %v13331_v17  ;;  %17202 = vmatprep.subr.bf16.mxu0 %v17201_v40 }
0x4483   :  { %v13334_v58 = vpop.xlane.xlu1 %13333 }
0x4484   :  { %17735 = vrcp.f32 %v13334_v58 }
0x448a   :  { %v17734_v52 = vpop.eup %17733 }
0x448e   :  { %v17736_v53 = vpop.eup %17735 }
0x4551   :  { %v16413_v44 = vpop.f32.mrb[112].mxu0 }
0x4552   :  { %v13407_v49 = vpop.f32.mrb[113].mxu0  ;;  %v13419_v46 = vmul.f32 %v17736_v53, %v16413_v44 }
0x4553   :  { %v13418_v54 = vmul.f32 %v17734_v52, %v13407_v49 }
0x4555   :  { %16416 = vmatprep.mubr.msk.f32.mxu0 %vm1138_vm1, %v13418_v54 }
0x4556   :  { %16417 = vmatmul.mubr.msk.f32.vlgmr.msra.gmra.mrb[104].mxu0 %vm1138_vm1, %v13419_v46 }
0x4557   :  { %17204 = vmatpush3.bf16.msra.mxu0 %v17201_v40 }
0x4558   :  { %17206 = vmatprep.subr.bf16.mxu0 %v17205_v9 }
0x455b   :  { %17208 = vmatpush3.bf16.msra.mxu0 %v17205_v9  ;;  %v14620_v9 = vld [vmem:[#allocation23] ss:$0 sm:$0xff] }
0x455c   :  { %17210 = vmatprep.subr.bf16.mxu0 %v17209_v8 }
0x455f   :  { %17212 = vmatpush3.bf16.msra.mxu0 %v17209_v8 }
0x4560   :  { %17214 = vmatprep.subr.bf16.mxu0 %v17213_v60 }
0x4563   :  { %17216 = vmatpush3.bf16.msra.mxu0 %v17213_v60 }
0x4629   :  { %v16418_v55 = vpop.f32.mrb[104].mxu0 }
0x462a   :  { %v13492_v56 = vpop.f32.mrb[105].mxu0  ;;  %v13511_v38 = vadd.f32 %v16418_v55, %v14614_v29 }
0x462b   :  { %v13510_v10 = vadd.f32 %v14614_v29, %v13492_v56 }
0x462c   :  { %v13513_v34 = vadd.f32 %v13511_v38, %v20638_v28 }
0x462d   :  { %v13512_v57 = vadd.f32 %v13510_v10, %v20634_v3 }
0x462e   :  { %v13517_v4 = vsel %vm880_vm0, %v13513_v34, 0.0 }
0x462f   :  { %v13514_v61 = vsel %vm880_vm0, %v13512_v57, 0.0 }
0x4630   :  { %13515 = vadd.xlane.f32.xlu0 %v13514_v61 }
0x4634   :  { %13518 = vadd.xlane.f32.xlu0 %v13517_v4 }
0x46bd   :  { %v13516_v16 = vpop.xlane.xlu0 %13515 }
0x46be   :  { %v13520_v5 = vmul.f32 0.03125, %v13516_v16 }
0x46c0   :  { %v13522_v27 = vsub.f32 %v13512_v57, %v13520_v5 }
0x46c1   :  { %v13519_v12 = vpop.xlane.xlu0 %13518 }
0x46c2   :  { %v13521_v6 = vmul.f32 0.03125, %v13519_v12  ;;  %v13524_v1 = vmul.f32 %v13522_v27, %v13522_v27 }
0x46c4   :  { %v13523_v42 = vsub.f32 %v13513_v34, %v13521_v6  ;;  %v13526_v3 = vsel %vm880_vm0, %v13524_v1, 0.0 }
0x46c5   :  { %13527 = vadd.xlane.f32.xlu0 %v13526_v3 }
0x46c6   :  { %v13525_v28 = vmul.f32 %v13523_v42, %v13523_v42 }
0x46c8   :  { %v13529_v11 = vsel %vm880_vm0, %v13525_v28, 0.0 }
0x46c9   :  { %13530 = vadd.xlane.f32.xlu0 %v13529_v11 }
0x4752   :  { %v13528_v36 = vpop.xlane.xlu0 %13527 }
0x4753   :  { %v13532_v32 = vmul.f32 0.03125, %v13528_v36 }
0x4755   :  { %v13534_v20 = vadd.f32 1e-05, %v13532_v32 }
0x4756   :  { %v13531_v47 = vpop.xlane.xlu0 %13530 }
0x4757   :  { %17737 = vrsqrt.f32 %v13534_v20  ;;  %v13533_v19 = vmul.f32 0.03125, %v13531_v47 }
0x4759   :  { %v13535_v63 = vadd.f32 1e-05, %v13533_v19 }
0x475b   :  { %17739 = vrsqrt.f32 %v13535_v63 }
0x4761   :  { %v17738_v0 = vpop.eup %17737 }
0x4762   :  { %v13538_v31 = vmul.f32 %v17738_v0, %v13522_v27 }
0x4764   :  { %v13547_v24 = vmul.f32 %v14615_v21, %v13538_v31 }
0x4765   :  { %v17740_v59 = vpop.eup %17739 }
0x4766   :  { %v13539_v51 = vmul.f32 %v17740_v59, %v13523_v42  ;;  %v20800_v25 = vadd.f32 %v14616_v23, %v13547_v24 }
0x4768   :  { %v13548_v26 = vmul.f32 %v14615_v21, %v13539_v51  ;;  %16427 = vmatprep.mubr.msk.f32.mxu1 %vm880_vm0, %v20800_v25 }
0x476a   :  { %v20804_v62 = vadd.f32 %v14616_v23, %v13548_v26 }
0x476c   :  { %16428 = vmatmul.mubr.msk.f32.vlgmr.msra.gmra.mrb[114].mxu1 %vm880_vm0, %v20804_v62 }
0x483f   :  { %v16429_v7 = vpop.f32.mrb[114].mxu1 }
0x4840   :  { %v13647_v2 = vadd.f32 %v16429_v7, %v14617_v48  ;;  %v13641_v17 = vpop.f32.mrb[115].mxu1 }
0x4841   :  { %v13642_v58 = vadd.f32 %v14617_v48, %v13641_v17 }
0x4842   :  { %v13651_v44 = vmul.f32 0.70710677, %v13647_v2  ;;  %v13699_v40 = vmul.f32 0.5, %v13647_v2 }
0x4843   :  { %v13650_v52 = vmul.f32 0.70710677, %v13642_v58  ;;  %v13698_v30 = vmul.f32 0.5, %v13642_v58 }
0x4844   :  { %v13653_v49 = vand.u32 2147483647, %v13651_v44  ;;  %vm13693_vm11 = vcmp.lt.f32.partialorder %v13651_v44, 0.0 }
0x4845   :  { %v13652_v53 = vand.u32 2147483647, %v13650_v52  ;;  %vm13692_vm12 = vcmp.lt.f32.partialorder %v13650_v52, 0.0 }
0x4846   :  { %v13655_v54 = vmul.f32 0.3275911, %v13653_v49  ;;  %v13681_v56 = vsub.f32 0.0, %v13653_v49 }
0x4847   :  { %v13654_v46 = vmul.f32 0.3275911, %v13652_v53  ;;  %v13680_v38 = vsub.f32 0.0, %v13652_v53 }
0x4848   :  { %v13657_v29 = vadd.f32 1.0, %v13655_v54  ;;  %v13683_v57 = vmul.f32 %v13681_v56, %v13653_v49 }
0x4849   :  { %v13656_v55 = vadd.f32 1.0, %v13654_v46  ;;  %v13682_v4 = vmul.f32 %v13680_v38, %v13652_v53 }
0x484a   :  { %17741 = vrcp.f32 %v13657_v29  ;;  %v13686_v27 = vmul.f32 1.442695, %v13683_v57 }
0x484b   :  { %17743 = vrcp.f32 %v13656_v55  ;;  %v13684_v1 = vmul.f32 1.442695, %v13682_v4  ;;  %v14624_v4 = vld [vmem:[#allocation31] ss:$0 sm:$0xff] }
0x484c   :  { %17745 = vpow2.f32 %v13686_v27 }
0x484d   :  { %17747 = vpow2.f32 %v13684_v1 }
0x4854   :  { %v17742_v10 = vpop.eup %17741 }
0x4855   :  { %v17744_v34 = vpop.eup %17743  ;;  %v13663_v61 = vmul.f32 1.0614054, %v17742_v10 }
0x4856   :  { %v13662_v16 = vmul.f32 1.0614054, %v17744_v34  ;;  %v17746_v20 = vpop.eup %17745 }
0x4857   :  { %v13665_v5 = vadd.f32 -1.4531521, %v13663_v61  ;;  %v17748_v19 = vpop.eup %17747 }
0x4858   :  { %v13664_v12 = vadd.f32 -1.4531521, %v13662_v16 }
0x4859   :  { %v13667_v6 = vmul.f32 %v17742_v10, %v13665_v5 }
0x485a   :  { %v13666_v42 = vmul.f32 %v17744_v34, %v13664_v12 }
0x485b   :  { %v13669_v3 = vadd.f32 1.4214138, %v13667_v6 }
0x485c   :  { %v13668_v28 = vadd.f32 1.4214138, %v13666_v42 }
0x485d   :  { %v13671_v11 = vmul.f32 %v17742_v10, %v13669_v3 }
0x485e   :  { %v13670_v22 = vmul.f32 %v17744_v34, %v13668_v28 }
0x485f   :  { %v13673_v50 = vadd.f32 -0.28449672, %v13671_v11 }
0x4860   :  { %v13672_v14 = vadd.f32 -0.28449672, %v13670_v22 }
0x4861   :  { %v13675_v13 = vmul.f32 %v17742_v10, %v13673_v50 }
0x4862   :  { %v13674_v18 = vmul.f32 %v17744_v34, %v13672_v14 }
0x4863   :  { %v13677_v15 = vadd.f32 0.2548296, %v13675_v13 }
0x4864   :  { %v13676_v36 = vadd.f32 0.2548296, %v13674_v18 }
0x4865   :  { %v13679_v32 = vmul.f32 %v17742_v10, %v13677_v15 }
0x4866   :  { %v13678_v47 = vmul.f32 %v17744_v34, %v13676_v36  ;;  %v14623_v34 = vld [vmem:[#allocation32] ss:$0 sm:$0xff] }
0x4867   :  { %v13689_v63 = vmul.f32 %v17746_v20, %v13679_v32 }
0x4868   :  { %v13688_v0 = vmul.f32 %v17748_v19, %v13678_v47 }
0x4869   :  { %v13691_v21 = vsub.f32 1.0, %v13689_v63 }
0x486a   :  { %v13690_v31 = vsub.f32 1.0, %v13688_v0 }
0x486b   :  { %v13695_v23 = vsub.f32 0.0, %v13691_v21 }
0x486c   :  { %v13694_v24 = vsub.f32 0.0, %v13690_v31 }
0x486d   :  { %v13697_v59 = vsel %vm13693_vm11, %v13695_v23, %v13691_v21 }
0x486e   :  { %v13701_v51 = vadd.f32 1.0, %v13697_v59  ;;  %v13696_v26 = vsel %vm13692_vm12, %v13694_v24, %v13690_v31 }
0x486f   :  { %v13700_v33 = vadd.f32 1.0, %v13696_v26 }
0x4870   :  { %v13703_v35 = vmul.f32 %v13701_v51, %v13699_v40 }
0x4871   :  { %v13702_v39 = vmul.f32 %v13700_v33, %v13698_v30 }
0x4873   :  { %16446 = vmatprep.mubr.msk.f32.mxu0 %vm2995_vm6, %v13702_v39 }
0x4874   :  { %16447 = vmatmul.mubr.msk.f32.vlgmr.msra.gmra.mrb[114].mxu0 %vm2995_vm6, %v13703_v35 }
0x4947   :  { %v16448_v41 = vpop.f32.mrb[114].mxu0 }
0x4948   :  { %v13791_v43 = vpop.f32.mrb[115].mxu0  ;;  %v13797_v8 = vadd.f32 %v16448_v41, %v14620_v9 }
0x4949   :  { %v13792_v45 = vadd.f32 %v14620_v9, %v13791_v43 }
0x494a   :  { %v13801_v60 = vadd.f32 %v13797_v8, %v20804_v62 }
0x494b   :  { %v13800_v37 = vadd.f32 %v13792_v45, %v20800_v25 }
0x494c   :  { %v13805_v7 = vsel %vm880_vm0, %v13801_v60, 0.0 }
0x494d   :  { %v13802_v48 = vsel %vm880_vm0, %v13800_v37, 0.0 }
0x494e   :  { %13803 = vadd.xlane.f32.xlu0 %v13802_v48 }
0x4952   :  { %13806 = vadd.xlane.f32.xlu0 %v13805_v7 }
0x49db   :  { %v13804_v2 = vpop.xlane.xlu0 %13803 }
0x49dc   :  { %v13808_v17 = vmul.f32 0.03125, %v13804_v2 }
0x49de   :  { %v13810_v58 = vsub.f32 %v13800_v37, %v13808_v17 }
0x49df   :  { %v13807_v44 = vpop.xlane.xlu0 %13806 }
0x49e0   :  { %v13809_v52 = vmul.f32 0.03125, %v13807_v44  ;;  %v13812_v49 = vmul.f32 %v13810_v58, %v13810_v58 }
0x49e2   :  { %v13811_v53 = vsub.f32 %v13801_v60, %v13809_v52  ;;  %v13814_v54 = vsel %vm880_vm0, %v13812_v49, 0.0 }
0x49e3   :  { %13815 = vadd.xlane.f32.xlu0 %v13814_v54 }
0x49e4   :  { %v13813_v46 = vmul.f32 %v13811_v53, %v13811_v53 }
0x49e6   :  { %v13817_v25 = vsel %vm880_vm0, %v13813_v46, 0.0 }
0x49e7   :  { %13818 = vadd.xlane.f32.xlu0 %v13817_v25 }
0x4a70   :  { %v13816_v62 = vpop.xlane.xlu0 %13815 }
0x4a71   :  { %v13820_v29 = vmul.f32 0.03125, %v13816_v62 }
0x4a73   :  { %v13822_v55 = vadd.f32 1e-05, %v13820_v29 }
0x4a74   :  { %v13819_v56 = vpop.xlane.xlu0 %13818 }
0x4a75   :  { %17749 = vrsqrt.f32 %v13822_v55  ;;  %v13821_v38 = vmul.f32 0.03125, %v13819_v56 }
0x4a77   :  { %v13823_v10 = vadd.f32 1e-05, %v13821_v38 }
0x4a79   :  { %17751 = vrsqrt.f32 %v13823_v10 }
0x4a7f   :  { %v17750_v57 = vpop.eup %17749 }
0x4a80   :  { %v13826_v61 = vmul.f32 %v17750_v57, %v13810_v58 }
0x4a82   :  { %v13835_v16 = vmul.f32 %v14623_v34, %v13826_v61 }
0x4a83   :  { %v17752_v5 = vpop.eup %17751 }
0x4a84   :  { %v13844_v27 = vadd.f32 %v14624_v4, %v13835_v16  ;;  %v13827_v12 = vmul.f32 %v17752_v5, %v13811_v53 }
0x4a86   :  { %v13846_v6 = vsel %vm880_vm0, %v13844_v27, 0.0  ;;  %v13836_v1 = vmul.f32 %v14623_v34, %v13827_v12 }
0x4a87   :  { %13847 = vadd.xlane.f32.xlu0 %v13846_v6 }
0x4a88   :  { %v13845_v42 = vadd.f32 %v14624_v4, %v13836_v1 }
0x4a8a   :  { %v13849_v3 = vsel %vm880_vm0, %v13845_v42, 0.0 }
0x4a8b   :  { %13850 = vadd.xlane.f32.xlu1 %v13849_v3 }
0x4b14   :  { %v13848_v28 = vpop.xlane.xlu0 %13847 }
0x4b15   :  { %v13852_v11 = vmul.f32 0.03125, %v13848_v28 }
0x4b17   :  { %v13854_v22 = vsub.f32 %v13844_v27, %v13852_v11 }
0x4b18   :  { %v13851_v50 = vpop.xlane.xlu1 %13850 }
0x4b19   :  { %v13853_v14 = vmul.f32 0.03125, %v13851_v50  ;;  %v13856_v13 = vmul.f32 %v13854_v22, %v13854_v22 }
0x4b1b   :  { %v13855_v18 = vsub.f32 %v13845_v42, %v13853_v14  ;;  %v13858_v15 = vsel %vm880_vm0, %v13856_v13, 0.0 }
0x4b1c   :  { %13859 = vadd.xlane.f32.xlu0 %v13858_v15 }
0x4b1d   :  { %v13857_v36 = vmul.f32 %v13855_v18, %v13855_v18 }
0x4b1f   :  { %v13861_v32 = vsel %vm880_vm0, %v13857_v36, 0.0 }
0x4b20   :  { %13862 = vadd.xlane.f32.xlu1 %v13861_v32 }
0x4b21   :  { %18700 = shalt.err (!%p18697_p4)
}
0x4b22   :  { %s18701_s29 = scalar_lea.hbm %s19396_s12, 256 }
0x4b23   :  { %p18702_p5 = scmp.ne.s32.totalorder %s19396_s12, %s18701_s29  ;;  %p18705_p6 = scmp.lt.u32.totalorder %s18701_s29, %s19396_s12 }
0x4b25   :  { %p18707_p7 = pnand %p18705_p6, %p18702_p5 }
0x4b27   :  { %18710 = shalt.err (!%p18707_p7)
}
0x4b28   :  { %s18920_s5 = smov 128   ;;  %s18921_s13 = smov 8   ;;  %v14625_v23 = vld [vmem:[#allocation38] ss:$0 sm:$0xff]  ;;  %v14626_v59 = vld [vmem:[#allocation37] ss:$0 sm:$0xff] }
0x4b29   :  { %13915 = dma.vmem_to_hbm [thread:$0]  %s13910_s26, 256, %s19396_s12, [#allocation69], %s18920_s5, %s18920_s5, %s18921_s13  }
0x4b2a   :  { %s18922_s30 = smov [#allocation67]  }
0x4b2b   :  { %s13897_s14 = sshll.u32 %s18922_s30, 4  ;;  %s13898_s14 = int_to_ptr.vmem [resolvable:$true] %s13897_s14 }
0x4b2c   :  { %s18711_s12 = scalar_lea.vmem %s13898_s14, 256  ;;  %p18716_p9 = scmp.lt.s32.totalorder %s13898_s14, %s13898_s14 }
0x4b2d   :  { %p18712_p8 = scmp.ne.s32.totalorder %s13898_s14, %s18711_s12  ;;  %p18717_p10 = scmp.lt.s32.totalorder %s18711_s12, %s18711_s12 }
0x4b2f   :  { %p18718_p11 = por %p18717_p10, %p18716_p9 }
0x4b31   :  { %p18719_p12 = pnand %p18718_p11, %p18712_p8 }
0x4ba9   :  { %v13860_v20 = vpop.xlane.xlu0 %13859 }
0x4baa   :  { %v13864_v47 = vmul.f32 0.03125, %v13860_v20 }
0x4bac   :  { %v13866_v19 = vadd.f32 1e-05, %v13864_v47 }
0x4bad   :  { %v13863_v63 = vpop.xlane.xlu1 %13862 }
0x4bae   :  { %17753 = vrsqrt.f32 %v13866_v19  ;;  %v13865_v0 = vmul.f32 0.03125, %v13863_v63 }
0x4bb0   :  { %v13867_v21 = vadd.f32 1e-05, %v13865_v0 }
0x4bb2   :  { %17755 = vrsqrt.f32 %v13867_v21 }
0x4bb8   :  { %v17754_v31 = vpop.eup %17753 }
0x4bb9   :  { %v13870_v24 = vmul.f32 %v17754_v31, %v13854_v22 }
0x4bbb   :  { %v13879_v51 = vmul.f32 %v14625_v23, %v13870_v24 }
0x4bbc   :  { %v17756_v26 = vpop.eup %17755 }
0x4bbd   :  { %v13871_v30 = vmul.f32 %v17756_v26, %v13855_v18  ;;  %v13888_v33 = vadd.f32 %v14626_v59, %v13879_v51 }
0x4bbf   :  { %v13880_v40 = vmul.f32 %v14625_v23, %v13871_v30  ;;  %13890 = vst.msk [vmem:[#allocation67] sm:$0xff] %vm880_vm0, %v13888_v33 }
0x4bc1   :  { %v13889_v39 = vadd.f32 %v14626_v59, %v13880_v40 }
0x4bc3   :  { %13891 = vst.msk [vmem:[#allocation67 + $0x8] sm:$0xff] %vm880_vm0, %v13889_v39 }
0x4bc4   :  { %18722 = shalt.err (!%p18719_p12)
}
0x4bc5   :  { %s18723_s6 = scalar_lea.hbm %s19391_s17, 256 }
0x4bc6   :  { %p18724_p13 = scmp.ne.s32.totalorder %s19391_s17, %s18723_s6  ;;  %p18727_p0 = scmp.lt.u32.totalorder %s18723_s6, %s19391_s17 }
0x4bc8   :  { %p18729_p1 = pnand %p18727_p0, %p18724_p13 }
0x4bca   :  { %18732 = shalt.err (!%p18729_p1)
}
0x4bcb   :  { %13903 = dma.vmem_to_hbm [thread:$0]  %s13898_s14, 256, %s19391_s17, [#allocation4], %s18920_s5, %s18920_s5, %s18921_s13  }
0x4bcc   :  { %18777 = dma.done.wait [#allocation4], 256  }
0x4bcd   :  { %18778 = vsyncadd [#allocation4], 4294967040 }
0x4bce   :  { %18779 = dma.done.wait [#allocation69], 256  }
0x4bcf   :  { %18780 = vsyncadd [#allocation69], 4294967040 }
0x4bd0   :  { %13922 = vsyncpa [#allocation3], 1 }
0x4bd1   :  { %13923 = vsyncpa [#allocation6], 1 }
0x4bd2   :  { %13924 = vsyncpa [#allocation9], 1 }
0x4bd3   :  { %13925 = vsyncpa [#allocation12], 1 }
0x4bd4   :  { %13926 = vsyncpa [#allocation15], 1 }
0x4bd5   :  { %13927 = vsyncpa [#allocation18], 1 }
0x4bd6   :  { %13928 = vsyncpa [#allocation21], 1 }
0x4bd7   :  { %13929 = vsyncpa [#allocation24], 1 }
0x4bd8   :  { %13930 = vsyncpa [#allocation27], 1 }
0x4bd9   :  { %13931 = vsyncpa [#allocation30], 1 }
0x4bda   :  { %13932 = vsyncpa [#allocation33], 1 }
0x4bdb   :  { %13933 = vsyncpa [#allocation36], 1 }
0x4bdc   :  { %13934 = vsyncpa [#allocation39], 1 }
0x4bdd   :  { %13935 = vsyncpa [#allocation42], 1 }
0x4bde   :  { %13936 = vsyncpa [#allocation45], 1 }
0x4bdf   :  { %13937 = vsyncpa [#allocation48], 1 }
0x4be0   :  { %13938 = vsyncpa [#allocation51], 1 }
0x4be1   :  { %13939 = vsyncpa [#allocation54], 1 }
0x4be2   :  { %13940 = vsyncpa [#allocation57], 1 }
0x4be3   :  { %13941 = vsyncpa [#allocation60], 1 }
0x4be4   :  { %13942 = vsyncpa [#allocation63], 1 }
0x4be5   :  { %13943 = vsyncpa [#allocation66], 1 }
0x4be6   :  { %13944 = vsyncpa [#allocation4], 1 }
0x4be7   :  { %13945 = vsyncpa [#allocation69], 1 }

</bundles_post_ra>
